<compile_context>
chip_gen: v6e
topology: v6e:2x2x1
jax: 0.10.0
libtpu: 0.0.40
codegen_flags: <defaults>
</compile_context>

<pallas_src>
import functools

import jax
import jax.numpy as jnp
from jax import lax
from jax.experimental import pallas as pl
from jax.experimental.pallas import tpu as pltpu

LANE = 128
SUBLANE = 8
H1 = 400            # obs_net hidden width
H2 = 300            # out_net hidden width
TB_MAX = 256        # batch-tile cap (256-wide MXU on v6e/v7x; harmless on v5e)
OUT_P = LANE        # lane-dense padded output width (Q lives in column 0)


def _round_up(n, m):
    return ((n + m - 1) // m) * m


def _pad2(arr, rows, cols):
    r, c = arr.shape
    return jnp.pad(arr, ((0, rows - r), (0, cols - c)))


# ----------------------------------------------------------------------------
# Parameter packing (one-time, outside the per-call path)
# ----------------------------------------------------------------------------
def init_params(key, obs_size, act_size):
    """nn.Linear default init: U(-1/sqrt(fan_in), +1/sqrt(fan_in))."""
    ks = jax.random.split(key, 6)

    def linear(kw, kb, fan_in, fan_out):
        bound = 1.0 / jnp.sqrt(fan_in)
        w = jax.random.uniform(kw, (fan_in, fan_out), jnp.float32, -bound, bound)
        b = jax.random.uniform(kb, (1, fan_out), jnp.float32, -bound, bound)
        return w, b

    w1, b1 = linear(ks[0], ks[1], obs_size, H1)
    w2, b2 = linear(ks[2], ks[3], H1 + act_size, H2)
    w3, b3 = linear(ks[4], ks[5], H2, 1)
    return {"w1": w1, "b1": b1, "w2": w2, "b2": b2, "w3": w3, "b3": b3}


def pack_params(params, compute_dtype=jnp.float32):
    """Pad output dims to lane multiples, split W2 at the concat boundary and
    cast weights to the MXU input dtype.  Call once and reuse."""
    h1_p = _round_up(H1, LANE)                    # 512
    h2_p = _round_up(H2, LANE)                    # 384
    w1 = params["w1"]
    w2 = params["w2"]
    obs_size = w1.shape[0]
    act_size = w2.shape[0] - H1
    return {
        # K (input-feature) dims are kept UNPADDED so activations need no
        # lane padding; only the output (lane) dims are padded with zeros,
        # which stays exact through bias-add and ReLU.
        "w1":  _pad2(w1, obs_size, h1_p).astype(compute_dtype),        # (obs, 512)
        "b1":  _pad2(params["b1"], 1, h1_p),                           # (1, 512) fp32
        "w2o": _pad2(w2[:H1, :], h1_p, h2_p).astype(compute_dtype),    # (512, 384)
        "w2a": _pad2(w2[H1:, :], act_size, h2_p).astype(compute_dtype),# (act, 384)
        "b2":  _pad2(params["b2"], 1, h2_p),                           # (1, 384) fp32
        "w3":  _pad2(params["w3"], h2_p, OUT_P).astype(compute_dtype), # (384, 128)
        "b3":  _pad2(params["b3"], 1, OUT_P),                          # (1, 128) fp32
    }


# ----------------------------------------------------------------------------
# Kernel
# ----------------------------------------------------------------------------
def _critic_kernel(x_ref, a_ref, w1_ref, b1_ref, w2o_ref, w2a_ref, b2_ref,
                   w3_ref, b3_ref, o_ref, *, compute_dtype, precision):
    x = x_ref[...].astype(compute_dtype)
    a = a_ref[...].astype(compute_dtype)

    # obs_net: Linear(obs -> 400) + ReLU   (output padded to 512 lanes)
    obs = jnp.dot(x, w1_ref[...], preferred_element_type=jnp.float32,
                  precision=precision)
    obs = jnp.maximum(obs + b1_ref[...], 0.0)

    # out_net layer 1: Linear(400+act -> 300) + ReLU; the concat is expressed
    # as a split matmul:  [obs, a] @ W2 == obs @ W2[:400] + a @ W2[400:]
    h2 = jnp.dot(obs.astype(compute_dtype), w2o_ref[...],
                 preferred_element_type=jnp.float32, precision=precision)
    h2 = h2 + jnp.dot(a, w2a_ref[...],
                      preferred_element_type=jnp.float32, precision=precision)
    h2 = jnp.maximum(h2 + b2_ref[...], 0.0)

    # out_net layer 2: Linear(300 -> 1)  (padded to 128 lanes; cols 1.. are 0)
    q = jnp.dot(h2.astype(compute_dtype), w3_ref[...],
                preferred_element_type=jnp.float32, precision=precision)
    o_ref[...] = q + b3_ref[...]


# ----------------------------------------------------------------------------
# Wrapper
# ----------------------------------------------------------------------------
def ddpg_critic_forward(x, a, packed, compute_dtype=jnp.float32):
    """Fused DDPG critic forward.

    x: (B, obs_size) float32
    a: (B, act_size) float32
    packed: output of pack_params()
    returns: (B, 1) float32 Q-values
    """
    B, obs_size = x.shape
    act_size = a.shape[1]
    h1_p = packed["w1"].shape[1]    # 512
    h2_p = packed["w2o"].shape[1]   # 384

    # Batch tile: one big tile for small/medium B, 256-row tiles for large B
    # (keeps >=2 grid steps whenever B > 256 -> dual-TC sharding on v7x).
    tb = min(_round_up(B, SUBLANE), TB_MAX)
    b_p = _round_up(B, tb)

    # Only the batch (sublane) axis is padded; feature (lane) axes keep their
    # true sizes since full-dim blocks bypass the (8,128) rule.
    if b_p != B:
        x = jnp.pad(x, ((0, b_p - B), (0, 0)))
        a = jnp.pad(a, ((0, b_p - B), (0, 0)))

    resident = lambda shape: pl.BlockSpec(shape, lambda i: (0, 0))

    # fp32 path: HIGHEST precision for parity with PyTorch fp32.
    prec = lax.Precision.HIGHEST if compute_dtype == jnp.float32 else None

    kernel = functools.partial(_critic_kernel,
                               compute_dtype=compute_dtype,
                               precision=prec)

    out = pl.pallas_call(
        kernel,
        out_shape=jax.ShapeDtypeStruct((b_p, OUT_P), jnp.float32),
        grid=(b_p // tb,),
        in_specs=[
            pl.BlockSpec((tb, obs_size), lambda i: (i, 0)),   # x tile (unpadded lanes)
            pl.BlockSpec((tb, act_size), lambda i: (i, 0)),   # a tile (unpadded lanes)
            resident((obs_size, h1_p)),                       # w1
            resident((1, h1_p)),                              # b1
            resident((h1_p, h2_p)),                           # w2 (obs part)
            resident((act_size, h2_p)),                       # w2 (act part)
            resident((1, h2_p)),                              # b2
            resident((h2_p, OUT_P)),                          # w3
            resident((1, OUT_P)),                             # b3
        ],
        out_specs=pl.BlockSpec((tb, OUT_P), lambda i: (i, 0)),
        compiler_params=pltpu.CompilerParams(
            dimension_semantics=("parallel",)),
    )(x, a, packed["w1"], packed["b1"], packed["w2o"], packed["w2a"],
      packed["b2"], packed["w3"], packed["b3"])

    # Padded batch rows / padded Q lanes are discarded here.
    return out[:B, :1]


# ----------------------------------------------------------------------------
# Reference + self-test
# ----------------------------------------------------------------------------
def _ref_forward(x, a, p):
    obs = jnp.maximum(x @ p["w1"] + p["b1"], 0.0)
    h = jnp.concatenate([obs, a], axis=1)
    h2 = jnp.maximum(h @ p["w2"] + p["b2"], 0.0)
    return h2 @ p["w3"] + p["b3"]


if __name__ == "__main__":
    key = jax.random.PRNGKey(0)
    k_x, k_a, k_p, k_x2, k_a2 = jax.random.split(key, 5)

    obs_size, act_size = 16, 8
    params = init_params(k_p, obs_size, act_size)

    # --- small batch, fp32 MXU path (parity with PyTorch fp32) -------------
    batch = 2
    x = jax.random.normal(k_x, (batch, obs_size), jnp.float32)
    a = jax.random.normal(k_a, (batch, act_size), jnp.float32)
    ref = _ref_forward(x, a, params)

    packed32 = pack_params(params, jnp.float32)
    out = jax.block_until_ready(ddpg_critic_forward(x, a, packed32, jnp.float32))
    assert out.shape == (batch, 1)
    assert jnp.allclose(out, ref, atol=1e-4, rtol=1e-4), (out, ref)

    # --- small batch, bf16-in / fp32-acc MXU path (full-rate MXU) ----------
    packed16 = pack_params(params, jnp.bfloat16)
    out16 = jax.block_until_ready(ddpg_critic_forward(x, a, packed16, jnp.bfloat16))
    assert out16.shape == (batch, 1)
    assert jnp.allclose(out16, ref, atol=5e-2, rtol=5e-2), (out16, ref)

    # --- mid-size batch: exercises tb=256 tiles, grid>1 and batch-row pad ---
    batch2 = 300
    x2 = jax.random.normal(k_x2, (batch2, obs_size), jnp.float32)
    a2 = jax.random.normal(k_a2, (batch2, act_size), jnp.float32)
    ref2 = _ref_forward(x2, a2, params)
    out2 = jax.block_until_ready(ddpg_critic_forward(x2, a2, packed32, jnp.float32))
    assert out2.shape == (batch2, 1)
    assert jnp.allclose(out2, ref2, atol=1e-4, rtol=1e-4)

    print("KERNEL_OK")
</pallas_src>

<mosaic_0001>
module attributes {stable_mosaic.version = 11 : i64} {
  func.func @_critic_kernel(%arg0: i32, %arg1: memref<8x16xf32, #tpu.memory_space<vmem>>, %arg2: memref<8x8xf32, #tpu.memory_space<vmem>>, %arg3: memref<16x512xf32, #tpu.memory_space<vmem>>, %arg4: memref<1x512xf32, #tpu.memory_space<vmem>>, %arg5: memref<512x384xf32, #tpu.memory_space<vmem>>, %arg6: memref<8x384xf32, #tpu.memory_space<vmem>>, %arg7: memref<1x384xf32, #tpu.memory_space<vmem>>, %arg8: memref<384x128xf32, #tpu.memory_space<vmem>>, %arg9: memref<1x128xf32, #tpu.memory_space<vmem>>, %arg10: memref<8x128xf32, #tpu.memory_space<vmem>>) attributes {dimension_semantics = [#tpu.dimension_semantics<parallel>], iteration_bounds = array<i64: 1>, scalar_prefetch = 0 : i64, scratch_operands = 0 : i64, tpu.core_type = #tpu.core_type<tc>, window_params = [{transform_indices = @transform_0, window_bounds = array<i64: 8, 16>}, {transform_indices = @transform_1, window_bounds = array<i64: 8, 8>}, {pipeline_mode = #tpu.pipeline_mode<synchronous>, transform_indices = @transform_2, window_bounds = array<i64: 16, 512>}, {pipeline_mode = #tpu.pipeline_mode<synchronous>, transform_indices = @transform_3, window_bounds = array<i64: 1, 512>}, {pipeline_mode = #tpu.pipeline_mode<synchronous>, transform_indices = @transform_4, window_bounds = array<i64: 512, 384>}, {pipeline_mode = #tpu.pipeline_mode<synchronous>, transform_indices = @transform_5, window_bounds = array<i64: 8, 384>}, {pipeline_mode = #tpu.pipeline_mode<synchronous>, transform_indices = @transform_6, window_bounds = array<i64: 1, 384>}, {pipeline_mode = #tpu.pipeline_mode<synchronous>, transform_indices = @transform_7, window_bounds = array<i64: 384, 128>}, {pipeline_mode = #tpu.pipeline_mode<synchronous>, transform_indices = @transform_8, window_bounds = array<i64: 1, 128>}, {transform_indices = @transform_9, window_bounds = array<i64: 8, 128>}]} {
    %c0 = arith.constant 0 : index
    %c0_0 = arith.constant 0 : index
    %0 = vector.load %arg1[%c0, %c0_0] : memref<8x16xf32, #tpu.memory_space<vmem>>, vector<8x16xf32>
    %c0_1 = arith.constant 0 : index
    %c0_2 = arith.constant 0 : index
    %1 = vector.load %arg2[%c0_1, %c0_2] : memref<8x8xf32, #tpu.memory_space<vmem>>, vector<8x8xf32>
    %c0_3 = arith.constant 0 : index
    %c0_4 = arith.constant 0 : index
    %2 = vector.load %arg3[%c0_3, %c0_4] : memref<16x512xf32, #tpu.memory_space<vmem>>, vector<16x512xf32>
    %cst = arith.constant dense<0.000000e+00> : vector<8x512xf32>
    %3 = tpu.matmul %0, %2, %cst {dimension_numbers = #tpu.dot_dimension_numbers<[1], [0], [0], [1], [0, 0, 1, 1], [], []>, precision = #tpu.contract_precision<fp32>} : vector<8x16xf32>, vector<16x512xf32>, vector<8x512xf32> -> vector<8x512xf32>
    %c0_5 = arith.constant 0 : index
    %c0_6 = arith.constant 0 : index
    %4 = vector.load %arg4[%c0_5, %c0_6] : memref<1x512xf32, #tpu.memory_space<vmem>>, vector<1x512xf32>
    %5 = vector.broadcast %4 : vector<1x512xf32> to vector<8x512xf32>
    %6 = arith.addf %3, %5 : vector<8x512xf32>
    %cst_7 = arith.constant 0.000000e+00 : f32
    %7 = vector.broadcast %cst_7 : f32 to vector<8x512xf32>
    %8 = arith.maximumf %6, %7 : vector<8x512xf32>
    %c0_8 = arith.constant 0 : index
    %c0_9 = arith.constant 0 : index
    %9 = vector.load %arg5[%c0_8, %c0_9] : memref<512x384xf32, #tpu.memory_space<vmem>>, vector<512x384xf32>
    %cst_10 = arith.constant dense<0.000000e+00> : vector<8x384xf32>
    %10 = tpu.matmul %8, %9, %cst_10 {dimension_numbers = #tpu.dot_dimension_numbers<[1], [0], [0], [1], [0, 0, 1, 1], [], []>, precision = #tpu.contract_precision<fp32>} : vector<8x512xf32>, vector<512x384xf32>, vector<8x384xf32> -> vector<8x384xf32>
    %c0_11 = arith.constant 0 : index
    %c0_12 = arith.constant 0 : index
    %11 = vector.load %arg6[%c0_11, %c0_12] : memref<8x384xf32, #tpu.memory_space<vmem>>, vector<8x384xf32>
    %cst_13 = arith.constant dense<0.000000e+00> : vector<8x384xf32>
    %12 = tpu.matmul %1, %11, %cst_13 {dimension_numbers = #tpu.dot_dimension_numbers<[1], [0], [0], [1], [0, 0, 1, 1], [], []>, precision = #tpu.contract_precision<fp32>} : vector<8x8xf32>, vector<8x384xf32>, vector<8x384xf32> -> vector<8x384xf32>
    %13 = arith.addf %10, %12 : vector<8x384xf32>
    %c0_14 = arith.constant 0 : index
    %c0_15 = arith.constant 0 : index
    %14 = vector.load %arg7[%c0_14, %c0_15] : memref<1x384xf32, #tpu.memory_space<vmem>>, vector<1x384xf32>
    %15 = vector.broadcast %14 : vector<1x384xf32> to vector<8x384xf32>
    %16 = arith.addf %13, %15 : vector<8x384xf32>
    %cst_16 = arith.constant 0.000000e+00 : f32
    %17 = vector.broadcast %cst_16 : f32 to vector<8x384xf32>
    %18 = arith.maximumf %16, %17 : vector<8x384xf32>
    %c0_17 = arith.constant 0 : index
    %c0_18 = arith.constant 0 : index
    %19 = vector.load %arg8[%c0_17, %c0_18] : memref<384x128xf32, #tpu.memory_space<vmem>>, vector<384x128xf32>
    %cst_19 = arith.constant dense<0.000000e+00> : vector<8x128xf32>
    %20 = tpu.matmul %18, %19, %cst_19 {dimension_numbers = #tpu.dot_dimension_numbers<[1], [0], [0], [1], [0, 0, 1, 1], [], []>, precision = #tpu.contract_precision<fp32>} : vector<8x384xf32>, vector<384x128xf32>, vector<8x128xf32> -> vector<8x128xf32>
    %c0_20 = arith.constant 0 : index
    %c0_21 = arith.constant 0 : index
    %21 = vector.load %arg9[%c0_20, %c0_21] : memref<1x128xf32, #tpu.memory_space<vmem>>, vector<1x128xf32>
    %22 = vector.broadcast %21 : vector<1x128xf32> to vector<8x128xf32>
    %23 = arith.addf %20, %22 : vector<8x128xf32>
    %c0_22 = arith.constant 0 : index
    %c0_23 = arith.constant 0 : index
    %24 = vector.load %arg10[%c0_22, %c0_23] : memref<8x128xf32, #tpu.memory_space<vmem>>, vector<8x128xf32>
    tpu.vector_store %arg10[%c0_22, %c0_23], %23 {strides = array<i32>} : memref<8x128xf32, #tpu.memory_space<vmem>>, vector<8x128xf32>,
    return
  }
  func.func @transform_0(%arg0: i32) -> (i32, i32) {
    %c0_i32 = arith.constant 0 : i32
    %c0_i32_0 = arith.constant 0 : i32
    return %arg0, %c0_i32 : i32, i32
  }
  func.func @transform_1(%arg0: i32) -> (i32, i32) {
    %c0_i32 = arith.constant 0 : i32
    %c0_i32_0 = arith.constant 0 : i32
    return %arg0, %c0_i32 : i32, i32
  }
  func.func @transform_2(%arg0: i32) -> (i32, i32) {
    %c0_i32 = arith.constant 0 : i32
    %c0_i32_0 = arith.constant 0 : i32
    %c0_i32_1 = arith.constant 0 : i32
    return %c0_i32, %c0_i32_0 : i32, i32
  }
  func.func @transform_3(%arg0: i32) -> (i32, i32) {
    %c0_i32 = arith.constant 0 : i32
    %c0_i32_0 = arith.constant 0 : i32
    %c0_i32_1 = arith.constant 0 : i32
    return %c0_i32, %c0_i32_0 : i32, i32
  }
  func.func @transform_4(%arg0: i32) -> (i32, i32) {
    %c0_i32 = arith.constant 0 : i32
    %c0_i32_0 = arith.constant 0 : i32
    %c0_i32_1 = arith.constant 0 : i32
    return %c0_i32, %c0_i32_0 : i32, i32
  }
  func.func @transform_5(%arg0: i32) -> (i32, i32) {
    %c0_i32 = arith.constant 0 : i32
    %c0_i32_0 = arith.constant 0 : i32
    %c0_i32_1 = arith.constant 0 : i32
    return %c0_i32, %c0_i32_0 : i32, i32
  }
  func.func @transform_6(%arg0: i32) -> (i32, i32) {
    %c0_i32 = arith.constant 0 : i32
    %c0_i32_0 = arith.constant 0 : i32
    %c0_i32_1 = arith.constant 0 : i32
    return %c0_i32, %c0_i32_0 : i32, i32
  }
  func.func @transform_7(%arg0: i32) -> (i32, i32) {
    %c0_i32 = arith.constant 0 : i32
    %c0_i32_0 = arith.constant 0 : i32
    %c0_i32_1 = arith.constant 0 : i32
    return %c0_i32, %c0_i32_0 : i32, i32
  }
  func.func @transform_8(%arg0: i32) -> (i32, i32) {
    %c0_i32 = arith.constant 0 : i32
    %c0_i32_0 = arith.constant 0 : i32
    %c0_i32_1 = arith.constant 0 : i32
    return %c0_i32, %c0_i32_0 : i32, i32
  }
  func.func @transform_9(%arg0: i32) -> (i32, i32) {
    %c0_i32 = arith.constant 0 : i32
    %c0_i32_0 = arith.constant 0 : i32
    return %arg0, %c0_i32 : i32, i32
  }
}

</mosaic_0001>

<bundles_post_ra>
// kernel: tpu_custom_call.1
= control target key start
LH: loop header
LB: loop body
LE: loop exit
PB: predicated region body
PF: predicated region fallthrough
CT: control target
= control target key end

     0   :  { %14 = vsyncpa [#allocation3], 0  ;;  %s14093_s0 = inlined_call_operand.hbm [shape: f32[8,16], index: 0, kind: input, shape index: {}]   ;;  %s14094_s1 = inlined_call_operand.hbm [shape: f32[8,8], index: 1, kind: input, shape index: {}]   ;;  %s14095_s2 = inlined_call_operand.hbm [shape: f32[16,512], index: 2, kind: input, shape index: {}]   ;;  %s14096_s3 = inlined_call_operand.vmem [shape: f32[1,512], index: 3, kind: input, shape index: {}]   ;;  %s14097_s4 = inlined_call_operand.hbm [shape: f32[512,384], index: 4, kind: input, shape index: {}]   ;;  %s14098_s5 = inlined_call_operand.hbm [shape: f32[8,384], index: 5, kind: input, shape index: {}]   ;;  %s14099_s6 = inlined_call_operand.vmem [shape: f32[1,384], index: 6, kind: input, shape index: {}]   ;;  %s14100_s7 = inlined_call_operand.hbm [shape: f32[384,128], index: 7, kind: input, shape index: {}]   ;;  %s14101_s8 = inlined_call_operand.vmem [shape: f32[1,128], index: 8, kind: input, shape index: {}]   ;;  %s14102_s9 = inlined_call_operand.hbm [shape: f32[8,128], index: 9, kind: output, shape index: {}]  }
   0x1   :  { %15 = vsyncpa [#allocation6], 0 }
   0x2   :  { %16 = vsyncpa [#allocation9], 0 }
   0x3   :  { %17 = vsyncpa [#allocation12], 0 }
   0x4   :  { %18 = vsyncpa [#allocation4], 0  ;;  %s9284_s30 = smov [#allocation5]   ;;  %s9285_s11 = smov [#allocation8]  }
   0x5   :  { %s35_s10 = sshll.u32 %s9284_s30, 4  ;;  %s58_s12 = sshll.u32 %s9285_s11, 4  ;;  %s36_s10 = int_to_ptr.vmem [resolvable:$true] %s35_s10  ;;  %s59_s12 = int_to_ptr.vmem [resolvable:$true] %s58_s12 }
   0x6   :  { %s9142_s13 = scalar_lea.vmem %s36_s10, 128  ;;  %p9147_p1 = scmp.lt.s32.totalorder %s36_s10, %s36_s10 }
   0x7   :  { %p9143_p0 = scmp.ne.s32.totalorder %s36_s10, %s9142_s13  ;;  %p9148_p2 = scmp.lt.s32.totalorder %s9142_s13, %s9142_s13 }
   0x9   :  { %p9149_p3 = por %p9148_p2, %p9147_p1 }
   0xb   :  { %p9150_p4 = pnand %p9149_p3, %p9143_p0 }
   0xd   :  { %9153 = shalt.err (!%p9150_p4)
}
   0xe   :  { %38 = dma.hbm_to_vmem [thread:$0]  %s14094_s1, 128, %s36_s10, [#allocation6]  }
   0xf   :  { %s9162_s16 = scalar_lea.vmem %s59_s12, 24576  ;;  %p9167_p6 = scmp.lt.s32.totalorder %s59_s12, %s59_s12 }
  0x10   :  { %p9163_p5 = scmp.ne.s32.totalorder %s59_s12, %s9162_s16  ;;  %p9168_p7 = scmp.lt.s32.totalorder %s9162_s16, %s9162_s16 }
  0x12   :  { %p9169_p8 = por %p9168_p7, %p9167_p6 }
  0x14   :  { %p9170_p9 = pnand %p9169_p8, %p9163_p5 }
  0x16   :  { %9173 = shalt.err (!%p9170_p9)
}
  0x17   :  { %s9286_s17 = smov 384   ;;  %s9287_s18 = smov 24  }
  0x18   :  { %64 = dma.hbm_to_vmem [thread:$0]  %s14097_s4, 24576, %s59_s12, [#allocation9], %s9286_s17, %s9286_s17, %s9287_s18  }
  0x19   :  { %s9288_s21 = smov [#allocation2]   ;;  %s9289_s23 = smov [#allocation7]  }
  0x1a   :  { %s25_s22 = sshll.u32 %s9288_s21, 4  ;;  %s44_s24 = sshll.u32 %s9289_s23, 4  ;;  %s26_s22 = int_to_ptr.vmem [resolvable:$true] %s25_s22  ;;  %s45_s24 = int_to_ptr.vmem [resolvable:$true] %s44_s24 }
  0x1b   :  { %s9182_s1 = scalar_lea.vmem %s26_s22, 128  ;;  %p9187_p11 = scmp.lt.s32.totalorder %s26_s22, %s26_s22 }
  0x1c   :  { %p9183_p10 = scmp.ne.s32.totalorder %s26_s22, %s9182_s1  ;;  %p9188_p12 = scmp.lt.s32.totalorder %s9182_s1, %s9182_s1 }
  0x1e   :  { %p9189_p13 = por %p9188_p12, %p9187_p11 }
  0x20   :  { %p9190_p0 = pnand %p9189_p13, %p9183_p10 }
  0x22   :  { %9193 = shalt.err (!%p9190_p0)
}
  0x23   :  { %28 = dma.hbm_to_vmem [thread:$0]  %s14093_s0, 128, %s26_s22, [#allocation3]  }
  0x24   :  { %s9202_s27 = scalar_lea.vmem %s45_s24, 1024  ;;  %p9207_p2 = scmp.lt.s32.totalorder %s45_s24, %s45_s24 }
  0x25   :  { %p9203_p1 = scmp.ne.s32.totalorder %s45_s24, %s9202_s27  ;;  %p9208_p3 = scmp.lt.s32.totalorder %s9202_s27, %s9202_s27 }
  0x27   :  { %p9209_p4 = por %p9208_p3, %p9207_p2 }
  0x29   :  { %p9210_p5 = pnand %p9209_p4, %p9203_p1 }
  0x2b   :  { %9213 = shalt.err (!%p9210_p5)
}
  0x2c   :  { %s9290_s4 = smov 512   ;;  %s9291_s28 = smov 32  }
  0x2d   :  { %50 = dma.hbm_to_vmem [thread:$0]  %s14095_s2, 1024, %s45_s24, [#allocation6], %s9290_s4, %s9290_s4, %s9291_s28  }
  0x2e   :  { %s9292_s10 = smov [#allocation10]   ;;  %s9293_s12 = smov [#allocation11]  }
  0x2f   :  { %s71_s11 = sshll.u32 %s9292_s10, 4  ;;  %s82_s13 = sshll.u32 %s9293_s12, 4  ;;  %s72_s11 = int_to_ptr.vmem [resolvable:$true] %s71_s11  ;;  %s83_s13 = int_to_ptr.vmem [resolvable:$true] %s82_s13 }
  0x30   :  { %s9222_s0 = scalar_lea.vmem %s72_s11, 384  ;;  %p9227_p7 = scmp.lt.s32.totalorder %s72_s11, %s72_s11 }
  0x31   :  { %p9223_p6 = scmp.ne.s32.totalorder %s72_s11, %s9222_s0  ;;  %p9228_p8 = scmp.lt.s32.totalorder %s9222_s0, %s9222_s0 }
  0x33   :  { %p9229_p9 = por %p9228_p8, %p9227_p7 }
  0x35   :  { %p9230_p10 = pnand %p9229_p9, %p9223_p6 }
  0x37   :  { %9233 = shalt.err (!%p9230_p10)
}
  0x38   :  { %74 = dma.hbm_to_vmem [thread:$0]  %s14098_s5, 384, %s72_s11, [#allocation9]  }
  0x39   :  { %s9242_s16 = scalar_lea.vmem %s83_s13, 6144  ;;  %p9247_p12 = scmp.lt.s32.totalorder %s83_s13, %s83_s13 }
  0x3a   :  { %p9243_p11 = scmp.ne.s32.totalorder %s83_s13, %s9242_s16  ;;  %p9248_p13 = scmp.lt.s32.totalorder %s9242_s16, %s9242_s16 }
  0x3c   :  { %p9249_p0 = por %p9248_p13, %p9247_p12 }
  0x3e   :  { %p9250_p1 = pnand %p9249_p0, %p9243_p11 }
  0x40   :  { %9253 = shalt.err (!%p9250_p1)
}
  0x41   :  { %s9294_s2 = smov 128   ;;  %s9295_s17 = smov 8  }
  0x42   :  { %88 = dma.hbm_to_vmem [thread:$0]  %s14100_s7, 6144, %s83_s13, [#allocation12], %s9294_s2, %s9294_s2, %s9295_s17  }
  0x43   :  { %9274 = dma.done.wait [#allocation3], 128  }
  0x44   :  { %9275 = vsyncadd [#allocation3], 4294967168 }
  0x45   :  { %9276 = dma.done.wait [#allocation6], 1152  }
  0x46   :  { %9277 = vsyncadd [#allocation6], 4294966144 }
  0x47   :  { %9278 = dma.done.wait [#allocation9], 24960  }
  0x48   :  { %9279 = vsyncadd [#allocation9], 4294942336 }
  0x49   :  { %9280 = dma.done.wait [#allocation12], 6144  }
  0x4a   :  { %9281 = vsyncadd [#allocation12], 4294961152  ;;  %v14113_v0 = vmov 0.0   ;;  %vm141_vm0 = vcmask 130048   ;;  %v116_v1 = vld [vmem:[#allocation7 + $0x28] sm:$0xff]  ;;  %v115_v2 = vld [vmem:[#allocation7 + $0x20] sm:$0xff] }
  0x4b   :  { %213 = vmatprep.mubr.f32.mxu0 %v14113_v0  ;;  %309 = vmatprep.mubr.f32.mxu1 %v14113_v0  ;;  %v112_v3 = vld [vmem:[#allocation7 + $0x8] sm:$0xff]  ;;  %v9369_v4 = vand.u32 4294901760, %v116_v1  ;;  %v9371_v5 = vand.u32 4294901760, %v115_v2  ;;  %v111_v7 = vld [vmem:[#allocation7] sm:$0xff]  ;;  %v109_v8 = vld [vmem:[#allocation2] sm:$0xff]  ;;  %vm1326_vm1 = vcmask 64512  }
  0x4c   :  { %v9373_v6 = vand.u32 4294901760, %v112_v3  ;;  %v9375_v9 = vand.u32 4294901760, %v111_v7  ;;  %v143_v10 = vsel %vm141_vm0, %v109_v8, 0  ;;  %v118_v15 = vld [vmem:[#allocation7 + $0x38] sm:$0xff]  ;;  %v117_v21 = vld [vmem:[#allocation7 + $0x30] sm:$0xff]  ;;  %v1324_v51 = vld [vmem:[#allocation10 + $0x8] sm:$0xff] }
  0x4d   :  { %174 = vmatprep.subr.mxu0 %v9369_v4  ;;  %v254_v11 = vsub.f32 %v116_v1, %v9369_v4  ;;  %v9379_v12 = vand.u32 4294901760, %v143_v10  ;;  %v260_v13 = vsub.f32 %v115_v2, %v9371_v5  ;;  %v114_v22 = vld [vmem:[#allocation7 + $0x18] sm:$0xff]  ;;  %v9390_v24 = vand.u32 4294901760, %v118_v15  ;;  %v113_v32 = vld [vmem:[#allocation7 + $0x10] sm:$0xff]  ;;  %v1323_v53 = vld [vmem:[#allocation10] sm:$0xff] }
  0x4e   :  { %v266_v14 = vsub.f32 %v112_v3, %v9373_v6  ;;  %176 = vmatpush1.msra.mxu0 %v9371_v5  ;;  %v272_v16 = vsub.f32 %v111_v7, %v9375_v9  ;;  %v9395_v30 = vand.u32 4294901760, %v117_v21  ;;  %v9397_v31 = vand.u32 4294901760, %v114_v22  ;;  %v110_v57 = vld [vmem:[#allocation5] sm:$0xff]  ;;  %v1325_v63 = vld [vmem:[#allocation10 + $0x10] sm:$0xff]  ;;  %v1176_v3 = vld [vmem:[#allocation8 + $0x168] sm:$0xff] }
  0x4f   :  { %178 = vmatprep.subr.mxu0 %v9373_v6  ;;  %v255_v17 = vand.u32 4294901760, %v254_v11  ;;  %v9387_v18 = vsub.f32 %v143_v10, %v9379_v12  ;;  %v261_v19 = vand.u32 4294901760, %v260_v13  ;;  %v9404_v39 = vsub.f32 %v118_v15, %v9390_v24  ;;  %v1177_v2 = vld [vmem:[#allocation8 + $0x170] sm:$0xff] }
  0x50   :  { %v267_v20 = vand.u32 4294901760, %v266_v14  ;;  %180 = vmatpush1.msra.mxu0 %v9375_v9  ;;  %v273_v23 = vand.u32 4294901760, %v272_v16  ;;  %v9406_v40 = vand.u32 4294901760, %v113_v32  ;;  %v9409_v41 = vsub.f32 %v117_v21, %v9395_v30  ;;  %v1170_v21 = vld [vmem:[#allocation8 + $0x138] sm:$0xff] }
  0x51   :  { %v256_v25 = vsub.f32 %v254_v11, %v255_v17  ;;  %v9393_v26 = vand.u32 4294901760, %v9387_v18  ;;  %v262_v27 = vsub.f32 %v260_v13, %v261_v19  ;;  %347 = vmatprep.subr.mxu0 %v254_v11  ;;  %v9413_v42 = vsub.f32 %v114_v22, %v9397_v31 }
  0x52   :  { %v268_v28 = vsub.f32 %v266_v14, %v267_v20  ;;  %v274_v29 = vsub.f32 %v272_v16, %v273_v23  ;;  %v9416_v43 = vsub.f32 %v113_v32, %v9406_v40  ;;  %v746_v44 = vand.u32 4294901760, %v9404_v39  ;;  %v1165_v32 = vld [vmem:[#allocation8 + $0x110] sm:$0xff] }
  0x53   :  { %v257_v33 = vand.u32 4294901760, %v256_v25  ;;  %v217_v34 = vsub.f32 %v9387_v18, %v9393_v26  ;;  %v263_v35 = vand.u32 4294901760, %v262_v27  ;;  %v752_v45 = vand.u32 4294901760, %v9409_v41  ;;  %v1168_v25 = vld [vmem:[#allocation8 + $0x128] sm:$0xff] }
  0x54   :  { %v269_v36 = vand.u32 4294901760, %v268_v28  ;;  %v275_v37 = vand.u32 4294901760, %v274_v29  ;;  %v758_v46 = vand.u32 4294901760, %v9413_v42  ;;  %v764_v47 = vand.u32 4294901760, %v9416_v43  ;;  %v1167_v28 = vld [vmem:[#allocation8 + $0x120] sm:$0xff] }
  0x55   :  { %258 = vmatprep.subr.mxu1 %v257_v33  ;;  %v9401_v38 = vand.u32 4294901760, %v217_v34  ;;  %v747_v48 = vsub.f32 %v9404_v39, %v746_v44  ;;  %v753_v49 = vsub.f32 %v9409_v41, %v752_v45  ;;  %v9448_v56 = vand.u32 4294901760, %v1324_v51 }
  0x56   :  { %264 = vmatpush1.msra.mxu1 %v263_v35  ;;  %v759_v50 = vsub.f32 %v9413_v42, %v758_v46  ;;  %v765_v52 = vsub.f32 %v9416_v43, %v764_v47  ;;  %v9452_v59 = vand.u32 4294901760, %v1323_v53  ;;  %v1328_v61 = vsel %vm1326_vm1, %v110_v57, 0 }
  0x57   :  { %219 = vmatmul.mubr.f32.vlgmr.msra.gmra.mxu0 %v9401_v38  ;;  %270 = vmatprep.subr.mxu1 %v269_v36  ;;  %v748_v54 = vand.u32 4294901760, %v747_v48  ;;  %v754_v55 = vand.u32 4294901760, %v753_v49  ;;  %v9459_v62 = vsub.f32 %v1324_v51, %v9448_v56  ;;  %v9475_v8 = vand.u32 4294901760, %v1177_v2  ;;  %v1159_v51 = vld [vmem:[#allocation8 + $0xe0] sm:$0xff] }
  0x58   :  { %350 = vmatpush1.msra.mxu0 %v260_v13  ;;  %276 = vmatpush1.msra.mxu1 %v275_v37  ;;  %v760_v58 = vand.u32 4294901760, %v759_v50  ;;  %v766_v60 = vand.u32 4294901760, %v765_v52  ;;  %v9463_v1 = vsub.f32 %v1323_v53, %v9452_v59  ;;  %v9532_v36 = vand.u32 4294901760, %v1168_v25  ;;  %v1158_v52 = vld [vmem:[#allocation8 + $0xd8] sm:$0xff] }
  0x59   :  { %353 = vmatprep.subr.mxu0 %v266_v14  ;;  %311 = vmatmul.mubr.f32.vlgmr.msra.gmra.mxu1 %v9379_v12  ;;  %v1440_v7 = vand.u32 4294901760, %v9459_v62  ;;  %14718 = vst [vmem:[#allocation19_spill] sm:$0xff] %v9475_v8  ;;  %v1173_v14 = vld [vmem:[#allocation8 + $0x150] sm:$0xff]  ;;  %vm9297_vm2 = vmmov 0  }
  0x5a   :  { %356 = vmatpush1.msra.mxu0 %v272_v16  ;;  %389 = vmatprep.mubr.f32.mxu0 %v14113_v0  ;;  %v14112_v10 = vand.u32 4294901760, %v9463_v1  ;;  %v1171_v16 = vld [vmem:[#allocation8 + $0x140] sm:$0xff]  ;;  %14723 = vst [vmem:[#allocation24_spill] sm:$0xff] %v9532_v36 }
  0x5b   :  { %427 = vmatprep.subr.mxu1 %v9369_v4  ;;  %392 = vmatmul.mubr.f32.vlgmr.msra.gmra.mxu0 %v9387_v18  ;;  %v9520_v27 = vand.u32 4294901760, %v1171_v16 }
  0x5c   :  { %429 = vmatpush1.msra.mxu1 %v9371_v5  ;;  %507 = vmatprep.subr.mxu0 %v255_v17  ;;  %v1441_v17 = vsub.f32 %v9459_v62, %v1440_v7  ;;  %v1447_v22 = vsub.f32 %v9463_v1, %v14112_v10  ;;  %v1149_v10 = vld [vmem:[#allocation8 + $0x90] sm:$0xff] }
  0x5d   :  { %431 = vmatprep.subr.mxu1 %v9373_v6  ;;  %511 = vmatpush1.msra.mxu0 %v261_v19  ;;  %v9500_v19 = vsub.f32 %v1177_v2, %v9475_v8 }
  0x5e   :  { %433 = vmatpush1.msra.mxu1 %v9375_v9  ;;  %466 = vmatprep.mubr.f32.mxu1 %v14113_v0  ;;  %v1442_v33 = vand.u32 4294901760, %v1441_v17 }
  0x5f   :  { %515 = vmatprep.subr.mxu0 %v267_v20  ;;  %470 = vmatmul.mubr.f32.vlgmr.msra.gmra.mxu1 %v9393_v26  ;;  %14719 = vst [vmem:[#allocation20_spill] sm:$0xff] %v9500_v19  ;;  %v14107_v34 = vand.u32 4294901760, %v9500_v19 }
  0x60   :  { %519 = vmatpush1.msra.mxu0 %v273_v23  ;;  %552 = vmatprep.mubr.f32.mxu0 %v14113_v0 }
  0x61   :  { %589 = vmatprep.subr.mxu1 %v9369_v4  ;;  %554 = vmatmul.mubr.f32.vlgmr.msra.gmra.mxu0 %v9379_v12  ;;  %v9466_v4 = vand.u32 4294901760, %v1328_v61 }
  0x62   :  { %591 = vmatpush1.msra.mxu1 %v9371_v5  ;;  %628 = vmatprep.mubr.f32.mxu1 %v14113_v0  ;;  %v1174_v5 = vld [vmem:[#allocation8 + $0x158] sm:$0xff] }
  0x63   :  { %593 = vmatprep.subr.mxu1 %v9373_v6  ;;  %665 = vmatprep.subr.mxu0 %v9390_v24  ;;  %v9470_v6 = vand.u32 4294901760, %v1325_v63  ;;  %v9482_v11 = vand.u32 4294901760, %v1174_v5  ;;  %v9487_v13 = vsub.f32 %v1328_v61, %v9466_v4 }
  0x64   :  { %595 = vmatpush1.msra.mxu1 %v9375_v9  ;;  %667 = vmatpush1.msra.mxu0 %v9395_v30  ;;  %v9477_v9 = vand.u32 4294901760, %v1176_v3 }
  0x65   :  { %630 = vmatmul.mubr.f32.vlgmr.msra.gmra.mxu1 %v9379_v12  ;;  %749 = vmatprep.subr.mxu1 %v748_v54  ;;  %v9492_v15 = vsub.f32 %v1325_v63, %v9470_v6  ;;  %v9511_v23 = vsub.f32 %v1174_v5, %v9482_v11  ;;  %v1156_v63 = vld [vmem:[#allocation8 + $0xc8] sm:$0xff]  ;;  %v9608_v5 = vand.u32 4294901760, %v1159_v51 }
  0x66   :  { %755 = vmatpush1.msra.mxu1 %v754_v55  ;;  %800 = vmatprep.mubr.f32.mxu1 %v14113_v0  ;;  %v9503_v20 = vsub.f32 %v1176_v3, %v9477_v9 }
  0x67   :  { %761 = vmatprep.subr.mxu1 %v760_v58  ;;  %669 = vmatprep.subr.mxu0 %v9397_v31  ;;  %14721 = vst [vmem:[#allocation22_spill] sm:$0xff] %v9511_v23  ;;  %v14109_v29 = vand.u32 4294901760, %v9492_v15  ;;  %v14104_v37 = vand.u32 4294901760, %v9511_v23  ;;  %14736 = vst [vmem:[#allocation37_spill] sm:$0xff] %v9608_v5 }
  0x68   :  { %767 = vmatpush1.msra.mxu1 %v766_v60  ;;  %671 = vmatpush1.msra.mxu0 %v9406_v40  ;;  %14720 = vst [vmem:[#allocation21_spill] sm:$0xff] %v9503_v20  ;;  %v14105_v35 = vand.u32 4294901760, %v9503_v20 }
  0x69   :  { %802 = vmatmul.mubr.f32.vlgmr.msra.gmra.mxu1 %v9379_v12  ;;  %918 = vmatprep.subr.mxu1 %v9390_v24  ;;  %v9586_v53 = vsub.f32 %v9511_v23, %v14104_v37 }
  0x6a   :  { %920 = vmatpush1.msra.mxu1 %v9395_v30  ;;  %704 = vmatprep.mubr.f32.mxu0 %v14113_v0 }
  0x6b   :  { %922 = vmatprep.subr.mxu1 %v9397_v31  ;;  %710 = vmatmul.mubr.f32.vlgmr.msra.gmra.mxu0 %v9401_v38 }
  0x6c   :  { %838 = vmatprep.subr.mxu0 %v9404_v39  ;;  %924 = vmatpush1.msra.mxu1 %v9406_v40  ;;  %v9541_v39 = vand.u32 4294901760, %v1167_v28 }
  0x6d   :  { %957 = vmatprep.mubr.f32.mxu1 %v14113_v0  ;;  %841 = vmatpush1.msra.mxu0 %v9409_v41  ;;  %v9549_v41 = vsub.f32 %v1171_v16, %v9520_v27 }
  0x6e   :  { %961 = vmatmul.mubr.f32.vlgmr.msra.gmra.mxu1 %v9393_v26  ;;  %1080 = vmatprep.subr.mxu1 %v9390_v24  ;;  %v9513_v24 = vand.u32 4294901760, %v1173_v14  ;;  %v9518_v26 = vand.u32 4294901760, %v9487_v13  ;;  %14725 = vst [vmem:[#allocation26_spill] sm:$0xff] %v9541_v39  ;;  %v9590_v55 = vsub.f32 %v1167_v28, %v9541_v39 }
  0x6f   :  { %844 = vmatprep.subr.mxu0 %v9413_v42  ;;  %1082 = vmatpush1.msra.mxu1 %v9395_v30  ;;  %v9525_v30 = vand.u32 4294901760, %v1170_v21  ;;  %14726 = vst [vmem:[#allocation27_spill] sm:$0xff] %v9549_v41  ;;  %v1161_v42 = vld [vmem:[#allocation8 + $0xf0] sm:$0xff]  ;;  %v14106_v58 = vand.u32 4294901760, %v9549_v41 }
  0x70   :  { %14722 = vst [vmem:[#allocation23_spill] sm:$0xff] %v9513_v24  ;;  %847 = vmatpush1.msra.mxu0 %v9416_v43  ;;  %880 = vmatprep.mubr.f32.mxu0 %v14113_v0  ;;  %v9539_v38 = vsub.f32 %v1173_v14, %v9513_v24  ;;  %v9570_v43 = vsub.f32 %v9500_v19, %v14107_v34  ;;  %14732 = vst [vmem:[#allocation33_spill] sm:$0xff] %v9590_v55  ;;  %v9600_v61 = vand.u32 4294901760, %v1161_v42  ;;  %v1137_v19 = vld [vmem:[#allocation8 + $0x30] sm:$0xff] }
  0x71   :  { %1084 = vmatprep.subr.mxu1 %v9397_v31  ;;  %883 = vmatmul.mubr.f32.vlgmr.msra.gmra.mxu0 %v9387_v18  ;;  %v1164_v31 = vld [vmem:[#allocation8 + $0x108] sm:$0xff]  ;;  %v1448_v18 = vand.u32 4294901760, %v1447_v22  ;;  %v9557_v48 = vsub.f32 %v1170_v21, %v9525_v30  ;;  %v9610_v14 = vand.u32 4294901760, %v1158_v52 }
  0x72   :  { %998 = vmatprep.subr.mxu0 %v746_v44  ;;  %1086 = vmatpush1.msra.mxu1 %v9406_v40  ;;  %14724 = vst [vmem:[#allocation25_spill] sm:$0xff] %v9539_v38  ;;  %v1162_v40 = vld [vmem:[#allocation8 + $0xf8] sm:$0xff]  ;;  %v1400_v44 = vsub.f32 %v9487_v13, %v9518_v26  ;;  %v9559_v49 = vand.u32 4294901760, %v1164_v31  ;;  %v14103_v54 = vand.u32 4294901760, %v9539_v38  ;;  %14734 = vst [vmem:[#allocation35_spill] sm:$0xff] %v9600_v61 }
  0x73   :  { %1119 = vmatprep.mubr.f32.mxu1 %v14113_v0  ;;  %1002 = vmatpush1.msra.mxu0 %v752_v45  ;;  %v9551_v45 = vand.u32 4294901760, %v1165_v32  ;;  %14728 = vst [vmem:[#allocation29_spill] sm:$0xff] %v9557_v48  ;;  %v9575_v50 = vand.u32 4294901760, %v1162_v40  ;;  %v14108_v2 = vand.u32 4294901760, %v9557_v48  ;;  %14737 = vst [vmem:[#allocation38_spill] sm:$0xff] %v9610_v14  ;;  %v9655_v34 = vsub.f32 %v1158_v52, %v9610_v14 }
  0x74   :  { %1121 = vmatmul.mubr.f32.vlgmr.msra.gmra.mxu1 %v9379_v12  ;;  %1006 = vmatprep.subr.mxu0 %v758_v46  ;;  %14729 = vst [vmem:[#allocation30_spill] sm:$0xff] %v9559_v49  ;;  %v9565_v46 = vsub.f32 %v9492_v15, %v14109_v29  ;;  %v9594_v57 = vand.u32 4294901760, %v1400_v44  ;;  %v9606_v3 = vsub.f32 %v1164_v31, %v9559_v49  ;;  %v1155_v31 = vld [vmem:[#allocation8 + $0xc0] sm:$0xff] }
  0x75   :  { %14727 = vst [vmem:[#allocation28_spill] sm:$0xff] %v9551_v45  ;;  %1010 = vmatpush1.msra.mxu0 %v764_v47  ;;  %1043 = vmatprep.mubr.f32.mxu0 %v14113_v0  ;;  %v9573_v47 = vsub.f32 %v1168_v25, %v9532_v36  ;;  %14731 = vst [vmem:[#allocation32_spill] sm:$0xff] %v9575_v50  ;;  %v9598_v60 = vsub.f32 %v1165_v32, %v9551_v45  ;;  %v14111_v32 = vand.u32 4294901760, %v9590_v55 }
  0x76   :  { %1443 = vmatprep.subr.mxu1 %v1442_v33  ;;  %1045 = vmatmul.mubr.f32.vlgmr.msra.gmra.mxu0 %v9379_v12  ;;  %v9581_v12 = vsub.f32 %v9503_v20, %v14105_v35  ;;  %14735 = vst [vmem:[#allocation36_spill] sm:$0xff] %v9606_v3  ;;  %v1906_v16 = vand.u32 4294901760, %v9565_v46  ;;  %v9618_v22 = vsub.f32 %v1162_v40, %v9575_v50  ;;  %v9629_v33 = vand.u32 4294901760, %v1156_v63 }
  0x77   :  { %14730 = vst [vmem:[#allocation31_spill] sm:$0xff] %v9573_v47  ;;  %1449 = vmatpush1.msra.mxu1 %v1448_v18  ;;  %1482 = vmatprep.mubr.f32.mxu1 %v14113_v0  ;;  %14733 = vst [vmem:[#allocation34_spill] sm:$0xff] %v9598_v60  ;;  %v14110_v21 = vand.u32 4294901760, %v9573_v47  ;;  %v9626_v28 = vsub.f32 %v9539_v38, %v14103_v54  ;;  %v1153_v18 = vld [vmem:[#allocation8 + $0xb0] sm:$0xff]  ;;  %v14115_v44 = vand.u32 4294901760, %v9598_v60  ;;  %v1152_v54 = vld [vmem:[#allocation8 + $0xa8] sm:$0xff] }
  0x78   :  { %1484 = vmatmul.mubr.f32.vlgmr.msra.gmra.mxu1 %v9466_v4  ;;  %1598 = vmatprep.subr.mxu1 %v9448_v56  ;;  %14738 = vst [vmem:[#allocation39_spill] sm:$0xff] %v9618_v22  ;;  %14739 = vst [vmem:[#allocation40_spill] sm:$0xff] %v9629_v33  ;;  %v9641_v46 = vsub.f32 %v1161_v42, %v9600_v61  ;;  %v9648_v37 = vsub.f32 %v9557_v48, %v14108_v2  ;;  %v14118_v35 = vand.u32 4294901760, %v9606_v3  ;;  %v1150_v42 = vld [vmem:[#allocation8 + $0x98] sm:$0xff]  ;;  %v14748_v2 = vmov 0.0   ;;  %v1141_v48 = vld [vmem:[#allocation8 + $0x50] sm:$0xff] }
  0x79   :  { %1361 = vmatprep.subr.mxu0 %v9448_v56  ;;  %1600 = vmatpush1.msra.mxu1 %v9452_v59  ;;  %14742 = vst [vmem:[#allocation43_spill] sm:$0xff] %v9655_v34  ;;  %v9665_v29 = vand.u32 4294901760, %v1155_v31  ;;  %v9667_v40 = vand.u32 4294901760, %v1153_v18  ;;  %v9675_v52 = vsub.f32 %v9590_v55, %v14111_v32  ;;  %v9680_v25 = vand.u32 4294901760, %v1152_v54  ;;  %v1138_v38 = vld [vmem:[#allocation8 + $0x38] sm:$0xff] }
  0x7a   :  { %1633 = vmatprep.mubr.f32.mxu1 %v14113_v0  ;;  %1363 = vmatpush1.msra.mxu0 %v9452_v59  ;;  %14740 = vst [vmem:[#allocation41_spill] sm:$0xff] %v9641_v46  ;;  %v9691_v32 = vand.u32 4294901760, %v1150_v42  ;;  %v9699_v17 = vsub.f32 %v9606_v3, %v14118_v35 }
  0x7b   :  { %1396 = vmatprep.mubr.f32.mxu0 %v14113_v0  ;;  %1752 = vmatprep.subr.mxu1 %v9448_v56  ;;  %v9637_v56 = vsub.f32 %v9549_v41, %v14106_v58  ;;  %v9652_v58 = vsub.f32 %v1159_v51, %v9608_v5  ;;  %14743 = vst [vmem:[#allocation44_spill] sm:$0xff] %v9665_v29  ;;  %14744 = vst [vmem:[#allocation45_spill] sm:$0xff] %v9667_v40 }
  0x7c   :  { %1637 = vmatmul.mubr.f32.vlgmr.msra.gmra.mxu1 %v9518_v26  ;;  %1402 = vmatmul.mubr.f32.vlgmr.msra.gmra.mxu0 %v9594_v57  ;;  %14746 = vst [vmem:[#allocation47_spill] sm:$0xff] %v9680_v25  ;;  %v9688_v51 = vsub.f32 %v9598_v60, %v14115_v44  ;;  %14747 = vst [vmem:[#allocation48_spill] sm:$0xff] %v9691_v32  ;;  %v1147_v60 = vld [vmem:[#allocation8 + $0x80] sm:$0xff]  ;;  %v9714_v35 = vsub.f32 %v1155_v31, %v9665_v29 }
  0x7d   :  { %1522 = vmatprep.subr.mxu0 %v9459_v62  ;;  %1754 = vmatpush1.msra.mxu1 %v9452_v59  ;;  %14741 = vst [vmem:[#allocation42_spill] sm:$0xff] %v9652_v58  ;;  %v9662_v59 = vsub.f32 %v9573_v47, %v14110_v21  ;;  %v9678_v21 = vsub.f32 %v1156_v63, %v9629_v33  ;;  %v14749_v62 = vand.u32 4294901760, %v9463_v1  ;;  %v14758_v31 = vand.u32 4294901760, %v9652_v58 }
  0x7e   :  { %1787 = vmatprep.mubr.f32.mxu1 %v14113_v0  ;;  %1525 = vmatpush1.msra.mxu0 %v9463_v1  ;;  %14751 = vst [vmem:[#allocation49_spill] sm:$0xff] %v9714_v35  ;;  %v9717_v44 = vsub.f32 %v1153_v18, %v9667_v40  ;;  %v14755_v18 = vand.u32 4294901760, %v9641_v46  ;;  %v9737_v1 = vsub.f32 %v1150_v42, %v9691_v32 }
  0x7f   :  { %1558 = vmatprep.mubr.f32.mxu0 %v14113_v0  ;;  %8883 = vmatprep.subr.mxu1 %v14113_v0  ;;  %14745 = vst [vmem:[#allocation46_spill] sm:$0xff] %v9678_v21  ;;  %v1146_v0 = vld [vmem:[#allocation8 + $0x78] sm:$0xff]  ;;  %v9748_v47 = vsub.f32 %v9652_v58, %v14758_v31  ;;  %v1140_v58 = vld [vmem:[#allocation8 + $0x48] sm:$0xff] }
  0x80   :  { %1789 = vmatmul.mubr.f32.vlgmr.msra.gmra.mxu1 %v9466_v4  ;;  %1561 = vmatmul.mubr.f32.vlgmr.msra.gmra.mxu0 %v9487_v13  ;;  %14752 = vst [vmem:[#allocation50_spill] sm:$0xff] %v9717_v44  ;;  %v9734_v3 = vsub.f32 %v9641_v46, %v14755_v18  ;;  %14756 = vst [vmem:[#allocation53_spill] sm:$0xff] %v9737_v1  ;;  %v14759_v18 = vand.u32 4294901760, %v9655_v34  ;;  %v9755_v46 = vand.u32 4294901760, %v1146_v0  ;;  %v9795_v20 = vand.u32 4294901760, %v1140_v58 }
  0x81   :  { %1676 = vmatprep.subr.mxu0 %v1440_v7  ;;  %8884 = vmatpush3.msra.mxu1 %v1906_v16  ;;  %v14750_v16 = vand.u32 4294901760, %v9618_v22  ;;  %v9724_v7 = vsub.f32 %v1152_v54, %v9680_v25  ;;  %v1143_v54 = vld [vmem:[#allocation8 + $0x60] sm:$0xff] }
  0x82   :  { %8885 = vmatprep.mubr.msk.f32.mxu1 %vm9297_vm2, %v14748_v2  ;;  %1680 = vmatpush1.msra.mxu0 %v14749_v62  ;;  %v9739_v62 = vand.u32 4294901760, %v1147_v60  ;;  %v9753_v42 = vsub.f32 %v9655_v34, %v14759_v18  ;;  %14760 = vst [vmem:[#allocation55_spill] sm:$0xff] %v9755_v46  ;;  %v14762_v18 = vand.u32 4294901760, %v9678_v21  ;;  %v9776_v55 = vand.u32 4294901760, %v1143_v54  ;;  %14768 = vst [vmem:[#allocation62_spill] sm:$0xff] %v9795_v20 }
  0x83   :  { %v9711_v63 = vsub.f32 %v9618_v22, %v14750_v16  ;;  %1713 = vmatprep.mubr.f32.mxu0 %v14748_v2  ;;  %8893 = vmatprep.subr.mxu1 %v14748_v2  ;;  %14753 = vst [vmem:[#allocation51_spill] sm:$0xff] %v9724_v7  ;;  %v9726_v16 = vand.u32 4294901760, %v1149_v10  ;;  %v1144_v22 = vld [vmem:[#allocation8 + $0x68] sm:$0xff] }
  0x84   :  { %8886 = vmatmul.mubr.f32.vlgmr.msra.gmra.mxu1 %v9466_v4  ;;  %1715 = vmatmul.mubr.f32.vlgmr.msra.gmra.mxu0 %v9466_v4  ;;  %14757 = vst [vmem:[#allocation54_spill] sm:$0xff] %v9739_v62  ;;  %v9762_v31 = vand.u32 4294901760, %v1144_v22  ;;  %v9770_v34 = vsub.f32 %v9678_v21, %v14762_v18  ;;  %14764 = vst [vmem:[#allocation58_spill] sm:$0xff] %v9776_v55  ;;  %v9783_v32 = vsub.f32 %v1147_v60, %v9739_v62 }
  0x85   :  { %14754 = vst [vmem:[#allocation52_spill] sm:$0xff] %v9726_v16  ;;  %8894 = vmatpush3.msra.mxu1 %v9470_v6  ;;  %8895 = vmatprep.mubr.msk.f32.mxu1 %vm9297_vm2, %v14748_v2  ;;  %v9774_v41 = vsub.f32 %v1149_v10, %v9726_v16  ;;  %v9785_v18 = vand.u32 4294901760, %v1141_v48  ;;  %v14769_v60 = vand.u32 4294901760, %v9570_v43  ;;  %v14771_v10 = vand.u32 4294901760, %v9717_v44  ;;  %v1134_v43 = vld [vmem:[#allocation8 + $0x18] sm:$0xff] }
  0x86   :  { %8878 = vmatprep.subr.mxu0 %v14748_v2  ;;  %8903 = vmatprep.subr.mxu1 %v14748_v2  ;;  %14761 = vst [vmem:[#allocation56_spill] sm:$0xff] %v9762_v31  ;;  %14765 = vst [vmem:[#allocation59_spill] sm:$0xff] %v9783_v32  ;;  %v9813_v21 = vand.u32 4294901760, %v1138_v38 }
  0x87   :  { %8879 = vmatpush3.msra.mxu0 %v9470_v6  ;;  %8880 = vmatprep.mubr.msk.f32.mxu0 %vm9297_vm2, %v14748_v2  ;;  %14763 = vst [vmem:[#allocation57_spill] sm:$0xff] %v9774_v41  ;;  %14766 = vst [vmem:[#allocation60_spill] sm:$0xff] %v9785_v18  ;;  %v9837_v62 = vsub.f32 %v1141_v48, %v9785_v18  ;;  %v14783_v48 = vand.u32 4294901760, %v9586_v53  ;;  %v14789_v18 = vand.u32 4294901760, %v9637_v56 }
  0x88   :  { %8896 = vmatmul.mubr.f32.vlgmr.msra.gmra.mxu1 %v9518_v26  ;;  %8881 = vmatmul.mubr.f32.vlgmr.msra.gmra.mxu0 %v9594_v57  ;;  %v9793_v57 = vsub.f32 %v1146_v0, %v9755_v46  ;;  %v9808_v26 = vsub.f32 %v9717_v44, %v14771_v10  ;;  %v9811_v0 = vsub.f32 %v1144_v22, %v9762_v31  ;;  %v1135_v46 = vld [vmem:[#allocation8 + $0x20] sm:$0xff]  ;;  %v14776_v44 = vand.u32 4294901760, %v9737_v1  ;;  %v1132_v10 = vld [vmem:[#allocation8 + $0x8] sm:$0xff] }
  0x89   :  { %8904 = vmatpush3.msra.mxu1 %v9470_v6  ;;  %8905 = vmatprep.mubr.msk.f32.mxu1 %vm9297_vm2, %v14748_v2  ;;  %v14770_v6 = vand.u32 4294901760, %v9714_v35  ;;  %14773 = vst [vmem:[#allocation64_spill] sm:$0xff] %v9813_v21  ;;  %v9826_v22 = vsub.f32 %v1143_v54, %v9776_v55  ;;  %14777 = vst [vmem:[#allocation66_spill] sm:$0xff] %v9837_v62  ;;  %v14779_v54 = vand.u32 4294901760, %v9581_v12  ;;  %v1131_v12 = vld [vmem:[#allocation8] sm:$0xff] }
  0x8a   :  { %14767 = vst [vmem:[#allocation61_spill] sm:$0xff] %v9793_v57  ;;  %2391 = vmatprep.subr.mxu1 %v14769_v60  ;;  %8888 = vmatprep.subr.mxu0 %v14748_v2  ;;  %14772 = vst [vmem:[#allocation63_spill] sm:$0xff] %v9811_v0  ;;  %v9833_v31 = vsub.f32 %v9737_v1, %v14776_v44  ;;  %v9848_v44 = vand.u32 4294901760, %v1135_v46  ;;  %v9850_v1 = vand.u32 4294901760, %v1134_v43  ;;  %v14784_v60 = vand.u32 4294901760, %v9492_v15 }
  0x8b   :  { %v9803_v23 = vsub.f32 %v9714_v35, %v14770_v6  ;;  %8889 = vmatpush3.msra.mxu0 %v9492_v15  ;;  %8890 = vmatprep.mubr.msk.f32.mxu0 %vm9297_vm2, %v14748_v2  ;;  %v14774_v6 = vand.u32 4294901760, %v9724_v7  ;;  %14775 = vst [vmem:[#allocation65_spill] sm:$0xff] %v9826_v22  ;;  %v14787_v15 = vand.u32 4294901760, %v9774_v41 }
  0x8c   :  { %8906 = vmatmul.mubr.f32.vlgmr.msra.gmra.mxu1 %v9466_v4  ;;  %8891 = vmatmul.mubr.f32.vlgmr.msra.gmra.mxu0 %v9487_v13  ;;  %14781 = vst [vmem:[#allocation69_spill] sm:$0xff] %v9848_v44  ;;  %14782 = vst [vmem:[#allocation70_spill] sm:$0xff] %v9850_v1  ;;  %v9860_v13 = vsub.f32 %v1138_v38, %v9813_v21  ;;  %v1225_v38 = vld [vmem:[#allocation8 + $0x2f0] sm:$0xff] }
  0x8d   :  { %v9822_v35 = vsub.f32 %v9724_v7, %v14774_v6  ;;  %v9839_v6 = vand.u32 4294901760, %v1137_v19  ;;  %2397 = vmatpush1.msra.mxu1 %v14779_v54  ;;  %8898 = vmatprep.subr.mxu0 %v14748_v2  ;;  %v9846_v7 = vsub.f32 %v1140_v58, %v9795_v20  ;;  %v14786_v58 = vand.u32 4294901760, %v9626_v28 }
  0x8e   :  { %2403 = vmatprep.subr.mxu1 %v14783_v48  ;;  %8899 = vmatpush3.msra.mxu0 %v14784_v60  ;;  %14785 = vst [vmem:[#allocation71_spill] sm:$0xff] %v9860_v13  ;;  %v9870_v60 = vsub.f32 %v9774_v41, %v14787_v15  ;;  %v9873_v54 = vand.u32 4294901760, %v1132_v10  ;;  %v14792_v41 = vand.u32 4294901760, %v9648_v37  ;;  %v9901_v28 = vsub.f32 %v1134_v43, %v9850_v1 }
  0x8f   :  { %14778 = vst [vmem:[#allocation67_spill] sm:$0xff] %v9839_v6  ;;  %14780 = vst [vmem:[#allocation68_spill] sm:$0xff] %v9846_v7  ;;  %2409 = vmatpush1.msra.mxu1 %v14786_v58  ;;  %8900 = vmatprep.mubr.msk.f32.mxu0 %vm9297_vm2, %v14748_v2  ;;  %v14790_v58 = vand.u32 4294901760, %v9783_v32  ;;  %v9886_v48 = vsub.f32 %v1137_v19, %v9839_v6  ;;  %v1224_v2 = vld [vmem:[#allocation8 + $0x2e8] sm:$0xff]  ;;  %v1222_v19 = vld [vmem:[#allocation8 + $0x2d8] sm:$0xff]  ;;  %v14796_v15 = vand.u32 4294901760, %v9662_v59 }
  0x90   :  { %14788 = vst [vmem:[#allocation72_spill] sm:$0xff] %v9873_v54  ;;  %2415 = vmatprep.subr.mxu1 %v14789_v18  ;;  %8901 = vmatmul.mubr.f32.vlgmr.msra.gmra.mxu0 %v9466_v4  ;;  %v14793_v4 = vand.u32 4294901760, %v9793_v57  ;;  %14795 = vst [vmem:[#allocation75_spill] sm:$0xff] %v9901_v28  ;;  %v14797_v37 = vand.u32 4294901760, %v9811_v0  ;;  %v9912_v18 = vand.u32 4294901760, %v1131_v12  ;;  %v14800_v43 = vand.u32 4294901760, %v9675_v52 }
  0x91   :  { %v9882_v53 = vsub.f32 %v9783_v32, %v14790_v58  ;;  %14791 = vst [vmem:[#allocation73_spill] sm:$0xff] %v9886_v48  ;;  %2421 = vmatpush1.msra.mxu1 %v14792_v41  ;;  %2242 = vmatprep.subr.mxu0 %v9475_v8  ;;  %v9898_v58 = vsub.f32 %v1135_v46, %v9848_v44  ;;  %v9914_v46 = vand.u32 4294901760, %v1225_v38  ;;  %v14806_v32 = vand.u32 4294901760, %v9699_v17 }
  0x92   :  { %v9894_v56 = vsub.f32 %v9793_v57, %v14793_v4  ;;  %2427 = vmatprep.subr.mxu1 %v14796_v15  ;;  %2244 = vmatpush1.msra.mxu0 %v9477_v9  ;;  %v9909_v41 = vsub.f32 %v9811_v0, %v14797_v37  ;;  %14798 = vst [vmem:[#allocation76_spill] sm:$0xff] %v9912_v18  ;;  %v14801_v15 = vand.u32 4294901760, %v9826_v22  ;;  %v9928_v4 = vand.u32 4294901760, %v1224_v2 }
  0x93   :  { %14794 = vst [vmem:[#allocation74_spill] sm:$0xff] %v9898_v58  ;;  %14799 = vst [vmem:[#allocation77_spill] sm:$0xff] %v9914_v46  ;;  %2433 = vmatpush1.msra.mxu1 %v14800_v43  ;;  %2246 = vmatprep.subr.mxu0 %v9482_v11  ;;  %v9926_v37 = vsub.f32 %v1132_v10, %v9873_v54  ;;  %v14804_v0 = vand.u32 4294901760, %v9688_v51  ;;  %v14805_v43 = vand.u32 4294901760, %v9837_v62  ;;  %v1221_v10 = vld [vmem:[#allocation8 + $0x2d0] sm:$0xff] }
  0x94   :  { %v9923_v57 = vsub.f32 %v9826_v22, %v14801_v15  ;;  %14803 = vst [vmem:[#allocation79_spill] sm:$0xff] %v9928_v4  ;;  %2248 = vmatpush1.msra.mxu0 %v9513_v24  ;;  %v9940_v22 = vand.u32 4294901760, %v1222_v19  ;;  %v1219_v15 = vld [vmem:[#allocation8 + $0x2c0] sm:$0xff]  ;;  %v14808_v24 = vand.u32 4294901760, %v9711_v63  ;;  %v9974_v17 = vsub.f32 %v1224_v2, %v9928_v4 }
  0x95   :  { %14802 = vst [vmem:[#allocation78_spill] sm:$0xff] %v9926_v37  ;;  %2439 = vmatprep.subr.mxu1 %v14804_v0  ;;  %v9937_v59 = vsub.f32 %v9837_v62, %v14805_v43  ;;  %2250 = vmatprep.subr.mxu0 %v9520_v27  ;;  %v14807_v0 = vand.u32 4294901760, %v9846_v7  ;;  %v9966_v43 = vsub.f32 %v1225_v38, %v9914_v46  ;;  %v1218_v62 = vld [vmem:[#allocation8 + $0x2b8] sm:$0xff]  ;;  %v9990_v2 = vand.u32 4294901760, %v1219_v15  ;;  %v1215_v63 = vld [vmem:[#allocation8 + $0x2a0] sm:$0xff] }
  0x96   :  { %2445 = vmatpush1.msra.mxu1 %v14806_v32  ;;  %2252 = vmatpush1.msra.mxu0 %v9525_v30  ;;  %v14809_v32 = vand.u32 4294901760, %v9860_v13  ;;  %14813 = vst [vmem:[#allocation82_spill] sm:$0xff] %v9974_v17 }
  0x97   :  { %v9949_v52 = vsub.f32 %v9846_v7, %v14807_v0  ;;  %2451 = vmatprep.subr.mxu1 %v14808_v24  ;;  %v9963_v0 = vsub.f32 %v1131_v12, %v9912_v18  ;;  %14811 = vst [vmem:[#allocation81_spill] sm:$0xff] %v9966_v43  ;;  %v14812_v7 = vand.u32 4294901760, %v9734_v3  ;;  %2254 = vmatprep.subr.mxu0 %v9532_v36  ;;  %v1216_v12 = vld [vmem:[#allocation8 + $0x2a8] sm:$0xff]  ;;  %14818 = vst [vmem:[#allocation85_spill] sm:$0xff] %v9990_v2 }
  0x98   :  { %v9960_v51 = vsub.f32 %v9860_v13, %v14809_v32  ;;  %v9976_v32 = vand.u32 4294901760, %v1221_v10  ;;  %v14815_v13 = vand.u32 4294901760, %v9748_v47  ;;  %2256 = vmatpush1.msra.mxu0 %v9541_v39  ;;  %v9988_v24 = vsub.f32 %v1222_v19, %v9940_v22  ;;  %v1213_v39 = vld [vmem:[#allocation8 + $0x290] sm:$0xff] }
  0x99   :  { %14810 = vst [vmem:[#allocation80_spill] sm:$0xff] %v9963_v0  ;;  %2457 = vmatpush1.msra.mxu1 %v14812_v7  ;;  %v14816_v7 = vand.u32 4294901760, %v9886_v48  ;;  %v14819_v36 = vand.u32 4294901760, %v9753_v42  ;;  %2258 = vmatprep.subr.mxu0 %v9551_v45  ;;  %v14822_v42 = vand.u32 4294901760, %v9770_v34  ;;  %v1212_v45 = vld [vmem:[#allocation8 + $0x288] sm:$0xff]  ;;  %v10028_v47 = vand.u32 4294901760, %v1215_v63 }
  0x9a   :  { %14814 = vst [vmem:[#allocation83_spill] sm:$0xff] %v9976_v32  ;;  %2463 = vmatprep.subr.mxu1 %v14815_v13  ;;  %14817 = vst [vmem:[#allocation84_spill] sm:$0xff] %v9988_v24  ;;  %v14820_v13 = vand.u32 4294901760, %v9898_v58  ;;  %2260 = vmatpush1.msra.mxu0 %v9559_v49  ;;  %v14828_v49 = vand.u32 4294901760, %v9808_v26  ;;  %v14836_v26 = vand.u32 4294901760, %v9966_v43 }
  0x9b   :  { %v9985_v38 = vsub.f32 %v9886_v48, %v14816_v7  ;;  %2469 = vmatpush1.msra.mxu1 %v14819_v36  ;;  %v14821_v7 = vand.u32 4294901760, %v9901_v28  ;;  %v10006_v48 = vand.u32 4294901760, %v1218_v62  ;;  %2262 = vmatprep.subr.mxu0 %v9575_v50  ;;  %v10026_v36 = vsub.f32 %v1221_v10, %v9976_v32  ;;  %14827 = vst [vmem:[#allocation88_spill] sm:$0xff] %v10028_v47  ;;  %v1206_v50 = vld [vmem:[#allocation8 + $0x258] sm:$0xff] }
  0x9c   :  { %v9999_v3 = vsub.f32 %v9898_v58, %v14820_v13  ;;  %2475 = vmatprep.subr.mxu1 %v14822_v42  ;;  %v10014_v58 = vand.u32 4294901760, %v1216_v12  ;;  %v1210_v13 = vld [vmem:[#allocation8 + $0x278] sm:$0xff]  ;;  %2264 = vmatpush1.msra.mxu0 %v9600_v61  ;;  %v1209_v42 = vld [vmem:[#allocation8 + $0x270] sm:$0xff]  ;;  %v14831_v10 = vand.u32 4294901760, %v9822_v35  ;;  %v14835_v35 = vand.u32 4294901760, %v9963_v0 }
  0x9d   :  { %v10004_v19 = vsub.f32 %v9901_v28, %v14821_v7  ;;  %v14824_v7 = vand.u32 4294901760, %v9803_v23  ;;  %v14825_v28 = vand.u32 4294901760, %v9926_v37  ;;  %14826 = vst [vmem:[#allocation87_spill] sm:$0xff] %v10026_v36  ;;  %2266 = vmatprep.subr.mxu0 %v9608_v5  ;;  %v10046_v61 = vsub.f32 %v1218_v62, %v10006_v48 }
  0x9e   :  { %14823 = vst [vmem:[#allocation86_spill] sm:$0xff] %v10014_v58  ;;  %v10048_v23 = vand.u32 4294901760, %v1212_v45  ;;  %2268 = vmatpush1.msra.mxu0 %v9610_v14  ;;  %v10064_v62 = vsub.f32 %v1216_v12, %v10014_v58  ;;  %v10066_v5 = vand.u32 4294901760, %v1210_v13  ;;  %v14842_v12 = vand.u32 4294901760, %v9882_v53 }
  0x9f   :  { %2481 = vmatpush1.msra.mxu1 %v14824_v7  ;;  %v10022_v34 = vsub.f32 %v9926_v37, %v14825_v28  ;;  %v10036_v28 = vsub.f32 %v1219_v15, %v9990_v2  ;;  %v10038_v37 = vand.u32 4294901760, %v1213_v39  ;;  %14832 = vst [vmem:[#allocation91_spill] sm:$0xff] %v10046_v61  ;;  %v1207_v7 = vld [vmem:[#allocation8 + $0x260] sm:$0xff]  ;;  %v14834_v15 = vand.u32 4294901760, %v9833_v31  ;;  %2270 = vmatprep.subr.mxu0 %v9629_v33 }
  0xa0   :  { %2487 = vmatprep.subr.mxu1 %v14828_v49  ;;  %14833 = vst [vmem:[#allocation92_spill] sm:$0xff] %v10048_v23  ;;  %v10061_v49 = vsub.f32 %v9966_v43, %v14836_v26  ;;  %14837 = vst [vmem:[#allocation93_spill] sm:$0xff] %v10064_v62  ;;  %v14839_v31 = vand.u32 4294901760, %v9870_v60  ;;  %v10076_v26 = vand.u32 4294901760, %v1209_v42  ;;  %2272 = vmatpush1.msra.mxu0 %v9665_v29  ;;  %v14843_v43 = vand.u32 4294901760, %v9974_v17 }
  0xa1   :  { %14829 = vst [vmem:[#allocation89_spill] sm:$0xff] %v10036_v28  ;;  %14830 = vst [vmem:[#allocation90_spill] sm:$0xff] %v10038_v37  ;;  %2493 = vmatpush1.msra.mxu1 %v14831_v10  ;;  %v10056_v10 = vsub.f32 %v9963_v0, %v14835_v35  ;;  %v10074_v0 = vsub.f32 %v1215_v63, %v10028_v47  ;;  %v10090_v35 = vand.u32 4294901760, %v1207_v7  ;;  %v1204_v63 = vld [vmem:[#allocation8 + $0x248] sm:$0xff]  ;;  %v14846_v33 = vand.u32 4294901760, %v9894_v56 }
  0xa2   :  { %2499 = vmatprep.subr.mxu1 %v14834_v15  ;;  %14838 = vst [vmem:[#allocation94_spill] sm:$0xff] %v10066_v5  ;;  %14841 = vst [vmem:[#allocation96_spill] sm:$0xff] %v10076_v26  ;;  %v10084_v60 = vsub.f32 %v9974_v17, %v14843_v43  ;;  %v10088_v15 = vsub.f32 %v1213_v39, %v10038_v37  ;;  %2274 = vmatprep.subr.mxu0 %v9667_v40  ;;  %v14847_v53 = vand.u32 4294901760, %v9988_v24  ;;  %v1203_v17 = vld [vmem:[#allocation8 + $0x240] sm:$0xff]  ;;  %v14853_v43 = vld [vmem:[#allocation48_spill] sm:$0xff] }
  0xa3   :  { %2505 = vmatpush1.msra.mxu1 %v14839_v31  ;;  %14840 = vst [vmem:[#allocation95_spill] sm:$0xff] %v10074_v0  ;;  %14845 = vst [vmem:[#allocation98_spill] sm:$0xff] %v10090_v35  ;;  %v10102_v31 = vsub.f32 %v1212_v45, %v10048_v23  ;;  %v10104_v39 = vand.u32 4294901760, %v1206_v50  ;;  %v14850_v29 = vand.u32 4294901760, %v9909_v41  ;;  %2276 = vmatpush1.msra.mxu0 %v9680_v25  ;;  %v14852_v45 = vand.u32 4294901760, %v9923_v57 }
  0xa4   :  { %2511 = vmatprep.subr.mxu1 %v14842_v12  ;;  %14844 = vst [vmem:[#allocation97_spill] sm:$0xff] %v10088_v15  ;;  %v10098_v12 = vsub.f32 %v9988_v24, %v14847_v53  ;;  %v10113_v24 = vsub.f32 %v1210_v13, %v10066_v5  ;;  %2278 = vmatprep.subr.mxu0 %v14853_v43  ;;  %v14854_v40 = vand.u32 4294901760, %v10026_v36  ;;  %v10127_v56 = vand.u32 4294901760, %v1204_v63  ;;  %v1201_v53 = vld [vmem:[#allocation8 + $0x230] sm:$0xff]  ;;  %v14862_v43 = vld [vmem:[#allocation54_spill] sm:$0xff] }
  0xa5   :  { %2517 = vmatpush1.msra.mxu1 %v14846_v33  ;;  %14848 = vst [vmem:[#allocation99_spill] sm:$0xff] %v10102_v31  ;;  %14849 = vst [vmem:[#allocation100_spill] sm:$0xff] %v10104_v39  ;;  %v2576_v33 = vand.u32 4294901760, %v10056_v10  ;;  %v10125_v10 = vsub.f32 %v1209_v42, %v10076_v26  ;;  %v14857_v13 = vand.u32 4294901760, %v9937_v59  ;;  %2280 = vmatpush1.msra.mxu0 %v9726_v16  ;;  %v14858_v57 = vand.u32 4294901760, %v10036_v28 }
  0xa6   :  { %2523 = vmatprep.subr.mxu1 %v14850_v29  ;;  %14851 = vst [vmem:[#allocation101_spill] sm:$0xff] %v10113_v24  ;;  %v10121_v29 = vsub.f32 %v10026_v36, %v14854_v40  ;;  %14856 = vst [vmem:[#allocation103_spill] sm:$0xff] %v10127_v56  ;;  %v10139_v41 = vsub.f32 %v1207_v7, %v10090_v35  ;;  %v10141_v42 = vand.u32 4294901760, %v1203_v17  ;;  %v14861_v36 = vand.u32 4294901760, %v9949_v52 }
  0xa7   :  { %2529 = vmatpush1.msra.mxu1 %v14852_v45  ;;  %14855 = vst [vmem:[#allocation102_spill] sm:$0xff] %v10125_v10  ;;  %v10135_v45 = vsub.f32 %v10036_v28, %v14858_v57  ;;  %2282 = vmatprep.subr.mxu0 %v14862_v43  ;;  %v2588_v59 = vand.u32 4294901760, %v10084_v60  ;;  %v10154_v40 = vsub.f32 %v1206_v50, %v10104_v39  ;;  %v14865_v7 = vand.u32 4294901760, %v9960_v51  ;;  %v14866_v28 = vld [vmem:[#allocation55_spill] sm:$0xff]  ;;  %v1200_v57 = vld [vmem:[#allocation8 + $0x228] sm:$0xff] }
  0xa8   :  { %2535 = vmatprep.subr.mxu1 %v14857_v13  ;;  %14859 = vst [vmem:[#allocation104_spill] sm:$0xff] %v10139_v41  ;;  %14860 = vst [vmem:[#allocation105_spill] sm:$0xff] %v10141_v42  ;;  %v14863_v13 = vand.u32 4294901760, %v10046_v61  ;;  %2284 = vmatpush1.msra.mxu0 %v14866_v28  ;;  %v2594_v52 = vand.u32 4294901760, %v10098_v12  ;;  %v14869_v50 = vand.u32 4294901760, %v9985_v38  ;;  %v14870_v43 = vld [vmem:[#allocation56_spill] sm:$0xff] }
  0xa9   :  { %2541 = vmatpush1.msra.mxu1 %v14861_v36  ;;  %14864 = vst [vmem:[#allocation106_spill] sm:$0xff] %v10154_v40  ;;  %v14867_v36 = vand.u32 4294901760, %v10064_v62  ;;  %2286 = vmatprep.subr.mxu0 %v14870_v43  ;;  %v2600_v51 = vand.u32 4294901760, %v10121_v29  ;;  %v14873_v28 = vand.u32 4294901760, %v9999_v3  ;;  %v2606_v38 = vand.u32 4294901760, %v10135_v45  ;;  %v14877_v3 = vld [vmem:[#allocation60_spill] sm:$0xff] }
  0xaa   :  { %v10150_v16 = vsub.f32 %v10046_v61, %v14863_v13  ;;  %2547 = vmatprep.subr.mxu1 %v14865_v7  ;;  %v10166_v61 = vand.u32 4294901760, %v1201_v53  ;;  %v14871_v7 = vand.u32 4294901760, %v10074_v0  ;;  %v1198_v13 = vld [vmem:[#allocation8 + $0x218] sm:$0xff]  ;;  %2288 = vmatpush1.msra.mxu0 %v9776_v55  ;;  %v14874_v29 = vand.u32 4294901760, %v10088_v15 }
  0xab   :  { %v10163_v60 = vsub.f32 %v10064_v62, %v14867_v36  ;;  %2553 = vmatpush1.msra.mxu1 %v14869_v50  ;;  %v10179_v62 = vsub.f32 %v1204_v63, %v10127_v56  ;;  %v10192_v36 = vsub.f32 %v1203_v17, %v10141_v42  ;;  %v1197_v63 = vld [vmem:[#allocation8 + $0x210] sm:$0xff]  ;;  %2290 = vmatprep.subr.mxu0 %v14877_v3  ;;  %v14878_v45 = vand.u32 4294901760, %v10102_v31 }
  0xac   :  { %14868 = vst [vmem:[#allocation107_spill] sm:$0xff] %v10166_v61  ;;  %v10175_v12 = vsub.f32 %v10074_v0, %v14871_v7  ;;  %2559 = vmatprep.subr.mxu1 %v14873_v28  ;;  %v10188_v50 = vsub.f32 %v10088_v15, %v14874_v29  ;;  %v14876_v0 = vand.u32 4294901760, %v10004_v19  ;;  %v2612_v28 = vand.u32 4294901760, %v10150_v16  ;;  %v1195_v7 = vld [vmem:[#allocation8 + $0x200] sm:$0xff]  ;;  %2292 = vmatpush1.msra.mxu0 %v9795_v20  ;;  %v1194_v29 = vld [vmem:[#allocation8 + $0x1f8] sm:$0xff] }
  0xad   :  { %14872 = vst [vmem:[#allocation56_spill] sm:$0xff] %v10179_v62  ;;  %14875 = vst [vmem:[#allocation108_spill] sm:$0xff] %v10192_v36  ;;  %v10201_v55 = vsub.f32 %v10102_v31, %v14878_v45  ;;  %v10204_v15 = vand.u32 4294901760, %v1200_v57  ;;  %v14880_v17 = vand.u32 4294901760, %v10022_v34  ;;  %v14881_v19 = vand.u32 4294901760, %v10113_v24  ;;  %2294 = vmatprep.subr.mxu0 %v9813_v21  ;;  %v1191_v20 = vld [vmem:[#allocation8 + $0x1e0] sm:$0xff] }
  0xae   :  { %2565 = vmatpush1.msra.mxu1 %v14876_v0  ;;  %v2618_v0 = vand.u32 4294901760, %v10163_v60  ;;  %v10216_v45 = vsub.f32 %v1201_v53, %v10166_v61  ;;  %v10218_v31 = vand.u32 4294901760, %v1198_v13  ;;  %v2624_v34 = vand.u32 4294901760, %v10175_v12  ;;  %2296 = vmatpush1.msra.mxu0 %v9839_v6 }
  0xaf   :  { %14879 = vst [vmem:[#allocation109_spill] sm:$0xff] %v10204_v15  ;;  %2571 = vmatprep.subr.mxu1 %v14880_v17  ;;  %v10213_v16 = vsub.f32 %v10113_v24, %v14881_v19  ;;  %v14884_v17 = vand.u32 4294901760, %v10125_v10  ;;  %v10228_v19 = vand.u32 4294901760, %v1197_v63  ;;  %v1192_v24 = vld [vmem:[#allocation8 + $0x1e8] sm:$0xff]  ;;  %v14886_v53 = vand.u32 4294901760, %v10061_v49  ;;  %2298 = vmatprep.subr.mxu0 %v9848_v44 }
  0xb0   :  { %14882 = vst [vmem:[#allocation110_spill] sm:$0xff] %v10216_v45  ;;  %14883 = vst [vmem:[#allocation111_spill] sm:$0xff] %v10218_v31  ;;  %2577 = vmatpush1.msra.mxu1 %v2576_v33  ;;  %v2630_v33 = vand.u32 4294901760, %v10188_v50  ;;  %v14887_v21 = vand.u32 4294901760, %v10139_v41  ;;  %v2636_v49 = vand.u32 4294901760, %v10201_v55  ;;  %v10250_v50 = vsub.f32 %v1200_v57, %v10204_v15  ;;  %2300 = vmatpush1.msra.mxu0 %v9850_v1 }
  0xb1   :  { %v10225_v60 = vsub.f32 %v10125_v10, %v14884_v17  ;;  %14885 = vst [vmem:[#allocation112_spill] sm:$0xff] %v10228_v19  ;;  %2583 = vmatprep.subr.mxu1 %v14886_v53  ;;  %v10240_v10 = vand.u32 4294901760, %v1195_v7  ;;  %v14889_v53 = vand.u32 4294901760, %v10154_v40  ;;  %v10258_v55 = vsub.f32 %v1198_v13, %v10218_v31  ;;  %2302 = vmatprep.subr.mxu0 %v9873_v54  ;;  %v1186_v13 = vld [vmem:[#allocation8 + $0x1b8] sm:$0xff] }
  0xb2   :  { %v10237_v12 = vsub.f32 %v10139_v41, %v14887_v21  ;;  %2589 = vmatpush2.msra.mxu1 %v2588_v59  ;;  %14890 = vst [vmem:[#allocation114_spill] sm:$0xff] %v10250_v50  ;;  %v10252_v21 = vand.u32 4294901760, %v1194_v29  ;;  %v1189_v41 = vld [vmem:[#allocation8 + $0x1d0] sm:$0xff]  ;;  %v2642_v59 = vand.u32 4294901760, %v10213_v16  ;;  %v10260_v44 = vand.u32 4294901760, %v1192_v24  ;;  %2304 = vmatpush1.msra.mxu0 %v9912_v18 }
  0xb3   :  { %14888 = vst [vmem:[#allocation113_spill] sm:$0xff] %v10240_v10  ;;  %v10247_v6 = vsub.f32 %v10154_v40, %v14889_v53  ;;  %2595 = vmatprep.subr.mxu1 %v2594_v52  ;;  %14891 = vst [vmem:[#allocation115_spill] sm:$0xff] %v10258_v55  ;;  %v1188_v53 = vld [vmem:[#allocation8 + $0x1c8] sm:$0xff]  ;;  %v2648_v57 = vand.u32 4294901760, %v10225_v60  ;;  %v14892_v40 = vand.u32 4294901760, %v10179_v62  ;;  %v10270_v16 = vsub.f32 %v1197_v63, %v10228_v19  ;;  %v1185_v63 = vld [vmem:[#allocation8 + $0x1b0] sm:$0xff] }
  0xb4   :  { %2601 = vmatpush2.msra.mxu1 %v2600_v51  ;;  %v10272_v17 = vand.u32 4294901760, %v1191_v20  ;;  %v2654_v51 = vand.u32 4294901760, %v10237_v12  ;;  %v14893_v54 = vand.u32 4294901760, %v10192_v36  ;;  %v10282_v1 = vsub.f32 %v1195_v7, %v10240_v10  ;;  %2306 = vmatprep.subr.mxu0 %v9914_v46 }
  0xb5   :  { %v10267_v52 = vsub.f32 %v10179_v62, %v14892_v40  ;;  %2607 = vmatprep.subr.mxu1 %v2606_v38  ;;  %v10284_v40 = vand.u32 4294901760, %v1189_v41  ;;  %v2660_v38 = vand.u32 4294901760, %v10247_v6  ;;  %v10290_v12 = vsub.f32 %v1194_v29, %v10252_v21  ;;  %2308 = vmatpush2.msra.mxu0 %v9928_v4  ;;  %v1182_v62 = vld [vmem:[#allocation8 + $0x198] sm:$0xff] }
  0xb6   :  { %v10279_v60 = vsub.f32 %v10192_v36, %v14893_v54  ;;  %14894 = vst [vmem:[#allocation116_spill] sm:$0xff] %v10282_v1  ;;  %2613 = vmatpush2.msra.mxu1 %v2612_v28  ;;  %v10292_v18 = vand.u32 4294901760, %v1188_v53  ;;  %v1183_v54 = vld [vmem:[#allocation8 + $0x1a0] sm:$0xff]  ;;  %v14895_v7 = vand.u32 4294901760, %v10216_v45  ;;  %v10300_v46 = vsub.f32 %v1192_v24, %v10260_v44  ;;  %2310 = vmatprep.subr.mxu0 %v9940_v22 }
  0xb7   :  { %2619 = vmatprep.subr.mxu1 %v2618_v0  ;;  %v10302_v6 = vand.u32 4294901760, %v1186_v13  ;;  %v2666_v29 = vand.u32 4294901760, %v10267_v52  ;;  %v10308_v4 = vsub.f32 %v1191_v20, %v10272_v17  ;;  %v10310_v3 = vand.u32 4294901760, %v1185_v63  ;;  %2312 = vmatpush2.msra.mxu0 %v9976_v32  ;;  %v1179_v52 = vld [vmem:[#allocation8 + $0x180] sm:$0xff] }
  0xb8   :  { %v2677_v36 = vsub.f32 %v10216_v45, %v14895_v7  ;;  %2625 = vmatpush2.msra.mxu1 %v2624_v34  ;;  %v1180_v7 = vld [vmem:[#allocation8 + $0x188] sm:$0xff]  ;;  %v2672_v24 = vand.u32 4294901760, %v10279_v60  ;;  %v10316_v34 = vsub.f32 %v1189_v41, %v10284_v40  ;;  %v10318_v45 = vand.u32 4294901760, %v1183_v54  ;;  %2314 = vmatprep.subr.mxu0 %v9990_v2 }
  0xb9   :  { %14896 = vst [vmem:[#allocation117_spill] sm:$0xff] %v10302_v6  ;;  %14897 = vst [vmem:[#allocation118_spill] sm:$0xff] %v10310_v3  ;;  %2631 = vmatprep.subr.mxu1 %v2630_v33  ;;  %v14899_v20 = vand.u32 4294901760, %v10250_v50  ;;  %v10326_v32 = vsub.f32 %v1188_v53, %v10292_v18  ;;  %v10328_v60 = vand.u32 4294901760, %v1182_v62  ;;  %2316 = vmatpush2.msra.mxu0 %v10006_v48  ;;  %v14902_v41 = vand.u32 4294901760, %v10258_v55 }
  0xba   :  { %14898 = vst [vmem:[#allocation119_spill] sm:$0xff] %v10316_v34  ;;  %2637 = vmatpush2.msra.mxu1 %v2636_v49  ;;  %v10336_v2 = vsub.f32 %v1186_v13, %v10302_v6  ;;  %2318 = vmatprep.subr.mxu0 %v10014_v58  ;;  %v14905_v53 = vand.u32 4294901760, %v10270_v16  ;;  %v2678_v13 = vand.u32 4294901760, %v2677_v36  ;;  %v14908_v28 = vand.u32 4294901760, %v10282_v1 }
  0xbb   :  { %v2683_v0 = vsub.f32 %v10250_v50, %v14899_v20  ;;  %14900 = vst [vmem:[#allocation120_spill] sm:$0xff] %v10326_v32  ;;  %14901 = vst [vmem:[#allocation121_spill] sm:$0xff] %v10328_v60  ;;  %2643 = vmatprep.subr.mxu1 %v2642_v59  ;;  %v2689_v49 = vsub.f32 %v10258_v55, %v14902_v41  ;;  %v10338_v20 = vand.u32 4294901760, %v1180_v7  ;;  %v10348_v41 = vand.u32 4294901760, %v1179_v52 }
  0xbc   :  { %14903 = vst [vmem:[#allocation122_spill] sm:$0xff] %v10336_v2  ;;  %2649 = vmatpush2.msra.mxu1 %v2648_v57  ;;  %v2695_v59 = vsub.f32 %v10270_v16, %v14905_v53  ;;  %v10346_v50 = vsub.f32 %v1185_v63, %v10310_v3  ;;  %2320 = vmatpush2.msra.mxu0 %v10028_v47  ;;  %v14910_v53 = vand.u32 4294901760, %v10290_v12 }
  0xbd   :  { %14904 = vst [vmem:[#allocation123_spill] sm:$0xff] %v10338_v20  ;;  %14907 = vst [vmem:[#allocation125_spill] sm:$0xff] %v10348_v41  ;;  %2655 = vmatprep.subr.mxu1 %v2654_v51  ;;  %v2701_v57 = vsub.f32 %v10282_v1, %v14908_v28  ;;  %v10356_v58 = vsub.f32 %v1183_v54, %v10318_v45  ;;  %2322 = vmatprep.subr.mxu0 %v10038_v37  ;;  %v2684_v63 = vand.u32 4294901760, %v2683_v0 }
  0xbe   :  { %14906 = vst [vmem:[#allocation124_spill] sm:$0xff] %v10346_v50  ;;  %2661 = vmatpush2.msra.mxu1 %v2660_v38  ;;  %v2707_v51 = vsub.f32 %v10290_v12, %v14910_v53  ;;  %v10364_v36 = vsub.f32 %v1182_v62, %v10328_v60  ;;  %2324 = vmatpush2.msra.mxu0 %v10048_v23  ;;  %v2690_v28 = vand.u32 4294901760, %v2689_v49  ;;  %v14912_v54 = vand.u32 4294901760, %v10300_v46 }
  0xbf   :  { %14909 = vst [vmem:[#allocation126_spill] sm:$0xff] %v10356_v58  ;;  %2667 = vmatprep.subr.mxu1 %v2666_v29  ;;  %v10372_v0 = vsub.f32 %v1180_v7, %v10338_v20  ;;  %2326 = vmatprep.subr.mxu0 %v10066_v5  ;;  %v2696_v53 = vand.u32 4294901760, %v2695_v59  ;;  %v14914_v62 = vand.u32 4294901760, %v10308_v4  ;;  %v10380_v49 = vsub.f32 %v1179_v52, %v10348_v41 }
  0xc0   :  { %14911 = vst [vmem:[#allocation127_spill] sm:$0xff] %v10364_v36  ;;  %v2713_v38 = vsub.f32 %v10300_v46, %v14912_v54  ;;  %2673 = vmatpush2.msra.mxu1 %v2672_v24  ;;  %2328 = vmatpush2.msra.mxu0 %v10076_v26  ;;  %v2702_v54 = vand.u32 4294901760, %v2701_v57  ;;  %v14916_v7 = vand.u32 4294901760, %v10316_v34  ;;  %v2708_v59 = vand.u32 4294901760, %v2707_v51 }
  0xc1   :  { %14913 = vst [vmem:[#allocation128_spill] sm:$0xff] %v10372_v0  ;;  %v2719_v29 = vsub.f32 %v10308_v4, %v14914_v62  ;;  %14915 = vst [vmem:[#allocation129_spill] sm:$0xff] %v10380_v49  ;;  %2679 = vmatprep.subr.mxu1 %v2678_v13  ;;  %2330 = vmatprep.subr.mxu0 %v10090_v35  ;;  %v14917_v62 = vand.u32 4294901760, %v10326_v32  ;;  %v14918_v57 = vand.u32 4294901760, %v10336_v2  ;;  %v14919_v51 = vand.u32 4294901760, %v10346_v50 }
  0xc2   :  { %v2725_v24 = vsub.f32 %v10316_v34, %v14916_v7  ;;  %2685 = vmatpush2.msra.mxu1 %v2684_v63  ;;  %2332 = vmatpush2.msra.mxu0 %v10104_v39  ;;  %v2714_v13 = vand.u32 4294901760, %v2713_v38  ;;  %v14280_v52 = vand.u32 4294901760, %v10380_v49  ;;  %v14920_v38 = vand.u32 4294901760, %v10356_v58 }
  0xc3   :  { %v2731_v33 = vsub.f32 %v10326_v32, %v14917_v62  ;;  %2691 = vmatprep.subr.mxu1 %v2690_v28  ;;  %v2737_v7 = vsub.f32 %v10336_v2, %v14918_v57  ;;  %2334 = vmatprep.subr.mxu0 %v10127_v56  ;;  %v2720_v63 = vand.u32 4294901760, %v2719_v29  ;;  %v2743_v62 = vsub.f32 %v10346_v50, %v14919_v51 }
  0xc4   :  { %2697 = vmatpush2.msra.mxu1 %v2696_v53  ;;  %2336 = vmatpush2.msra.mxu0 %v10141_v42  ;;  %v2726_v28 = vand.u32 4294901760, %v2725_v24  ;;  %v2749_v57 = vsub.f32 %v10356_v58, %v14920_v38  ;;  %v14921_v29 = vand.u32 4294901760, %v10364_v36 }
  0xc5   :  { %2703 = vmatprep.subr.mxu1 %v2702_v54  ;;  %2338 = vmatprep.subr.mxu0 %v10166_v61  ;;  %v2732_v53 = vand.u32 4294901760, %v2731_v33  ;;  %v2738_v51 = vand.u32 4294901760, %v2737_v7  ;;  %v14922_v54 = vand.u32 4294901760, %v10372_v0  ;;  %v2744_v38 = vand.u32 4294901760, %v2743_v62 }
  0xc6   :  { %2709 = vmatpush2.msra.mxu1 %v2708_v59  ;;  %v2755_v55 = vsub.f32 %v10364_v36, %v14921_v29  ;;  %2340 = vmatpush2.msra.mxu0 %v10204_v15  ;;  %v2767_v33 = vsub.f32 %v10380_v49, %v14280_v52  ;;  %v2750_v59 = vand.u32 4294901760, %v2749_v57  ;;  %v121_v62 = vlaneseq }
  0xc7   :  { %2715 = vmatprep.subr.mxu1 %v2714_v13  ;;  %v2761_v24 = vsub.f32 %v10372_v0, %v14922_v54  ;;  %2342 = vmatprep.subr.mxu0 %v10218_v31 }
  0xc8   :  { %2721 = vmatpush2.msra.mxu1 %v2720_v63  ;;  %2344 = vmatpush2.msra.mxu0 %v10228_v19  ;;  %v2756_v13 = vand.u32 4294901760, %v2755_v55  ;;  %v2768_v63 = vand.u32 4294901760, %v2767_v33  ;;  %v14923_v55 = vld [vmem:[#allocation20_spill] sm:$0xff] }
  0xc9   :  { %2727 = vmatprep.subr.mxu1 %v2726_v28  ;;  %2346 = vmatprep.subr.mxu0 %v10240_v10  ;;  %v2762_v7 = vand.u32 4294901760, %v2761_v24  ;;  %v10433_v28 = vshrl.u32 %v121_v62, 7 }
  0xca   :  { %2733 = vmatpush2.msra.mxu1 %v2732_v53  ;;  %2348 = vmatpush2.msra.mxu0 %v10252_v21  ;;  %v119_v53 = vld [vmem:[%s14096_s3] sm:$0xf] }
  0xcb   :  { %2739 = vmatprep.subr.mxu1 %v2738_v51  ;;  %2350 = vmatprep.subr.mxu0 %v10260_v44  ;;  %14924 = vst [vmem:[#allocation130_spill] sm:$0xff] %v10433_v28  ;;  %v14293_v57 = vsub.s32 0, %v10433_v28  ;;  %v14297_v29 = vsub.s32 1, %v10433_v28 }
  0xcc   :  { %2745 = vmatpush2.msra.mxu1 %v2744_v38  ;;  %2352 = vmatpush2.msra.mxu0 %v10272_v17 }
  0xcd   :  { %2751 = vmatprep.subr.mxu1 %v2750_v59  ;;  %2354 = vmatprep.subr.mxu0 %v10284_v40  ;;  %v124_v51 = vrot.slane %v119_v53, %v14293_v57  ;;  %v128_v54 = vrot.slane %v119_v53, %v14297_v29 }
  0xce   :  { %2757 = vmatpush2.msra.mxu1 %v2756_v13  ;;  %2356 = vmatpush2.msra.mxu0 %v10292_v18 }
  0xcf   :  { %2763 = vmatprep.subr.mxu1 %v2762_v7  ;;  %2358 = vmatprep.subr.mxu0 %v10302_v6 }
  0xd0   :  { %2769 = vmatpush2.msra.mxu1 %v2768_v63  ;;  %2360 = vmatpush2.msra.mxu0 %v10310_v3 }
  0xd1   :  { %2983 = vmatprep.subr.mxu1 %v9475_v8  ;;  %2362 = vmatprep.subr.mxu0 %v10318_v45 }
  0xd2   :  { %2364 = vmatpush2.msra.mxu0 %v10328_v60 }
  0xd3   :  { %2366 = vmatprep.subr.mxu0 %v10338_v20 }
  0xd4   :  { %2368 = vmatpush2.msra.mxu0 %v10348_v41 }
  0xd5   :  { %2781 = vmatprep.subr.mxu0 %v14923_v55 }
 0x117   :  { %v220_v24 = vpop.f32.mrf.mxu0 }
 0x118   :  { %v221_v38 = vadd.f32 %v220_v24, %v124_v51  ;;  %v14300_v51 = vsub.s32 2, %v10433_v28 }
 0x119   :  { %v222_v33 = vpop.f32.mrf.mxu0  ;;  %v312_v59 = vpop.f32.mrf.mxu1 }
 0x11a   :  { %v223_v13 = vadd.f32 %v222_v33, %v128_v54  ;;  %v313_v7 = vadd.f32 %v312_v59, %v221_v38  ;;  %v135_v54 = vsub.s32 3, %v10433_v28  ;;  %v14936_v28 = vld [vmem:[#allocation28_spill] sm:$0xff] }
 0x11b   :  { %v393_v63 = vpop.f32.mrf.mxu0  ;;  %v314_v62 = vpop.f32.mrf.mxu1 }
 0x11c   :  { %v394_v52 = vadd.f32 %v393_v63, %v313_v7  ;;  %v315_v55 = vadd.f32 %v314_v62, %v223_v13 }
 0x11d   :  { %v395_v49 = vpop.f32.mrf.mxu0 }
 0x11e   :  { %v396_v0 = vadd.f32 %v395_v49, %v315_v55  ;;  %v132_v49 = vrot.slane %v119_v53, %v14300_v51 }
 0x11f   :  { %v471_v36 = vpop.f32.mrf.mxu1 }
 0x120   :  { %v472_v58 = vadd.f32 %v471_v36, %v394_v52 }
 0x121   :  { %v555_v50 = vpop.f32.mrf.mxu0  ;;  %v473_v2 = vpop.f32.mrf.mxu1 }
 0x122   :  { %v556_v57 = vadd.f32 %v555_v50, %v472_v58  ;;  %v474_v32 = vadd.f32 %v473_v2, %v396_v0  ;;  %v136_v58 = vrot.slane %v119_v53, %v135_v54 }
 0x123   :  { %v557_v8 = vpop.f32.mrf.mxu0 }
 0x124   :  { %v558_v29 = vadd.f32 %v557_v8, %v474_v32 }
 0x125   :  { %v631_v24 = vpop.f32.mrf.mxu1 }
 0x126   :  { %v632_v34 = vadd.f32 %v631_v24, %v556_v57 }
 0x127   :  { %v633_v38 = vpop.f32.mrf.mxu1 }
 0x128   :  { %v1127_v33 = vmax.f32 %v632_v34, 0.0  ;;  %v634_v59 = vadd.f32 %v633_v38, %v558_v29 }
 0x129   :  { %v803_v55 = vpop.f32.mrf.mxu1 }
 0x12a   :  { %v10448_v36 = vand.u32 4294901760, %v1127_v33  ;;  %v1128_v52 = vmax.f32 %v634_v59, 0.0 }
 0x12b   :  { %v711_v2 = vpop.f32.mrf.mxu0  ;;  %v805_v50 = vpop.f32.mrf.mxu1 }
 0x12c   :  { %14925 = vst [vmem:[#allocation131_spill] sm:$0xff] %v10448_v36  ;;  %v10451_v8 = vsub.f32 %v1127_v33, %v10448_v36  ;;  %v10453_v32 = vand.u32 4294901760, %v1128_v52  ;;  %v712_v0 = vadd.f32 %v711_v2, %v132_v49  ;;  %v14931_v33 = vld [vmem:[#allocation23_spill] sm:$0xff] }
 0x12d   :  { %v713_v57 = vpop.f32.mrf.mxu0 }
 0x12e   :  { %14926 = vst [vmem:[#allocation132_spill] sm:$0xff] %v10451_v8  ;;  %14927 = vst [vmem:[#allocation133_spill] sm:$0xff] %v10453_v32  ;;  %v10456_v34 = vand.u32 4294901760, %v10451_v8  ;;  %v10459_v29 = vsub.f32 %v1128_v52, %v10453_v32  ;;  %2771 = vmatprep.mubr.f32.mxu1 %v10453_v32  ;;  %v714_v13 = vadd.f32 %v713_v57, %v136_v58  ;;  %v962_v53 = vpop.f32.mrf.mxu1 }
 0x12f   :  { %v804_v7 = vadd.f32 %v803_v55, %v712_v0  ;;  %2773 = vmatmul.mubr.f32.vlgmr.msra.gmra.mxu1 %v10448_v36  ;;  %v14933_v0 = vld [vmem:[#allocation24_spill] sm:$0xff] }
 0x130   :  { %14928 = vst [vmem:[#allocation134_spill] sm:$0xff] %v10456_v34  ;;  %14929 = vst [vmem:[#allocation135_spill] sm:$0xff] %v10459_v29  ;;  %2985 = vmatpush1.msra.mxu1 %v9477_v9  ;;  %v10465_v63 = vand.u32 4294901760, %v10459_v29  ;;  %v806_v62 = vadd.f32 %v805_v50, %v714_v13  ;;  %v964_v24 = vpop.f32.mrf.mxu1  ;;  %v2378_v54 = vsub.f32 %v10451_v8, %v10456_v34  ;;  %v14935_v13 = vld [vmem:[#allocation26_spill] sm:$0xff] }
 0x131   :  { %2987 = vmatprep.subr.mxu1 %v9482_v11  ;;  %v884_v38 = vpop.f32.mrf.mxu0 }
 0x132   :  { %14930 = vst [vmem:[#allocation136_spill] sm:$0xff] %v10465_v63  ;;  %2989 = vmatpush1.msra.mxu1 %v14931_v33  ;;  %3113 = vmatprep.mubr.f32.mxu1 %v10465_v63  ;;  %v2372_v59 = vsub.f32 %v10459_v29, %v10465_v63  ;;  %v885_v49 = vadd.f32 %v884_v38, %v804_v7  ;;  %v10479_v57 = vand.u32 4294901760, %v2378_v54  ;;  %v14937_v63 = vld [vmem:[#allocation21_spill] sm:$0xff]  ;;  %v14939_v54 = vld [vmem:[#allocation22_spill] sm:$0xff] }
 0x133   :  { %2991 = vmatprep.subr.mxu1 %v9520_v27  ;;  %v886_v55 = vpop.f32.mrf.mxu0 }
 0x134   :  { %2993 = vmatpush1.msra.mxu1 %v9525_v30  ;;  %v10476_v52 = vand.u32 4294901760, %v2372_v59  ;;  %v887_v58 = vadd.f32 %v886_v55, %v806_v62  ;;  %v963_v2 = vadd.f32 %v962_v53, %v885_v49  ;;  %v1122_v50 = vpop.f32.mrf.mxu1  ;;  %14934 = vst [vmem:[#allocation24_spill] sm:$0xff] %v10479_v57  ;;  %v14938_v53 = vld [vmem:[#allocation30_spill] sm:$0xff] }
 0x135   :  { %2995 = vmatprep.subr.mxu1 %v14933_v0 }
 0x136   :  { %14932 = vst [vmem:[#allocation23_spill] sm:$0xff] %v10476_v52  ;;  %2997 = vmatpush1.msra.mxu1 %v14935_v13  ;;  %2374 = vmatprep.mubr.f32.mxu0 %v10476_v52  ;;  %v965_v51 = vadd.f32 %v964_v24, %v887_v58  ;;  %v1046_v7 = vpop.f32.mrf.mxu0  ;;  %v1124_v38 = vpop.f32.mrf.mxu1  ;;  %v14941_v24 = vld [vmem:[#allocation32_spill] sm:$0xff]  ;;  %v14942_v58 = vld [vmem:[#allocation25_spill] sm:$0xff] }
 0x137   :  { %2999 = vmatprep.subr.mxu1 %v14936_v28  ;;  %2380 = vmatmul.mubr.f32.vlgmr.msra.gmra.mxu0 %v10479_v57  ;;  %v1047_v59 = vadd.f32 %v1046_v7, %v963_v2  ;;  %v14943_v57 = vld [vmem:[#allocation35_spill] sm:$0xff] }
 0x138   :  { %2784 = vmatpush1.msra.mxu0 %v14937_v63  ;;  %3001 = vmatpush1.msra.mxu1 %v14938_v53  ;;  %v1048_v62 = vpop.f32.mrf.mxu0  ;;  %v1485_v49 = vpop.f32.mrf.mxu1  ;;  %v14944_v2 = vld [vmem:[#allocation27_spill] sm:$0xff]  ;;  %v14946_v53 = vld [vmem:[#allocation37_spill] sm:$0xff] }
 0x139   :  { %2787 = vmatprep.subr.mxu0 %v14939_v54  ;;  %2973 = vmatprep.mubr.f32.mxu0 %v10459_v29  ;;  %v1049_v55 = vadd.f32 %v1048_v62, %v965_v51  ;;  %v10489_v52 = vadd.f32 %v1122_v50, %v1047_v59  ;;  %v14947_v63 = vld [vmem:[#allocation29_spill] sm:$0xff]  ;;  %v14948_v51 = vld [vmem:[#allocation31_spill] sm:$0xff]  ;;  %v14949_v59 = vld [vmem:[#allocation40_spill] sm:$0xff] }
 0x13a   :  { %3003 = vmatprep.subr.mxu1 %v14941_v24  ;;  %2790 = vmatpush1.msra.mxu0 %v14942_v58  ;;  %v1487_v36 = vpop.f32.mrf.mxu1  ;;  %v14950_v62 = vld [vmem:[#allocation33_spill] sm:$0xff]  ;;  %v14958_v58 = vld [vmem:[#allocation52_spill] sm:$0xff] }
 0x13b   :  { %14940 = vst [vmem:[#allocation26_spill] sm:$0xff] %v10489_v52  ;;  %3005 = vmatpush1.msra.mxu1 %v14943_v57  ;;  %2793 = vmatprep.subr.mxu0 %v14944_v2  ;;  %v10495_v7 = vadd.f32 %v1124_v38, %v1049_v55  ;;  %v14951_v2 = vld [vmem:[#allocation44_spill] sm:$0xff]  ;;  %v14952_v38 = vld [vmem:[#allocation34_spill] sm:$0xff] }
 0x13c   :  { %3007 = vmatprep.subr.mxu1 %v14946_v53  ;;  %2796 = vmatpush1.msra.mxu0 %v14947_v63  ;;  %v1403_v54 = vpop.f32.mrf.mxu0  ;;  %v1638_v29 = vpop.f32.mrf.mxu1  ;;  %v14954_v63 = vld [vmem:[#allocation36_spill] sm:$0xff] }
 0x13d   :  { %14945 = vst [vmem:[#allocation28_spill] sm:$0xff] %v10495_v7  ;;  %3009 = vmatpush1.msra.mxu1 %v9610_v14  ;;  %2799 = vmatprep.subr.mxu0 %v14948_v51  ;;  %v1486_v50 = vadd.f32 %v1485_v49, %v1403_v54  ;;  %v14953_v7 = vld [vmem:[#allocation45_spill] sm:$0xff]  ;;  %v14955_v49 = vld [vmem:[#allocation39_spill] sm:$0xff] }
 0x13e   :  { %3011 = vmatprep.subr.mxu1 %v14949_v59  ;;  %2802 = vmatpush1.msra.mxu0 %v14950_v62  ;;  %v1405_v52 = vpop.f32.mrf.mxu0  ;;  %v1640_v57 = vpop.f32.mrf.mxu1  ;;  %v14956_v59 = vld [vmem:[#allocation48_spill] sm:$0xff]  ;;  %v14957_v62 = vld [vmem:[#allocation41_spill] sm:$0xff] }
 0x13f   :  { %3013 = vmatpush1.msra.mxu1 %v14951_v2  ;;  %2805 = vmatprep.subr.mxu0 %v14952_v38  ;;  %v1488_v55 = vadd.f32 %v1487_v36, %v1405_v52  ;;  %v14959_v36 = vld [vmem:[#allocation42_spill] sm:$0xff]  ;;  %v14961_v38 = vld [vmem:[#allocation43_spill] sm:$0xff] }
 0x140   :  { %3015 = vmatprep.subr.mxu1 %v14953_v7  ;;  %2808 = vmatpush1.msra.mxu0 %v14954_v63  ;;  %v1562_v53 = vpop.f32.mrf.mxu0  ;;  %v1790_v14 = vpop.f32.mrf.mxu1  ;;  %v14960_v63 = vld [vmem:[#allocation54_spill] sm:$0xff] }
 0x141   :  { %3017 = vmatpush1.msra.mxu1 %v9680_v25  ;;  %2811 = vmatprep.subr.mxu0 %v14955_v49  ;;  %v1563_v54 = vadd.f32 %v1562_v53, %v1486_v50  ;;  %v14962_v49 = vld [vmem:[#allocation55_spill] sm:$0xff]  ;;  %v14963_v53 = vld [vmem:[#allocation46_spill] sm:$0xff] }
 0x142   :  { %3019 = vmatprep.subr.mxu1 %v14956_v59  ;;  %2814 = vmatpush1.msra.mxu0 %v14957_v62  ;;  %v1564_v51 = vpop.f32.mrf.mxu0  ;;  %v1792_v2 = vpop.f32.mrf.mxu1  ;;  %v14964_v59 = vld [vmem:[#allocation49_spill] sm:$0xff] }
 0x143   :  { %3021 = vmatpush1.msra.mxu1 %v14958_v58  ;;  %2817 = vmatprep.subr.mxu0 %v14959_v36  ;;  %v1565_v52 = vadd.f32 %v1564_v51, %v1488_v55  ;;  %v1639_v7 = vadd.f32 %v1638_v29, %v1563_v54  ;;  %v14965_v51 = vld [vmem:[#allocation58_spill] sm:$0xff] }
 0x144   :  { %3023 = vmatprep.subr.mxu1 %v14960_v63  ;;  %2820 = vmatpush1.msra.mxu0 %v14961_v38  ;;  %v1716_v25 = vpop.f32.mrf.mxu0  ;;  %v1943_v24 = vpop.f32.mrf.mxu1  ;;  %v14966_v29 = vld [vmem:[#allocation50_spill] sm:$0xff]  ;;  %v14968_v38 = vld [vmem:[#allocation60_spill] sm:$0xff] }
 0x145   :  { %3025 = vmatpush1.msra.mxu1 %v14962_v49  ;;  %2823 = vmatprep.subr.mxu0 %v14963_v53  ;;  %v1641_v50 = vadd.f32 %v1640_v57, %v1565_v52  ;;  %v1717_v62 = vadd.f32 %v1716_v25, %v1639_v7  ;;  %v14969_v49 = vld [vmem:[#allocation51_spill] sm:$0xff]  ;;  %v14970_v25 = vld [vmem:[#allocation62_spill] sm:$0xff]  ;;  %v14971_v7 = vld [vmem:[#allocation53_spill] sm:$0xff] }
 0x146   :  { %3027 = vmatprep.subr.mxu1 %v14870_v43  ;;  %2826 = vmatpush1.msra.mxu0 %v14964_v59  ;;  %v1718_v58 = vpop.f32.mrf.mxu0  ;;  %v8887_v36 = vpop.f32.mrf.mxu1  ;;  %v14973_v59 = vld [vmem:[#allocation64_spill] sm:$0xff] }
 0x147   :  { %3029 = vmatpush1.msra.mxu1 %v14965_v51  ;;  %2829 = vmatprep.subr.mxu0 %v14966_v29  ;;  %v1719_v55 = vadd.f32 %v1718_v58, %v1641_v50  ;;  %v10521_v54 = vadd.f32 %v1790_v14, %v1717_v62  ;;  %v14974_v51 = vld [vmem:[#allocation57_spill] sm:$0xff]  ;;  %v14975_v62 = vld [vmem:[#allocation67_spill] sm:$0xff] }
 0x148   :  { %3031 = vmatprep.subr.mxu1 %v14968_v38  ;;  %2832 = vmatpush1.msra.mxu0 %v14969_v49  ;;  %v1867_v53 = vpop.f32.mrf.mxu0  ;;  %v2091_v57 = vpop.f32.mrf.mxu1  ;;  %v14976_v50 = vld [vmem:[#allocation59_spill] sm:$0xff]  ;;  %v14978_v49 = vld [vmem:[#allocation61_spill] sm:$0xff] }
 0x149   :  { %14967 = vst [vmem:[#allocation54_spill] sm:$0xff] %v10521_v54  ;;  %3033 = vmatpush1.msra.mxu1 %v14970_v25  ;;  %2835 = vmatprep.subr.mxu0 %v14971_v7  ;;  %v10527_v52 = vadd.f32 %v1792_v2, %v1719_v55  ;;  %v1944_v36 = vadd.f32 %v1943_v24, %v1867_v53  ;;  %v14977_v54 = vld [vmem:[#allocation69_spill] sm:$0xff]  ;;  %v14979_v7 = vld [vmem:[#allocation70_spill] sm:$0xff]  ;;  %v14980_v2 = vld [vmem:[#allocation63_spill] sm:$0xff] }
 0x14a   :  { %3035 = vmatprep.subr.mxu1 %v14973_v59  ;;  %2838 = vmatpush1.msra.mxu0 %v14974_v51  ;;  %v8882_v58 = vpop.f32.mrf.mxu0  ;;  %v8897_v14 = vpop.f32.mrf.mxu1  ;;  %v14981_v53 = vld [vmem:[#allocation72_spill] sm:$0xff]  ;;  %v14982_v55 = vld [vmem:[#allocation65_spill] sm:$0xff] }
 0x14b   :  { %14972 = vst [vmem:[#allocation50_spill] sm:$0xff] %v10527_v52  ;;  %3037 = vmatpush1.msra.mxu1 %v14975_v62  ;;  %2841 = vmatprep.subr.mxu0 %v14976_v50  ;;  %v14983_v52 = vld [vmem:[#allocation76_spill] sm:$0xff]  ;;  %v14984_v50 = vld [vmem:[#allocation66_spill] sm:$0xff]  ;;  %v14985_v62 = vld [vmem:[#allocation77_spill] sm:$0xff] }
 0x14c   :  { %3039 = vmatprep.subr.mxu1 %v14977_v54  ;;  %2844 = vmatpush1.msra.mxu0 %v14978_v49  ;;  %v2017_v25 = vpop.f32.mrf.mxu0  ;;  %v2237_v38 = vpop.f32.mrf.mxu1  ;;  %v14986_v49 = vld [vmem:[#allocation68_spill] sm:$0xff] }
 0x14d   :  { %3041 = vmatpush1.msra.mxu1 %v14979_v7  ;;  %2847 = vmatprep.subr.mxu0 %v14980_v2  ;;  %v2018_v24 = vadd.f32 %v2017_v25, %v1944_v36  ;;  %v14987_v7 = vld [vmem:[#allocation79_spill] sm:$0xff]  ;;  %v14989_v36 = vld [vmem:[#allocation73_spill] sm:$0xff] }
 0x14e   :  { %3043 = vmatprep.subr.mxu1 %v14981_v53  ;;  %2850 = vmatpush1.msra.mxu0 %v14982_v55  ;;  %v8892_v58 = vpop.f32.mrf.mxu0  ;;  %v8907_v14 = vpop.f32.mrf.mxu1  ;;  %v14988_v2 = vld [vmem:[#allocation71_spill] sm:$0xff] }
 0x14f   :  { %3045 = vmatpush1.msra.mxu1 %v14983_v52  ;;  %2853 = vmatprep.subr.mxu0 %v14984_v50  ;;  %v2092_v54 = vadd.f32 %v2091_v57, %v2018_v24  ;;  %v14990_v14 = vld [vmem:[#allocation83_spill] sm:$0xff]  ;;  %v14991_v52 = vld [vmem:[#allocation74_spill] sm:$0xff]  ;;  %v14993_v24 = vld [vmem:[#allocation85_spill] sm:$0xff] }
 0x150   :  { %3047 = vmatprep.subr.mxu1 %v14985_v62  ;;  %2856 = vmatpush1.msra.mxu0 %v14986_v49  ;;  %v2165_v51 = vpop.f32.mrf.mxu0  ;;  %v14994_v49 = vld [vmem:[#allocation75_spill] sm:$0xff] }
 0x151   :  { %3049 = vmatpush2.msra.mxu1 %v14987_v7  ;;  %2859 = vmatprep.subr.mxu0 %v14988_v2  ;;  %v2166_v25 = vadd.f32 %v2165_v51, %v2092_v54  ;;  %v14995_v7 = vld [vmem:[#allocation78_spill] sm:$0xff]  ;;  %v14997_v54 = vld [vmem:[#allocation80_spill] sm:$0xff] }
 0x152   :  { %3051 = vmatprep.subr.mxu1 %v9940_v22  ;;  %2862 = vmatpush1.msra.mxu0 %v14989_v36  ;;  %v8902_v58 = vpop.f32.mrf.mxu0  ;;  %v14996_v51 = vld [vmem:[#allocation86_spill] sm:$0xff] }
 0x153   :  { %3053 = vmatpush2.msra.mxu1 %v14990_v14  ;;  %2865 = vmatprep.subr.mxu0 %v14991_v52  ;;  %v10549_v57 = vadd.f32 %v2237_v38, %v2166_v25  ;;  %v14998_v58 = vld [vmem:[#allocation81_spill] sm:$0xff]  ;;  %v14999_v38 = vld [vmem:[#allocation82_spill] sm:$0xff]  ;;  %v15000_v25 = vld [vmem:[#allocation84_spill] sm:$0xff] }
 0x154   :  { %3055 = vmatprep.subr.mxu1 %v14993_v24  ;;  %2868 = vmatpush1.msra.mxu0 %v14994_v49 }
 0x155   :  { %14992 = vst [vmem:[#allocation64_spill] sm:$0xff] %v10549_v57  ;;  %3057 = vmatpush2.msra.mxu1 %v10006_v48  ;;  %2871 = vmatprep.subr.mxu0 %v14995_v7  ;;  %v15001_v57 = vld [vmem:[#allocation87_spill] sm:$0xff] }
 0x156   :  { %3059 = vmatprep.subr.mxu1 %v14996_v51  ;;  %2874 = vmatpush1.msra.mxu0 %v14997_v54  ;;  %v15002_v51 = vld [vmem:[#allocation89_spill] sm:$0xff] }
 0x157   :  { %3061 = vmatpush2.msra.mxu1 %v10028_v47  ;;  %2877 = vmatprep.subr.mxu0 %v14998_v58  ;;  %v15003_v47 = vld [vmem:[#allocation91_spill] sm:$0xff] }
 0x158   :  { %3063 = vmatprep.subr.mxu1 %v10038_v37  ;;  %2880 = vmatpush2.msra.mxu0 %v14999_v38  ;;  %v15004_v37 = vld [vmem:[#allocation93_spill] sm:$0xff] }
 0x159   :  { %3065 = vmatpush2.msra.mxu1 %v10048_v23  ;;  %2883 = vmatprep.subr.mxu0 %v15000_v25  ;;  %v15005_v23 = vld [vmem:[#allocation95_spill] sm:$0xff] }
 0x15a   :  { %3067 = vmatprep.subr.mxu1 %v10066_v5  ;;  %2886 = vmatpush2.msra.mxu0 %v15001_v57  ;;  %v15006_v5 = vld [vmem:[#allocation97_spill] sm:$0xff] }
 0x15b   :  { %3069 = vmatpush2.msra.mxu1 %v10076_v26  ;;  %2889 = vmatprep.subr.mxu0 %v15002_v51  ;;  %v15007_v26 = vld [vmem:[#allocation99_spill] sm:$0xff] }
 0x15c   :  { %3071 = vmatprep.subr.mxu1 %v10090_v35  ;;  %2892 = vmatpush2.msra.mxu0 %v15003_v47  ;;  %v15008_v35 = vld [vmem:[#allocation101_spill] sm:$0xff] }
 0x15d   :  { %3073 = vmatpush2.msra.mxu1 %v10104_v39  ;;  %2895 = vmatprep.subr.mxu0 %v15004_v37  ;;  %v15009_v39 = vld [vmem:[#allocation102_spill] sm:$0xff] }
 0x15e   :  { %3075 = vmatprep.subr.mxu1 %v10127_v56  ;;  %2898 = vmatpush2.msra.mxu0 %v15005_v23  ;;  %v15010_v56 = vld [vmem:[#allocation104_spill] sm:$0xff] }
 0x15f   :  { %3077 = vmatpush2.msra.mxu1 %v10141_v42  ;;  %2901 = vmatprep.subr.mxu0 %v15006_v5  ;;  %v15011_v42 = vld [vmem:[#allocation106_spill] sm:$0xff] }
 0x160   :  { %3079 = vmatprep.subr.mxu1 %v10166_v61  ;;  %2904 = vmatpush2.msra.mxu0 %v15007_v26  ;;  %v15012_v61 = vld [vmem:[#allocation56_spill] sm:$0xff] }
 0x161   :  { %3081 = vmatpush2.msra.mxu1 %v10204_v15  ;;  %2907 = vmatprep.subr.mxu0 %v15008_v35  ;;  %v15013_v15 = vld [vmem:[#allocation108_spill] sm:$0xff] }
 0x162   :  { %3083 = vmatprep.subr.mxu1 %v10218_v31  ;;  %2910 = vmatpush2.msra.mxu0 %v15009_v39  ;;  %v15014_v31 = vld [vmem:[#allocation110_spill] sm:$0xff] }
 0x163   :  { %3085 = vmatpush2.msra.mxu1 %v10228_v19  ;;  %2913 = vmatprep.subr.mxu0 %v15010_v56  ;;  %v15015_v19 = vld [vmem:[#allocation114_spill] sm:$0xff] }
 0x164   :  { %3087 = vmatprep.subr.mxu1 %v10240_v10  ;;  %2916 = vmatpush2.msra.mxu0 %v15011_v42  ;;  %v15016_v10 = vld [vmem:[#allocation115_spill] sm:$0xff] }
 0x165   :  { %3089 = vmatpush2.msra.mxu1 %v10252_v21  ;;  %2919 = vmatprep.subr.mxu0 %v15012_v61 }
 0x166   :  { %3091 = vmatprep.subr.mxu1 %v10260_v44  ;;  %2922 = vmatpush2.msra.mxu0 %v15013_v15 }
 0x167   :  { %3093 = vmatpush2.msra.mxu1 %v10272_v17  ;;  %2925 = vmatprep.subr.mxu0 %v15014_v31 }
 0x168   :  { %3095 = vmatprep.subr.mxu1 %v10284_v40  ;;  %2928 = vmatpush2.msra.mxu0 %v15015_v19 }
 0x169   :  { %3097 = vmatpush2.msra.mxu1 %v10292_v18  ;;  %2931 = vmatprep.subr.mxu0 %v15016_v10 }
 0x16a   :  { %3099 = vmatprep.subr.mxu1 %v10302_v6  ;;  %2934 = vmatpush2.msra.mxu0 %v10270_v16  ;;  %v15017_v6 = vld [vmem:[#allocation119_spill] sm:$0xff] }
 0x16b   :  { %3101 = vmatpush2.msra.mxu1 %v10310_v3  ;;  %2937 = vmatprep.subr.mxu0 %v10282_v1  ;;  %v15018_v3 = vld [vmem:[#allocation19_spill] sm:$0xff]  ;;  %v15019_v1 = vld [vmem:[#allocation120_spill] sm:$0xff] }
 0x16c   :  { %3103 = vmatprep.subr.mxu1 %v10318_v45  ;;  %2940 = vmatpush2.msra.mxu0 %v10290_v12 }
 0x16d   :  { %3105 = vmatpush2.msra.mxu1 %v10328_v60  ;;  %2943 = vmatprep.subr.mxu0 %v10300_v46  ;;  %v15020_v60 = vld [vmem:[#allocation122_spill] sm:$0xff] }
 0x16e   :  { %3107 = vmatprep.subr.mxu1 %v10338_v20  ;;  %2946 = vmatpush2.msra.mxu0 %v10308_v4  ;;  %v15021_v20 = vld [vmem:[#allocation124_spill] sm:$0xff] }
 0x16f   :  { %3109 = vmatpush2.msra.mxu1 %v10348_v41  ;;  %2949 = vmatprep.subr.mxu0 %v15017_v6  ;;  %v15022_v41 = vld [vmem:[#allocation126_spill] sm:$0xff] }
 0x170   :  { %3117 = vmatmul.mubr.f32.vlgmr.msra.gmra.mxu1 %v10456_v34  ;;  %3389 = vmatprep.subr.mxu1 %v15018_v3  ;;  %v15023_v34 = vld [vmem:[#allocation127_spill] sm:$0xff]  ;;  %v15024_v3 = vld [vmem:[#allocation128_spill] sm:$0xff] }
 0x171   :  { %2952 = vmatpush2.msra.mxu0 %v15019_v1  ;;  %3391 = vmatpush1.msra.mxu1 %v9477_v9  ;;  %v15025_v9 = vld [vmem:[#allocation129_spill] sm:$0xff] }
 0x172   :  { %3517 = vmatprep.mubr.f32.mxu1 %v10453_v32  ;;  %2955 = vmatprep.subr.mxu0 %v15020_v60 }
 0x173   :  { %3393 = vmatprep.subr.mxu1 %v9482_v11  ;;  %2958 = vmatpush2.msra.mxu0 %v15021_v20  ;;  %v15026_v11 = vld [vmem:[#allocation20_spill] sm:$0xff] }
 0x174   :  { %3395 = vmatpush1.msra.mxu1 %v14931_v33  ;;  %2961 = vmatprep.subr.mxu0 %v15022_v41  ;;  %v15027_v33 = vand.u32 4294901760, %v15026_v11  ;;  %v15037_v11 = vld [vmem:[#allocation27_spill] sm:$0xff] }
 0x175   :  { %3397 = vmatprep.subr.mxu1 %v9520_v27  ;;  %2964 = vmatpush2.msra.mxu0 %v15023_v34  ;;  %v15028_v27 = vld [vmem:[#allocation21_spill] sm:$0xff] }
 0x176   :  { %3399 = vmatpush1.msra.mxu1 %v9525_v30  ;;  %2967 = vmatprep.subr.mxu0 %v15024_v3  ;;  %v15029_v41 = vand.u32 4294901760, %v15028_v27  ;;  %v15030_v30 = vld [vmem:[#allocation30_spill] sm:$0xff] }
 0x177   :  { %3401 = vmatprep.subr.mxu1 %v14933_v0  ;;  %2970 = vmatpush2.msra.mxu0 %v15025_v9  ;;  %v15031_v3 = vld [vmem:[#allocation22_spill] sm:$0xff]  ;;  %v15033_v9 = vld [vmem:[#allocation32_spill] sm:$0xff] }
 0x178   :  { %3403 = vmatpush1.msra.mxu1 %v14935_v13  ;;  %2976 = vmatmul.mubr.f32.vlgmr.msra.gmra.mxu0 %v10451_v8  ;;  %v15032_v0 = vand.u32 4294901760, %v15031_v3  ;;  %v15034_v13 = vld [vmem:[#allocation25_spill] sm:$0xff]  ;;  %v15036_v8 = vld [vmem:[#allocation35_spill] sm:$0xff] }
 0x179   :  { %3126 = vmatprep.subr.mxu0 %v15027_v33  ;;  %3405 = vmatprep.subr.mxu1 %v14936_v28  ;;  %v15035_v34 = vand.u32 4294901760, %v15034_v13  ;;  %v15038_v33 = vand.u32 4294901760, %v15037_v11  ;;  %v15039_v28 = vld [vmem:[#allocation37_spill] sm:$0xff] }
 0x17a   :  { %3130 = vmatpush1.msra.mxu0 %v15029_v41  ;;  %3380 = vmatprep.mubr.f32.mxu0 %v10453_v32  ;;  %v15040_v41 = vld [vmem:[#allocation29_spill] sm:$0xff]  ;;  %v15042_v32 = vld [vmem:[#allocation38_spill] sm:$0xff] }
 0x17b   :  { %3407 = vmatpush1.msra.mxu1 %v15030_v30  ;;  %3134 = vmatprep.subr.mxu0 %v15032_v0  ;;  %v15041_v27 = vand.u32 4294901760, %v15040_v41  ;;  %v15043_v30 = vld [vmem:[#allocation31_spill] sm:$0xff]  ;;  %v15045_v0 = vld [vmem:[#allocation40_spill] sm:$0xff] }
 0x17c   :  { %3409 = vmatprep.subr.mxu1 %v15033_v9  ;;  %3138 = vmatpush1.msra.mxu0 %v15035_v34  ;;  %v15044_v3 = vand.u32 4294901760, %v15043_v30  ;;  %v15046_v9 = vld [vmem:[#allocation33_spill] sm:$0xff]  ;;  %v15048_v34 = vld [vmem:[#allocation44_spill] sm:$0xff] }
 0x17d   :  { %3411 = vmatpush1.msra.mxu1 %v15036_v8  ;;  %3142 = vmatprep.subr.mxu0 %v15038_v33  ;;  %v15047_v13 = vand.u32 4294901760, %v15046_v9  ;;  %v15049_v8 = vld [vmem:[#allocation34_spill] sm:$0xff]  ;;  %v15051_v33 = vld [vmem:[#allocation45_spill] sm:$0xff] }
 0x17e   :  { %3413 = vmatprep.subr.mxu1 %v15039_v28  ;;  %3146 = vmatpush1.msra.mxu0 %v15041_v27  ;;  %v15050_v11 = vand.u32 4294901760, %v15049_v8  ;;  %v15052_v28 = vld [vmem:[#allocation36_spill] sm:$0xff]  ;;  %v15054_v27 = vld [vmem:[#allocation47_spill] sm:$0xff] }
 0x17f   :  { %3415 = vmatpush1.msra.mxu1 %v15042_v32  ;;  %3150 = vmatprep.subr.mxu0 %v15044_v3  ;;  %v15053_v41 = vand.u32 4294901760, %v15052_v28  ;;  %v15055_v32 = vld [vmem:[#allocation39_spill] sm:$0xff]  ;;  %v15057_v3 = vld [vmem:[#allocation48_spill] sm:$0xff] }
 0x180   :  { %3417 = vmatprep.subr.mxu1 %v15045_v0  ;;  %3154 = vmatpush1.msra.mxu0 %v15047_v13  ;;  %v15056_v30 = vand.u32 4294901760, %v15055_v32  ;;  %v15058_v0 = vld [vmem:[#allocation41_spill] sm:$0xff]  ;;  %v15060_v13 = vld [vmem:[#allocation52_spill] sm:$0xff]  ;;  %v15065_v28 = vld [vmem:[#allocation55_spill] sm:$0xff] }
 0x181   :  { %3419 = vmatpush1.msra.mxu1 %v15048_v34  ;;  %3158 = vmatprep.subr.mxu0 %v15050_v11  ;;  %v15059_v9 = vand.u32 4294901760, %v15058_v0  ;;  %v15061_v34 = vld [vmem:[#allocation42_spill] sm:$0xff]  ;;  %v15063_v11 = vld [vmem:[#allocation43_spill] sm:$0xff]  ;;  %v15068_v32 = vld [vmem:[#allocation49_spill] sm:$0xff]  ;;  %v15071_v0 = vand.u32 4294901760, %v14966_v29 }
 0x182   :  { %3421 = vmatprep.subr.mxu1 %v15051_v33  ;;  %3162 = vmatpush1.msra.mxu0 %v15053_v41  ;;  %v15062_v8 = vand.u32 4294901760, %v15061_v34  ;;  %v15064_v33 = vand.u32 4294901760, %v15063_v11  ;;  %v15066_v41 = vld [vmem:[#allocation46_spill] sm:$0xff] }
 0x183   :  { %3423 = vmatpush1.msra.mxu1 %v15054_v27  ;;  %3166 = vmatprep.subr.mxu0 %v15056_v30  ;;  %v15067_v27 = vand.u32 4294901760, %v15066_v41  ;;  %v15069_v30 = vand.u32 4294901760, %v15068_v32  ;;  %v15075_v34 = vld [vmem:[#allocation62_spill] sm:$0xff]  ;;  %v15081_v41 = vld [vmem:[#allocation59_spill] sm:$0xff]  ;;  %v15083_v32 = vld [vmem:[#allocation69_spill] sm:$0xff] }
 0x184   :  { %3425 = vmatprep.subr.mxu1 %v15057_v3  ;;  %3170 = vmatpush1.msra.mxu0 %v15059_v9  ;;  %v15070_v3 = vld [vmem:[#allocation58_spill] sm:$0xff]  ;;  %v15072_v9 = vld [vmem:[#allocation60_spill] sm:$0xff]  ;;  %v15082_v29 = vand.u32 4294901760, %v15081_v41  ;;  %v15094_v41 = vld [vmem:[#allocation79_spill] sm:$0xff] }
 0x185   :  { %3427 = vmatpush1.msra.mxu1 %v15060_v13  ;;  %3174 = vmatprep.subr.mxu0 %v15062_v8  ;;  %v15076_v8 = vld [vmem:[#allocation53_spill] sm:$0xff] }
 0x186   :  { %3429 = vmatprep.subr.mxu1 %v14960_v63  ;;  %3178 = vmatpush1.msra.mxu0 %v15064_v33  ;;  %v15073_v63 = vld [vmem:[#allocation51_spill] sm:$0xff]  ;;  %v15077_v11 = vand.u32 4294901760, %v15076_v8  ;;  %v15090_v8 = vld [vmem:[#allocation76_spill] sm:$0xff] }
 0x187   :  { %3431 = vmatpush1.msra.mxu1 %v15065_v28  ;;  %3182 = vmatprep.subr.mxu0 %v15067_v27  ;;  %v15074_v13 = vand.u32 4294901760, %v15073_v63  ;;  %v15080_v28 = vld [vmem:[#allocation67_spill] sm:$0xff]  ;;  %v1273_v27 = vld [vmem:[#allocation8 + $0x470] sm:$0xff] }
 0x188   :  { %3433 = vmatprep.subr.mxu1 %v14870_v43  ;;  %3186 = vmatpush1.msra.mxu0 %v15069_v30  ;;  %v15078_v43 = vld [vmem:[#allocation57_spill] sm:$0xff] }
 0x189   :  { %3435 = vmatpush1.msra.mxu1 %v15070_v3  ;;  %3190 = vmatprep.subr.mxu0 %v15071_v0  ;;  %v15079_v33 = vand.u32 4294901760, %v15078_v43  ;;  %v15084_v30 = vld [vmem:[#allocation61_spill] sm:$0xff]  ;;  %v15086_v0 = vld [vmem:[#allocation70_spill] sm:$0xff]  ;;  %v15092_v43 = vld [vmem:[#allocation68_spill] sm:$0xff] }
 0x18a   :  { %3437 = vmatprep.subr.mxu1 %v15072_v9  ;;  %3194 = vmatpush1.msra.mxu0 %v15074_v13  ;;  %v15085_v3 = vand.u32 4294901760, %v15084_v30  ;;  %v15087_v9 = vld [vmem:[#allocation63_spill] sm:$0xff]  ;;  %v10697_v13 = vand.u32 4294901760, %v1273_v27  ;;  %v15098_v30 = vand.u32 4294901760, %v14991_v52 }
 0x18b   :  { %3439 = vmatpush1.msra.mxu1 %v15075_v34  ;;  %3198 = vmatprep.subr.mxu0 %v15077_v11  ;;  %v15088_v63 = vand.u32 4294901760, %v15087_v9  ;;  %v1272_v34 = vld [vmem:[#allocation8 + $0x468] sm:$0xff]  ;;  %v15091_v11 = vand.u32 4294901760, %v14984_v50  ;;  %v1263_v9 = vld [vmem:[#allocation8 + $0x420] sm:$0xff] }
 0x18c   :  { %3441 = vmatprep.subr.mxu1 %v14973_v59  ;;  %3202 = vmatpush1.msra.mxu0 %v15079_v33  ;;  %v15089_v59 = vand.u32 4294901760, %v14982_v55  ;;  %v15093_v33 = vand.u32 4294901760, %v15092_v43  ;;  %v10708_v55 = vand.u32 4294901760, %v1272_v34  ;;  %v10714_v50 = vsub.f32 %v1273_v27, %v10697_v13  ;;  %v1260_v43 = vld [vmem:[#allocation8 + $0x408] sm:$0xff] }
 0x18d   :  { %3443 = vmatpush1.msra.mxu1 %v15080_v28  ;;  %3206 = vmatprep.subr.mxu0 %v15082_v29  ;;  %v1270_v28 = vld [vmem:[#allocation8 + $0x458] sm:$0xff]  ;;  %v1269_v29 = vld [vmem:[#allocation8 + $0x450] sm:$0xff]  ;;  %v15101_v27 = vand.u32 4294901760, %v14995_v7  ;;  %v15108_v7 = vand.u32 4294901760, %v14998_v58  ;;  %v15116_v58 = vand.u32 4294901760, %v15000_v25 }
 0x18e   :  { %3445 = vmatprep.subr.mxu1 %v15083_v32  ;;  %3210 = vmatpush1.msra.mxu0 %v15085_v3  ;;  %v15096_v32 = vand.u32 4294901760, %v14989_v36  ;;  %15097 = vst [vmem:[#allocation72_spill] sm:$0xff] %v10714_v50  ;;  %v10719_v3 = vand.u32 4294901760, %v1270_v28  ;;  %v1264_v36 = vld [vmem:[#allocation8 + $0x428] sm:$0xff] }
 0x18f   :  { %3447 = vmatpush1.msra.mxu1 %v15086_v0  ;;  %3214 = vmatprep.subr.mxu0 %v15088_v63  ;;  %v15099_v0 = vand.u32 4294901760, %v14994_v49  ;;  %v15104_v63 = vld [vmem:[#allocation86_spill] sm:$0xff]  ;;  %v14335_v49 = vand.u32 4294901760, %v10714_v50 }
 0x190   :  { %3449 = vmatprep.subr.mxu1 %v14981_v53  ;;  %3218 = vmatpush1.msra.mxu0 %v15089_v59  ;;  %v15095_v53 = vand.u32 4294901760, %v14988_v2  ;;  %v1266_v2 = vld [vmem:[#allocation8 + $0x438] sm:$0xff] }
 0x191   :  { %3451 = vmatpush1.msra.mxu1 %v15090_v8  ;;  %3222 = vmatprep.subr.mxu0 %v15091_v11  ;;  %v10738_v59 = vand.u32 4294901760, %v1266_v2  ;;  %v1261_v8 = vld [vmem:[#allocation8 + $0x410] sm:$0xff]  ;;  %v10746_v11 = vand.u32 4294901760, %v1264_v36  ;;  %v10772_v25 = vsub.f32 %v10714_v50, %v14335_v49  ;;  %v15132_v49 = vld [vmem:[#allocation100_spill] sm:$0xff] }
 0x192   :  { %3453 = vmatprep.subr.mxu1 %v14985_v62  ;;  %3226 = vmatpush1.msra.mxu0 %v15093_v33  ;;  %v1267_v62 = vld [vmem:[#allocation8 + $0x440] sm:$0xff]  ;;  %v15111_v33 = vld [vmem:[#allocation90_spill] sm:$0xff] }
 0x193   :  { %3455 = vmatpush2.msra.mxu1 %v15094_v41  ;;  %3230 = vmatprep.subr.mxu0 %v15095_v53  ;;  %v10732_v52 = vand.u32 4294901760, %v1267_v62  ;;  %15106 = vst [vmem:[#allocation71_spill] sm:$0xff] %v10738_v59  ;;  %15110 = vst [vmem:[#allocation83_spill] sm:$0xff] %v10746_v11  ;;  %v10754_v53 = vand.u32 4294901760, %v1263_v9 }
 0x194   :  { %3457 = vmatprep.subr.mxu1 %v9940_v22  ;;  %3234 = vmatpush1.msra.mxu0 %v15096_v32  ;;  %v10724_v22 = vand.u32 4294901760, %v1269_v29  ;;  %v1258_v32 = vld [vmem:[#allocation8 + $0x3f8] sm:$0xff] }
 0x195   :  { %3459 = vmatpush2.msra.mxu1 %v14990_v14  ;;  %3238 = vmatprep.subr.mxu0 %v15098_v30  ;;  %v10730_v14 = vsub.f32 %v1272_v34, %v10708_v55  ;;  %15103 = vst [vmem:[#allocation77_spill] sm:$0xff] %v10732_v52  ;;  %v10744_v34 = vsub.f32 %v1270_v28, %v10719_v3  ;;  %15114 = vst [vmem:[#allocation85_spill] sm:$0xff] %v10754_v53  ;;  %v15115_v30 = vld [vmem:[#allocation92_spill] sm:$0xff] }
 0x196   :  { %3461 = vmatprep.subr.mxu1 %v14993_v24  ;;  %3242 = vmatpush1.msra.mxu0 %v15099_v0  ;;  %15100 = vst [vmem:[#allocation65_spill] sm:$0xff] %v10724_v22  ;;  %v15105_v24 = vand.u32 4294901760, %v14997_v54  ;;  %v15112_v54 = vand.u32 4294901760, %v14999_v38  ;;  %v10752_v41 = vsub.f32 %v1269_v29, %v10724_v22  ;;  %v15117_v28 = vld [vmem:[#allocation28_spill] sm:$0xff]  ;;  %v10764_v38 = vand.u32 4294901760, %v1261_v8  ;;  %v15120_v29 = vld [vmem:[#allocation94_spill] sm:$0xff] }
 0x197   :  { %3463 = vmatpush2.msra.mxu1 %v10006_v48  ;;  %3246 = vmatprep.subr.mxu0 %v15101_v27  ;;  %15102 = vst [vmem:[#allocation66_spill] sm:$0xff] %v10730_v14  ;;  %v15107_v48 = vld [vmem:[#allocation88_spill] sm:$0xff]  ;;  %15109 = vst [vmem:[#allocation73_spill] sm:$0xff] %v10744_v34  ;;  %v1130_v0 = vmax.f32 %v15117_v28, 0.0  ;;  %v14338_v27 = vand.u32 4294901760, %v10730_v14  ;;  %v1255_v28 = vld [vmem:[#allocation8 + $0x3e0] sm:$0xff] }
 0x198   :  { %3465 = vmatprep.subr.mxu1 %v15104_v63  ;;  %3250 = vmatpush1.msra.mxu0 %v15105_v24  ;;  %15113 = vst [vmem:[#allocation74_spill] sm:$0xff] %v10752_v41  ;;  %v10762_v63 = vsub.f32 %v1267_v62, %v10732_v52  ;;  %15119 = vst [vmem:[#allocation78_spill] sm:$0xff] %v10764_v38  ;;  %v1257_v24 = vld [vmem:[#allocation8 + $0x3f0] sm:$0xff]  ;;  %v15124_v62 = vld [vmem:[#allocation96_spill] sm:$0xff] }
 0x199   :  { %3467 = vmatpush2.msra.mxu1 %v15107_v48  ;;  %3254 = vmatprep.subr.mxu0 %v15108_v7  ;;  %v15121_v48 = vand.u32 4294901760, %v15001_v57  ;;  %v10775_v7 = vsub.f32 %v1266_v2, %v10738_v59  ;;  %v10784_v57 = vsub.f32 %v1264_v36, %v10746_v11  ;;  %v15129_v2 = vand.u32 4294901760, %v15003_v47 }
 0x19a   :  { %3469 = vmatprep.subr.mxu1 %v15111_v33  ;;  %3258 = vmatpush2.msra.mxu0 %v15112_v54  ;;  %15118 = vst [vmem:[#allocation75_spill] sm:$0xff] %v10762_v63  ;;  %v10777_v33 = vand.u32 4294901760, %v1260_v43  ;;  %v15125_v54 = vand.u32 4294901760, %v15002_v51  ;;  %v10795_v51 = vand.u32 4294901760, %v1257_v24  ;;  %v15133_v36 = vand.u32 4294901760, %v15004_v37 }
 0x19b   :  { %3471 = vmatpush2.msra.mxu1 %v15115_v30  ;;  %3262 = vmatprep.subr.mxu0 %v15116_v58  ;;  %15122 = vst [vmem:[#allocation80_spill] sm:$0xff] %v10775_v7  ;;  %15126 = vst [vmem:[#allocation82_spill] sm:$0xff] %v10784_v57  ;;  %v10786_v58 = vand.u32 4294901760, %v1258_v32  ;;  %v10800_v30 = vand.u32 4294901760, %v1130_v0  ;;  %v10805_v47 = vsub.f32 %v10730_v14, %v14338_v27  ;;  %v10819_v27 = vand.u32 4294901760, %v1255_v28  ;;  %v1251_v14 = vld [vmem:[#allocation8 + $0x3c0] sm:$0xff] }
 0x19c   :  { %3473 = vmatprep.subr.mxu1 %v15120_v29  ;;  %3266 = vmatpush2.msra.mxu0 %v15121_v48  ;;  %15123 = vst [vmem:[#allocation81_spill] sm:$0xff] %v10777_v33  ;;  %v15128_v29 = vld [vmem:[#allocation98_spill] sm:$0xff]  ;;  %15131 = vst [vmem:[#allocation89_spill] sm:$0xff] %v10795_v51  ;;  %v15136_v48 = vld [vmem:[#allocation103_spill] sm:$0xff]  ;;  %v10817_v50 = vsub.f32 %v1260_v43, %v10777_v33  ;;  %v15146_v33 = vand.u32 4294901760, %v15007_v26  ;;  %v15152_v26 = vand.u32 4294901760, %v15008_v35 }
 0x19d   :  { %3475 = vmatpush2.msra.mxu1 %v15124_v62  ;;  %3270 = vmatprep.subr.mxu0 %v15125_v54  ;;  %15127 = vst [vmem:[#allocation84_spill] sm:$0xff] %v10786_v58  ;;  %v10793_v62 = vsub.f32 %v1263_v9, %v10754_v53  ;;  %v1254_v54 = vld [vmem:[#allocation8 + $0x3d8] sm:$0xff]  ;;  %15134 = vst [vmem:[#allocation91_spill] sm:$0xff] %v10800_v30  ;;  %v10809_v9 = vsub.f32 %v1261_v8, %v10764_v38  ;;  %v15141_v8 = vand.u32 4294901760, %v15006_v5 }
 0x19e   :  { %3477 = vmatprep.subr.mxu1 %v15128_v29  ;;  %3274 = vmatpush2.msra.mxu0 %v15129_v2  ;;  %v1252_v2 = vld [vmem:[#allocation8 + $0x3c8] sm:$0xff]  ;;  %15138 = vst [vmem:[#allocation95_spill] sm:$0xff] %v10817_v50  ;;  %15139 = vst [vmem:[#allocation97_spill] sm:$0xff] %v10819_v27  ;;  %v15140_v29 = vld [vmem:[#allocation105_spill] sm:$0xff]  ;;  %v10831_v37 = vsub.f32 %v1258_v32, %v10786_v58  ;;  %v10833_v43 = vand.u32 4294901760, %v1254_v54  ;;  %v15147_v5 = vand.u32 4294901760, %v10752_v41 }
 0x19f   :  { %15130 = vst [vmem:[#allocation87_spill] sm:$0xff] %v10793_v62  ;;  %3479 = vmatpush2.msra.mxu1 %v15132_v49  ;;  %3278 = vmatprep.subr.mxu0 %v15133_v36  ;;  %15135 = vst [vmem:[#allocation93_spill] sm:$0xff] %v10809_v9  ;;  %v15137_v49 = vand.u32 4294901760, %v15005_v23  ;;  %v15145_v36 = vld [vmem:[#allocation107_spill] sm:$0xff]  ;;  %v10850_v32 = vsub.f32 %v1130_v0, %v10800_v30 }
 0x1a0   :  { %3481 = vmatprep.subr.mxu1 %v15136_v48  ;;  %v15142_v48 = vand.u32 4294901760, %v10744_v34  ;;  %15143 = vst [vmem:[#allocation99_spill] sm:$0xff] %v10831_v37  ;;  %15144 = vst [vmem:[#allocation101_spill] sm:$0xff] %v10833_v43  ;;  %v10887_v0 = vsub.f32 %v1254_v54, %v10833_v43  ;;  %v1248_v54 = vld [vmem:[#allocation8 + $0x3a8] sm:$0xff] }
 0x1a1   :  { %3282 = vmatpush2.msra.mxu0 %v15137_v49  ;;  %3483 = vmatpush2.msra.mxu1 %v15140_v29  ;;  %v10841_v29 = vsub.f32 %v10752_v41, %v15147_v5  ;;  %v10847_v49 = vand.u32 4294901760, %v1252_v2  ;;  %15150 = vst [vmem:[#allocation106_spill] sm:$0xff] %v10850_v32  ;;  %v15156_v41 = vand.u32 4294901760, %v15009_v39  ;;  %v15159_v5 = vld [vmem:[#allocation112_spill] sm:$0xff] }
 0x1a2   :  { %3286 = vmatprep.subr.mxu0 %v15141_v8  ;;  %v10827_v23 = vsub.f32 %v10744_v34, %v15142_v48  ;;  %3485 = vmatprep.subr.mxu1 %v15145_v36  ;;  %v10845_v48 = vsub.f32 %v1257_v24, %v10795_v51  ;;  %v15151_v34 = vld [vmem:[#allocation109_spill] sm:$0xff]  ;;  %v10861_v8 = vand.u32 4294901760, %v1251_v14  ;;  %v15155_v24 = vld [vmem:[#allocation111_spill] sm:$0xff]  ;;  %15162 = vst [vmem:[#allocation110_spill] sm:$0xff] %v10887_v0 }
 0x1a3   :  { %3290 = vmatpush2.msra.mxu0 %v15146_v33  ;;  %15149 = vst [vmem:[#allocation104_spill] sm:$0xff] %v10847_v49  ;;  %3487 = vmatpush2.msra.mxu1 %v15151_v34  ;;  %v15153_v33 = vand.u32 4294901760, %v10762_v63  ;;  %v15157_v34 = vand.u32 4294901760, %v10775_v7 }
 0x1a4   :  { %15148 = vst [vmem:[#allocation102_spill] sm:$0xff] %v10845_v48  ;;  %3294 = vmatprep.subr.mxu0 %v15152_v26  ;;  %15154 = vst [vmem:[#allocation56_spill] sm:$0xff] %v10861_v8  ;;  %3489 = vmatprep.subr.mxu1 %v15155_v24  ;;  %v1249_v26 = vld [vmem:[#allocation8 + $0x3b0] sm:$0xff] }
 0x1a5   :  { %v10858_v36 = vsub.f32 %v10762_v63, %v15153_v33  ;;  %3298 = vmatpush2.msra.mxu0 %v15156_v41  ;;  %v10870_v35 = vsub.f32 %v10775_v7, %v15157_v34  ;;  %v10874_v33 = vsub.f32 %v1255_v28, %v10819_v27  ;;  %3491 = vmatpush2.msra.mxu1 %v15159_v5  ;;  %v15160_v63 = vand.u32 4294901760, %v15010_v56  ;;  %v15163_v28 = vld [vmem:[#allocation113_spill] sm:$0xff]  ;;  %v15187_v7 = vld [vmem:[#allocation118_spill] sm:$0xff] }
 0x1a6   :  { %v15161_v41 = vand.u32 4294901760, %v10784_v57  ;;  %3493 = vmatprep.subr.mxu1 %v15163_v28  ;;  %v15164_v5 = vand.u32 4294901760, %v15011_v42  ;;  %v10900_v34 = vsub.f32 %v1252_v2, %v10847_v49  ;;  %v15167_v28 = vand.u32 4294901760, %v15012_v61  ;;  %v1246_v2 = vld [vmem:[#allocation8 + $0x398] sm:$0xff] }
 0x1a7   :  { %15158 = vst [vmem:[#allocation108_spill] sm:$0xff] %v10874_v33  ;;  %3302 = vmatprep.subr.mxu0 %v15160_v63  ;;  %v15165_v63 = vand.u32 4294901760, %v10793_v62  ;;  %3495 = vmatpush2.msra.mxu1 %v10252_v21  ;;  %v15171_v21 = vand.u32 4294901760, %v15013_v15  ;;  %v15175_v15 = vand.u32 4294901760, %v10831_v37  ;;  %v10939_v61 = vand.u32 4294901760, %v1248_v54 }
 0x1a8   :  { %v10883_v24 = vsub.f32 %v10784_v57, %v15161_v41  ;;  %3306 = vmatpush2.msra.mxu0 %v15164_v5  ;;  %15166 = vst [vmem:[#allocation114_spill] sm:$0xff] %v10900_v34  ;;  %v15168_v5 = vand.u32 4294901760, %v10809_v9  ;;  %v10915_v41 = vsub.f32 %v1251_v14, %v10861_v8  ;;  %3497 = vmatprep.subr.mxu1 %v10260_v44  ;;  %v15174_v14 = vand.u32 4294901760, %v15014_v31 }
 0x1a9   :  { %v10896_v39 = vsub.f32 %v10793_v62, %v15165_v63  ;;  %3310 = vmatprep.subr.mxu0 %v15167_v28  ;;  %v10912_v63 = vand.u32 4294901760, %v10850_v32  ;;  %v15172_v28 = vand.u32 4294901760, %v10817_v50  ;;  %v1245_v62 = vld [vmem:[#allocation8 + $0x390] sm:$0xff]  ;;  %3499 = vmatpush2.msra.mxu1 %v10272_v17  ;;  %15176 = vst [vmem:[#allocation120_spill] sm:$0xff] %v10939_v61  ;;  %v15178_v17 = vand.u32 4294901760, %v10845_v48 }
 0x1aa   :  { %v10909_v56 = vsub.f32 %v10809_v9, %v15168_v5  ;;  %15170 = vst [vmem:[#allocation119_spill] sm:$0xff] %v10915_v41  ;;  %3314 = vmatpush2.msra.mxu0 %v15171_v21  ;;  %v10927_v9 = vand.u32 4294901760, %v1249_v26  ;;  %v10936_v21 = vsub.f32 %v10831_v37, %v15175_v15  ;;  %v1243_v5 = vld [vmem:[#allocation8 + $0x380] sm:$0xff]  ;;  %3501 = vmatprep.subr.mxu1 %v10284_v40  ;;  %v10951_v44 = vand.u32 4294901760, %v1246_v2 }
 0x1ab   :  { %15169 = vst [vmem:[#allocation115_spill] sm:$0xff] %v10912_v63  ;;  %v10924_v42 = vsub.f32 %v10817_v50, %v15172_v28  ;;  %3318 = vmatprep.subr.mxu0 %v15174_v14  ;;  %v15177_v50 = vand.u32 4294901760, %v15015_v19  ;;  %v10948_v14 = vsub.f32 %v10845_v48, %v15178_v17  ;;  %v1242_v28 = vld [vmem:[#allocation8 + $0x378] sm:$0xff]  ;;  %3503 = vmatpush2.msra.mxu1 %v10292_v18  ;;  %v15180_v37 = vand.u32 4294901760, %v15016_v10  ;;  %v1240_v17 = vld [vmem:[#allocation8 + $0x368] sm:$0xff]  ;;  %v15182_v48 = vld [vmem:[#allocation117_spill] sm:$0xff] }
 0x1ac   :  { %15173 = vst [vmem:[#allocation19_spill] sm:$0xff] %v10927_v9  ;;  %15179 = vst [vmem:[#allocation122_spill] sm:$0xff] %v10951_v44  ;;  %v3656_v40 = vsub.f32 %v10850_v32, %v10912_v63  ;;  %v10960_v31 = vand.u32 4294901760, %v1245_v62  ;;  %3505 = vmatprep.subr.mxu1 %v15182_v48  ;;  %v15183_v15 = vand.u32 4294901760, %v10270_v16  ;;  %v15184_v10 = vand.u32 4294901760, %v10874_v33  ;;  %v15188_v32 = vld [vmem:[#allocation116_spill] sm:$0xff] }
 0x1ad   :  { %3322 = vmatpush2.msra.mxu0 %v15177_v50  ;;  %v10972_v19 = vsub.f32 %v1249_v26, %v10927_v9  ;;  %v10974_v57 = vand.u32 4294901760, %v1243_v5  ;;  %v1239_v50 = vld [vmem:[#allocation8 + $0x360] sm:$0xff]  ;;  %3507 = vmatpush2.msra.mxu1 %v15187_v7  ;;  %v15189_v48 = vand.u32 4294901760, %v15188_v32  ;;  %v10988_v26 = vand.u32 4294901760, %v1242_v28  ;;  %v15197_v63 = vld [vmem:[#allocation121_spill] sm:$0xff] }
 0x1ae   :  { %3326 = vmatprep.subr.mxu0 %v15180_v37  ;;  %15181 = vst [vmem:[#allocation124_spill] sm:$0xff] %v10960_v31  ;;  %v10969_v37 = vsub.f32 %v10874_v33, %v15184_v10  ;;  %v10986_v10 = vsub.f32 %v1248_v54, %v10939_v61  ;;  %v1237_v33 = vld [vmem:[#allocation8 + $0x350] sm:$0xff]  ;;  %3509 = vmatprep.subr.mxu1 %v10318_v45  ;;  %v15193_v7 = vand.u32 4294901760, %v10290_v12  ;;  %v11002_v54 = vand.u32 4294901760, %v1240_v17  ;;  %v1227_v61 = vld [vmem:[#allocation8 + $0x300] sm:$0xff] }
 0x1af   :  { %3330 = vmatpush2.msra.mxu0 %v15183_v15  ;;  %15185 = vst [vmem:[#allocation20_spill] sm:$0xff] %v10972_v19  ;;  %15186 = vst [vmem:[#allocation21_spill] sm:$0xff] %v10974_v57  ;;  %v15190_v15 = vand.u32 4294901760, %v10887_v0  ;;  %3511 = vmatpush2.msra.mxu1 %v15197_v63  ;;  %v15198_v45 = vand.u32 4294901760, %v10300_v46  ;;  %v11007_v12 = vand.u32 4294901760, %v3656_v40  ;;  %v15204_v63 = vand.u32 4294901760, %v10308_v4 }
 0x1b0   :  { %3334 = vmatprep.subr.mxu0 %v15189_v48  ;;  %15191 = vst [vmem:[#allocation30_spill] sm:$0xff] %v10986_v10  ;;  %15192 = vst [vmem:[#allocation22_spill] sm:$0xff] %v10988_v26  ;;  %v15194_v48 = vand.u32 4294901760, %v10900_v34  ;;  %v1231_v40 = vld [vmem:[#allocation8 + $0x320] sm:$0xff]  ;;  %v1230_v4 = vld [vmem:[#allocation8 + $0x318] sm:$0xff] }
 0x1b1   :  { %v10983_v18 = vsub.f32 %v10887_v0, %v15190_v15  ;;  %3338 = vmatpush2.msra.mxu0 %v15193_v7  ;;  %v11000_v15 = vsub.f32 %v1246_v2, %v10951_v44  ;;  %15196 = vst [vmem:[#allocation25_spill] sm:$0xff] %v11002_v54  ;;  %v1236_v0 = vld [vmem:[#allocation8 + $0x348] sm:$0xff]  ;;  %15199 = vst [vmem:[#allocation35_spill] sm:$0xff] %v11007_v12  ;;  %v15200_v7 = vand.u32 4294901760, %v10915_v41  ;;  %v11017_v2 = vand.u32 4294901760, %v1239_v50  ;;  %v15203_v44 = vld [vmem:[#allocation123_spill] sm:$0xff] }
 0x1b2   :  { %v10997_v16 = vsub.f32 %v10900_v34, %v15194_v48  ;;  %3342 = vmatprep.subr.mxu0 %v15198_v45  ;;  %v11015_v48 = vsub.f32 %v1245_v62, %v10960_v31  ;;  %v1234_v34 = vld [vmem:[#allocation8 + $0x338] sm:$0xff]  ;;  %3513 = vmatprep.subr.mxu1 %v15203_v44  ;;  %v11025_v45 = vsub.f32 %v1243_v5, %v10974_v57  ;;  %v15207_v62 = vld [vmem:[#allocation125_spill] sm:$0xff]  ;;  %v15208_v31 = vand.u32 4294901760, %v15017_v6  ;;  %v15211_v5 = vld [vmem:[#allocation131_spill] sm:$0xff] }
 0x1b3   :  { %15195 = vst [vmem:[#allocation32_spill] sm:$0xff] %v11000_v15  ;;  %v11012_v32 = vsub.f32 %v10915_v41, %v15200_v7  ;;  %15202 = vst [vmem:[#allocation37_spill] sm:$0xff] %v11017_v2  ;;  %3346 = vmatpush2.msra.mxu0 %v15204_v63  ;;  %v11027_v7 = vand.u32 4294901760, %v1237_v33  ;;  %v1233_v41 = vld [vmem:[#allocation8 + $0x330] sm:$0xff]  ;;  %3515 = vmatpush2.msra.mxu1 %v15207_v62  ;;  %v11035_v63 = vsub.f32 %v1242_v28, %v10988_v26 }
 0x1b4   :  { %15201 = vst [vmem:[#allocation27_spill] sm:$0xff] %v11015_v48  ;;  %15205 = vst [vmem:[#allocation29_spill] sm:$0xff] %v11025_v45  ;;  %3350 = vmatprep.subr.mxu0 %v15208_v31  ;;  %v11037_v46 = vand.u32 4294901760, %v1236_v0  ;;  %3519 = vmatmul.mubr.f32.vlgmr.msra.gmra.mxu1 %v15211_v5  ;;  %v15212_v57 = vand.u32 4294901760, %v10772_v25  ;;  %v11045_v31 = vsub.f32 %v1240_v17, %v11002_v54  ;;  %v11047_v44 = vand.u32 4294901760, %v1234_v34  ;;  %v1228_v17 = vld [vmem:[#allocation8 + $0x308] sm:$0xff] }
 0x1b5   :  { %15206 = vst [vmem:[#allocation38_spill] sm:$0xff] %v11027_v7  ;;  %15209 = vst [vmem:[#allocation31_spill] sm:$0xff] %v11035_v63  ;;  %v15215_v28 = vand.u32 4294901760, %v15019_v1  ;;  %v15216_v26 = vand.u32 4294901760, %v10805_v47  ;;  %v11058_v62 = vand.u32 4294901760, %v1233_v41  ;;  %4055 = vmatprep.mubr.f32.mxu1 %v10800_v30  ;;  %v15219_v6 = vand.u32 4294901760, %v15020_v60 }
 0x1b6   :  { %15210 = vst [vmem:[#allocation40_spill] sm:$0xff] %v11037_v46  ;;  %3675 = vmatprep.subr.mxu1 %v15212_v57  ;;  %15213 = vst [vmem:[#allocation33_spill] sm:$0xff] %v11045_v31  ;;  %v11056_v57 = vsub.f32 %v1239_v50, %v11017_v2  ;;  %v15220_v1 = vand.u32 4294901760, %v10972_v19  ;;  %v11072_v50 = vand.u32 4294901760, %v1231_v40  ;;  %v15223_v25 = vand.u32 4294901760, %v10827_v23  ;;  %v15229_v23 = vld [vmem:[#allocation126_spill] sm:$0xff] }
 0x1b7   :  { %15214 = vst [vmem:[#allocation44_spill] sm:$0xff] %v11047_v44  ;;  %3354 = vmatpush2.msra.mxu0 %v15215_v28  ;;  %3681 = vmatpush1.msra.mxu1 %v15216_v26  ;;  %15218 = vst [vmem:[#allocation45_spill] sm:$0xff] %v11058_v62  ;;  %v11070_v28 = vsub.f32 %v1237_v33, %v11027_v7  ;;  %v15224_v30 = vand.u32 4294901760, %v15021_v20  ;;  %v15225_v60 = vand.u32 4294901760, %v10986_v10  ;;  %v11087_v33 = vand.u32 4294901760, %v1230_v4 }
 0x1b8   :  { %15217 = vst [vmem:[#allocation34_spill] sm:$0xff] %v11056_v57  ;;  %3358 = vmatprep.subr.mxu0 %v15219_v6  ;;  %v11066_v47 = vsub.f32 %v10972_v19, %v15220_v1  ;;  %15222 = vst [vmem:[#allocation47_spill] sm:$0xff] %v11072_v50  ;;  %3687 = vmatprep.subr.mxu1 %v15223_v25  ;;  %v11085_v26 = vsub.f32 %v1236_v0, %v11037_v46  ;;  %v15228_v19 = vand.u32 4294901760, %v10841_v29  ;;  %v15235_v29 = vld [vmem:[#allocation127_spill] sm:$0xff] }
 0x1b9   :  { %15221 = vst [vmem:[#allocation36_spill] sm:$0xff] %v11070_v28  ;;  %3362 = vmatpush2.msra.mxu0 %v15224_v30  ;;  %v11081_v6 = vsub.f32 %v10986_v10, %v15225_v60  ;;  %15227 = vst [vmem:[#allocation48_spill] sm:$0xff] %v11087_v33  ;;  %v15230_v25 = vand.u32 4294901760, %v15229_v23  ;;  %v15231_v20 = vand.u32 4294901760, %v11000_v15  ;;  %v11100_v1 = vsub.f32 %v1234_v34, %v11047_v44 }
 0x1ba   :  { %15226 = vst [vmem:[#allocation39_spill] sm:$0xff] %v11085_v26  ;;  %3693 = vmatpush1.msra.mxu1 %v15228_v19  ;;  %v11102_v0 = vand.u32 4294901760, %v1228_v17  ;;  %v15234_v10 = vand.u32 4294901760, %v10858_v36  ;;  %v15236_v19 = vand.u32 4294901760, %v15235_v29  ;;  %v15237_v23 = vand.u32 4294901760, %v11015_v48  ;;  %v15241_v36 = vld [vmem:[#allocation128_spill] sm:$0xff] }
 0x1bb   :  { %3366 = vmatprep.subr.mxu0 %v15230_v25  ;;  %v11096_v30 = vsub.f32 %v11000_v15, %v15231_v20  ;;  %15232 = vst [vmem:[#allocation41_spill] sm:$0xff] %v11100_v1  ;;  %v11115_v60 = vsub.f32 %v1233_v41, %v11058_v62  ;;  %v11117_v34 = vand.u32 4294901760, %v1227_v61  ;;  %v15240_v15 = vand.u32 4294901760, %v10870_v35  ;;  %v15246_v35 = vld [vmem:[#allocation129_spill] sm:$0xff] }
 0x1bc   :  { %15233 = vst [vmem:[#allocation52_spill] sm:$0xff] %v11102_v0  ;;  %3699 = vmatprep.subr.mxu1 %v15234_v10  ;;  %3370 = vmatpush2.msra.mxu0 %v15236_v19  ;;  %v11111_v25 = vsub.f32 %v11015_v48, %v15237_v23  ;;  %v15242_v10 = vand.u32 4294901760, %v15241_v36  ;;  %v15243_v19 = vand.u32 4294901760, %v11025_v45  ;;  %v11131_v41 = vsub.f32 %v1231_v40, %v11072_v50  ;;  %v1321_v40 = vld [vmem:[#allocation8 + $0x5f0] sm:$0xff] }
 0x1bd   :  { %15238 = vst [vmem:[#allocation42_spill] sm:$0xff] %v11115_v60  ;;  %15239 = vst [vmem:[#allocation43_spill] sm:$0xff] %v11117_v34  ;;  %3705 = vmatpush1.msra.mxu1 %v15240_v15  ;;  %v15245_v48 = vand.u32 4294901760, %v10883_v24  ;;  %v15247_v15 = vand.u32 4294901760, %v15246_v35  ;;  %v11145_v20 = vsub.f32 %v1230_v4, %v11087_v33  ;;  %v1320_v4 = vld [vmem:[#allocation8 + $0x5e8] sm:$0xff]  ;;  %v15254_v24 = vand.u32 4294901760, %v11056_v57 }
 0x1be   :  { %3374 = vmatprep.subr.mxu0 %v15242_v10  ;;  %v11127_v23 = vsub.f32 %v11025_v45, %v15243_v19  ;;  %15244 = vst [vmem:[#allocation55_spill] sm:$0xff] %v11131_v41  ;;  %v15248_v10 = vand.u32 4294901760, %v11035_v63  ;;  %v15250_v45 = vand.u32 4294901760, %v10896_v39  ;;  %v15253_v39 = vand.u32 4294901760, %v10909_v56 }
 0x1bf   :  { %3711 = vmatprep.subr.mxu1 %v15245_v48  ;;  %3378 = vmatpush2.msra.mxu0 %v15247_v15  ;;  %15249 = vst [vmem:[#allocation46_spill] sm:$0xff] %v11145_v20  ;;  %v15251_v48 = vand.u32 4294901760, %v11045_v31  ;;  %v11167_v36 = vsub.f32 %v11056_v57, %v15254_v24  ;;  %v11171_v15 = vsub.f32 %v1227_v61, %v11117_v34  ;;  %v11182_v19 = vand.u32 4294901760, %v1321_v40  ;;  %v1315_v24 = vld [vmem:[#allocation8 + $0x5c0] sm:$0xff] }
 0x1c0   :  { %v11141_v29 = vsub.f32 %v11035_v63, %v15248_v10  ;;  %3717 = vmatpush1.msra.mxu1 %v15250_v45  ;;  %3382 = vmatmul.mubr.f32.vlgmr.msra.gmra.mxu0 %v15211_v5  ;;  %v11158_v10 = vsub.f32 %v1228_v17, %v11102_v0  ;;  %v1318_v17 = vld [vmem:[#allocation8 + $0x5d8] sm:$0xff]  ;;  %v15258_v61 = vand.u32 4294901760, %v10924_v42  ;;  %v15261_v57 = vand.u32 4294901760, %v10936_v21 }
 0x1c1   :  { %v11154_v35 = vsub.f32 %v11045_v31, %v15251_v48  ;;  %3526 = vmatprep.subr.mxu0 %v10697_v13  ;;  %3723 = vmatprep.subr.mxu1 %v15253_v39  ;;  %15255 = vst [vmem:[#allocation58_spill] sm:$0xff] %v11171_v15  ;;  %v15256_v39 = vand.u32 4294901760, %v11070_v28  ;;  %15257 = vst [vmem:[#allocation60_spill] sm:$0xff] %v11182_v19  ;;  %v1317_v48 = vld [vmem:[#allocation8 + $0x5d0] sm:$0xff]  ;;  %v15264_v31 = vand.u32 4294901760, %v10948_v14  ;;  %v15267_v63 = vand.u32 4294901760, %v10969_v37 }
 0x1c2   :  { %15252 = vst [vmem:[#allocation49_spill] sm:$0xff] %v11158_v10  ;;  %3528 = vmatpush1.msra.mxu0 %v10708_v55  ;;  %3658 = vmatprep.mubr.f32.mxu0 %v11007_v12  ;;  %v15259_v12 = vand.u32 4294901760, %v11085_v26 }
 0x1c3   :  { %v11179_v45 = vsub.f32 %v11070_v28, %v15256_v39  ;;  %3729 = vmatpush1.msra.mxu1 %v15258_v61  ;;  %3530 = vmatprep.subr.mxu0 %v10719_v3  ;;  %v11194_v28 = vand.u32 4294901760, %v1320_v4  ;;  %v15262_v61 = vand.u32 4294901760, %v11100_v1  ;;  %v1314_v39 = vld [vmem:[#allocation8 + $0x5b8] sm:$0xff] }
 0x1c4   :  { %v11191_v56 = vsub.f32 %v11085_v26, %v15259_v12  ;;  %3735 = vmatprep.subr.mxu1 %v15261_v57  ;;  %3532 = vmatpush1.msra.mxu0 %v10724_v22  ;;  %v11206_v26 = vand.u32 4294901760, %v1318_v17  ;;  %v15265_v57 = vand.u32 4294901760, %v11115_v60  ;;  %v1312_v12 = vld [vmem:[#allocation8 + $0x5a8] sm:$0xff]  ;;  %v15300_v22 = vand.u32 4294901760, %v11141_v29 }
 0x1c5   :  { %15260 = vst [vmem:[#allocation51_spill] sm:$0xff] %v11194_v28  ;;  %v11203_v5 = vsub.f32 %v11100_v1, %v15262_v61  ;;  %3741 = vmatpush1.msra.mxu1 %v15264_v31  ;;  %3534 = vmatprep.subr.mxu0 %v10732_v52  ;;  %v11218_v1 = vand.u32 4294901760, %v1317_v48  ;;  %v15268_v31 = vand.u32 4294901760, %v11131_v41  ;;  %v1311_v61 = vld [vmem:[#allocation8 + $0x5a0] sm:$0xff]  ;;  %v15271_v52 = vand.u32 4294901760, %v10983_v18 }
 0x1c6   :  { %15263 = vst [vmem:[#allocation62_spill] sm:$0xff] %v11206_v26  ;;  %v11215_v42 = vsub.f32 %v11115_v60, %v15265_v57  ;;  %3747 = vmatprep.subr.mxu1 %v15267_v63  ;;  %3536 = vmatpush1.msra.mxu0 %v10738_v59  ;;  %v11230_v57 = vsub.f32 %v1321_v40, %v11182_v19  ;;  %v11232_v60 = vand.u32 4294901760, %v1315_v24  ;;  %v15272_v63 = vand.u32 4294901760, %v11145_v20 }
 0x1c7   :  { %15266 = vst [vmem:[#allocation53_spill] sm:$0xff] %v11218_v1  ;;  %v11227_v21 = vsub.f32 %v11131_v41, %v15268_v31  ;;  %3753 = vmatpush1.msra.mxu1 %v15271_v52  ;;  %3538 = vmatprep.subr.mxu0 %v10746_v11  ;;  %v11244_v31 = vsub.f32 %v1320_v4, %v11194_v28  ;;  %v11246_v40 = vand.u32 4294901760, %v1314_v39  ;;  %v1309_v41 = vld [vmem:[#allocation8 + $0x590] sm:$0xff]  ;;  %v15275_v59 = vand.u32 4294901760, %v10997_v16 }
 0x1c8   :  { %15269 = vst [vmem:[#allocation57_spill] sm:$0xff] %v11230_v57  ;;  %15270 = vst [vmem:[#allocation67_spill] sm:$0xff] %v11232_v60  ;;  %v11241_v14 = vsub.f32 %v11145_v20, %v15272_v63  ;;  %3540 = vmatpush1.msra.mxu0 %v10754_v53  ;;  %v15276_v18 = vand.u32 4294901760, %v11158_v10  ;;  %v11258_v63 = vsub.f32 %v1318_v17, %v11206_v26  ;;  %v11260_v4 = vand.u32 4294901760, %v1312_v12  ;;  %v1308_v20 = vld [vmem:[#allocation8 + $0x588] sm:$0xff] }
 0x1c9   :  { %15273 = vst [vmem:[#allocation59_spill] sm:$0xff] %v11244_v31  ;;  %15274 = vst [vmem:[#allocation69_spill] sm:$0xff] %v11246_v40  ;;  %3759 = vmatprep.subr.mxu1 %v15275_v59  ;;  %v15279_v11 = vand.u32 4294901760, %v11012_v32  ;;  %3542 = vmatprep.subr.mxu0 %v10764_v38  ;;  %v15280_v16 = vand.u32 4294901760, %v11171_v15  ;;  %v11274_v17 = vand.u32 4294901760, %v1311_v61  ;;  %v15283_v53 = vand.u32 4294901760, %v11066_v47 }
 0x1ca   :  { %v11255_v37 = vsub.f32 %v11158_v10, %v15276_v18  ;;  %15277 = vst [vmem:[#allocation61_spill] sm:$0xff] %v11258_v63  ;;  %15278 = vst [vmem:[#allocation70_spill] sm:$0xff] %v11260_v4  ;;  %v11272_v18 = vsub.f32 %v1317_v48, %v11218_v1  ;;  %v1306_v10 = vld [vmem:[#allocation8 + $0x578] sm:$0xff]  ;;  %v15284_v32 = vld [vmem:[#allocation81_spill] sm:$0xff]  ;;  %v11282_v38 = vsub.f32 %v1315_v24, %v11232_v60  ;;  %v15287_v48 = vand.u32 4294901760, %v11081_v6 }
 0x1cb   :  { %3765 = vmatpush1.msra.mxu1 %v15279_v11  ;;  %v11269_v52 = vsub.f32 %v11171_v15, %v15280_v16  ;;  %15282 = vst [vmem:[#allocation76_spill] sm:$0xff] %v11274_v17  ;;  %3544 = vmatpush1.msra.mxu0 %v15284_v32  ;;  %v11284_v16 = vand.u32 4294901760, %v1309_v41  ;;  %v1305_v15 = vld [vmem:[#allocation8 + $0x570] sm:$0xff]  ;;  %v11292_v32 = vsub.f32 %v1314_v39, %v11246_v40  ;;  %v11294_v11 = vand.u32 4294901760, %v1308_v20  ;;  %v1303_v59 = vld [vmem:[#allocation8 + $0x560] sm:$0xff] }
 0x1cc   :  { %15281 = vst [vmem:[#allocation63_spill] sm:$0xff] %v11272_v18  ;;  %3771 = vmatprep.subr.mxu1 %v15283_v53  ;;  %15285 = vst [vmem:[#allocation68_spill] sm:$0xff] %v11282_v38  ;;  %3546 = vmatprep.subr.mxu0 %v10786_v58  ;;  %v15290_v24 = vand.u32 4294901760, %v11096_v30  ;;  %v11302_v58 = vsub.f32 %v1312_v12, %v11260_v4  ;;  %v11304_v47 = vand.u32 4294901760, %v1306_v10  ;;  %v1302_v53 = vld [vmem:[#allocation8 + $0x558] sm:$0xff]  ;;  %v15293_v39 = vand.u32 4294901760, %v11111_v25 }
 0x1cd   :  { %15286 = vst [vmem:[#allocation79_spill] sm:$0xff] %v11284_v16  ;;  %3777 = vmatpush1.msra.mxu1 %v15287_v48  ;;  %15288 = vst [vmem:[#allocation86_spill] sm:$0xff] %v11292_v32  ;;  %3548 = vmatpush1.msra.mxu0 %v10795_v51  ;;  %v11312_v51 = vsub.f32 %v1311_v61, %v11274_v17  ;;  %v11314_v6 = vand.u32 4294901760, %v1305_v15  ;;  %v1300_v48 = vld [vmem:[#allocation8 + $0x548] sm:$0xff]  ;;  %v15296_v12 = vand.u32 4294901760, %v11127_v23  ;;  %v15297_v25 = vand.u32 4294901760, %v11230_v57 }
 0x1ce   :  { %15289 = vst [vmem:[#allocation88_spill] sm:$0xff] %v11294_v11  ;;  %3783 = vmatprep.subr.mxu1 %v15290_v24  ;;  %15291 = vst [vmem:[#allocation90_spill] sm:$0xff] %v11302_v58  ;;  %3550 = vmatprep.subr.mxu0 %v10819_v27  ;;  %v11326_v24 = vsub.f32 %v1309_v41, %v11284_v16  ;;  %v11328_v61 = vand.u32 4294901760, %v1303_v59  ;;  %v1299_v27 = vld [vmem:[#allocation8 + $0x540] sm:$0xff]  ;;  %v15301_v23 = vand.u32 4294901760, %v11244_v31  ;;  %v11342_v41 = vand.u32 4294901760, %v1302_v53 }
 0x1cf   :  { %15292 = vst [vmem:[#allocation92_spill] sm:$0xff] %v11304_v47  ;;  %3789 = vmatpush1.msra.mxu1 %v15293_v39  ;;  %15294 = vst [vmem:[#allocation28_spill] sm:$0xff] %v11312_v51  ;;  %3552 = vmatpush1.msra.mxu0 %v10833_v43  ;;  %v11322_v39 = vsub.f32 %v11230_v57, %v15297_v25  ;;  %v11340_v30 = vsub.f32 %v1308_v20, %v11294_v11  ;;  %v15304_v57 = vand.u32 4294901760, %v11154_v35 }
 0x1d0   :  { %15295 = vst [vmem:[#allocation94_spill] sm:$0xff] %v11314_v6  ;;  %3795 = vmatprep.subr.mxu1 %v15296_v12  ;;  %15298 = vst [vmem:[#allocation96_spill] sm:$0xff] %v11326_v24  ;;  %3554 = vmatprep.subr.mxu0 %v10847_v49  ;;  %v11336_v12 = vsub.f32 %v11244_v31, %v15301_v23  ;;  %v11354_v31 = vsub.f32 %v1306_v10, %v11304_v47  ;;  %v11356_v25 = vand.u32 4294901760, %v1300_v48 }
 0x1d1   :  { %15299 = vst [vmem:[#allocation98_spill] sm:$0xff] %v11328_v61  ;;  %3801 = vmatpush1.msra.mxu1 %v15300_v22  ;;  %15302 = vst [vmem:[#allocation100_spill] sm:$0xff] %v11340_v30  ;;  %3556 = vmatpush1.msra.mxu0 %v10861_v8  ;;  %v15305_v22 = vand.u32 4294901760, %v11258_v63  ;;  %v15308_v20 = vand.u32 4294901760, %v11167_v36  ;;  %v15309_v35 = vand.u32 4294901760, %v11272_v18  ;;  %v11370_v23 = vand.u32 4294901760, %v1299_v27 }
 0x1d2   :  { %15303 = vst [vmem:[#allocation103_spill] sm:$0xff] %v11342_v41  ;;  %3807 = vmatprep.subr.mxu1 %v15304_v57  ;;  %15306 = vst [vmem:[#allocation105_spill] sm:$0xff] %v11354_v31  ;;  %3558 = vmatprep.subr.mxu0 %v10927_v9  ;;  %v15312_v10 = vand.u32 4294901760, %v11179_v45  ;;  %v15313_v8 = vld [vmem:[#allocation120_spill] sm:$0xff]  ;;  %v3866_v36 = vand.u32 4294901760, %v11322_v39  ;;  %v3872_v45 = vand.u32 4294901760, %v11336_v12 }
 0x1d3   :  { %v11350_v29 = vsub.f32 %v11258_v63, %v15305_v22  ;;  %15307 = vst [vmem:[#allocation107_spill] sm:$0xff] %v11356_v25  ;;  %3813 = vmatpush1.msra.mxu1 %v15308_v20  ;;  %v11364_v57 = vsub.f32 %v11272_v18, %v15309_v35  ;;  %v11368_v63 = vsub.f32 %v1305_v15, %v11314_v6  ;;  %15311 = vst [vmem:[#allocation111_spill] sm:$0xff] %v11370_v23  ;;  %v15317_v18 = vld [vmem:[#allocation122_spill] sm:$0xff]  ;;  %v1297_v35 = vld [vmem:[#allocation8 + $0x530] sm:$0xff] }
 0x1d4   :  { %3819 = vmatprep.subr.mxu1 %v15312_v10  ;;  %3560 = vmatpush1.msra.mxu0 %v15313_v8  ;;  %v15314_v20 = vand.u32 4294901760, %v11282_v38  ;;  %v11383_v22 = vsub.f32 %v1303_v59, %v11328_v61  ;;  %v15316_v15 = vand.u32 4294901760, %v11191_v56  ;;  %v15318_v10 = vand.u32 4294901760, %v11292_v32  ;;  %v15321_v56 = vld [vmem:[#allocation124_spill] sm:$0xff] }
 0x1d5   :  { %15310 = vst [vmem:[#allocation109_spill] sm:$0xff] %v11368_v63  ;;  %3562 = vmatprep.subr.mxu0 %v15317_v18  ;;  %v15320_v59 = vand.u32 4294901760, %v11203_v5  ;;  %v15322_v12 = vand.u32 4294901760, %v11302_v58  ;;  %v15325_v5 = vld [vmem:[#allocation21_spill] sm:$0xff] }
 0x1d6   :  { %v11379_v9 = vsub.f32 %v11282_v38, %v15314_v20  ;;  %15315 = vst [vmem:[#allocation112_spill] sm:$0xff] %v11383_v22  ;;  %3825 = vmatpush1.msra.mxu1 %v15316_v15  ;;  %v11392_v39 = vsub.f32 %v11292_v32, %v15318_v10  ;;  %v11396_v38 = vsub.f32 %v1302_v53, %v11342_v41  ;;  %v3878_v15 = vand.u32 4294901760, %v11350_v29  ;;  %v1296_v53 = vld [vmem:[#allocation8 + $0x528] sm:$0xff] }
 0x1d7   :  { %3831 = vmatprep.subr.mxu1 %v15320_v59  ;;  %3564 = vmatpush1.msra.mxu0 %v15321_v56  ;;  %v11405_v18 = vsub.f32 %v11302_v58, %v15322_v12  ;;  %v11409_v20 = vsub.f32 %v1300_v48, %v11356_v25  ;;  %v15324_v32 = vand.u32 4294901760, %v11215_v42  ;;  %v3884_v59 = vand.u32 4294901760, %v11364_v57  ;;  %v1294_v48 = vld [vmem:[#allocation8 + $0x518] sm:$0xff]  ;;  %v1293_v12 = vld [vmem:[#allocation8 + $0x510] sm:$0xff] }
 0x1d8   :  { %15319 = vst [vmem:[#allocation113_spill] sm:$0xff] %v11396_v38  ;;  %3566 = vmatprep.subr.mxu0 %v15325_v5  ;;  %v15326_v29 = vand.u32 4294901760, %v11312_v51  ;;  %v11422_v10 = vsub.f32 %v1299_v27, %v11370_v23  ;;  %v15328_v58 = vand.u32 4294901760, %v11227_v21  ;;  %v15329_v42 = vld [vmem:[#allocation22_spill] sm:$0xff]  ;;  %v15330_v57 = vand.u32 4294901760, %v11326_v24 }
 0x1d9   :  { %15323 = vst [vmem:[#allocation117_spill] sm:$0xff] %v11409_v20  ;;  %3837 = vmatpush1.msra.mxu1 %v15324_v32  ;;  %3568 = vmatpush1.msra.mxu0 %v15329_v42  ;;  %v3890_v32 = vand.u32 4294901760, %v11379_v9  ;;  %v15332_v27 = vand.u32 4294901760, %v11241_v14  ;;  %v15333_v21 = vand.u32 4294901760, %v11340_v30  ;;  %v15335_v42 = vand.u32 4294901760, %v11255_v37 }
 0x1da   :  { %v11418_v56 = vsub.f32 %v11312_v51, %v15326_v29  ;;  %15327 = vst [vmem:[#allocation118_spill] sm:$0xff] %v11422_v10  ;;  %3843 = vmatprep.subr.mxu1 %v15328_v58  ;;  %v11431_v5 = vsub.f32 %v11326_v24, %v15330_v57  ;;  %v11434_v51 = vand.u32 4294901760, %v1297_v35  ;;  %3570 = vmatprep.subr.mxu0 %v11002_v54  ;;  %v3896_v58 = vand.u32 4294901760, %v11392_v39  ;;  %v1291_v29 = vld [vmem:[#allocation8 + $0x500] sm:$0xff]  ;;  %v1290_v57 = vld [vmem:[#allocation8 + $0x4f8] sm:$0xff] }
 0x1db   :  { %3849 = vmatpush1.msra.mxu1 %v15332_v27  ;;  %v11443_v9 = vsub.f32 %v11340_v30, %v15333_v21  ;;  %v11446_v24 = vand.u32 4294901760, %v1296_v53  ;;  %3572 = vmatpush1.msra.mxu0 %v11017_v2  ;;  %v3902_v14 = vand.u32 4294901760, %v11405_v18  ;;  %v15336_v27 = vand.u32 4294901760, %v11354_v31  ;;  %v1288_v21 = vld [vmem:[#allocation8 + $0x4e8] sm:$0xff] }
 0x1dc   :  { %15331 = vst [vmem:[#allocation116_spill] sm:$0xff] %v11434_v51  ;;  %3855 = vmatprep.subr.mxu1 %v15335_v42  ;;  %v11458_v30 = vand.u32 4294901760, %v1294_v48  ;;  %v15338_v54 = vand.u32 4294901760, %v11269_v52  ;;  %3574 = vmatprep.subr.mxu0 %v11027_v7  ;;  %v3908_v37 = vand.u32 4294901760, %v11418_v56  ;;  %v15339_v42 = vand.u32 4294901760, %v11368_v63 }
 0x1dd   :  { %15334 = vst [vmem:[#allocation121_spill] sm:$0xff] %v11446_v24  ;;  %v11455_v39 = vsub.f32 %v11354_v31, %v15336_v27  ;;  %v11470_v31 = vand.u32 4294901760, %v1293_v12  ;;  %3576 = vmatpush1.msra.mxu0 %v11037_v46  ;;  %v3914_v52 = vand.u32 4294901760, %v11431_v5  ;;  %v11480_v56 = vsub.f32 %v1297_v35, %v11434_v51  ;;  %v1285_v35 = vld [vmem:[#allocation8 + $0x4d0] sm:$0xff] }
 0x1de   :  { %15337 = vst [vmem:[#allocation123_spill] sm:$0xff] %v11458_v30  ;;  %3861 = vmatpush1.msra.mxu1 %v15338_v54  ;;  %v11467_v18 = vsub.f32 %v11368_v63, %v15339_v42  ;;  %v15341_v54 = vand.u32 4294901760, %v11383_v22  ;;  %v11482_v42 = vand.u32 4294901760, %v1291_v29  ;;  %v1287_v63 = vld [vmem:[#allocation8 + $0x4e0] sm:$0xff]  ;;  %3578 = vmatprep.subr.mxu0 %v11047_v44  ;;  %v15344_v27 = vand.u32 4294901760, %v11396_v38 }
 0x1df   :  { %15340 = vst [vmem:[#allocation125_spill] sm:$0xff] %v11470_v31  ;;  %3867 = vmatprep.subr.mxu1 %v3866_v36  ;;  %15342 = vst [vmem:[#allocation126_spill] sm:$0xff] %v11480_v56  ;;  %v3920_v36 = vand.u32 4294901760, %v11443_v9  ;;  %v11492_v46 = vsub.f32 %v1296_v53, %v11446_v24  ;;  %3580 = vmatpush1.msra.mxu0 %v11058_v62  ;;  %v11504_v44 = vsub.f32 %v1294_v48, %v11458_v30  ;;  %v1284_v53 = vld [vmem:[#allocation8 + $0x4c8] sm:$0xff]  ;;  %v1282_v48 = vld [vmem:[#allocation8 + $0x4b8] sm:$0xff] }
 0x1e0   :  { %v11477_v7 = vsub.f32 %v11383_v22, %v15341_v54  ;;  %15343 = vst [vmem:[#allocation127_spill] sm:$0xff] %v11482_v42  ;;  %3873 = vmatpush2.msra.mxu1 %v3872_v45  ;;  %v11489_v5 = vsub.f32 %v11396_v38, %v15344_v27  ;;  %v11494_v54 = vand.u32 4294901760, %v1290_v57  ;;  %v3926_v45 = vand.u32 4294901760, %v11455_v39  ;;  %3582 = vmatprep.subr.mxu0 %v11072_v50 }
 0x1e1   :  { %15345 = vst [vmem:[#allocation128_spill] sm:$0xff] %v11492_v46  ;;  %3879 = vmatprep.subr.mxu1 %v3878_v15  ;;  %v15346_v22 = vand.u32 4294901760, %v11409_v20  ;;  %15347 = vst [vmem:[#allocation129_spill] sm:$0xff] %v11504_v44  ;;  %v11506_v27 = vand.u32 4294901760, %v1288_v21  ;;  %v3932_v15 = vand.u32 4294901760, %v11467_v18  ;;  %v15348_v38 = vand.u32 4294901760, %v11422_v10  ;;  %3584 = vmatpush1.msra.mxu0 %v11087_v33 }
 0x1e2   :  { %3885 = vmatpush2.msra.mxu1 %v3884_v59  ;;  %v11516_v62 = vsub.f32 %v1293_v12, %v11470_v31  ;;  %v3938_v59 = vand.u32 4294901760, %v11477_v7  ;;  %v11524_v18 = vsub.f32 %v1291_v29, %v11482_v42  ;;  %v11526_v50 = vand.u32 4294901760, %v1285_v35  ;;  %3586 = vmatprep.subr.mxu0 %v11102_v0  ;;  %v1279_v7 = vld [vmem:[#allocation8 + $0x4a0] sm:$0xff] }
 0x1e3   :  { %v11501_v9 = vsub.f32 %v11409_v20, %v15346_v22  ;;  %v11513_v39 = vsub.f32 %v11422_v10, %v15348_v38  ;;  %v11518_v22 = vand.u32 4294901760, %v1287_v63  ;;  %3891 = vmatprep.subr.mxu1 %v3890_v32  ;;  %v1281_v38 = vld [vmem:[#allocation8 + $0x4b0] sm:$0xff]  ;;  %v3944_v12 = vand.u32 4294901760, %v11489_v5  ;;  %3588 = vmatpush1.msra.mxu0 %v11117_v34  ;;  %v1278_v5 = vld [vmem:[#allocation8 + $0x498] sm:$0xff]  ;;  %v1275_v10 = vld [vmem:[#allocation8 + $0x480] sm:$0xff] }
 0x1e4   :  { %3897 = vmatpush2.msra.mxu1 %v3896_v58  ;;  %v11532_v32 = vsub.f32 %v1290_v57, %v11494_v54  ;;  %v11534_v33 = vand.u32 4294901760, %v1284_v53  ;;  %v11540_v58 = vsub.f32 %v1288_v21, %v11506_v27  ;;  %v11542_v0 = vand.u32 4294901760, %v1282_v48  ;;  %3590 = vmatprep.subr.mxu0 %v11182_v19 }
 0x1e5   :  { %3903 = vmatprep.subr.mxu1 %v3902_v14  ;;  %v3950_v29 = vand.u32 4294901760, %v11501_v9  ;;  %v3956_v57 = vand.u32 4294901760, %v11513_v39  ;;  %v11548_v14 = vsub.f32 %v1287_v63, %v11518_v22  ;;  %v11550_v34 = vand.u32 4294901760, %v1281_v38  ;;  %v1276_v9 = vld [vmem:[#allocation8 + $0x488] sm:$0xff]  ;;  %3592 = vmatpush2.msra.mxu0 %v11194_v28 }
 0x1e6   :  { %15349 = vst [vmem:[#allocation137_spill] sm:$0xff] %v11532_v32  ;;  %15350 = vst [vmem:[#allocation138_spill] sm:$0xff] %v11534_v33  ;;  %3909 = vmatpush2.msra.mxu1 %v3908_v37  ;;  %v15352_v21 = vand.u32 4294901760, %v11480_v56  ;;  %v11558_v19 = vsub.f32 %v1285_v35, %v11526_v50  ;;  %v11560_v39 = vand.u32 4294901760, %v1279_v7  ;;  %3594 = vmatprep.subr.mxu0 %v11206_v26  ;;  %v15353_v63 = vand.u32 4294901760, %v11492_v46 }
 0x1e7   :  { %15351 = vst [vmem:[#allocation139_spill] sm:$0xff] %v11548_v14  ;;  %3915 = vmatprep.subr.mxu1 %v3914_v52  ;;  %v11568_v2 = vsub.f32 %v1284_v53, %v11534_v33  ;;  %3596 = vmatpush2.msra.mxu0 %v11218_v1  ;;  %v15355_v35 = vand.u32 4294901760, %v11504_v44  ;;  %v15357_v53 = vand.u32 4294901760, %v11516_v62  ;;  %v15358_v37 = vand.u32 4294901760, %v11524_v18 }
 0x1e8   :  { %v3961_v20 = vsub.f32 %v11480_v56, %v15352_v21  ;;  %3921 = vmatpush2.msra.mxu1 %v3920_v36  ;;  %v3967_v52 = vsub.f32 %v11492_v46, %v15353_v63  ;;  %v11570_v21 = vand.u32 4294901760, %v1278_v5  ;;  %v11578_v56 = vsub.f32 %v1282_v48, %v11542_v0  ;;  %3598 = vmatprep.subr.mxu0 %v11232_v60 }
 0x1e9   :  { %3927 = vmatprep.subr.mxu1 %v3926_v45  ;;  %v3973_v36 = vsub.f32 %v11504_v44, %v15355_v35  ;;  %v11580_v63 = vand.u32 4294901760, %v1276_v9  ;;  %v3979_v45 = vsub.f32 %v11516_v62, %v15357_v53  ;;  %v11588_v46 = vsub.f32 %v1281_v38, %v11550_v34  ;;  %3600 = vmatpush2.msra.mxu0 %v11246_v40 }
 0x1ea   :  { %15354 = vst [vmem:[#allocation140_spill] sm:$0xff] %v11570_v21  ;;  %15356 = vst [vmem:[#allocation141_spill] sm:$0xff] %v11578_v56  ;;  %3933 = vmatpush2.msra.mxu1 %v3932_v15  ;;  %v11590_v35 = vand.u32 4294901760, %v1275_v10  ;;  %v3962_v48 = vand.u32 4294901760, %v3961_v20  ;;  %v3985_v15 = vsub.f32 %v11524_v18, %v15358_v37  ;;  %v11598_v60 = vsub.f32 %v1279_v7, %v11560_v39 }
 0x1eb   :  { %3939 = vmatprep.subr.mxu1 %v3938_v59  ;;  %3602 = vmatprep.subr.mxu0 %v11260_v4  ;;  %v3968_v38 = vand.u32 4294901760, %v3967_v52  ;;  %v15359_v53 = vand.u32 4294901760, %v11532_v32  ;;  %v11606_v20 = vsub.f32 %v1278_v5, %v11570_v21  ;;  %v3974_v37 = vand.u32 4294901760, %v3973_v36 }
 0x1ec   :  { %3945 = vmatpush2.msra.mxu1 %v3944_v12  ;;  %3604 = vmatpush2.msra.mxu0 %v11274_v17  ;;  %v15360_v7 = vand.u32 4294901760, %v11540_v58  ;;  %v11614_v52 = vsub.f32 %v1276_v9, %v11580_v63  ;;  %v15361_v5 = vand.u32 4294901760, %v11548_v14  ;;  %v11622_v36 = vsub.f32 %v1275_v10, %v11590_v35 }
 0x1ed   :  { %v3991_v59 = vsub.f32 %v11532_v32, %v15359_v53  ;;  %3951 = vmatprep.subr.mxu1 %v3950_v29  ;;  %3606 = vmatprep.subr.mxu0 %v11284_v16  ;;  %v3980_v53 = vand.u32 4294901760, %v3979_v45  ;;  %v15362_v9 = vand.u32 4294901760, %v11558_v19 }
 0x1ee   :  { %v3997_v12 = vsub.f32 %v11540_v58, %v15360_v7  ;;  %3957 = vmatpush2.msra.mxu1 %v3956_v57  ;;  %v4003_v29 = vsub.f32 %v11548_v14, %v15361_v5  ;;  %3608 = vmatpush2.msra.mxu0 %v11294_v11  ;;  %v3986_v7 = vand.u32 4294901760, %v3985_v15  ;;  %v15363_v5 = vand.u32 4294901760, %v11568_v2 }
 0x1ef   :  { %3963 = vmatprep.subr.mxu1 %v3962_v48  ;;  %v4009_v57 = vsub.f32 %v11558_v19, %v15362_v9  ;;  %3610 = vmatprep.subr.mxu0 %v11304_v47  ;;  %v3992_v45 = vand.u32 4294901760, %v3991_v59  ;;  %v15364_v48 = vld [vmem:[#allocation26_spill] sm:$0xff]  ;;  %v15365_v9 = vand.u32 4294901760, %v11578_v56 }
 0x1f0   :  { %3969 = vmatpush2.msra.mxu1 %v3968_v38  ;;  %v4015_v28 = vsub.f32 %v11568_v2, %v15363_v5  ;;  %v1129_v14 = vmax.f32 %v15364_v48, 0.0  ;;  %3612 = vmatpush2.msra.mxu0 %v11314_v6  ;;  %v3998_v15 = vand.u32 4294901760, %v3997_v12  ;;  %v4004_v59 = vand.u32 4294901760, %v4003_v29 }
 0x1f1   :  { %3975 = vmatprep.subr.mxu1 %v3974_v37  ;;  %v4021_v44 = vsub.f32 %v11578_v56, %v15365_v9  ;;  %3614 = vmatprep.subr.mxu0 %v11328_v61  ;;  %v15366_v5 = vand.u32 4294901760, %v11588_v46  ;;  %v14511_v48 = vand.u32 4294901760, %v11622_v36  ;;  %v4010_v37 = vand.u32 4294901760, %v4009_v57 }
 0x1f2   :  { %3981 = vmatpush2.msra.mxu1 %v3980_v53  ;;  %3616 = vmatpush2.msra.mxu0 %v11342_v41  ;;  %v15367_v12 = vand.u32 4294901760, %v11598_v60  ;;  %v4016_v53 = vand.u32 4294901760, %v4015_v28  ;;  %v15368_v29 = vand.u32 4294901760, %v11606_v20  ;;  %v11653_v56 = vand.u32 4294901760, %v1129_v14 }
 0x1f3   :  { %v4027_v10 = vsub.f32 %v11588_v46, %v15366_v5  ;;  %3987 = vmatprep.subr.mxu1 %v3986_v7  ;;  %3618 = vmatprep.subr.mxu0 %v11356_v25  ;;  %v4022_v7 = vand.u32 4294901760, %v4021_v44  ;;  %v15370_v57 = vand.u32 4294901760, %v11614_v52  ;;  %v4051_v28 = vsub.f32 %v11622_v36, %v14511_v48  ;;  %v15387_v48 = vld [vmem:[#allocation74_spill] sm:$0xff] }
 0x1f4   :  { %v4033_v9 = vsub.f32 %v11598_v60, %v15367_v12  ;;  %3993 = vmatpush2.msra.mxu1 %v3992_v45  ;;  %v4039_v38 = vsub.f32 %v11606_v20, %v15368_v29  ;;  %15369 = vst [vmem:[#allocation26_spill] sm:$0xff] %v11653_v56  ;;  %3620 = vmatpush2.msra.mxu0 %v11370_v23  ;;  %v15376_v29 = vld [vmem:[#allocation71_spill] sm:$0xff] }
 0x1f5   :  { %3999 = vmatprep.subr.mxu1 %v3998_v15  ;;  %v4045_v5 = vsub.f32 %v11614_v52, %v15370_v57  ;;  %3622 = vmatprep.subr.mxu0 %v11434_v51  ;;  %v4028_v45 = vand.u32 4294901760, %v4027_v10  ;;  %v11666_v15 = vsub.f32 %v1129_v14, %v11653_v56  ;;  %v4052_v10 = vand.u32 4294901760, %v4051_v28  ;;  %v15373_v14 = vld [vmem:[#allocation115_spill] sm:$0xff]  ;;  %v15381_v28 = vld [vmem:[#allocation78_spill] sm:$0xff] }
 0x1f6   :  { %4005 = vmatpush2.msra.mxu1 %v4004_v59  ;;  %3624 = vmatpush2.msra.mxu0 %v11446_v24  ;;  %v4034_v12 = vand.u32 4294901760, %v4033_v9  ;;  %v4040_v44 = vand.u32 4294901760, %v4039_v38  ;;  %v15374_v9 = vld [vmem:[#allocation65_spill] sm:$0xff]  ;;  %v15378_v57 = vld [vmem:[#allocation83_spill] sm:$0xff] }
 0x1f7   :  { %4011 = vmatprep.subr.mxu1 %v4010_v37  ;;  %3626 = vmatprep.subr.mxu0 %v11458_v30  ;;  %15371 = vst [vmem:[#allocation142_spill] sm:$0xff] %v11666_v15  ;;  %v4046_v59 = vand.u32 4294901760, %v4045_v5  ;;  %v11673_v37 = vand.u32 4294901760, %v11666_v15  ;;  %v15379_v5 = vld [vmem:[#allocation85_spill] sm:$0xff] }
 0x1f8   :  { %4017 = vmatpush2.msra.mxu1 %v4016_v53  ;;  %3628 = vmatpush2.msra.mxu0 %v11470_v31  ;;  %v15375_v53 = vld [vmem:[#allocation77_spill] sm:$0xff] }
 0x1f9   :  { %4023 = vmatprep.subr.mxu1 %v4022_v7  ;;  %3630 = vmatprep.subr.mxu0 %v11482_v42  ;;  %15372 = vst [vmem:[#allocation143_spill] sm:$0xff] %v11673_v37  ;;  %v3662_v38 = vsub.f32 %v11666_v15, %v11673_v37 }
 0x1fa   :  { %4029 = vmatpush2.msra.mxu1 %v4028_v45  ;;  %3632 = vmatpush2.msra.mxu0 %v11494_v54  ;;  %v15380_v45 = vld [vmem:[#allocation72_spill] sm:$0xff] }
 0x1fb   :  { %4035 = vmatprep.subr.mxu1 %v4034_v12  ;;  %3634 = vmatprep.subr.mxu0 %v11506_v27  ;;  %v11693_v7 = vand.u32 4294901760, %v3662_v38  ;;  %v15382_v12 = vld [vmem:[#allocation66_spill] sm:$0xff]  ;;  %v15386_v38 = vld [vmem:[#allocation84_spill] sm:$0xff] }
 0x1fc   :  { %4041 = vmatpush2.msra.mxu1 %v4040_v44  ;;  %3636 = vmatpush2.msra.mxu0 %v11518_v22  ;;  %v15383_v44 = vld [vmem:[#allocation106_spill] sm:$0xff] }
 0x1fd   :  { %4047 = vmatprep.subr.mxu1 %v4046_v59  ;;  %3638 = vmatprep.subr.mxu0 %v11526_v50  ;;  %15377 = vst [vmem:[#allocation65_spill] sm:$0xff] %v11693_v7  ;;  %v15384_v59 = vld [vmem:[#allocation81_spill] sm:$0xff] }
 0x1fe   :  { %4053 = vmatpush2.msra.mxu1 %v4052_v10  ;;  %3640 = vmatpush2.msra.mxu0 %v11534_v33  ;;  %v15385_v10 = vld [vmem:[#allocation73_spill] sm:$0xff] }
 0x1ff   :  { %4057 = vmatmul.mubr.f32.vlgmr.msra.gmra.mxu1 %v11653_v56  ;;  %4267 = vmatprep.subr.mxu1 %v10697_v13  ;;  %v15389_v56 = vld [vmem:[#allocation75_spill] sm:$0xff] }
 0x200   :  { %4269 = vmatpush1.msra.mxu1 %v10708_v55  ;;  %4397 = vmatprep.mubr.f32.mxu1 %v15373_v14  ;;  %v15388_v14 = vld [vmem:[#allocation89_spill] sm:$0xff] }
 0x201   :  { %3642 = vmatprep.subr.mxu0 %v11542_v0  ;;  %4271 = vmatprep.subr.mxu1 %v10719_v3 }
 0x202   :  { %3644 = vmatpush2.msra.mxu0 %v11550_v34  ;;  %4273 = vmatpush1.msra.mxu1 %v15374_v9 }
 0x203   :  { %3646 = vmatprep.subr.mxu0 %v11560_v39  ;;  %4275 = vmatprep.subr.mxu1 %v15375_v53 }
 0x204   :  { %3648 = vmatpush2.msra.mxu0 %v11570_v21  ;;  %4277 = vmatpush1.msra.mxu1 %v15376_v29 }
 0x205   :  { %3650 = vmatprep.subr.mxu0 %v11580_v63  ;;  %4279 = vmatprep.subr.mxu1 %v15378_v57 }
 0x206   :  { %3652 = vmatpush2.msra.mxu0 %v11590_v35  ;;  %4281 = vmatpush1.msra.mxu1 %v15379_v5 }
 0x207   :  { %3664 = vmatmul.mubr.f32.vlgmr.msra.gmra.mxu0 %v11693_v7  ;;  %4065 = vmatprep.subr.mxu0 %v15380_v45  ;;  %v15390_v7 = vld [vmem:[#allocation97_spill] sm:$0xff]  ;;  %v15391_v45 = vld [vmem:[#allocation80_spill] sm:$0xff] }
 0x208   :  { %4283 = vmatprep.subr.mxu1 %v15381_v28  ;;  %4068 = vmatpush1.msra.mxu0 %v15382_v12  ;;  %v15392_v12 = vld [vmem:[#allocation82_spill] sm:$0xff] }
 0x209   :  { %4257 = vmatprep.mubr.f32.mxu0 %v15383_v44  ;;  %4285 = vmatpush1.msra.mxu1 %v15384_v59  ;;  %v15393_v44 = vld [vmem:[#allocation87_spill] sm:$0xff] }
 0x20a   :  { %4071 = vmatprep.subr.mxu0 %v15385_v10  ;;  %4287 = vmatprep.subr.mxu1 %v15386_v38  ;;  %v15394_v10 = vld [vmem:[#allocation56_spill] sm:$0xff]  ;;  %v15395_v38 = vld [vmem:[#allocation93_spill] sm:$0xff] }
 0x20b   :  { %4074 = vmatpush1.msra.mxu0 %v15387_v48  ;;  %4289 = vmatpush1.msra.mxu1 %v15388_v14  ;;  %v15396_v48 = vld [vmem:[#allocation19_spill] sm:$0xff] }
 0x20c   :  { %4077 = vmatprep.subr.mxu0 %v15389_v56  ;;  %4291 = vmatprep.subr.mxu1 %v15390_v7  ;;  %v15397_v14 = vld [vmem:[#allocation95_spill] sm:$0xff] }
 0x20d   :  { %4080 = vmatpush1.msra.mxu0 %v15391_v45  ;;  %4293 = vmatpush1.msra.mxu1 %v10833_v43  ;;  %v15398_v7 = vld [vmem:[#allocation99_spill] sm:$0xff]  ;;  %v15399_v45 = vld [vmem:[#allocation122_spill] sm:$0xff] }
 0x20e   :  { %4083 = vmatprep.subr.mxu0 %v15392_v12  ;;  %4295 = vmatprep.subr.mxu1 %v10847_v49  ;;  %v15400_v43 = vld [vmem:[#allocation102_spill] sm:$0xff]  ;;  %v15401_v12 = vld [vmem:[#allocation124_spill] sm:$0xff] }
 0x20f   :  { %4086 = vmatpush1.msra.mxu0 %v15393_v44  ;;  %4297 = vmatpush1.msra.mxu1 %v15394_v10  ;;  %v15402_v49 = vld [vmem:[#allocation108_spill] sm:$0xff]  ;;  %v15403_v44 = vld [vmem:[#allocation21_spill] sm:$0xff]  ;;  %v15404_v10 = vld [vmem:[#allocation110_spill] sm:$0xff] }
 0x210   :  { %4089 = vmatprep.subr.mxu0 %v15395_v38  ;;  %4299 = vmatprep.subr.mxu1 %v15396_v48  ;;  %v15405_v38 = vld [vmem:[#allocation22_spill] sm:$0xff] }
 0x211   :  { %4092 = vmatpush1.msra.mxu0 %v15397_v14  ;;  %4301 = vmatpush1.msra.mxu1 %v15313_v8  ;;  %v15406_v48 = vld [vmem:[#allocation114_spill] sm:$0xff]  ;;  %v15407_v14 = vld [vmem:[#allocation25_spill] sm:$0xff]  ;;  %v15408_v8 = vld [vmem:[#allocation119_spill] sm:$0xff] }
 0x212   :  { %4095 = vmatprep.subr.mxu0 %v15398_v7  ;;  %4303 = vmatprep.subr.mxu1 %v15399_v45  ;;  %v15409_v7 = vld [vmem:[#allocation37_spill] sm:$0xff]  ;;  %v15410_v45 = vld [vmem:[#allocation20_spill] sm:$0xff] }
 0x213   :  { %4098 = vmatpush1.msra.mxu0 %v15400_v43  ;;  %4305 = vmatpush1.msra.mxu1 %v15401_v12  ;;  %v15411_v43 = vld [vmem:[#allocation38_spill] sm:$0xff] }
 0x214   :  { %4101 = vmatprep.subr.mxu0 %v15402_v49  ;;  %4307 = vmatprep.subr.mxu1 %v15403_v44  ;;  %v15412_v12 = vld [vmem:[#allocation30_spill] sm:$0xff]  ;;  %v15413_v49 = vld [vmem:[#allocation40_spill] sm:$0xff] }
 0x215   :  { %4104 = vmatpush1.msra.mxu0 %v15404_v10  ;;  %4309 = vmatpush1.msra.mxu1 %v15405_v38  ;;  %v15414_v44 = vld [vmem:[#allocation32_spill] sm:$0xff]  ;;  %v15416_v38 = vld [vmem:[#allocation27_spill] sm:$0xff] }
 0x216   :  { %4107 = vmatprep.subr.mxu0 %v15406_v48  ;;  %4311 = vmatprep.subr.mxu1 %v15407_v14  ;;  %v15415_v10 = vld [vmem:[#allocation44_spill] sm:$0xff]  ;;  %v15417_v48 = vld [vmem:[#allocation45_spill] sm:$0xff] }
 0x217   :  { %4110 = vmatpush1.msra.mxu0 %v15408_v8  ;;  %4313 = vmatpush1.msra.mxu1 %v15409_v7  ;;  %v15418_v14 = vld [vmem:[#allocation29_spill] sm:$0xff]  ;;  %v15419_v8 = vld [vmem:[#allocation47_spill] sm:$0xff] }
 0x218   :  { %4113 = vmatprep.subr.mxu0 %v15410_v45  ;;  %4315 = vmatprep.subr.mxu1 %v15411_v43  ;;  %v15420_v7 = vld [vmem:[#allocation31_spill] sm:$0xff]  ;;  %v15421_v45 = vld [vmem:[#allocation48_spill] sm:$0xff]  ;;  %v15422_v43 = vld [vmem:[#allocation33_spill] sm:$0xff] }
 0x219   :  { %4116 = vmatpush1.msra.mxu0 %v15412_v12  ;;  %4317 = vmatpush1.msra.mxu1 %v15413_v49  ;;  %v15423_v12 = vld [vmem:[#allocation52_spill] sm:$0xff]  ;;  %v15424_v49 = vld [vmem:[#allocation34_spill] sm:$0xff] }
 0x21a   :  { %4119 = vmatprep.subr.mxu0 %v15414_v44  ;;  %4319 = vmatprep.subr.mxu1 %v15415_v10  ;;  %v15425_v44 = vld [vmem:[#allocation43_spill] sm:$0xff]  ;;  %v15426_v10 = vld [vmem:[#allocation36_spill] sm:$0xff] }
 0x21b   :  { %4122 = vmatpush1.msra.mxu0 %v15416_v38  ;;  %4321 = vmatpush1.msra.mxu1 %v15417_v48  ;;  %v15427_v38 = vld [vmem:[#allocation60_spill] sm:$0xff]  ;;  %v15428_v48 = vld [vmem:[#allocation39_spill] sm:$0xff] }
 0x21c   :  { %4125 = vmatprep.subr.mxu0 %v15418_v14  ;;  %4323 = vmatprep.subr.mxu1 %v15419_v8  ;;  %v15429_v14 = vld [vmem:[#allocation51_spill] sm:$0xff]  ;;  %v15430_v8 = vld [vmem:[#allocation41_spill] sm:$0xff] }
 0x21d   :  { %4128 = vmatpush1.msra.mxu0 %v15420_v7  ;;  %4325 = vmatpush1.msra.mxu1 %v15421_v45  ;;  %v15431_v45 = vld [vmem:[#allocation42_spill] sm:$0xff] }
 0x21e   :  { %4131 = vmatprep.subr.mxu0 %v15422_v43  ;;  %4327 = vmatprep.subr.mxu1 %v15423_v12  ;;  %v15432_v12 = vld [vmem:[#allocation55_spill] sm:$0xff] }
 0x21f   :  { %4134 = vmatpush1.msra.mxu0 %v15424_v49  ;;  %4329 = vmatpush1.msra.mxu1 %v15425_v44  ;;  %v15433_v49 = vld [vmem:[#allocation67_spill] sm:$0xff]  ;;  %v15434_v44 = vld [vmem:[#allocation46_spill] sm:$0xff] }
 0x220   :  { %4137 = vmatprep.subr.mxu0 %v15426_v10  ;;  %4331 = vmatprep.subr.mxu1 %v15427_v38  ;;  %v15435_v38 = vld [vmem:[#allocation49_spill] sm:$0xff] }
 0x221   :  { %4140 = vmatpush1.msra.mxu0 %v15428_v48  ;;  %4333 = vmatpush2.msra.mxu1 %v15429_v14  ;;  %v15436_v14 = vld [vmem:[#allocation58_spill] sm:$0xff] }
 0x222   :  { %4143 = vmatprep.subr.mxu0 %v15430_v8  ;;  %4335 = vmatprep.subr.mxu1 %v11206_v26  ;;  %v15437_v26 = vld [vmem:[#allocation57_spill] sm:$0xff] }
 0x223   :  { %4146 = vmatpush1.msra.mxu0 %v15431_v45  ;;  %4337 = vmatpush2.msra.mxu1 %v11218_v1  ;;  %v15438_v1 = vld [vmem:[#allocation59_spill] sm:$0xff] }
 0x224   :  { %4149 = vmatprep.subr.mxu0 %v15432_v12  ;;  %4339 = vmatprep.subr.mxu1 %v15433_v49  ;;  %v15439_v49 = vld [vmem:[#allocation61_spill] sm:$0xff] }
 0x225   :  { %4152 = vmatpush1.msra.mxu0 %v15434_v44  ;;  %4341 = vmatpush2.msra.mxu1 %v11246_v40  ;;  %v15440_v40 = vld [vmem:[#allocation63_spill] sm:$0xff] }
 0x226   :  { %4155 = vmatprep.subr.mxu0 %v15435_v38  ;;  %4343 = vmatprep.subr.mxu1 %v11260_v4  ;;  %v15441_v4 = vld [vmem:[#allocation68_spill] sm:$0xff] }
 0x227   :  { %4158 = vmatpush1.msra.mxu0 %v15436_v14  ;;  %4345 = vmatpush2.msra.mxu1 %v11274_v17  ;;  %v15442_v17 = vld [vmem:[#allocation86_spill] sm:$0xff] }
 0x228   :  { %4161 = vmatprep.subr.mxu0 %v15437_v26  ;;  %4347 = vmatprep.subr.mxu1 %v11284_v16  ;;  %v15443_v16 = vld [vmem:[#allocation90_spill] sm:$0xff] }
 0x229   :  { %4164 = vmatpush2.msra.mxu0 %v15438_v1  ;;  %4349 = vmatpush2.msra.mxu1 %v11294_v11  ;;  %v15444_v11 = vld [vmem:[#allocation28_spill] sm:$0xff] }
 0x22a   :  { %4167 = vmatprep.subr.mxu0 %v15439_v49  ;;  %4351 = vmatprep.subr.mxu1 %v11304_v47  ;;  %v15445_v47 = vld [vmem:[#allocation96_spill] sm:$0xff] }
 0x22b   :  { %4170 = vmatpush2.msra.mxu0 %v15440_v40  ;;  %4353 = vmatpush2.msra.mxu1 %v11314_v6  ;;  %v15446_v6 = vld [vmem:[#allocation100_spill] sm:$0xff] }
 0x22c   :  { %4173 = vmatprep.subr.mxu0 %v15441_v4  ;;  %4355 = vmatprep.subr.mxu1 %v11328_v61  ;;  %v15447_v61 = vld [vmem:[#allocation105_spill] sm:$0xff] }
 0x22d   :  { %4176 = vmatpush2.msra.mxu0 %v15442_v17  ;;  %4357 = vmatpush2.msra.mxu1 %v11342_v41  ;;  %v15448_v41 = vld [vmem:[#allocation109_spill] sm:$0xff] }
 0x22e   :  { %4179 = vmatprep.subr.mxu0 %v15443_v16  ;;  %4359 = vmatprep.subr.mxu1 %v11356_v25  ;;  %v15449_v25 = vld [vmem:[#allocation112_spill] sm:$0xff] }
 0x22f   :  { %4182 = vmatpush2.msra.mxu0 %v15444_v11  ;;  %4361 = vmatpush2.msra.mxu1 %v11370_v23  ;;  %v15450_v23 = vld [vmem:[#allocation113_spill] sm:$0xff] }
 0x230   :  { %4185 = vmatprep.subr.mxu0 %v15445_v47  ;;  %4363 = vmatprep.subr.mxu1 %v11434_v51  ;;  %v15451_v51 = vld [vmem:[#allocation117_spill] sm:$0xff] }
 0x231   :  { %4188 = vmatpush2.msra.mxu0 %v15446_v6  ;;  %4365 = vmatpush2.msra.mxu1 %v11446_v24  ;;  %v15452_v24 = vld [vmem:[#allocation118_spill] sm:$0xff] }
 0x232   :  { %4191 = vmatprep.subr.mxu0 %v15447_v61  ;;  %4367 = vmatprep.subr.mxu1 %v11458_v30  ;;  %v15453_v30 = vld [vmem:[#allocation126_spill] sm:$0xff] }
 0x233   :  { %4194 = vmatpush2.msra.mxu0 %v15448_v41  ;;  %4369 = vmatpush2.msra.mxu1 %v11470_v31  ;;  %v15454_v31 = vld [vmem:[#allocation128_spill] sm:$0xff] }
 0x234   :  { %4197 = vmatprep.subr.mxu0 %v15449_v25  ;;  %4371 = vmatprep.subr.mxu1 %v11482_v42  ;;  %v15455_v42 = vld [vmem:[#allocation129_spill] sm:$0xff] }
 0x235   :  { %4200 = vmatpush2.msra.mxu0 %v15450_v23  ;;  %4373 = vmatpush2.msra.mxu1 %v11494_v54 }
 0x236   :  { %4203 = vmatprep.subr.mxu0 %v15451_v51  ;;  %4375 = vmatprep.subr.mxu1 %v11506_v27 }
 0x237   :  { %4206 = vmatpush2.msra.mxu0 %v15452_v24  ;;  %4377 = vmatpush2.msra.mxu1 %v11518_v22 }
 0x238   :  { %4209 = vmatprep.subr.mxu0 %v15453_v30  ;;  %4379 = vmatprep.subr.mxu1 %v11526_v50 }
 0x239   :  { %4212 = vmatpush2.msra.mxu0 %v15454_v31  ;;  %4381 = vmatpush2.msra.mxu1 %v11534_v33  ;;  %v15456_v33 = vld [vmem:[#allocation139_spill] sm:$0xff] }
 0x23a   :  { %4215 = vmatprep.subr.mxu0 %v15455_v42  ;;  %4383 = vmatprep.subr.mxu1 %v11542_v0 }
 0x23b   :  { %4218 = vmatpush2.msra.mxu0 %v11516_v62  ;;  %4385 = vmatpush2.msra.mxu1 %v11550_v34 }
 0x23c   :  { %4221 = vmatprep.subr.mxu0 %v11524_v18  ;;  %4387 = vmatprep.subr.mxu1 %v11560_v39 }
 0x23d   :  { %4224 = vmatpush2.msra.mxu0 %v11532_v32  ;;  %4389 = vmatpush2.msra.mxu1 %v11570_v21  ;;  %v15457_v32 = vld [vmem:[#allocation91_spill] sm:$0xff]  ;;  %v15458_v21 = vld [vmem:[#allocation141_spill] sm:$0xff] }
 0x23e   :  { %4227 = vmatprep.subr.mxu0 %v11540_v58  ;;  %4391 = vmatprep.subr.mxu1 %v11580_v63 }
 0x23f   :  { %4230 = vmatpush2.msra.mxu0 %v15456_v33  ;;  %4393 = vmatpush2.msra.mxu1 %v11590_v35 }
 0x240   :  { %4233 = vmatprep.subr.mxu0 %v11558_v19  ;;  %4401 = vmatmul.mubr.f32.vlgmr.msra.gmra.mxu1 %v11673_v37 }
 0x241   :  { %4673 = vmatprep.subr.mxu1 %v10697_v13  ;;  %4236 = vmatpush2.msra.mxu0 %v11568_v2  ;;  %v15459_v13 = vld [vmem:[#allocation72_spill] sm:$0xff] }
 0x242   :  { %4675 = vmatpush1.msra.mxu1 %v10708_v55  ;;  %4801 = vmatprep.mubr.f32.mxu1 %v15457_v32  ;;  %v15460_v55 = vand.u32 4294901760, %v15459_v13  ;;  %v15469_v13 = vand.u32 4294901760, %v15389_v56 }
 0x243   :  { %4239 = vmatprep.subr.mxu0 %v15458_v21  ;;  %4677 = vmatprep.subr.mxu1 %v10719_v3  ;;  %v15461_v3 = vld [vmem:[#allocation66_spill] sm:$0xff] }
 0x244   :  { %4242 = vmatpush2.msra.mxu0 %v11588_v46  ;;  %4679 = vmatpush1.msra.mxu1 %v15374_v9  ;;  %v15462_v9 = vand.u32 4294901760, %v15461_v3 }
 0x245   :  { %4245 = vmatprep.subr.mxu0 %v11598_v60  ;;  %4681 = vmatprep.subr.mxu1 %v15375_v53  ;;  %v15463_v53 = vld [vmem:[#allocation73_spill] sm:$0xff] }
 0x246   :  { %4248 = vmatpush2.msra.mxu0 %v11606_v20  ;;  %4683 = vmatpush1.msra.mxu1 %v15376_v29  ;;  %v15464_v29 = vand.u32 4294901760, %v15463_v53 }
 0x247   :  { %4251 = vmatprep.subr.mxu0 %v11614_v52  ;;  %4685 = vmatprep.subr.mxu1 %v15378_v57  ;;  %v15465_v57 = vld [vmem:[#allocation84_spill] sm:$0xff] }
 0x248   :  { %4254 = vmatpush2.msra.mxu0 %v11622_v36  ;;  %4687 = vmatpush1.msra.mxu1 %v15379_v5  ;;  %v15466_v5 = vld [vmem:[#allocation74_spill] sm:$0xff] }
 0x249   :  { %4260 = vmatmul.mubr.f32.vlgmr.msra.gmra.mxu0 %v11666_v15  ;;  %4410 = vmatprep.subr.mxu0 %v15460_v55  ;;  %v15467_v37 = vand.u32 4294901760, %v15466_v5  ;;  %v15468_v15 = vld [vmem:[#allocation89_spill] sm:$0xff]  ;;  %v15471_v55 = vld [vmem:[#allocation80_spill] sm:$0xff] }
 0x24a   :  { %4689 = vmatprep.subr.mxu1 %v15381_v28  ;;  %4414 = vmatpush1.msra.mxu0 %v15462_v9  ;;  %v15470_v28 = vld [vmem:[#allocation97_spill] sm:$0xff]  ;;  %v15472_v3 = vand.u32 4294901760, %v15471_v55 }
 0x24b   :  { %4664 = vmatprep.mubr.f32.mxu0 %v15457_v32  ;;  %4691 = vmatpush1.msra.mxu1 %v15384_v59  ;;  %v15473_v9 = vld [vmem:[#allocation101_spill] sm:$0xff]  ;;  %v15474_v59 = vld [vmem:[#allocation82_spill] sm:$0xff] }
 0x24c   :  { %4418 = vmatprep.subr.mxu0 %v15464_v29  ;;  %4693 = vmatprep.subr.mxu1 %v15465_v57  ;;  %v15475_v53 = vand.u32 4294901760, %v15474_v59  ;;  %v15476_v29 = vld [vmem:[#allocation104_spill] sm:$0xff]  ;;  %v15477_v57 = vld [vmem:[#allocation87_spill] sm:$0xff] }
 0x24d   :  { %4422 = vmatpush1.msra.mxu0 %v15467_v37  ;;  %4695 = vmatpush1.msra.mxu1 %v15468_v15  ;;  %v15478_v5 = vand.u32 4294901760, %v15477_v57  ;;  %v15479_v37 = vld [vmem:[#allocation56_spill] sm:$0xff]  ;;  %v15480_v15 = vld [vmem:[#allocation93_spill] sm:$0xff] }
 0x24e   :  { %4426 = vmatprep.subr.mxu0 %v15469_v13  ;;  %4697 = vmatprep.subr.mxu1 %v15470_v28  ;;  %v15481_v56 = vand.u32 4294901760, %v15480_v15  ;;  %v15482_v13 = vld [vmem:[#allocation19_spill] sm:$0xff] }
 0x24f   :  { %4430 = vmatpush1.msra.mxu0 %v15472_v3  ;;  %4699 = vmatpush1.msra.mxu1 %v15473_v9  ;;  %v15483_v28 = vld [vmem:[#allocation95_spill] sm:$0xff]  ;;  %v15485_v3 = vld [vmem:[#allocation120_spill] sm:$0xff] }
 0x250   :  { %4434 = vmatprep.subr.mxu0 %v15475_v53  ;;  %4701 = vmatprep.subr.mxu1 %v15476_v29  ;;  %v15484_v55 = vand.u32 4294901760, %v15483_v28  ;;  %v15486_v9 = vld [vmem:[#allocation99_spill] sm:$0xff]  ;;  %v15488_v53 = vld [vmem:[#allocation122_spill] sm:$0xff] }
 0x251   :  { %4438 = vmatpush1.msra.mxu0 %v15478_v5  ;;  %4703 = vmatpush1.msra.mxu1 %v15479_v37  ;;  %v15487_v59 = vand.u32 4294901760, %v15486_v9  ;;  %v15489_v29 = vld [vmem:[#allocation102_spill] sm:$0xff]  ;;  %v15491_v5 = vld [vmem:[#allocation124_spill] sm:$0xff] }
 0x252   :  { %4442 = vmatprep.subr.mxu0 %v15481_v56  ;;  %4705 = vmatprep.subr.mxu1 %v15482_v13  ;;  %v15490_v57 = vand.u32 4294901760, %v15489_v29  ;;  %v15492_v37 = vld [vmem:[#allocation108_spill] sm:$0xff]  ;;  %v15494_v56 = vld [vmem:[#allocation21_spill] sm:$0xff]  ;;  %v15495_v13 = vld [vmem:[#allocation110_spill] sm:$0xff] }
 0x253   :  { %4446 = vmatpush1.msra.mxu0 %v15484_v55  ;;  %4707 = vmatpush1.msra.mxu1 %v15485_v3  ;;  %v15493_v15 = vand.u32 4294901760, %v15492_v37  ;;  %v15496_v28 = vand.u32 4294901760, %v15495_v13  ;;  %v15497_v55 = vld [vmem:[#allocation22_spill] sm:$0xff] }
 0x254   :  { %4450 = vmatprep.subr.mxu0 %v15487_v59  ;;  %4709 = vmatprep.subr.mxu1 %v15488_v53  ;;  %v15498_v3 = vld [vmem:[#allocation114_spill] sm:$0xff]  ;;  %v15500_v59 = vld [vmem:[#allocation25_spill] sm:$0xff]  ;;  %v15501_v53 = vld [vmem:[#allocation119_spill] sm:$0xff] }
 0x255   :  { %4454 = vmatpush1.msra.mxu0 %v15490_v57  ;;  %4711 = vmatpush1.msra.mxu1 %v15491_v5  ;;  %v15499_v9 = vand.u32 4294901760, %v15498_v3  ;;  %v15502_v29 = vand.u32 4294901760, %v15501_v53  ;;  %v15503_v57 = vld [vmem:[#allocation37_spill] sm:$0xff]  ;;  %v15504_v5 = vld [vmem:[#allocation20_spill] sm:$0xff] }
 0x256   :  { %4458 = vmatprep.subr.mxu0 %v15493_v15  ;;  %4713 = vmatprep.subr.mxu1 %v15494_v56  ;;  %v15505_v37 = vand.u32 4294901760, %v15504_v5  ;;  %v15506_v15 = vld [vmem:[#allocation38_spill] sm:$0xff] }
 0x257   :  { %4462 = vmatpush1.msra.mxu0 %v15496_v28  ;;  %4715 = vmatpush1.msra.mxu1 %v15497_v55  ;;  %v15507_v56 = vld [vmem:[#allocation30_spill] sm:$0xff]  ;;  %v15509_v28 = vld [vmem:[#allocation40_spill] sm:$0xff] }
 0x258   :  { %4466 = vmatprep.subr.mxu0 %v15499_v9  ;;  %4717 = vmatprep.subr.mxu1 %v15500_v59  ;;  %v15508_v13 = vand.u32 4294901760, %v15507_v56  ;;  %v15510_v55 = vld [vmem:[#allocation32_spill] sm:$0xff]  ;;  %v15513_v59 = vld [vmem:[#allocation27_spill] sm:$0xff] }
 0x259   :  { %4470 = vmatpush1.msra.mxu0 %v15502_v29  ;;  %4719 = vmatpush1.msra.mxu1 %v15503_v57  ;;  %v15511_v3 = vand.u32 4294901760, %v15510_v55  ;;  %v15512_v9 = vld [vmem:[#allocation44_spill] sm:$0xff]  ;;  %v15514_v53 = vand.u32 4294901760, %v15513_v59  ;;  %v15515_v29 = vld [vmem:[#allocation45_spill] sm:$0xff]  ;;  %v15523_v55 = vld [vmem:[#allocation34_spill] sm:$0xff]  ;;  %v15526_v59 = vand.u32 4294901760, %v15426_v10 }
 0x25a   :  { %4474 = vmatprep.subr.mxu0 %v15505_v37  ;;  %4721 = vmatprep.subr.mxu1 %v15506_v15  ;;  %v15516_v57 = vld [vmem:[#allocation29_spill] sm:$0xff]  ;;  %v15518_v37 = vld [vmem:[#allocation47_spill] sm:$0xff]  ;;  %v15519_v15 = vand.u32 4294901760, %v15420_v7  ;;  %v15520_v56 = vld [vmem:[#allocation48_spill] sm:$0xff]  ;;  %v15528_v7 = vand.u32 4294901760, %v15428_v48  ;;  %v15534_v10 = vand.u32 4294901760, %v15432_v12 }
 0x25b   :  { %4478 = vmatpush1.msra.mxu0 %v15508_v13  ;;  %4723 = vmatpush1.msra.mxu1 %v15509_v28  ;;  %v15517_v5 = vand.u32 4294901760, %v15516_v57  ;;  %v15521_v13 = vand.u32 4294901760, %v15422_v43  ;;  %v15522_v28 = vld [vmem:[#allocation52_spill] sm:$0xff]  ;;  %v15530_v43 = vand.u32 4294901760, %v15430_v8  ;;  %v15531_v57 = vld [vmem:[#allocation62_spill] sm:$0xff]  ;;  %v15536_v48 = vand.u32 4294901760, %v15434_v44 }
 0x25c   :  { %4482 = vmatprep.subr.mxu0 %v15511_v3  ;;  %4725 = vmatprep.subr.mxu1 %v15512_v9  ;;  %v15524_v3 = vand.u32 4294901760, %v15523_v55  ;;  %v15525_v9 = vld [vmem:[#allocation43_spill] sm:$0xff]  ;;  %v15538_v8 = vand.u32 4294901760, %v15435_v38  ;;  %v15542_v12 = vand.u32 4294901760, %v15437_v26  ;;  %v1226_v55 = vld [vmem:[#allocation8 + $0x2f8] sm:$0xff]  ;;  %v15544_v44 = vand.u32 4294901760, %v15438_v1 }
 0x25d   :  { %4486 = vmatpush1.msra.mxu0 %v15514_v53  ;;  %4727 = vmatpush1.msra.mxu1 %v15515_v29  ;;  %v15527_v53 = vld [vmem:[#allocation60_spill] sm:$0xff]  ;;  %v15529_v29 = vld [vmem:[#allocation51_spill] sm:$0xff]  ;;  %v15546_v38 = vand.u32 4294901760, %v15439_v49  ;;  %v11939_v26 = vand.u32 4294901760, %v1226_v55  ;;  %v15550_v1 = vand.u32 4294901760, %v15441_v4  ;;  %v15552_v49 = vand.u32 4294901760, %v15442_v17 }
 0x25e   :  { %4490 = vmatprep.subr.mxu0 %v15517_v5  ;;  %4729 = vmatprep.subr.mxu1 %v15518_v37  ;;  %v15532_v5 = vand.u32 4294901760, %v15431_v45  ;;  %v15533_v37 = vld [vmem:[#allocation53_spill] sm:$0xff]  ;;  %v15540_v45 = vand.u32 4294901760, %v15436_v14  ;;  %v15547_v14 = vld [vmem:[#allocation92_spill] sm:$0xff] }
 0x25f   :  { %4494 = vmatpush1.msra.mxu0 %v15519_v15  ;;  %4731 = vmatpush1.msra.mxu1 %v15520_v56  ;;  %v15535_v15 = vld [vmem:[#allocation67_spill] sm:$0xff]  ;;  %v15537_v56 = vld [vmem:[#allocation69_spill] sm:$0xff] }
 0x260   :  { %4498 = vmatprep.subr.mxu0 %v15521_v13  ;;  %4733 = vmatprep.subr.mxu1 %v15522_v28  ;;  %v15539_v13 = vld [vmem:[#allocation70_spill] sm:$0xff]  ;;  %v15541_v28 = vld [vmem:[#allocation76_spill] sm:$0xff]  ;;  %v1217_v4 = vld [vmem:[#allocation8 + $0x2b0] sm:$0xff] }
 0x261   :  { %4502 = vmatpush1.msra.mxu0 %v15524_v3  ;;  %4735 = vmatpush1.msra.mxu1 %v15525_v9  ;;  %v15543_v3 = vld [vmem:[#allocation79_spill] sm:$0xff]  ;;  %v1178_v9 = vld [vmem:[#allocation8 + $0x178] sm:$0xff] }
 0x262   :  { %4506 = vmatprep.subr.mxu0 %v15526_v59  ;;  %4737 = vmatprep.subr.mxu1 %v15527_v53  ;;  %v15545_v59 = vld [vmem:[#allocation88_spill] sm:$0xff]  ;;  %v1223_v53 = vld [vmem:[#allocation8 + $0x2e0] sm:$0xff] }
 0x263   :  { %4510 = vmatpush1.msra.mxu0 %v15528_v7  ;;  %4739 = vmatpush2.msra.mxu1 %v15529_v29  ;;  %v15548_v7 = vand.u32 4294901760, %v15440_v40  ;;  %v1175_v29 = vld [vmem:[#allocation8 + $0x160] sm:$0xff]  ;;  %v1172_v40 = vld [vmem:[#allocation8 + $0x148] sm:$0xff] }
 0x264   :  { %4514 = vmatprep.subr.mxu0 %v15530_v43  ;;  %4741 = vmatprep.subr.mxu1 %v15531_v57  ;;  %v15549_v43 = vld [vmem:[#allocation94_spill] sm:$0xff]  ;;  %v11944_v57 = vand.u32 4294901760, %v1178_v9 }
 0x265   :  { %4518 = vmatpush1.msra.mxu0 %v15532_v5  ;;  %4743 = vmatpush2.msra.mxu1 %v15533_v37  ;;  %v1220_v5 = vld [vmem:[#allocation8 + $0x2c8] sm:$0xff]  ;;  %v15551_v37 = vld [vmem:[#allocation98_spill] sm:$0xff] }
 0x266   :  { %4522 = vmatprep.subr.mxu0 %v15534_v10  ;;  %4745 = vmatprep.subr.mxu1 %v15535_v15  ;;  %v11949_v10 = vand.u32 4294901760, %v1223_v53  ;;  %v15553_v15 = vld [vmem:[#allocation103_spill] sm:$0xff]  ;;  %v11962_v17 = vand.u32 4294901760, %v1220_v5 }
 0x267   :  { %4526 = vmatpush1.msra.mxu0 %v15536_v48  ;;  %4747 = vmatpush2.msra.mxu1 %v15537_v56  ;;  %v15554_v48 = vand.u32 4294901760, %v15443_v16  ;;  %v11954_v56 = vand.u32 4294901760, %v1175_v29  ;;  %v11968_v16 = vsub.f32 %v1178_v9, %v11944_v57 }
 0x268   :  { %4530 = vmatprep.subr.mxu0 %v15538_v8  ;;  %4749 = vmatprep.subr.mxu1 %v15539_v13  ;;  %v15555_v8 = vld [vmem:[#allocation107_spill] sm:$0xff]  ;;  %v15556_v13 = vand.u32 4294901760, %v15444_v11  ;;  %v15560_v11 = vand.u32 4294901760, %v15446_v6  ;;  %v15565_v6 = vand.u32 4294901760, %v15448_v41 }
 0x269   :  { %4534 = vmatpush1.msra.mxu0 %v15540_v45  ;;  %4751 = vmatpush2.msra.mxu1 %v15541_v28  ;;  %v11960_v45 = vsub.f32 %v1226_v55, %v11939_v26  ;;  %v1169_v28 = vld [vmem:[#allocation8 + $0x130] sm:$0xff]  ;;  %v11976_v55 = vsub.f32 %v1223_v53, %v11949_v10  ;;  %v11984_v9 = vsub.f32 %v1175_v29, %v11954_v56  ;;  %v15568_v29 = vand.u32 4294901760, %v15449_v25 }
 0x26a   :  { %4538 = vmatprep.subr.mxu0 %v15542_v12  ;;  %4753 = vmatprep.subr.mxu1 %v15543_v3  ;;  %v15557_v12 = vld [vmem:[#allocation111_spill] sm:$0xff]  ;;  %v15558_v3 = vand.u32 4294901760, %v15445_v47  ;;  %v15562_v47 = vand.u32 4294901760, %v15447_v61 }
 0x26b   :  { %4542 = vmatpush2.msra.mxu0 %v15544_v44  ;;  %4755 = vmatpush2.msra.mxu1 %v15545_v59  ;;  %v11970_v44 = vand.u32 4294901760, %v1172_v40  ;;  %v1214_v59 = vld [vmem:[#allocation8 + $0x298] sm:$0xff]  ;;  %15563 = vst [vmem:[#allocation77_spill] sm:$0xff] %v11984_v9  ;;  %v14542_v53 = vand.u32 4294901760, %v11960_v45  ;;  %v1163_v61 = vld [vmem:[#allocation8 + $0x100] sm:$0xff] }
 0x26c   :  { %4546 = vmatprep.subr.mxu0 %v15546_v38  ;;  %4757 = vmatprep.subr.mxu1 %v15547_v14  ;;  %v15559_v38 = vld [vmem:[#allocation116_spill] sm:$0xff]  ;;  %v11978_v14 = vand.u32 4294901760, %v1217_v4 }
 0x26d   :  { %4550 = vmatpush2.msra.mxu0 %v15548_v7  ;;  %4759 = vmatpush2.msra.mxu1 %v15549_v43  ;;  %v1166_v7 = vld [vmem:[#allocation8 + $0x118] sm:$0xff]  ;;  %v15561_v43 = vld [vmem:[#allocation121_spill] sm:$0xff] }
 0x26e   :  { %4554 = vmatprep.subr.mxu0 %v15550_v1  ;;  %4761 = vmatprep.subr.mxu1 %v15551_v37  ;;  %v11986_v1 = vand.u32 4294901760, %v1169_v28  ;;  %v1211_v37 = vld [vmem:[#allocation8 + $0x280] sm:$0xff]  ;;  %v12004_v41 = vand.u32 4294901760, %v1166_v7 }
 0x26f   :  { %4558 = vmatpush2.msra.mxu0 %v15552_v49  ;;  %4763 = vmatpush2.msra.mxu1 %v15553_v15  ;;  %v15564_v49 = vld [vmem:[#allocation123_spill] sm:$0xff]  ;;  %v11993_v15 = vsub.f32 %v1220_v5, %v11962_v17  ;;  %v15571_v5 = vand.u32 4294901760, %v15450_v23  ;;  %v12013_v25 = vand.u32 4294901760, %v1211_v37  ;;  %v12022_v23 = vand.u32 4294901760, %v1163_v61 }
 0x270   :  { %4562 = vmatprep.subr.mxu0 %v15554_v48  ;;  %4765 = vmatprep.subr.mxu1 %v15555_v8  ;;  %v11995_v48 = vand.u32 4294901760, %v1214_v59  ;;  %v15567_v8 = vld [vmem:[#allocation125_spill] sm:$0xff] }
 0x271   :  { %4566 = vmatpush2.msra.mxu0 %v15556_v13  ;;  %4767 = vmatpush2.msra.mxu1 %v15557_v12  ;;  %15566 = vst [vmem:[#allocation71_spill] sm:$0xff] %v11993_v15  ;;  %v14541_v13 = vand.u32 4294901760, %v11968_v16  ;;  %v12002_v12 = vsub.f32 %v1172_v40, %v11970_v44  ;;  %v15573_v40 = vand.u32 4294901760, %v15451_v51  ;;  %v14545_v51 = vand.u32 4294901760, %v11993_v15 }
 0x272   :  { %4570 = vmatprep.subr.mxu0 %v15558_v3  ;;  %4769 = vmatprep.subr.mxu1 %v15559_v38  ;;  %v1208_v3 = vld [vmem:[#allocation8 + $0x268] sm:$0xff]  ;;  %v15570_v38 = vld [vmem:[#allocation127_spill] sm:$0xff] }
 0x273   :  { %4574 = vmatpush2.msra.mxu0 %v15560_v11  ;;  %4771 = vmatpush2.msra.mxu1 %v15561_v43  ;;  %15569 = vst [vmem:[#allocation83_spill] sm:$0xff] %v12002_v12  ;;  %v14543_v11 = vand.u32 4294901760, %v11976_v55  ;;  %v12011_v43 = vsub.f32 %v1217_v4, %v11978_v14  ;;  %v15575_v4 = vand.u32 4294901760, %v15452_v24  ;;  %v12044_v24 = vsub.f32 %v11968_v16, %v14541_v13 }
 0x274   :  { %4578 = vmatprep.subr.mxu0 %v15562_v47  ;;  %4773 = vmatprep.subr.mxu1 %v15564_v49  ;;  %v1160_v47 = vld [vmem:[#allocation8 + $0xe8] sm:$0xff]  ;;  %v14544_v49 = vand.u32 4294901760, %v11984_v9 }
 0x275   :  { %4582 = vmatpush2.msra.mxu0 %v15565_v6  ;;  %4775 = vmatpush2.msra.mxu1 %v15567_v8  ;;  %15572 = vst [vmem:[#allocation85_spill] sm:$0xff] %v12011_v43  ;;  %v12020_v6 = vsub.f32 %v1169_v28, %v11986_v1  ;;  %v1205_v8 = vld [vmem:[#allocation8 + $0x250] sm:$0xff]  ;;  %v12036_v28 = vand.u32 4294901760, %v1208_v3 }
 0x276   :  { %4586 = vmatprep.subr.mxu0 %v15568_v29  ;;  %4777 = vmatprep.subr.mxu1 %v15570_v38  ;;  %v12034_v29 = vsub.f32 %v1214_v59, %v11995_v48  ;;  %v1157_v38 = vld [vmem:[#allocation8 + $0xd0] sm:$0xff]  ;;  %v12050_v59 = vand.u32 4294901760, %v1160_v47  ;;  %v12064_v13 = vand.u32 4294901760, %v1205_v8 }
 0x277   :  { %4590 = vmatpush2.msra.mxu0 %v15571_v5  ;;  %4779 = vmatpush2.msra.mxu1 %v11494_v54  ;;  %15574 = vst [vmem:[#allocation78_spill] sm:$0xff] %v12020_v6  ;;  %v12030_v54 = vsub.f32 %v11960_v45, %v14542_v53  ;;  %v14546_v5 = vand.u32 4294901760, %v12002_v12  ;;  %v15582_v53 = vand.u32 4294901760, %v15455_v42 }
 0x278   :  { %4594 = vmatprep.subr.mxu0 %v15573_v40  ;;  %4781 = vmatprep.subr.mxu1 %v11506_v27  ;;  %15576 = vst [vmem:[#allocation81_spill] sm:$0xff] %v12034_v29  ;;  %v15577_v27 = vand.u32 4294901760, %v15453_v30  ;;  %v12048_v40 = vsub.f32 %v1166_v7, %v12004_v41  ;;  %v12058_v30 = vsub.f32 %v11976_v55, %v14543_v11  ;;  %v15581_v7 = vld [vmem:[#allocation138_spill] sm:$0xff]  ;;  %v12078_v11 = vand.u32 4294901760, %v1157_v38 }
 0x279   :  { %4598 = vmatpush2.msra.mxu0 %v15575_v4  ;;  %4783 = vmatpush2.msra.mxu1 %v11518_v22  ;;  %v15579_v4 = vand.u32 4294901760, %v15454_v31  ;;  %v14547_v22 = vand.u32 4294901760, %v12011_v43  ;;  %v14548_v31 = vand.u32 4294901760, %v12020_v6  ;;  %v5038_v42 = vand.u32 4294901760, %v12030_v54  ;;  %v15591_v54 = vld [vmem:[#allocation140_spill] sm:$0xff] }
 0x27a   :  { %4602 = vmatprep.subr.mxu0 %v15577_v27  ;;  %15578 = vst [vmem:[#allocation75_spill] sm:$0xff] %v12048_v40  ;;  %4785 = vmatprep.subr.mxu1 %v11526_v50  ;;  %v12062_v27 = vsub.f32 %v1211_v37, %v12013_v25  ;;  %v12072_v50 = vsub.f32 %v11984_v9, %v14544_v49  ;;  %v15584_v37 = vand.u32 4294901760, %v11516_v62  ;;  %v4926_v62 = vand.u32 4294901760, %v12044_v24 }
 0x27b   :  { %4606 = vmatpush2.msra.mxu0 %v15579_v4  ;;  %4787 = vmatpush2.msra.mxu1 %v15581_v7  ;;  %v12076_v4 = vsub.f32 %v1163_v61, %v12022_v23  ;;  %v14549_v7 = vand.u32 4294901760, %v12034_v29  ;;  %v12091_v49 = vsub.f32 %v1208_v3, %v12036_v28  ;;  %v15586_v61 = vand.u32 4294901760, %v11524_v18  ;;  %v15588_v3 = vld [vmem:[#allocation137_spill] sm:$0xff] }
 0x27c   :  { %15580 = vst [vmem:[#allocation31_spill] sm:$0xff] %v12062_v27  ;;  %4610 = vmatprep.subr.mxu0 %v15582_v53  ;;  %4789 = vmatprep.subr.mxu1 %v11542_v0  ;;  %v12087_v53 = vsub.f32 %v11993_v15, %v14545_v51  ;;  %v12100_v0 = vsub.f32 %v12002_v12, %v14546_v5  ;;  %v1202_v51 = vld [vmem:[#allocation8 + $0x238] sm:$0xff]  ;;  %v5045_v18 = vand.u32 4294901760, %v12058_v30 }
 0x27d   :  { %15583 = vst [vmem:[#allocation33_spill] sm:$0xff] %v12076_v4  ;;  %4614 = vmatpush2.msra.mxu0 %v15584_v37  ;;  %15585 = vst [vmem:[#allocation36_spill] sm:$0xff] %v12091_v49  ;;  %4791 = vmatpush2.msra.mxu1 %v11550_v34  ;;  %v12104_v37 = vsub.f32 %v1160_v47, %v12050_v59  ;;  %v15589_v34 = vand.u32 4294901760, %v15588_v3  ;;  %v12113_v24 = vsub.f32 %v12011_v43, %v14547_v22  ;;  %v1154_v47 = vld [vmem:[#allocation8 + $0xb8] sm:$0xff] }
 0x27e   :  { %4618 = vmatprep.subr.mxu0 %v15586_v61  ;;  %4793 = vmatprep.subr.mxu1 %v11560_v39  ;;  %v12117_v5 = vsub.f32 %v1205_v8, %v12064_v13  ;;  %v15592_v39 = vand.u32 4294901760, %v11540_v58  ;;  %v4933_v3 = vand.u32 4294901760, %v12072_v50  ;;  %v12126_v30 = vsub.f32 %v12020_v6, %v14548_v31  ;;  %v1199_v8 = vld [vmem:[#allocation8 + $0x220] sm:$0xff]  ;;  %v15597_v61 = vld [vmem:[#allocation26_spill] sm:$0xff] }
 0x27f   :  { %15587 = vst [vmem:[#allocation39_spill] sm:$0xff] %v12104_v37  ;;  %4622 = vmatpush2.msra.mxu0 %v15589_v34  ;;  %4795 = vmatpush2.msra.mxu1 %v15591_v54  ;;  %v12130_v22 = vsub.f32 %v1157_v38, %v12078_v11  ;;  %v15594_v54 = vand.u32 4294901760, %v15456_v33  ;;  %v5052_v58 = vand.u32 4294901760, %v12087_v53  ;;  %v12139_v50 = vsub.f32 %v12034_v29, %v14549_v7  ;;  %v1151_v34 = vld [vmem:[#allocation8 + $0xa0] sm:$0xff]  ;;  %v1145_v29 = vld [vmem:[#allocation8 + $0x70] sm:$0xff] }
 0x280   :  { %15590 = vst [vmem:[#allocation41_spill] sm:$0xff] %v12117_v5  ;;  %4626 = vmatprep.subr.mxu0 %v15592_v39  ;;  %4797 = vmatprep.subr.mxu1 %v11580_v63  ;;  %v12142_v31 = vand.u32 4294901760, %v1202_v51  ;;  %v15595_v38 = vand.u32 4294901760, %v11558_v19  ;;  %v4940_v33 = vand.u32 4294901760, %v12100_v0  ;;  %v15596_v63 = vand.u32 4294901760, %v12048_v40  ;;  %v1196_v39 = vld [vmem:[#allocation8 + $0x208] sm:$0xff] }
 0x281   :  { %15593 = vst [vmem:[#allocation42_spill] sm:$0xff] %v12130_v22  ;;  %4630 = vmatpush2.msra.mxu0 %v15594_v54  ;;  %4799 = vmatpush2.msra.mxu1 %v11590_v35  ;;  %v12154_v7 = vand.u32 4294901760, %v1154_v47  ;;  %v5059_v35 = vand.u32 4294901760, %v12113_v24  ;;  %v15598_v19 = vand.u32 4294901760, %v12062_v27  ;;  %v12164_v32 = vand.u32 4294901760, %v1199_v8  ;;  %v15601_v0 = vld [vmem:[#allocation133_spill] sm:$0xff] }
 0x282   :  { %4634 = vmatprep.subr.mxu0 %v15595_v38  ;;  %v12151_v53 = vsub.f32 %v12048_v40, %v15596_v63  ;;  %4803 = vmatmul.mubr.f32.vlgmr.msra.gmra.mxu1 %v15597_v61  ;;  %v1148_v63 = vld [vmem:[#allocation8 + $0x88] sm:$0xff]  ;;  %v15599_v54 = vand.u32 4294901760, %v11568_v2  ;;  %v4947_v40 = vand.u32 4294901760, %v12126_v30  ;;  %v15602_v6 = vand.u32 4294901760, %v15458_v21 }
 0x283   :  { %8181 = vmatprep.subr.mxu1 %v5038_v42  ;;  %v12161_v38 = vsub.f32 %v12062_v27, %v15598_v19  ;;  %v15600_v42 = vand.u32 4294901760, %v12076_v4  ;;  %v12175_v19 = vand.u32 4294901760, %v1151_v34  ;;  %v1193_v27 = vld [vmem:[#allocation8 + $0x1f0] sm:$0xff]  ;;  %5146 = vmatprep.mubr.f32.mxu1 %v15601_v0  ;;  %v5066_v2 = vand.u32 4294901760, %v12139_v50 }
 0x284   :  { %4638 = vmatpush2.msra.mxu0 %v15599_v54  ;;  %8182 = vmatpush3.msra.mxu1 %v4926_v62  ;;  %v15603_v62 = vand.u32 4294901760, %v12091_v49  ;;  %v12187_v54 = vsub.f32 %v1202_v51, %v12142_v31  ;;  %v4954_v21 = vand.u32 4294901760, %v12151_v53  ;;  %v12202_v0 = vand.u32 4294901760, %v1148_v63  ;;  %v1190_v51 = vld [vmem:[#allocation8 + $0x1d8] sm:$0xff] }
 0x285   :  { %v12172_v24 = vsub.f32 %v12076_v4, %v15600_v42  ;;  %4642 = vmatprep.subr.mxu0 %v15602_v6  ;;  %v12189_v42 = vand.u32 4294901760, %v1196_v39  ;;  %8183 = vmatprep.subr.mxu1 %v5045_v18  ;;  %v15605_v4 = vand.u32 4294901760, %v11588_v46  ;;  %v15606_v6 = vand.u32 4294901760, %v12104_v37 }
 0x286   :  { %v12184_v30 = vsub.f32 %v12091_v49, %v15603_v62  ;;  %15604 = vst [vmem:[#allocation55_spill] sm:$0xff] %v12187_v54  ;;  %v12200_v62 = vsub.f32 %v1154_v47, %v12154_v7  ;;  %8184 = vmatpush3.msra.mxu1 %v4933_v3  ;;  %v15608_v49 = vand.u32 4294901760, %v11598_v60  ;;  %v5073_v46 = vand.u32 4294901760, %v12161_v38  ;;  %v1142_v47 = vld [vmem:[#allocation8 + $0x58] sm:$0xff] }
 0x287   :  { %4646 = vmatpush2.msra.mxu0 %v15605_v4  ;;  %v12197_v50 = vsub.f32 %v12104_v37, %v15606_v6  ;;  %v15609_v4 = vand.u32 4294901760, %v12117_v5  ;;  %v12213_v53 = vsub.f32 %v1199_v8, %v12164_v32  ;;  %v12215_v6 = vand.u32 4294901760, %v1193_v27  ;;  %8185 = vmatprep.subr.mxu1 %v5052_v58  ;;  %v1187_v8 = vld [vmem:[#allocation8 + $0x1c0] sm:$0xff] }
 0x288   :  { %15607 = vst [vmem:[#allocation46_spill] sm:$0xff] %v12200_v62  ;;  %4650 = vmatprep.subr.mxu0 %v15608_v49  ;;  %v15611_v37 = vand.u32 4294901760, %v11606_v20  ;;  %v4961_v60 = vand.u32 4294901760, %v12172_v24  ;;  %v15612_v49 = vand.u32 4294901760, %v12130_v22  ;;  %v12226_v38 = vsub.f32 %v1151_v34, %v12175_v19  ;;  %8186 = vmatpush3.msra.mxu1 %v4940_v33 }
 0x289   :  { %v12210_v18 = vsub.f32 %v12117_v5, %v15609_v4  ;;  %15610 = vst [vmem:[#allocation49_spill] sm:$0xff] %v12213_v53  ;;  %v12228_v4 = vand.u32 4294901760, %v1145_v29  ;;  %v15614_v5 = vand.u32 4294901760, %v11614_v52  ;;  %v5080_v20 = vand.u32 4294901760, %v12184_v30  ;;  %8187 = vmatprep.subr.mxu1 %v5059_v35  ;;  %v1184_v30 = vld [vmem:[#allocation8 + $0x1a8] sm:$0xff] }
 0x28a   :  { %4654 = vmatpush2.msra.mxu0 %v15611_v37  ;;  %v12223_v3 = vsub.f32 %v12130_v22, %v15612_v49  ;;  %15613 = vst [vmem:[#allocation58_spill] sm:$0xff] %v12226_v38  ;;  %v12235_v58 = vsub.f32 %v1196_v39, %v12189_v42  ;;  %v12237_v24 = vand.u32 4294901760, %v1190_v51  ;;  %v1139_v49 = vld [vmem:[#allocation8 + $0x40] sm:$0xff]  ;;  %v15615_v34 = vand.u32 4294901760, %v11622_v36  ;;  %8188 = vmatpush3.msra.mxu1 %v4947_v40 }
 0x28b   :  { %4658 = vmatprep.subr.mxu0 %v15614_v5  ;;  %v4968_v22 = vand.u32 4294901760, %v12197_v50  ;;  %v12244_v52 = vsub.f32 %v1148_v63, %v12202_v0  ;;  %v12246_v5 = vand.u32 4294901760, %v1142_v47  ;;  %v5087_v39 = vand.u32 4294901760, %v12210_v18  ;;  %v1136_v50 = vld [vmem:[#allocation8 + $0x28] sm:$0xff]  ;;  %8189 = vmatprep.subr.mxu1 %v5066_v2  ;;  %v1181_v18 = vld [vmem:[#allocation8 + $0x190] sm:$0xff] }
 0x28c   :  { %4662 = vmatpush2.msra.mxu0 %v15615_v34  ;;  %v12252_v36 = vsub.f32 %v1193_v27, %v12215_v6  ;;  %v12254_v34 = vand.u32 4294901760, %v1187_v8  ;;  %v4975_v63 = vand.u32 4294901760, %v12223_v3  ;;  %v12260_v40 = vsub.f32 %v1145_v29, %v12228_v4  ;;  %v15617_v27 = vld [vmem:[#allocation23_spill] sm:$0xff]  ;;  %v1133_v29 = vld [vmem:[#allocation8 + $0x10] sm:$0xff]  ;;  %8190 = vmatpush3.msra.mxu1 %v4954_v21 }
 0x28d   :  { %15616 = vst [vmem:[#allocation57_spill] sm:$0xff] %v12244_v52  ;;  %4666 = vmatmul.mubr.f32.vlgmr.msra.gmra.mxu0 %v15597_v61  ;;  %8146 = vmatprep.subr.mxu0 %v11939_v26  ;;  %v12262_v37 = vand.u32 4294901760, %v1139_v49  ;;  %v15618_v35 = vand.u32 4294901760, %v12187_v54  ;;  %v12271_v3 = vsub.f32 %v1190_v51, %v12237_v24  ;;  %v12273_v33 = vand.u32 4294901760, %v1184_v30 }
 0x28e   :  { %8147 = vmatpush3.msra.mxu0 %v11944_v57  ;;  %4910 = vmatprep.mubr.f32.mxu0 %v15617_v27  ;;  %v15619_v43 = vand.u32 4294901760, %v12200_v62  ;;  %v12281_v15 = vsub.f32 %v1142_v47, %v12246_v5  ;;  %v15620_v51 = vand.u32 4294901760, %v12213_v53  ;;  %v15621_v47 = vand.u32 4294901760, %v12226_v38 }
 0x28f   :  { %v5093_v61 = vsub.f32 %v12187_v54, %v15618_v35  ;;  %8148 = vmatprep.subr.mxu0 %v11949_v10  ;;  %v12283_v35 = vand.u32 4294901760, %v1136_v50  ;;  %8191 = vmatprep.subr.mxu1 %v5073_v46  ;;  %v12291_v54 = vsub.f32 %v1187_v8, %v12254_v34  ;;  %v15622_v2 = vand.u32 4294901760, %v12235_v58 }
 0x290   :  { %v4981_v12 = vsub.f32 %v12200_v62, %v15619_v43  ;;  %8149 = vmatpush3.msra.mxu0 %v11954_v56  ;;  %v5100_v21 = vsub.f32 %v12213_v53, %v15620_v51  ;;  %v12293_v43 = vand.u32 4294901760, %v1181_v18  ;;  %8192 = vmatpush3.msra.mxu1 %v4961_v60  ;;  %v4988_v46 = vsub.f32 %v12226_v38, %v15621_v47 }
 0x291   :  { %8150 = vmatprep.subr.mxu0 %v11962_v17  ;;  %v12301_v62 = vsub.f32 %v1139_v49, %v12262_v37  ;;  %v12303_v51 = vand.u32 4294901760, %v1133_v29  ;;  %8193 = vmatprep.subr.mxu1 %v5080_v20  ;;  %v5094_v8 = vand.u32 4294901760, %v5093_v61  ;;  %v5107_v60 = vsub.f32 %v12235_v58, %v15622_v2 }
 0x292   :  { %8151 = vmatpush3.msra.mxu0 %v11970_v44  ;;  %v12311_v9 = vsub.f32 %v1184_v30, %v12273_v33  ;;  %8194 = vmatpush3.msra.mxu1 %v4968_v22  ;;  %v4982_v49 = vand.u32 4294901760, %v4981_v12  ;;  %v15623_v47 = vand.u32 4294901760, %v12244_v52  ;;  %v12319_v61 = vsub.f32 %v1136_v50, %v12283_v35 }
 0x293   :  { %8152 = vmatprep.subr.mxu0 %v11978_v14  ;;  %8195 = vmatprep.subr.mxu1 %v5087_v39  ;;  %v5101_v2 = vand.u32 4294901760, %v5100_v21  ;;  %v15624_v30 = vand.u32 4294901760, %v12252_v36  ;;  %v12327_v12 = vsub.f32 %v1181_v18, %v12293_v43  ;;  %v15625_v50 = vand.u32 4294901760, %v12260_v40 }
 0x294   :  { %v4995_v20 = vsub.f32 %v12244_v52, %v15623_v47  ;;  %8153 = vmatpush3.msra.mxu0 %v11986_v1  ;;  %8196 = vmatpush3.msra.mxu1 %v4975_v63  ;;  %v4989_v47 = vand.u32 4294901760, %v4988_v46  ;;  %v12335_v21 = vsub.f32 %v1133_v29, %v12303_v51  ;;  %v15626_v18 = vand.u32 4294901760, %v12271_v3 }
 0x295   :  { %v5114_v22 = vsub.f32 %v12252_v36, %v15624_v30  ;;  %8154 = vmatprep.subr.mxu0 %v11995_v48  ;;  %v5002_v39 = vsub.f32 %v12260_v40, %v15625_v50  ;;  %8197 = vmatprep.subr.mxu1 %v5094_v8  ;;  %v5108_v30 = vand.u32 4294901760, %v5107_v60  ;;  %v15627_v50 = vand.u32 4294901760, %v12281_v15 }
 0x296   :  { %8155 = vmatpush3.msra.mxu0 %v12004_v41  ;;  %v5121_v63 = vsub.f32 %v12271_v3, %v15626_v18  ;;  %8198 = vmatpush3.msra.mxu1 %v4982_v49  ;;  %v4996_v46 = vand.u32 4294901760, %v4995_v20  ;;  %v15628_v60 = vand.u32 4294901760, %v12291_v54  ;;  %v15629_v20 = vand.u32 4294901760, %v12301_v62 }
 0x297   :  { %8156 = vmatprep.subr.mxu0 %v12013_v25  ;;  %v5009_v27 = vsub.f32 %v12281_v15, %v15627_v50  ;;  %8199 = vmatprep.subr.mxu1 %v5101_v2  ;;  %v5115_v8 = vand.u32 4294901760, %v5114_v22  ;;  %v5003_v49 = vand.u32 4294901760, %v5002_v39  ;;  %v14584_v29 = vand.u32 4294901760, %v12335_v21 }
 0x298   :  { %8157 = vmatpush3.msra.mxu0 %v12022_v23  ;;  %v5128_v18 = vsub.f32 %v12291_v54, %v15628_v60  ;;  %8200 = vmatpush3.msra.mxu1 %v4989_v47  ;;  %v5016_v50 = vsub.f32 %v12301_v62, %v15629_v20  ;;  %v5122_v2 = vand.u32 4294901760, %v5121_v63  ;;  %v15630_v22 = vand.u32 4294901760, %v12311_v9 }
 0x299   :  { %8158 = vmatprep.subr.mxu0 %v12036_v28  ;;  %8201 = vmatprep.subr.mxu1 %v5108_v30  ;;  %v5010_v47 = vand.u32 4294901760, %v5009_v27  ;;  %v15631_v39 = vand.u32 4294901760, %v12319_v61  ;;  %v15632_v30 = vand.u32 4294901760, %v12327_v12  ;;  %v5030_v27 = vsub.f32 %v12335_v21, %v14584_v29  ;;  %v15651_v29 = vld [vmem:[#allocation46_spill] sm:$0xff] }
 0x29a   :  { %8159 = vmatpush3.msra.mxu0 %v12050_v59  ;;  %v5135_v60 = vsub.f32 %v12311_v9, %v15630_v22  ;;  %8202 = vmatpush3.msra.mxu1 %v4996_v46  ;;  %v5129_v20 = vand.u32 4294901760, %v5128_v18  ;;  %v5017_v22 = vand.u32 4294901760, %v5016_v50  ;;  %v15634_v50 = vld [vmem:[#allocation136_spill] sm:$0xff] }
 0x29b   :  { %8160 = vmatprep.subr.mxu0 %v12064_v13  ;;  %v5023_v53 = vsub.f32 %v12319_v61, %v15631_v39  ;;  %8203 = vmatprep.subr.mxu1 %v5115_v8  ;;  %v5142_v63 = vsub.f32 %v12327_v12, %v15632_v30  ;;  %v15638_v39 = vld [vmem:[#allocation71_spill] sm:$0xff]  ;;  %v15640_v30 = vld [vmem:[#allocation85_spill] sm:$0xff] }
 0x29c   :  { %8161 = vmatpush3.msra.mxu0 %v12078_v11  ;;  %8204 = vmatpush3.msra.mxu1 %v5003_v49  ;;  %v5136_v46 = vand.u32 4294901760, %v5135_v60  ;;  %v5031_v49 = vand.u32 4294901760, %v5030_v27  ;;  %v15636_v60 = vld [vmem:[#allocation135_spill] sm:$0xff] }
 0x29d   :  { %8162 = vmatprep.subr.mxu0 %v12142_v31  ;;  %8205 = vmatprep.subr.mxu1 %v5122_v2  ;;  %v5024_v8 = vand.u32 4294901760, %v5023_v53  ;;  %v5143_v18 = vand.u32 4294901760, %v5142_v63  ;;  %v15633_v53 = vld [vmem:[#allocation131_spill] sm:$0xff]  ;;  %v15635_v2 = vld [vmem:[#allocation24_spill] sm:$0xff]  ;;  %v15641_v63 = vld [vmem:[#allocation78_spill] sm:$0xff] }
 0x29e   :  { %8163 = vmatpush3.msra.mxu0 %v12154_v7  ;;  %8206 = vmatpush3.msra.mxu1 %v5010_v47  ;;  %v15637_v47 = vld [vmem:[#allocation77_spill] sm:$0xff]  ;;  %v15643_v27 = vld [vmem:[#allocation75_spill] sm:$0xff] }
 0x29f   :  { %8164 = vmatprep.subr.mxu0 %v12164_v32  ;;  %8207 = vmatprep.subr.mxu1 %v5129_v20  ;;  %v15639_v20 = vld [vmem:[#allocation83_spill] sm:$0xff] }
 0x2a0   :  { %8165 = vmatpush3.msra.mxu0 %v12175_v19  ;;  %8208 = vmatpush3.msra.mxu1 %v5017_v22  ;;  %v15642_v22 = vld [vmem:[#allocation81_spill] sm:$0xff] }
 0x2a1   :  { %8166 = vmatprep.subr.mxu0 %v12189_v42  ;;  %8209 = vmatprep.subr.mxu1 %v5136_v46  ;;  %v15644_v46 = vld [vmem:[#allocation31_spill] sm:$0xff] }
 0x2a2   :  { %8167 = vmatpush3.msra.mxu0 %v12202_v0  ;;  %8210 = vmatpush3.msra.mxu1 %v5024_v8  ;;  %v15645_v8 = vld [vmem:[#allocation33_spill] sm:$0xff] }
 0x2a3   :  { %8168 = vmatprep.subr.mxu0 %v12215_v6  ;;  %8211 = vmatprep.subr.mxu1 %v5143_v18  ;;  %v15646_v18 = vld [vmem:[#allocation36_spill] sm:$0xff] }
 0x2a4   :  { %8169 = vmatpush3.msra.mxu0 %v12228_v4  ;;  %8212 = vmatpush3.msra.mxu1 %v5031_v49  ;;  %v15647_v49 = vld [vmem:[#allocation39_spill] sm:$0xff] }
 0x2a5   :  { %8170 = vmatprep.subr.mxu0 %v12237_v24  ;;  %5148 = vmatmul.mubr.f32.vlgmr.msra.gmra.mxu1 %v15633_v53  ;;  %v15652_v53 = vld [vmem:[#allocation49_spill] sm:$0xff] }
 0x2a6   :  { %8251 = vmatprep.subr.mxu1 %v11939_v26  ;;  %8171 = vmatpush3.msra.mxu0 %v12246_v5 }
 0x2a7   :  { %8252 = vmatpush3.msra.mxu1 %v11944_v57  ;;  %5390 = vmatprep.mubr.f32.mxu1 %v15634_v50  ;;  %v15648_v50 = vld [vmem:[#allocation41_spill] sm:$0xff] }
 0x2a8   :  { %8172 = vmatprep.subr.mxu0 %v12254_v34  ;;  %8253 = vmatprep.subr.mxu1 %v11949_v10 }
 0x2a9   :  { %8173 = vmatpush3.msra.mxu0 %v12262_v37  ;;  %8254 = vmatpush3.msra.mxu1 %v11954_v56 }
 0x2aa   :  { %8174 = vmatprep.subr.mxu0 %v12273_v33  ;;  %8255 = vmatprep.subr.mxu1 %v11962_v17 }
 0x2ab   :  { %8175 = vmatpush3.msra.mxu0 %v12283_v35  ;;  %8256 = vmatpush3.msra.mxu1 %v11970_v44 }
 0x2ac   :  { %8176 = vmatprep.subr.mxu0 %v12293_v43  ;;  %8257 = vmatprep.subr.mxu1 %v11978_v14 }
 0x2ad   :  { %8177 = vmatpush3.msra.mxu0 %v12303_v51  ;;  %8258 = vmatpush3.msra.mxu1 %v11986_v1 }
 0x2ae   :  { %4916 = vmatmul.mubr.f32.vlgmr.msra.gmra.mxu0 %v15635_v2  ;;  %8216 = vmatprep.subr.mxu0 %v11960_v45  ;;  %v15649_v2 = vld [vmem:[#allocation42_spill] sm:$0xff] }
 0x2af   :  { %8259 = vmatprep.subr.mxu1 %v11995_v48  ;;  %8217 = vmatpush3.msra.mxu0 %v11968_v16 }
 0x2b0   :  { %5283 = vmatprep.mubr.f32.mxu0 %v15636_v60  ;;  %8260 = vmatpush3.msra.mxu1 %v12004_v41  ;;  %v15650_v60 = vld [vmem:[#allocation55_spill] sm:$0xff] }
 0x2b1   :  { %8218 = vmatprep.subr.mxu0 %v11976_v55  ;;  %8261 = vmatprep.subr.mxu1 %v12013_v25 }
 0x2b2   :  { %8219 = vmatpush3.msra.mxu0 %v15637_v47  ;;  %8262 = vmatpush3.msra.mxu1 %v12022_v23 }
 0x2b3   :  { %8220 = vmatprep.subr.mxu0 %v15638_v39  ;;  %8263 = vmatprep.subr.mxu1 %v12036_v28 }
 0x2b4   :  { %8221 = vmatpush3.msra.mxu0 %v15639_v20  ;;  %8264 = vmatpush3.msra.mxu1 %v12050_v59 }
 0x2b5   :  { %8222 = vmatprep.subr.mxu0 %v15640_v30  ;;  %8265 = vmatprep.subr.mxu1 %v12064_v13 }
 0x2b6   :  { %8223 = vmatpush3.msra.mxu0 %v15641_v63  ;;  %8266 = vmatpush3.msra.mxu1 %v12078_v11 }
 0x2b7   :  { %8224 = vmatprep.subr.mxu0 %v15642_v22  ;;  %8267 = vmatprep.subr.mxu1 %v12142_v31 }
 0x2b8   :  { %8225 = vmatpush3.msra.mxu0 %v15643_v27  ;;  %8268 = vmatpush3.msra.mxu1 %v12154_v7 }
 0x2b9   :  { %8226 = vmatprep.subr.mxu0 %v15644_v46  ;;  %8269 = vmatprep.subr.mxu1 %v12164_v32 }
 0x2ba   :  { %8227 = vmatpush3.msra.mxu0 %v15645_v8  ;;  %8270 = vmatpush3.msra.mxu1 %v12175_v19 }
 0x2bb   :  { %8228 = vmatprep.subr.mxu0 %v15646_v18  ;;  %8271 = vmatprep.subr.mxu1 %v12189_v42 }
 0x2bc   :  { %8229 = vmatpush3.msra.mxu0 %v15647_v49  ;;  %8272 = vmatpush3.msra.mxu1 %v12202_v0 }
 0x2bd   :  { %8230 = vmatprep.subr.mxu0 %v15648_v50  ;;  %8273 = vmatprep.subr.mxu1 %v12215_v6 }
 0x2be   :  { %8231 = vmatpush3.msra.mxu0 %v15649_v2  ;;  %8274 = vmatpush3.msra.mxu1 %v12228_v4 }
 0x2bf   :  { %8232 = vmatprep.subr.mxu0 %v15650_v60  ;;  %8275 = vmatprep.subr.mxu1 %v12237_v24 }
 0x2c0   :  { %8233 = vmatpush3.msra.mxu0 %v15651_v29  ;;  %8276 = vmatpush3.msra.mxu1 %v12246_v5 }
 0x2c1   :  { %8234 = vmatprep.subr.mxu0 %v15652_v53  ;;  %8277 = vmatprep.subr.mxu1 %v12254_v34 }
 0x2c2   :  { %8235 = vmatpush3.msra.mxu0 %v12226_v38  ;;  %8278 = vmatpush3.msra.mxu1 %v12262_v37  ;;  %v15653_v38 = vld [vmem:[#allocation134_spill] sm:$0xff] }
 0x2c3   :  { %8236 = vmatprep.subr.mxu0 %v12235_v58  ;;  %8279 = vmatprep.subr.mxu1 %v12273_v33 }
 0x2c4   :  { %8237 = vmatpush3.msra.mxu0 %v12244_v52  ;;  %8280 = vmatpush3.msra.mxu1 %v12283_v35  ;;  %v15654_v52 = vld [vmem:[#allocation133_spill] sm:$0xff] }
 0x2c5   :  { %8238 = vmatprep.subr.mxu0 %v12252_v36  ;;  %8281 = vmatprep.subr.mxu1 %v12293_v43 }
 0x2c6   :  { %8239 = vmatpush3.msra.mxu0 %v12260_v40  ;;  %8282 = vmatpush3.msra.mxu1 %v12303_v51 }
 0x2c7   :  { %8240 = vmatprep.subr.mxu0 %v12271_v3  ;;  %5394 = vmatmul.mubr.f32.vlgmr.msra.gmra.mxu1 %v15653_v38 }
 0x2c8   :  { %8321 = vmatprep.subr.mxu1 %v11939_v26  ;;  %8241 = vmatpush3.msra.mxu0 %v12281_v15  ;;  %v15655_v26 = vld [vmem:[#allocation132_spill] sm:$0xff] }
 0x2c9   :  { %8322 = vmatpush3.msra.mxu1 %v11944_v57  ;;  %5664 = vmatprep.mubr.f32.mxu1 %v15654_v52  ;;  %v15656_v57 = vand.u32 4294901760, %v11960_v45  ;;  %v15659_v45 = vand.u32 4294901760, %v15637_v47  ;;  %v15662_v47 = vand.u32 4294901760, %v15640_v30 }
 0x2ca   :  { %8242 = vmatprep.subr.mxu0 %v12291_v54  ;;  %8323 = vmatprep.subr.mxu1 %v11949_v10  ;;  %v1322_v10 = vld [vmem:[#allocation8 + $0x5f8] sm:$0xff] }
 0x2cb   :  { %8243 = vmatpush3.msra.mxu0 %v12301_v62  ;;  %8324 = vmatpush3.msra.mxu1 %v11954_v56  ;;  %v15657_v56 = vand.u32 4294901760, %v11968_v16  ;;  %v15660_v16 = vand.u32 4294901760, %v15638_v39  ;;  %v1313_v39 = vld [vmem:[#allocation8 + $0x5b0] sm:$0xff] }
 0x2cc   :  { %8244 = vmatprep.subr.mxu0 %v12311_v9  ;;  %8325 = vmatprep.subr.mxu1 %v11962_v17  ;;  %v1274_v17 = vld [vmem:[#allocation8 + $0x478] sm:$0xff] }
 0x2cd   :  { %8245 = vmatpush3.msra.mxu0 %v12319_v61  ;;  %8326 = vmatpush3.msra.mxu1 %v11970_v44  ;;  %v15658_v44 = vand.u32 4294901760, %v11976_v55  ;;  %v12484_v38 = vand.u32 4294901760, %v1274_v17  ;;  %v15661_v55 = vand.u32 4294901760, %v15639_v20 }
 0x2ce   :  { %8246 = vmatprep.subr.mxu0 %v12327_v12  ;;  %8327 = vmatprep.subr.mxu1 %v11978_v14  ;;  %v1319_v14 = vld [vmem:[#allocation8 + $0x5e0] sm:$0xff] }
 0x2cf   :  { %8247 = vmatpush3.msra.mxu0 %v12335_v21  ;;  %8328 = vmatpush3.msra.mxu1 %v11986_v1  ;;  %v12479_v1 = vand.u32 4294901760, %v1322_v10  ;;  %v12508_v30 = vsub.f32 %v1274_v17, %v12484_v38 }
 0x2d0   :  { %5286 = vmatmul.mubr.f32.vlgmr.msra.gmra.mxu0 %v15655_v26  ;;  %8286 = vmatprep.subr.mxu0 %v15656_v57  ;;  %v15663_v26 = vand.u32 4294901760, %v15641_v63  ;;  %v1265_v57 = vld [vmem:[#allocation8 + $0x430] sm:$0xff]  ;;  %v15665_v63 = vand.u32 4294901760, %v15643_v27  ;;  %v15668_v27 = vand.u32 4294901760, %v15645_v8 }
 0x2d1   :  { %8329 = vmatprep.subr.mxu1 %v11995_v48  ;;  %8287 = vmatpush3.msra.mxu0 %v15657_v56  ;;  %v1271_v48 = vld [vmem:[#allocation8 + $0x460] sm:$0xff] }
 0x2d2   :  { %5560 = vmatprep.mubr.f32.mxu0 %v15654_v52  ;;  %8330 = vmatpush3.msra.mxu1 %v12004_v41  ;;  %v1316_v41 = vld [vmem:[#allocation8 + $0x5c8] sm:$0xff] }
 0x2d3   :  { %8288 = vmatprep.subr.mxu0 %v15658_v44  ;;  %8331 = vmatprep.subr.mxu1 %v12013_v25  ;;  %v12489_v25 = vand.u32 4294901760, %v1319_v14  ;;  %v1268_v52 = vld [vmem:[#allocation8 + $0x448] sm:$0xff]  ;;  %v12502_v20 = vand.u32 4294901760, %v1316_v41  ;;  %v12518_v44 = vand.u32 4294901760, %v1313_v39 }
 0x2d4   :  { %8289 = vmatpush3.msra.mxu0 %v15659_v45  ;;  %8332 = vmatpush3.msra.mxu1 %v12022_v23  ;;  %v12494_v23 = vand.u32 4294901760, %v1271_v48  ;;  %v12510_v56 = vand.u32 4294901760, %v1268_v52  ;;  %v12526_v45 = vand.u32 4294901760, %v1265_v57 }
 0x2d5   :  { %8290 = vmatprep.subr.mxu0 %v15660_v16  ;;  %8333 = vmatprep.subr.mxu1 %v12036_v28  ;;  %v12500_v28 = vsub.f32 %v1322_v10, %v12479_v1  ;;  %v12516_v10 = vsub.f32 %v1319_v14, %v12489_v25  ;;  %v12533_v16 = vsub.f32 %v1316_v41, %v12502_v20  ;;  %v15672_v41 = vand.u32 4294901760, %v15647_v49 }
 0x2d6   :  { %8291 = vmatpush3.msra.mxu0 %v15661_v55  ;;  %8334 = vmatpush3.msra.mxu1 %v12050_v59  ;;  %v15664_v59 = vand.u32 4294901760, %v15642_v22  ;;  %v15666_v22 = vand.u32 4294901760, %v15644_v46  ;;  %v12524_v17 = vsub.f32 %v1271_v48, %v12494_v23  ;;  %v1259_v46 = vld [vmem:[#allocation8 + $0x400] sm:$0xff]  ;;  %v15670_v48 = vand.u32 4294901760, %v15646_v18 }
 0x2d7   :  { %8292 = vmatprep.subr.mxu0 %v15662_v47  ;;  %8335 = vmatprep.subr.mxu1 %v12064_v13  ;;  %v1310_v13 = vld [vmem:[#allocation8 + $0x598] sm:$0xff]  ;;  %v14589_v14 = vand.u32 4294901760, %v12500_v28  ;;  %15669 = vst [vmem:[#allocation61_spill] sm:$0xff] %v12533_v16  ;;  %v14587_v55 = vand.u32 4294901760, %v12508_v30  ;;  %v1304_v47 = vld [vmem:[#allocation8 + $0x568] sm:$0xff]  ;;  %v12562_v49 = vand.u32 4294901760, %v1259_v46 }
 0x2d8   :  { %8293 = vmatpush3.msra.mxu0 %v15663_v26  ;;  %8336 = vmatpush3.msra.mxu1 %v12078_v11  ;;  %v1262_v11 = vld [vmem:[#allocation8 + $0x418] sm:$0xff]  ;;  %15667 = vst [vmem:[#allocation59_spill] sm:$0xff] %v12524_v17  ;;  %v14588_v26 = vand.u32 4294901760, %v12516_v10 }
 0x2d9   :  { %8294 = vmatprep.subr.mxu0 %v15664_v59  ;;  %8337 = vmatprep.subr.mxu1 %v12142_v31  ;;  %v1307_v31 = vld [vmem:[#allocation8 + $0x580] sm:$0xff]  ;;  %v12544_v8 = vand.u32 4294901760, %v1262_v11  ;;  %v1256_v59 = vld [vmem:[#allocation8 + $0x3e8] sm:$0xff] }
 0x2da   :  { %8295 = vmatpush3.msra.mxu0 %v15665_v63  ;;  %8338 = vmatpush3.msra.mxu1 %v12154_v7  ;;  %v12535_v7 = vand.u32 4294901760, %v1310_v13  ;;  %v12553_v18 = vand.u32 4294901760, %v1307_v31  ;;  %v14590_v63 = vand.u32 4294901760, %v12524_v17 }
 0x2db   :  { %8296 = vmatprep.subr.mxu0 %v15666_v22  ;;  %8339 = vmatprep.subr.mxu1 %v12164_v32  ;;  %v12542_v32 = vsub.f32 %v1268_v52, %v12510_v56  ;;  %v15674_v52 = vand.u32 4294901760, %v15648_v50  ;;  %v1301_v22 = vld [vmem:[#allocation8 + $0x550] sm:$0xff]  ;;  %v14591_v50 = vand.u32 4294901760, %v12533_v16 }
 0x2dc   :  { %8297 = vmatpush3.msra.mxu0 %v15668_v27  ;;  %8340 = vmatpush3.msra.mxu1 %v12175_v19  ;;  %v12551_v19 = vsub.f32 %v1313_v39, %v12518_v44  ;;  %v15676_v39 = vand.u32 4294901760, %v15649_v2  ;;  %v12574_v27 = vsub.f32 %v1310_v13, %v12535_v7  ;;  %v12584_v2 = vsub.f32 %v12508_v30, %v14587_v55 }
 0x2dd   :  { %8298 = vmatprep.subr.mxu0 %v15670_v48  ;;  %15671 = vst [vmem:[#allocation63_spill] sm:$0xff] %v12542_v32  ;;  %8341 = vmatprep.subr.mxu1 %v12189_v42  ;;  %v12560_v42 = vsub.f32 %v1265_v57, %v12526_v45  ;;  %v12576_v57 = vand.u32 4294901760, %v1304_v47  ;;  %v1253_v48 = vld [vmem:[#allocation8 + $0x3d0] sm:$0xff]  ;;  %v12590_v13 = vand.u32 4294901760, %v1256_v59  ;;  %v12604_v55 = vand.u32 4294901760, %v1301_v22 }
 0x2de   :  { %8299 = vmatpush3.msra.mxu0 %v15672_v41  ;;  %15673 = vst [vmem:[#allocation68_spill] sm:$0xff] %v12551_v19  ;;  %8342 = vmatpush3.msra.mxu1 %v12202_v0  ;;  %v12570_v0 = vsub.f32 %v12500_v28, %v14589_v14  ;;  %15677 = vst [vmem:[#allocation90_spill] sm:$0xff] %v12574_v27  ;;  %v14592_v41 = vand.u32 4294901760, %v12542_v32 }
 0x2df   :  { %8300 = vmatprep.subr.mxu0 %v15674_v52  ;;  %15675 = vst [vmem:[#allocation86_spill] sm:$0xff] %v12560_v42  ;;  %8343 = vmatprep.subr.mxu1 %v12215_v6  ;;  %v15678_v6 = vand.u32 4294901760, %v15650_v60  ;;  %v12588_v52 = vsub.f32 %v1262_v11, %v12544_v8  ;;  %v14593_v60 = vand.u32 4294901760, %v12551_v19  ;;  %v15682_v11 = vand.u32 4294901760, %v15652_v53 }
 0x2e0   :  { %8301 = vmatpush3.msra.mxu0 %v15676_v39  ;;  %8344 = vmatpush3.msra.mxu1 %v12228_v4  ;;  %v15680_v39 = vand.u32 4294901760, %v15651_v29  ;;  %v12598_v4 = vsub.f32 %v12516_v10, %v14588_v26  ;;  %v14594_v29 = vand.u32 4294901760, %v12560_v42  ;;  %v12618_v26 = vand.u32 4294901760, %v1253_v48 }
 0x2e1   :  { %8302 = vmatprep.subr.mxu0 %v15678_v6  ;;  %15679 = vst [vmem:[#allocation28_spill] sm:$0xff] %v12588_v52  ;;  %8345 = vmatprep.subr.mxu1 %v12237_v24  ;;  %v12602_v6 = vsub.f32 %v1307_v31, %v12553_v18  ;;  %v12612_v24 = vsub.f32 %v12524_v17, %v14590_v63  ;;  %v15684_v31 = vld [vmem:[#allocation58_spill] sm:$0xff] }
 0x2e2   :  { %8303 = vmatpush3.msra.mxu0 %v15680_v39  ;;  %8346 = vmatpush3.msra.mxu1 %v12246_v5  ;;  %v12616_v39 = vsub.f32 %v1259_v46, %v12562_v49  ;;  %v15685_v14 = vand.u32 4294901760, %v15684_v31  ;;  %v5900_v5 = vand.u32 4294901760, %v12570_v0  ;;  %v12627_v53 = vsub.f32 %v12533_v16, %v14591_v50  ;;  %v1298_v50 = vld [vmem:[#allocation8 + $0x538] sm:$0xff] }
 0x2e3   :  { %15681 = vst [vmem:[#allocation96_spill] sm:$0xff] %v12602_v6  ;;  %8304 = vmatprep.subr.mxu0 %v15682_v11  ;;  %8347 = vmatprep.subr.mxu1 %v12254_v34  ;;  %v14595_v11 = vand.u32 4294901760, %v12574_v27  ;;  %v12631_v63 = vsub.f32 %v1304_v47, %v12576_v57  ;;  %v15687_v46 = vand.u32 4294901760, %v12235_v58  ;;  %v5788_v34 = vand.u32 4294901760, %v12584_v2  ;;  %v15689_v47 = vld [vmem:[#allocation57_spill] sm:$0xff] }
 0x2e4   :  { %15683 = vst [vmem:[#allocation100_spill] sm:$0xff] %v12616_v39  ;;  %8305 = vmatpush3.msra.mxu0 %v15685_v14  ;;  %8348 = vmatpush3.msra.mxu1 %v12262_v37  ;;  %v12640_v14 = vsub.f32 %v12542_v32, %v14592_v41  ;;  %v14596_v0 = vand.u32 4294901760, %v12588_v52  ;;  %v12644_v31 = vsub.f32 %v1256_v59, %v12590_v13  ;;  %v15690_v37 = vand.u32 4294901760, %v15689_v47  ;;  %v1250_v59 = vld [vmem:[#allocation8 + $0x3b8] sm:$0xff] }
 0x2e5   :  { %15686 = vst [vmem:[#allocation105_spill] sm:$0xff] %v12631_v63  ;;  %8306 = vmatprep.subr.mxu0 %v15687_v46  ;;  %8349 = vmatprep.subr.mxu1 %v12273_v33  ;;  %v5907_v58 = vand.u32 4294901760, %v12598_v4  ;;  %v12653_v2 = vsub.f32 %v12551_v19, %v14593_v60  ;;  %v14601_v46 = vand.u32 4294901760, %v12602_v6  ;;  %v12657_v41 = vsub.f32 %v1301_v22, %v12604_v55  ;;  %v1295_v22 = vld [vmem:[#allocation8 + $0x520] sm:$0xff] }
 0x2e6   :  { %15688 = vst [vmem:[#allocation109_spill] sm:$0xff] %v12644_v31  ;;  %8307 = vmatpush3.msra.mxu0 %v15690_v37  ;;  %8350 = vmatpush3.msra.mxu1 %v12283_v35  ;;  %v15692_v33 = vand.u32 4294901760, %v12252_v36  ;;  %v5795_v47 = vand.u32 4294901760, %v12612_v24  ;;  %v12666_v4 = vsub.f32 %v12560_v42, %v14594_v29  ;;  %v12670_v60 = vsub.f32 %v1253_v48, %v12618_v26  ;;  %v1247_v37 = vld [vmem:[#allocation8 + $0x3a0] sm:$0xff] }
 0x2e7   :  { %15691 = vst [vmem:[#allocation112_spill] sm:$0xff] %v12657_v41  ;;  %8351 = vmatprep.subr.mxu1 %v12293_v43  ;;  %v15694_v35 = vand.u32 4294901760, %v12260_v40  ;;  %v5914_v36 = vand.u32 4294901760, %v12627_v53  ;;  %v12679_v24 = vsub.f32 %v12574_v27, %v14595_v11  ;;  %v12682_v29 = vand.u32 4294901760, %v1298_v50  ;;  %v1292_v11 = vld [vmem:[#allocation8 + $0x508] sm:$0xff]  ;;  %v1241_v27 = vld [vmem:[#allocation8 + $0x370] sm:$0xff] }
 0x2e8   :  { %8308 = vmatprep.subr.mxu0 %v15692_v33  ;;  %15693 = vst [vmem:[#allocation113_spill] sm:$0xff] %v12670_v60  ;;  %8352 = vmatpush3.msra.mxu1 %v12303_v51  ;;  %v15695_v48 = vand.u32 4294901760, %v12271_v3  ;;  %v5802_v40 = vand.u32 4294901760, %v12640_v14  ;;  %v12691_v43 = vsub.f32 %v12588_v52, %v14596_v0  ;;  %v15696_v33 = vld [vmem:[#allocation131_spill] sm:$0xff]  ;;  %v5921_v51 = vand.u32 4294901760, %v12653_v2  ;;  %v1244_v0 = vld [vmem:[#allocation8 + $0x388] sm:$0xff] }
 0x2e9   :  { %8309 = vmatpush3.msra.mxu0 %v15694_v35  ;;  %v12694_v35 = vand.u32 4294901760, %v1250_v59  ;;  %5666 = vmatmul.mubr.f32.vlgmr.msra.gmra.mxu1 %v15696_v33  ;;  %v12701_v3 = vsub.f32 %v12602_v6, %v14601_v46  ;;  %v15697_v53 = vand.u32 4294901760, %v12281_v15  ;;  %v5809_v52 = vand.u32 4294901760, %v12666_v4  ;;  %v1289_v6 = vld [vmem:[#allocation8 + $0x4f0] sm:$0xff]  ;;  %v15699_v14 = vld [vmem:[#allocation91_spill] sm:$0xff] }
 0x2ea   :  { %8310 = vmatprep.subr.mxu0 %v15695_v48  ;;  %8391 = vmatprep.subr.mxu1 %v5900_v5  ;;  %v12704_v48 = vand.u32 4294901760, %v1295_v22  ;;  %v15698_v5 = vand.u32 4294901760, %v12616_v39  ;;  %v12715_v46 = vand.u32 4294901760, %v1247_v37  ;;  %v15700_v42 = vand.u32 4294901760, %v12291_v54 }
 0x2eb   :  { %8311 = vmatpush3.msra.mxu0 %v15697_v53  ;;  %8392 = vmatpush3.msra.mxu1 %v5788_v34  ;;  %v5928_v15 = vand.u32 4294901760, %v12679_v24  ;;  %v15701_v34 = vand.u32 4294901760, %v12631_v63  ;;  %v12727_v53 = vsub.f32 %v1298_v50, %v12682_v29  ;;  %v5816_v54 = vand.u32 4294901760, %v12691_v43  ;;  %v1286_v50 = vld [vmem:[#allocation8 + $0x4d8] sm:$0xff] }
 0x2ec   :  { %v12712_v2 = vsub.f32 %v12616_v39, %v15698_v5  ;;  %6008 = vmatprep.mubr.f32.mxu1 %v15699_v14  ;;  %8312 = vmatprep.subr.mxu0 %v15700_v42  ;;  %v12729_v5 = vand.u32 4294901760, %v1292_v11  ;;  %v15703_v39 = vand.u32 4294901760, %v12301_v62  ;;  %v15704_v42 = vand.u32 4294901760, %v12644_v31 }
 0x2ed   :  { %v12724_v4 = vsub.f32 %v12631_v63, %v15701_v34  ;;  %15702 = vst [vmem:[#allocation117_spill] sm:$0xff] %v12727_v53  ;;  %8393 = vmatprep.subr.mxu1 %v5907_v58  ;;  %v12740_v34 = vsub.f32 %v1250_v59, %v12694_v35  ;;  %v12742_v14 = vand.u32 4294901760, %v1244_v0  ;;  %v15706_v63 = vand.u32 4294901760, %v12311_v9  ;;  %v1238_v59 = vld [vmem:[#allocation8 + $0x358] sm:$0xff] }
 0x2ee   :  { %8313 = vmatpush3.msra.mxu0 %v15703_v39  ;;  %v12737_v24 = vsub.f32 %v12644_v31, %v15704_v42  ;;  %8394 = vmatpush3.msra.mxu1 %v5795_v47  ;;  %v5935_v62 = vand.u32 4294901760, %v12701_v3  ;;  %v15707_v39 = vand.u32 4294901760, %v12657_v41  ;;  %v12753_v43 = vsub.f32 %v1295_v22, %v12704_v48  ;;  %v1283_v22 = vld [vmem:[#allocation8 + $0x4c0] sm:$0xff] }
 0x2ef   :  { %15705 = vst [vmem:[#allocation118_spill] sm:$0xff] %v12740_v34  ;;  %8314 = vmatprep.subr.mxu0 %v15706_v63  ;;  %v12755_v42 = vand.u32 4294901760, %v1289_v6  ;;  %8395 = vmatprep.subr.mxu1 %v5914_v36  ;;  %v15710_v31 = vand.u32 4294901760, %v12319_v61  ;;  %v5823_v9 = vand.u32 4294901760, %v12712_v2  ;;  %v15711_v63 = vand.u32 4294901760, %v12670_v60 }
 0x2f0   :  { %v12750_v58 = vsub.f32 %v12657_v41, %v15707_v39  ;;  %15708 = vst [vmem:[#allocation126_spill] sm:$0xff] %v12753_v43  ;;  %v12766_v3 = vsub.f32 %v1247_v37, %v12715_v46  ;;  %v12768_v39 = vand.u32 4294901760, %v1241_v27  ;;  %8396 = vmatpush3.msra.mxu1 %v5802_v40  ;;  %v15713_v41 = vand.u32 4294901760, %v12327_v12 }
 0x2f1   :  { %15709 = vst [vmem:[#allocation128_spill] sm:$0xff] %v12755_v42  ;;  %8315 = vmatpush3.msra.mxu0 %v15710_v31  ;;  %v12763_v47 = vsub.f32 %v12670_v60, %v15711_v63  ;;  %v5942_v61 = vand.u32 4294901760, %v12724_v4  ;;  %v14622_v31 = vand.u32 4294901760, %v12727_v53  ;;  %v12775_v36 = vsub.f32 %v1292_v11, %v12729_v5  ;;  %v1235_v63 = vld [vmem:[#allocation8 + $0x340] sm:$0xff]  ;;  %8397 = vmatprep.subr.mxu1 %v5921_v51  ;;  %v1280_v4 = vld [vmem:[#allocation8 + $0x4a8] sm:$0xff] }
 0x2f2   :  { %15712 = vst [vmem:[#allocation129_spill] sm:$0xff] %v12768_v39  ;;  %8316 = vmatprep.subr.mxu0 %v15713_v41  ;;  %v12777_v2 = vand.u32 4294901760, %v1286_v50  ;;  %v15715_v37 = vand.u32 4294901760, %v12335_v21  ;;  %v5830_v60 = vand.u32 4294901760, %v12737_v24  ;;  %v12784_v12 = vsub.f32 %v1244_v0, %v12742_v14  ;;  %8398 = vmatpush3.msra.mxu1 %v5809_v52  ;;  %v1232_v24 = vld [vmem:[#allocation8 + $0x328] sm:$0xff] }
 0x2f3   :  { %v12786_v41 = vand.u32 4294901760, %v1238_v59  ;;  %v5949_v11 = vand.u32 4294901760, %v12750_v58  ;;  %v12792_v21 = vsub.f32 %v1289_v6, %v12755_v42  ;;  %8399 = vmatprep.subr.mxu1 %v5928_v15  ;;  %v5837_v0 = vand.u32 4294901760, %v12763_v47  ;;  %v1277_v58 = vld [vmem:[#allocation8 + $0x490] sm:$0xff]  ;;  %v15719_v6 = vld [vmem:[#allocation35_spill] sm:$0xff] }
 0x2f4   :  { %15714 = vst [vmem:[#allocation139_spill] sm:$0xff] %v12777_v2  ;;  %8317 = vmatpush3.msra.mxu0 %v15715_v37  ;;  %15716 = vst [vmem:[#allocation141_spill] sm:$0xff] %v12784_v12  ;;  %v12794_v37 = vand.u32 4294901760, %v1283_v22  ;;  %v12800_v52 = vsub.f32 %v1241_v27, %v12768_v39  ;;  %v5955_v51 = vsub.f32 %v12727_v53, %v14622_v31  ;;  %v12813_v40 = vand.u32 4294901760, %v1280_v4  ;;  %v1229_v27 = vld [vmem:[#allocation8 + $0x310] sm:$0xff] }
 0x2f5   :  { %5562 = vmatmul.mubr.f32.vlgmr.msra.gmra.mxu0 %v15696_v33  ;;  %8356 = vmatprep.subr.mxu0 %v12479_v1  ;;  %v12802_v33 = vand.u32 4294901760, %v1235_v63  ;;  %v12811_v47 = vsub.f32 %v1286_v50, %v12777_v2  ;;  %v15721_v19 = vand.u32 4294901760, %v12740_v34  ;;  %v12821_v16 = vsub.f32 %v1238_v59, %v12786_v41 }
 0x2f6   :  { %15717 = vst [vmem:[#allocation72_spill] sm:$0xff] %v12794_v37  ;;  %15718 = vst [vmem:[#allocation66_spill] sm:$0xff] %v12800_v52  ;;  %8357 = vmatpush3.msra.mxu0 %v12484_v38  ;;  %5772 = vmatprep.mubr.f32.mxu0 %v15719_v6  ;;  %v12823_v31 = vand.u32 4294901760, %v1232_v24  ;;  %v15722_v50 = vand.u32 4294901760, %v12753_v43  ;;  %v12831_v53 = vsub.f32 %v1283_v22, %v12794_v37  ;;  %v15724_v59 = vand.u32 4294901760, %v12766_v3 }
 0x2f7   :  { %15720 = vst [vmem:[#allocation73_spill] sm:$0xff] %v12813_v40  ;;  %8400 = vmatpush3.msra.mxu1 %v5816_v54  ;;  %8358 = vmatprep.subr.mxu0 %v12489_v25  ;;  %v5843_v32 = vsub.f32 %v12740_v34, %v15721_v19  ;;  %v12833_v19 = vand.u32 4294901760, %v1277_v58  ;;  %v12841_v34 = vsub.f32 %v1235_v63, %v12802_v33  ;;  %v5956_v22 = vand.u32 4294901760, %v5955_v51 }
 0x2f8   :  { %8401 = vmatprep.subr.mxu1 %v5935_v62  ;;  %8359 = vmatpush3.msra.mxu0 %v12494_v23  ;;  %v5962_v54 = vsub.f32 %v12753_v43, %v15722_v50  ;;  %v5850_v62 = vsub.f32 %v12766_v3, %v15724_v59  ;;  %v12843_v50 = vand.u32 4294901760, %v1229_v27  ;;  %v15726_v15 = vand.u32 4294901760, %v12775_v36 }
 0x2f9   :  { %15723 = vst [vmem:[#allocation84_spill] sm:$0xff] %v12833_v19  ;;  %8402 = vmatpush3.msra.mxu1 %v5823_v9  ;;  %8360 = vmatprep.subr.mxu0 %v12502_v20  ;;  %v12851_v17 = vsub.f32 %v1280_v4, %v12813_v40  ;;  %v5844_v63 = vand.u32 4294901760, %v5843_v32  ;;  %v15727_v59 = vand.u32 4294901760, %v12784_v12  ;;  %v12859_v51 = vsub.f32 %v1232_v24, %v12823_v31 }
 0x2fa   :  { %15725 = vst [vmem:[#allocation74_spill] sm:$0xff] %v12843_v50  ;;  %8403 = vmatprep.subr.mxu1 %v5942_v61  ;;  %8361 = vmatpush3.msra.mxu0 %v12510_v56  ;;  %v5969_v9 = vsub.f32 %v12775_v36, %v15726_v15  ;;  %v5963_v15 = vand.u32 4294901760, %v5962_v54  ;;  %v15729_v4 = vand.u32 4294901760, %v12792_v21  ;;  %v12867_v32 = vsub.f32 %v1277_v58, %v12833_v19 }
 0x2fb   :  { %8404 = vmatpush3.msra.mxu1 %v5830_v60  ;;  %8362 = vmatprep.subr.mxu0 %v12518_v44  ;;  %v5857_v61 = vsub.f32 %v12784_v12, %v15727_v59  ;;  %15728 = vst [vmem:[#allocation89_spill] sm:$0xff] %v12859_v51  ;;  %v5851_v59 = vand.u32 4294901760, %v5850_v62  ;;  %v15731_v24 = vand.u32 4294901760, %v12800_v52  ;;  %v12875_v54 = vsub.f32 %v1229_v27, %v12843_v50 }
 0x2fc   :  { %8405 = vmatprep.subr.mxu1 %v5949_v11  ;;  %8363 = vmatpush3.msra.mxu0 %v12526_v45  ;;  %v5976_v60 = vsub.f32 %v12792_v21, %v15729_v4  ;;  %15730 = vst [vmem:[#allocation97_spill] sm:$0xff] %v12867_v32  ;;  %v5970_v4 = vand.u32 4294901760, %v5969_v9  ;;  %v15733_v58 = vand.u32 4294901760, %v12811_v47  ;;  %v15735_v9 = vand.u32 4294901760, %v12831_v53 }
 0x2fd   :  { %8406 = vmatpush3.msra.mxu1 %v5837_v0  ;;  %8364 = vmatprep.subr.mxu0 %v12535_v7  ;;  %v5864_v11 = vsub.f32 %v12800_v52, %v15731_v24  ;;  %15732 = vst [vmem:[#allocation80_spill] sm:$0xff] %v12875_v54  ;;  %v5858_v62 = vand.u32 4294901760, %v5857_v61  ;;  %v15734_v24 = vand.u32 4294901760, %v12821_v16  ;;  %v15736_v61 = vand.u32 4294901760, %v12841_v34 }
 0x2fe   :  { %8407 = vmatprep.subr.mxu1 %v5956_v22  ;;  %8365 = vmatpush3.msra.mxu0 %v12544_v8  ;;  %v5983_v0 = vsub.f32 %v12811_v47, %v15733_v58  ;;  %v5977_v22 = vand.u32 4294901760, %v5976_v60  ;;  %v5990_v58 = vsub.f32 %v12831_v53, %v15735_v9  ;;  %v14631_v27 = vand.u32 4294901760, %v12875_v54 }
 0x2ff   :  { %8408 = vmatpush3.msra.mxu1 %v5844_v63  ;;  %8366 = vmatprep.subr.mxu0 %v12553_v18  ;;  %v5871_v6 = vsub.f32 %v12821_v16, %v15734_v24  ;;  %v5865_v63 = vand.u32 4294901760, %v5864_v11  ;;  %v5878_v24 = vsub.f32 %v12841_v34, %v15736_v61  ;;  %v15737_v60 = vand.u32 4294901760, %v12851_v17 }
 0x300   :  { %8409 = vmatprep.subr.mxu1 %v5963_v15  ;;  %8367 = vmatpush3.msra.mxu0 %v12562_v49  ;;  %v5984_v15 = vand.u32 4294901760, %v5983_v0  ;;  %v15738_v11 = vand.u32 4294901760, %v12859_v51  ;;  %v5991_v61 = vand.u32 4294901760, %v5990_v58 }
 0x301   :  { %8410 = vmatpush3.msra.mxu1 %v5851_v59  ;;  %8368 = vmatprep.subr.mxu0 %v12576_v57  ;;  %v5997_v9 = vsub.f32 %v12851_v17, %v15737_v60  ;;  %v5872_v59 = vand.u32 4294901760, %v5871_v6  ;;  %v5879_v60 = vand.u32 4294901760, %v5878_v24  ;;  %v5892_v6 = vsub.f32 %v12875_v54, %v14631_v27  ;;  %v15741_v24 = vld [vmem:[#allocation115_spill] sm:$0xff]  ;;  %v15757_v27 = vld [vmem:[#allocation117_spill] sm:$0xff] }
 0x302   :  { %8411 = vmatprep.subr.mxu1 %v5970_v4  ;;  %8369 = vmatpush3.msra.mxu0 %v12590_v13  ;;  %v5885_v43 = vsub.f32 %v12859_v51, %v15738_v11  ;;  %v15739_v4 = vand.u32 4294901760, %v12867_v32  ;;  %v15745_v11 = vld [vmem:[#allocation61_spill] sm:$0xff] }
 0x303   :  { %8412 = vmatpush3.msra.mxu1 %v5858_v62  ;;  %8370 = vmatprep.subr.mxu0 %v12604_v55  ;;  %v5998_v62 = vand.u32 4294901760, %v5997_v9  ;;  %v15743_v9 = vld [vmem:[#allocation106_spill] sm:$0xff] }
 0x304   :  { %8413 = vmatprep.subr.mxu1 %v5977_v22  ;;  %8371 = vmatpush3.msra.mxu0 %v12618_v26  ;;  %v6004_v0 = vsub.f32 %v12867_v32, %v15739_v4  ;;  %v5886_v22 = vand.u32 4294901760, %v5885_v43  ;;  %v15740_v43 = vld [vmem:[#allocation26_spill] sm:$0xff]  ;;  %v15747_v4 = vld [vmem:[#allocation68_spill] sm:$0xff] }
 0x305   :  { %8414 = vmatpush3.msra.mxu1 %v5865_v63  ;;  %8372 = vmatprep.subr.mxu0 %v12682_v29  ;;  %v5893_v63 = vand.u32 4294901760, %v5892_v6  ;;  %v15750_v6 = vld [vmem:[#allocation28_spill] sm:$0xff] }
 0x306   :  { %8415 = vmatprep.subr.mxu1 %v5984_v15  ;;  %8373 = vmatpush3.msra.mxu0 %v12694_v35  ;;  %v6005_v58 = vand.u32 4294901760, %v6004_v0  ;;  %v15742_v15 = vld [vmem:[#allocation65_spill] sm:$0xff]  ;;  %v15748_v0 = vld [vmem:[#allocation86_spill] sm:$0xff] }
 0x307   :  { %8416 = vmatpush3.msra.mxu1 %v5872_v59  ;;  %8374 = vmatprep.subr.mxu0 %v12704_v48  ;;  %v15744_v59 = vld [vmem:[#allocation59_spill] sm:$0xff] }
 0x308   :  { %8417 = vmatprep.subr.mxu1 %v5991_v61  ;;  %8375 = vmatpush3.msra.mxu0 %v12715_v46  ;;  %v15746_v61 = vld [vmem:[#allocation63_spill] sm:$0xff] }
 0x309   :  { %8418 = vmatpush3.msra.mxu1 %v5879_v60  ;;  %8376 = vmatprep.subr.mxu0 %v12729_v5  ;;  %v15749_v60 = vld [vmem:[#allocation90_spill] sm:$0xff] }
 0x30a   :  { %8419 = vmatprep.subr.mxu1 %v5998_v62  ;;  %8377 = vmatpush3.msra.mxu0 %v12742_v14  ;;  %v15751_v62 = vld [vmem:[#allocation96_spill] sm:$0xff] }
 0x30b   :  { %8420 = vmatpush3.msra.mxu1 %v5886_v22  ;;  %8378 = vmatprep.subr.mxu0 %v12755_v42  ;;  %v15752_v22 = vld [vmem:[#allocation100_spill] sm:$0xff] }
 0x30c   :  { %8421 = vmatprep.subr.mxu1 %v6005_v58  ;;  %8379 = vmatpush3.msra.mxu0 %v12768_v39  ;;  %v15753_v58 = vld [vmem:[#allocation105_spill] sm:$0xff] }
 0x30d   :  { %8422 = vmatpush3.msra.mxu1 %v5893_v63  ;;  %8380 = vmatprep.subr.mxu0 %v12777_v2  ;;  %v15754_v63 = vld [vmem:[#allocation109_spill] sm:$0xff] }
 0x30e   :  { %6010 = vmatmul.mubr.f32.vlgmr.msra.gmra.mxu1 %v15740_v43  ;;  %8461 = vmatprep.subr.mxu1 %v12479_v1  ;;  %v15758_v43 = vld [vmem:[#allocation118_spill] sm:$0xff] }
 0x30f   :  { %8381 = vmatpush3.msra.mxu0 %v12786_v41  ;;  %8462 = vmatpush3.msra.mxu1 %v12484_v38 }
 0x310   :  { %6252 = vmatprep.mubr.f32.mxu1 %v15741_v24  ;;  %8382 = vmatprep.subr.mxu0 %v12794_v37  ;;  %v15755_v24 = vld [vmem:[#allocation112_spill] sm:$0xff] }
 0x311   :  { %8463 = vmatprep.subr.mxu1 %v12489_v25  ;;  %8383 = vmatpush3.msra.mxu0 %v12802_v33 }
 0x312   :  { %8464 = vmatpush3.msra.mxu1 %v12494_v23  ;;  %8384 = vmatprep.subr.mxu0 %v12813_v40 }
 0x313   :  { %8465 = vmatprep.subr.mxu1 %v12502_v20  ;;  %8385 = vmatpush3.msra.mxu0 %v12823_v31 }
 0x314   :  { %8466 = vmatpush3.msra.mxu1 %v12510_v56  ;;  %8386 = vmatprep.subr.mxu0 %v12833_v19 }
 0x315   :  { %8467 = vmatprep.subr.mxu1 %v12518_v44  ;;  %8387 = vmatpush3.msra.mxu0 %v12843_v50 }
 0x316   :  { %8468 = vmatpush3.msra.mxu1 %v12526_v45  ;;  %5778 = vmatmul.mubr.f32.vlgmr.msra.gmra.mxu0 %v15742_v15  ;;  %v15756_v15 = vld [vmem:[#allocation113_spill] sm:$0xff] }
 0x317   :  { %8426 = vmatprep.subr.mxu0 %v12500_v28  ;;  %8469 = vmatprep.subr.mxu1 %v12535_v7 }
 0x318   :  { %8427 = vmatpush3.msra.mxu0 %v12508_v30  ;;  %6145 = vmatprep.mubr.f32.mxu0 %v15743_v9  ;;  %v2381_v9 = vpop.f32.mrf.mxu0 }
 0x319   :  { %8470 = vmatpush3.msra.mxu1 %v12544_v8  ;;  %8428 = vmatprep.subr.mxu0 %v12516_v10 }
 0x31a   :  { %8471 = vmatprep.subr.mxu1 %v12553_v18  ;;  %8429 = vmatpush3.msra.mxu0 %v15744_v59 }
 0x31b   :  { %8472 = vmatpush3.msra.mxu1 %v12562_v49  ;;  %8430 = vmatprep.subr.mxu0 %v15745_v11 }
 0x31c   :  { %8473 = vmatprep.subr.mxu1 %v12576_v57  ;;  %8431 = vmatpush3.msra.mxu0 %v15746_v61 }
 0x31d   :  { %8474 = vmatpush3.msra.mxu1 %v12590_v13  ;;  %8432 = vmatprep.subr.mxu0 %v15747_v4 }
 0x31e   :  { %8475 = vmatprep.subr.mxu1 %v12604_v55  ;;  %8433 = vmatpush3.msra.mxu0 %v15748_v0 }
 0x31f   :  { %8476 = vmatpush3.msra.mxu1 %v12618_v26  ;;  %8434 = vmatprep.subr.mxu0 %v15749_v60 }
 0x320   :  { %8477 = vmatprep.subr.mxu1 %v12682_v29  ;;  %8435 = vmatpush3.msra.mxu0 %v15750_v6 }
 0x321   :  { %8478 = vmatpush3.msra.mxu1 %v12694_v35  ;;  %8436 = vmatprep.subr.mxu0 %v15751_v62 }
 0x322   :  { %8479 = vmatprep.subr.mxu1 %v12704_v48  ;;  %8437 = vmatpush3.msra.mxu0 %v15752_v22 }
 0x323   :  { %8480 = vmatpush3.msra.mxu1 %v12715_v46  ;;  %8438 = vmatprep.subr.mxu0 %v15753_v58 }
 0x324   :  { %8481 = vmatprep.subr.mxu1 %v12729_v5  ;;  %8439 = vmatpush3.msra.mxu0 %v15754_v63  ;;  %v15759_v63 = vld [vmem:[#allocation126_spill] sm:$0xff] }
 0x325   :  { %8482 = vmatpush3.msra.mxu1 %v12742_v14  ;;  %8440 = vmatprep.subr.mxu0 %v15755_v24 }
 0x326   :  { %8483 = vmatprep.subr.mxu1 %v12755_v42  ;;  %8441 = vmatpush3.msra.mxu0 %v15756_v15  ;;  %v2383_v42 = vpop.f32.mrf.mxu0 }
 0x327   :  { %8484 = vmatpush3.msra.mxu1 %v12768_v39  ;;  %8442 = vmatprep.subr.mxu0 %v15757_v27  ;;  %v15760_v27 = vld [vmem:[#allocation54_spill] sm:$0xff] }
 0x328   :  { %8485 = vmatprep.subr.mxu1 %v12777_v2  ;;  %8443 = vmatpush3.msra.mxu0 %v15758_v43  ;;  %v2774_v2 = vpop.f32.mrf.mxu1  ;;  %v2382_v43 = vadd.f32 %v2381_v9, %v15760_v27  ;;  %v2977_v39 = vpop.f32.mrf.mxu0 }
 0x329   :  { %8486 = vmatpush3.msra.mxu1 %v12786_v41  ;;  %8444 = vmatprep.subr.mxu0 %v15759_v63 }
 0x32a   :  { %8487 = vmatprep.subr.mxu1 %v12794_v37  ;;  %8445 = vmatpush3.msra.mxu0 %v12766_v3  ;;  %v15761_v37 = vld [vmem:[#allocation50_spill] sm:$0xff]  ;;  %v2776_v27 = vpop.f32.mrf.mxu1  ;;  %v2775_v9 = vadd.f32 %v2774_v2, %v2382_v43  ;;  %v6587_v2 = vld [vmem:[#allocation11 + $0xf8] sm:$0xff] }
 0x32b   :  { %8488 = vmatpush3.msra.mxu1 %v12802_v33  ;;  %8446 = vmatprep.subr.mxu0 %v12775_v36  ;;  %v2384_v63 = vadd.f32 %v2383_v42, %v15761_v37  ;;  %v15763_v37 = vld [vmem:[#allocation91_spill] sm:$0xff] }
 0x32c   :  { %8489 = vmatprep.subr.mxu1 %v12813_v40  ;;  %8447 = vmatpush3.msra.mxu0 %v12784_v12  ;;  %v15762_v40 = vld [vmem:[#allocation143_spill] sm:$0xff]  ;;  %v2979_v12 = vpop.f32.mrf.mxu0 }
 0x32d   :  { %8490 = vmatpush3.msra.mxu1 %v12823_v31  ;;  %8448 = vmatprep.subr.mxu0 %v12792_v21  ;;  %v2777_v42 = vadd.f32 %v2776_v27, %v2384_v63  ;;  %v6570_v63 = vld [vmem:[#allocation11 + $0x70] sm:$0xff] }
 0x32e   :  { %8491 = vmatprep.subr.mxu1 %v12833_v19  ;;  %8449 = vmatpush3.msra.mxu0 %v12800_v52  ;;  %v3118_v52 = vpop.f32.mrf.mxu1  ;;  %v3383_v19 = vpop.f32.mrf.mxu0 }
 0x32f   :  { %8492 = vmatpush3.msra.mxu1 %v12843_v50  ;;  %8450 = vmatprep.subr.mxu0 %v12811_v47  ;;  %v2978_v50 = vadd.f32 %v2977_v39, %v2775_v9  ;;  %v6569_v9 = vld [vmem:[#allocation11 + $0x68] sm:$0xff] }
 0x330   :  { %6256 = vmatmul.mubr.f32.vlgmr.msra.gmra.mxu1 %v15762_v40  ;;  %8531 = vmatprep.subr.mxu1 %v12479_v1  ;;  %v2980_v1 = vadd.f32 %v2979_v12, %v2777_v42  ;;  %v6571_v40 = vld [vmem:[#allocation11 + $0x78] sm:$0xff]  ;;  %v3120_v39 = vpop.f32.mrf.mxu1  ;;  %v3385_v43 = vpop.f32.mrf.mxu0 }
 0x331   :  { %8451 = vmatpush3.msra.mxu0 %v12821_v16  ;;  %8532 = vmatpush3.msra.mxu1 %v12484_v38  ;;  %v6586_v38 = vld [vmem:[#allocation11 + $0xf0] sm:$0xff]  ;;  %v13009_v12 = vand.u32 4294901760, %v6571_v40 }
 0x332   :  { %6526 = vmatprep.mubr.f32.mxu1 %v15763_v37  ;;  %8452 = vmatprep.subr.mxu0 %v12831_v53  ;;  %v3121_v27 = vadd.f32 %v3120_v39, %v2980_v1  ;;  %v3520_v42 = vpop.f32.mrf.mxu1  ;;  %v6584_v39 = vld [vmem:[#allocation11 + $0xe0] sm:$0xff] }
 0x333   :  { %8533 = vmatprep.subr.mxu1 %v12489_v25  ;;  %8453 = vmatpush3.msra.mxu0 %v12841_v34  ;;  %v3119_v25 = vadd.f32 %v3118_v52, %v2978_v50  ;;  %v15765_v52 = vand.u32 4294901760, %v12500_v28  ;;  %v15767_v28 = vand.u32 4294901760, %v12516_v10  ;;  %v15771_v10 = vand.u32 4294901760, %v15745_v11 }
 0x334   :  { %8534 = vmatpush3.msra.mxu1 %v12494_v23  ;;  %8454 = vmatprep.subr.mxu0 %v12851_v17  ;;  %v13007_v23 = vand.u32 4294901760, %v6587_v2  ;;  %v3386_v50 = vadd.f32 %v3385_v43, %v3121_v27  ;;  %v6583_v27 = vld [vmem:[#allocation11 + $0xd8] sm:$0xff] }
 0x335   :  { %8535 = vmatprep.subr.mxu1 %v12502_v20  ;;  %8455 = vmatpush3.msra.mxu0 %v12859_v51  ;;  %v6585_v20 = vld [vmem:[#allocation11 + $0xe8] sm:$0xff]  ;;  %v15766_v51 = vand.u32 4294901760, %v12508_v30  ;;  %v13034_v30 = vand.u32 4294901760, %v6569_v9 }
 0x336   :  { %8536 = vmatpush3.msra.mxu1 %v12510_v56  ;;  %8456 = vmatprep.subr.mxu0 %v12867_v32  ;;  %v15764_v56 = vld [vmem:[#allocation142_spill] sm:$0xff]  ;;  %v3384_v32 = vadd.f32 %v3383_v19, %v3119_v25  ;;  %v13023_v1 = vand.u32 4294901760, %v6585_v20  ;;  %v13032_v25 = vsub.f32 %v6571_v40, %v13009_v12 }
 0x337   :  { %8537 = vmatprep.subr.mxu1 %v12518_v44  ;;  %8457 = vmatpush3.msra.mxu0 %v12875_v54  ;;  %v13016_v44 = vand.u32 4294901760, %v6586_v38  ;;  %v3665_v54 = vpop.f32.mrf.mxu0  ;;  %v6568_v19 = vld [vmem:[#allocation11 + $0x60] sm:$0xff] }
 0x338   :  { %8538 = vmatpush3.msra.mxu1 %v12526_v45  ;;  %6148 = vmatmul.mubr.f32.vlgmr.msra.gmra.mxu0 %v15764_v56  ;;  %v13021_v45 = vand.u32 4294901760, %v6570_v63  ;;  %15769 = vst [vmem:[#allocation82_spill] sm:$0xff] %v13032_v25  ;;  %v3521_v43 = vadd.f32 %v3520_v42, %v3384_v32  ;;  %v13047_v40 = vand.u32 4294901760, %v6568_v19  ;;  %v6567_v56 = vld [vmem:[#allocation11 + $0x58] sm:$0xff]  ;;  %v15773_v32 = vand.u32 4294901760, %v15746_v61  ;;  %v6582_v61 = vld [vmem:[#allocation11 + $0xd0] sm:$0xff] }
 0x339   :  { %8496 = vmatprep.subr.mxu0 %v15765_v52  ;;  %8539 = vmatprep.subr.mxu1 %v12535_v7  ;;  %v13029_v7 = vsub.f32 %v6587_v2, %v13007_v23  ;;  %v13045_v2 = vand.u32 4294901760, %v6584_v39  ;;  %v3667_v52 = vpop.f32.mrf.mxu0 }
 0x33a   :  { %8497 = vmatpush3.msra.mxu0 %v15766_v51  ;;  %6422 = vmatprep.mubr.f32.mxu0 %v15763_v37  ;;  %v15770_v51 = vand.u32 4294901760, %v15744_v59  ;;  %v3522_v37 = vpop.f32.mrf.mxu1  ;;  %v13056_v59 = vsub.f32 %v6585_v20, %v13023_v1  ;;  %v3666_v11 = vadd.f32 %v3665_v54, %v3521_v43  ;;  %v13069_v54 = vand.u32 4294901760, %v6583_v27 }
 0x33b   :  { %8540 = vmatpush3.msra.mxu1 %v12544_v8  ;;  %8498 = vmatprep.subr.mxu0 %v15767_v28  ;;  %15768 = vst [vmem:[#allocation101_spill] sm:$0xff] %v13029_v7  ;;  %v13043_v8 = vsub.f32 %v6586_v38, %v13016_v44  ;;  %v15776_v38 = vand.u32 4294901760, %v15747_v4  ;;  %v14648_v42 = vand.u32 4294901760, %v13029_v7  ;;  %v15779_v20 = vand.u32 4294901760, %v15749_v60 }
 0x33c   :  { %8541 = vmatprep.subr.mxu1 %v12553_v18  ;;  %8499 = vmatpush3.msra.mxu0 %v15770_v51  ;;  %v3523_v18 = vadd.f32 %v3522_v37, %v3386_v50  ;;  %15775 = vst [vmem:[#allocation56_spill] sm:$0xff] %v13056_v59  ;;  %v14647_v50 = vand.u32 4294901760, %v13032_v25  ;;  %v4058_v28 = vpop.f32.mrf.mxu1  ;;  %v13078_v51 = vsub.f32 %v6584_v39, %v13045_v2  ;;  %v6581_v37 = vld [vmem:[#allocation11 + $0xc8] sm:$0xff]  ;;  %v15782_v43 = vand.u32 4294901760, %v15750_v6 }
 0x33d   :  { %8542 = vmatpush3.msra.mxu1 %v12562_v49  ;;  %8500 = vmatprep.subr.mxu0 %v15771_v10  ;;  %15772 = vst [vmem:[#allocation104_spill] sm:$0xff] %v13043_v8  ;;  %v13053_v49 = vsub.f32 %v6570_v63, %v13021_v45  ;;  %v15778_v63 = vand.u32 4294901760, %v15748_v0  ;;  %v6566_v0 = vld [vmem:[#allocation11 + $0x50] sm:$0xff]  ;;  %v14644_v60 = vand.u32 4294901760, %v13056_v59  ;;  %v13088_v10 = vand.u32 4294901760, %v6582_v61 }
 0x33e   :  { %8543 = vmatprep.subr.mxu1 %v12576_v57  ;;  %8501 = vmatpush3.msra.mxu0 %v15773_v32  ;;  %v13064_v57 = vsub.f32 %v6569_v9, %v13034_v30  ;;  %v3668_v4 = vadd.f32 %v3667_v52, %v3523_v18  ;;  %v14646_v9 = vand.u32 4294901760, %v13043_v8  ;;  %15780 = vst [vmem:[#allocation19_spill] sm:$0xff] %v13078_v51  ;;  %v15783_v39 = vand.u32 4294901760, %v15751_v62  ;;  %v6565_v52 = vld [vmem:[#allocation11 + $0x48] sm:$0xff]  ;;  %v4060_v32 = vpop.f32.mrf.mxu1 }
 0x33f   :  { %15774 = vst [vmem:[#allocation87_spill] sm:$0xff] %v13053_v49  ;;  %8544 = vmatpush3.msra.mxu1 %v12590_v13  ;;  %8502 = vmatprep.subr.mxu0 %v15776_v38  ;;  %v13071_v13 = vand.u32 4294901760, %v6567_v56  ;;  %v13090_v18 = vadd.f32 %v4058_v28, %v3666_v11  ;;  %v13103_v6 = vsub.f32 %v13032_v25, %v14647_v50  ;;  %v13106_v11 = vpop.f32.mrf.mxu0  ;;  %v13117_v28 = vand.u32 4294901760, %v6566_v0  ;;  %v15793_v50 = vld [vmem:[#allocation128_spill] sm:$0xff] }
 0x340   :  { %15777 = vst [vmem:[#allocation93_spill] sm:$0xff] %v13064_v57  ;;  %8545 = vmatprep.subr.mxu1 %v12604_v55  ;;  %8503 = vmatpush3.msra.mxu0 %v15778_v63  ;;  %v13081_v55 = vsub.f32 %v6568_v19, %v13047_v40  ;;  %v14649_v19 = vand.u32 4294901760, %v13064_v57  ;;  %v13112_v62 = vsub.f32 %v6583_v27, %v13069_v54  ;;  %v13119_v63 = vand.u32 4294901760, %v6581_v37  ;;  %v15798_v27 = vld [vmem:[#allocation117_spill] sm:$0xff] }
 0x341   :  { %8546 = vmatpush3.msra.mxu1 %v12618_v26  ;;  %8504 = vmatprep.subr.mxu0 %v15779_v20  ;;  %v14645_v26 = vand.u32 4294901760, %v13053_v49  ;;  %v13115_v38 = vsub.f32 %v6567_v56, %v13071_v13  ;;  %v6580_v20 = vld [vmem:[#allocation11 + $0xc0] sm:$0xff]  ;;  %v15788_v56 = vld [vmem:[#allocation109_spill] sm:$0xff] }
 0x342   :  { %15781 = vst [vmem:[#allocation95_spill] sm:$0xff] %v13081_v55  ;;  %8547 = vmatprep.subr.mxu1 %v12682_v29  ;;  %8505 = vmatpush3.msra.mxu0 %v15782_v43  ;;  %v13098_v29 = vsub.f32 %v13029_v7, %v14648_v42  ;;  %15785 = vst [vmem:[#allocation120_spill] sm:$0xff] %v13112_v62  ;;  %v4061_v43 = vadd.f32 %v4060_v32, %v3668_v4  ;;  %v13147_v32 = vand.u32 4294901760, %v6565_v52 }
 0x343   :  { %8548 = vmatpush3.msra.mxu1 %v12694_v35  ;;  %8506 = vmatprep.subr.mxu0 %v15783_v39  ;;  %v15784_v35 = vand.u32 4294901760, %v15752_v22  ;;  %15786 = vst [vmem:[#allocation99_spill] sm:$0xff] %v13115_v38  ;;  %v15787_v39 = vand.u32 4294901760, %v15753_v58  ;;  %v13142_v58 = vsub.f32 %v13056_v59, %v14644_v60  ;;  %v13145_v4 = vsub.f32 %v6582_v61, %v13088_v10  ;;  %v13161_v61 = vpop.f32.mrf.mxu1  ;;  %v15809_v59 = vld [vmem:[#allocation72_spill] sm:$0xff] }
 0x344   :  { %8549 = vmatprep.subr.mxu1 %v12704_v48  ;;  %v13127_v48 = vsub.f32 %v13043_v8, %v14646_v9  ;;  %v13157_v60 = vsub.f32 %v13064_v57, %v14649_v19  ;;  %v4263_v9 = vpop.f32.mrf.mxu0  ;;  %v13169_v42 = vsub.f32 %v6566_v0, %v13117_v28  ;;  %v13172_v19 = vsub.f32 %v6581_v37, %v13119_v63 }
 0x345   :  { %8507 = vmatpush3.msra.mxu0 %v15784_v35  ;;  %8550 = vmatpush3.msra.mxu1 %v12715_v46  ;;  %v15789_v35 = vand.u32 4294901760, %v15788_v56  ;;  %v13137_v46 = vsub.f32 %v13053_v49, %v14645_v26  ;;  %15790 = vst [vmem:[#allocation122_spill] sm:$0xff] %v13145_v4  ;;  %v13159_v26 = vand.u32 4294901760, %v6580_v20  ;;  %v15797_v56 = vld [vmem:[#allocation129_spill] sm:$0xff]  ;;  %v15799_v22 = vand.u32 4294901760, %v15798_v27 }
 0x346   :  { %8508 = vmatprep.subr.mxu0 %v15787_v39  ;;  %8551 = vmatprep.subr.mxu1 %v12729_v5  ;;  %v6564_v39 = vld [vmem:[#allocation11 + $0x40] sm:$0xff]  ;;  %v15791_v5 = vand.u32 4294901760, %v15755_v24  ;;  %15795 = vst [vmem:[#allocation124_spill] sm:$0xff] %v13169_v42  ;;  %15796 = vst [vmem:[#allocation108_spill] sm:$0xff] %v13172_v19  ;;  %v15803_v24 = vld [vmem:[#allocation139_spill] sm:$0xff]  ;;  %v15810_v49 = vand.u32 4294901760, %v12766_v3 }
 0x347   :  { %8509 = vmatpush3.msra.mxu0 %v15789_v35  ;;  %8552 = vmatpush3.msra.mxu1 %v12742_v14  ;;  %15792 = vst [vmem:[#allocation102_spill] sm:$0xff] %v13159_v26  ;;  %v15794_v14 = vand.u32 4294901760, %v15756_v15  ;;  %v6579_v35 = vld [vmem:[#allocation11 + $0xb8] sm:$0xff]  ;;  %v15800_v15 = vand.u32 4294901760, %v13078_v51  ;;  %v13188_v37 = vand.u32 4294901760, %v6564_v39  ;;  %v13207_v27 = vsub.f32 %v6580_v20, %v13159_v26  ;;  %v6560_v26 = vld [vmem:[#allocation11 + $0x20] sm:$0xff] }
 0x348   :  { %8510 = vmatprep.subr.mxu0 %v15791_v5  ;;  %8553 = vmatprep.subr.mxu1 %v15793_v50  ;;  %v15801_v5 = vand.u32 4294901760, %v13081_v55  ;;  %v4404_v50 = vpop.f32.mrf.mxu1  ;;  %v15813_v3 = vand.u32 4294901760, %v12775_v36  ;;  %v15816_v20 = vld [vmem:[#allocation141_spill] sm:$0xff]  ;;  %v15818_v36 = vld [vmem:[#allocation130_spill] sm:$0xff] }
 0x349   :  { %8511 = vmatpush3.msra.mxu0 %v15794_v14  ;;  %8554 = vmatpush3.msra.mxu1 %v15797_v56  ;;  %v13181_v14 = vsub.f32 %v13078_v51, %v15800_v15  ;;  %15802 = vst [vmem:[#allocation21_spill] sm:$0xff] %v13188_v37  ;;  %v15804_v56 = vld [vmem:[#allocation118_spill] sm:$0xff]  ;;  %v13197_v15 = vsub.f32 %v6565_v52, %v13147_v32  ;;  %v6563_v51 = vld [vmem:[#allocation11 + $0x38] sm:$0xff]  ;;  %v6578_v52 = vld [vmem:[#allocation11 + $0xb0] sm:$0xff] }
 0x34a   :  { %8512 = vmatprep.subr.mxu0 %v15799_v22  ;;  %v13186_v0 = vsub.f32 %v13081_v55, %v15801_v5  ;;  %8555 = vmatprep.subr.mxu1 %v15803_v24  ;;  %v15805_v57 = vand.u32 4294901760, %v15804_v56  ;;  %v6533_v5 = vld [vmem:[%s14099_s6] sm:$0x7]  ;;  %v4264_v55 = vadd.f32 %v4263_v9, %v4061_v43  ;;  %v15806_v24 = vld [vmem:[#allocation126_spill] sm:$0xff]  ;;  %v13209_v22 = vand.u32 4294901760, %v6579_v35 }
 0x34b   :  { %8556 = vmatpush3.msra.mxu1 %v12786_v41  ;;  %v15807_v56 = vand.u32 4294901760, %v15806_v24  ;;  %v15811_v9 = vand.u32 4294901760, %v13112_v62  ;;  %v15812_v43 = vand.u32 4294901760, %v13115_v38  ;;  %v13253_v25 = vand.u32 4294901760, %v6578_v52 }
 0x34c   :  { %8513 = vmatpush3.msra.mxu0 %v15805_v57  ;;  %15808 = vst [vmem:[#allocation110_spill] sm:$0xff] %v13209_v22  ;;  %8557 = vmatprep.subr.mxu1 %v15809_v59  ;;  %v6562_v57 = vld [vmem:[#allocation11 + $0x30] sm:$0xff]  ;;  %v15820_v59 = vand.u32 4294901760, %v13145_v4 }
 0x34d   :  { %8514 = vmatprep.subr.mxu0 %v15807_v56  ;;  %v13217_v41 = vsub.f32 %v13112_v62, %v15811_v9  ;;  %v13222_v24 = vsub.f32 %v13115_v38, %v15812_v43  ;;  %8558 = vmatpush3.msra.mxu1 %v12802_v33  ;;  %v13232_v9 = vsub.f32 %v6564_v39, %v13188_v37  ;;  %v13234_v62 = vand.u32 4294901760, %v6563_v51  ;;  %v15815_v43 = vld [vmem:[#allocation73_spill] sm:$0xff]  ;;  %v13239_v56 = vpop.f32.mrf.mxu1  ;;  %v13241_v33 = vpop.f32.mrf.mxu0  ;;  %v6577_v37 = vld [vmem:[#allocation11 + $0xa8] sm:$0xff] }
 0x34e   :  { %8515 = vmatpush3.msra.mxu0 %v15810_v49  ;;  %8559 = vmatprep.subr.mxu1 %v15815_v43  ;;  %v15817_v38 = vand.u32 4294901760, %v15816_v20  ;;  %v13250_v39 = vsub.f32 %v13145_v4, %v15820_v59  ;;  %v4405_v20 = vadd.f32 %v4404_v50, %v4264_v55  ;;  %v13262_v7 = vand.u32 4294901760, %v6562_v57  ;;  %v15823_v59 = vld [vmem:[#allocation84_spill] sm:$0xff]  ;;  %v15824_v4 = vld [vmem:[#allocation66_spill] sm:$0xff] }
 0x34f   :  { %8516 = vmatprep.subr.mxu0 %v15813_v3  ;;  %15814 = vst [vmem:[#allocation22_spill] sm:$0xff] %v13232_v9  ;;  %v15819_v3 = vsub.s32 0, %v15818_v36  ;;  %8560 = vmatpush3.msra.mxu1 %v12823_v31  ;;  %v15825_v49 = vand.u32 4294901760, %v15824_v4  ;;  %v15826_v55 = vand.u32 4294901760, %v13169_v42  ;;  %v15828_v43 = vld [vmem:[#allocation74_spill] sm:$0xff]  ;;  %v15829_v4 = vand.u32 4294901760, %v12811_v47 }
 0x350   :  { %8517 = vmatpush3.msra.mxu0 %v15817_v38  ;;  %v15821_v38 = vand.u32 4294901760, %v12792_v21  ;;  %8561 = vmatprep.subr.mxu1 %v15823_v59  ;;  %v4669_v21 = vpop.f32.mrf.mxu0  ;;  %v15830_v59 = vsub.s32 1, %v15818_v36  ;;  %v15834_v47 = vand.u32 4294901760, %v13197_v15  ;;  %v4262_v36 = vadd.f32 %v13106_v11, %v13090_v18 }
 0x351   :  { %v13245_v8 = vrot.slane %v6533_v5, %v15819_v3  ;;  %v13260_v3 = vsub.f32 %v6579_v35, %v13209_v22  ;;  %v13272_v50 = vsub.f32 %v13169_v42, %v15826_v55  ;;  %v15827_v35 = vand.u32 4294901760, %v13172_v19  ;;  %8562 = vmatpush3.msra.mxu1 %v15828_v43  ;;  %v6561_v55 = vld [vmem:[#allocation11 + $0x28] sm:$0xff]  ;;  %v15832_v42 = vld [vmem:[#allocation26_spill] sm:$0xff] }
 0x352   :  { %8518 = vmatprep.subr.mxu0 %v15821_v38  ;;  %v6542_v31 = vrot.slane %v6533_v5, %v15830_v59  ;;  %v13286_v22 = vsub.f32 %v6563_v51, %v13234_v62  ;;  %6528 = vmatmul.mubr.f32.vlgmr.msra.gmra.mxu1 %v15832_v42  ;;  %v13298_v5 = vsub.f32 %v6578_v52, %v13253_v25  ;;  %v6576_v51 = vld [vmem:[#allocation11 + $0xa0] sm:$0xff] }
 0x353   :  { %15822 = vst [vmem:[#allocation114_spill] sm:$0xff] %v13260_v3  ;;  %8519 = vmatpush3.msra.mxu0 %v15825_v49  ;;  %v13277_v38 = vsub.f32 %v13172_v19, %v15827_v35  ;;  %v4670_v49 = vadd.f32 %v4669_v21, %v4405_v20  ;;  %v15833_v35 = vand.u32 4294901760, %v13098_v29  ;;  %v4806_v19 = vpop.f32.mrf.mxu1  ;;  %v13295_v20 = vsub.f32 %v13197_v15, %v15834_v47 }
 0x354   :  { %8520 = vmatprep.subr.mxu0 %v15829_v4  ;;  %15831 = vst [vmem:[#allocation25_spill] sm:$0xff] %v13286_v22  ;;  %15835 = vst [vmem:[#allocation119_spill] sm:$0xff] %v13298_v5  ;;  %v13300_v21 = vand.u32 4294901760, %v6577_v37  ;;  %v15836_v4 = vand.u32 4294901760, %v12821_v16  ;;  %v15837_v29 = vand.u32 4294901760, %v13103_v6  ;;  %v14683_v47 = vand.u32 4294901760, %v13260_v3 }
 0x355   :  { %8601 = vmatprep.subr.mxu1 %v15833_v35  ;;  %v4807_v59 = vadd.f32 %v4806_v19, %v4670_v49  ;;  %v15838_v35 = vand.u32 4294901760, %v13207_v27  ;;  %v13313_v52 = vsub.f32 %v6562_v57, %v13262_v7  ;;  %v15839_v16 = vand.u32 4294901760, %v12831_v53 }
 0x356   :  { %8521 = vmatpush3.msra.mxu0 %v15836_v4  ;;  %8602 = vmatpush3.msra.mxu1 %v15837_v29  ;;  %v15840_v6 = vand.u32 4294901760, %v13127_v48  ;;  %v13323_v4 = vand.u32 4294901760, %v6561_v55  ;;  %v6575_v29 = vld [vmem:[#allocation11 + $0x98] sm:$0xff]  ;;  %v15841_v57 = vand.u32 4294901760, %v12841_v34  ;;  %v15843_v53 = vand.u32 4294901760, %v13232_v9 }
 0x357   :  { %v13309_v43 = vsub.f32 %v13207_v27, %v15838_v35  ;;  %8522 = vmatprep.subr.mxu0 %v15839_v16  ;;  %v15842_v35 = vand.u32 4294901760, %v13137_v46  ;;  %v13329_v18 = vadd.f32 %v6542_v31, %v4807_v59  ;;  %v13337_v16 = vand.u32 4294901760, %v6576_v51  ;;  %v15849_v46 = vld [vmem:[#allocation97_spill] sm:$0xff] }
 0x358   :  { %8603 = vmatprep.subr.mxu1 %v15840_v6  ;;  %8523 = vmatpush3.msra.mxu0 %v15841_v57  ;;  %v13334_v11 = vsub.f32 %v13232_v9, %v15843_v53  ;;  %v6559_v6 = vld [vmem:[#allocation11 + $0x18] sm:$0xff]  ;;  %v15844_v49 = vand.u32 4294901760, %v12851_v17  ;;  %v15845_v34 = vand.u32 4294901760, %v13142_v58  ;;  %v13346_v59 = vsub.f32 %v6577_v37, %v13300_v21 }
 0x359   :  { %8604 = vmatpush3.msra.mxu1 %v15842_v35  ;;  %v13348_v57 = vand.u32 4294901760, %v6560_v26  ;;  %v6574_v35 = vld [vmem:[#allocation11 + $0x90] sm:$0xff]  ;;  %v15846_v53 = vld [vmem:[#allocation89_spill] sm:$0xff]  ;;  %v15848_v48 = vand.u32 4294901760, %v13157_v60  ;;  %v6889_v17 = vand.u32 4294901760, %v13309_v43  ;;  %v13358_v58 = vsub.f32 %v13260_v3, %v14683_v47  ;;  %v6573_v47 = vld [vmem:[#allocation11 + $0x88] sm:$0xff] }
 0x35a   :  { %8524 = vmatprep.subr.mxu0 %v15844_v49  ;;  %8605 = vmatprep.subr.mxu1 %v15845_v34  ;;  %v15847_v19 = vand.u32 4294901760, %v15846_v53  ;;  %v13361_v37 = vand.u32 4294901760, %v6575_v29  ;;  %v6558_v34 = vld [vmem:[#allocation11 + $0x10] sm:$0xff]  ;;  %v15850_v31 = vand.u32 4294901760, %v15849_v46  ;;  %v4403_v60 = vadd.f32 %v13161_v61, %v4262_v36 }
 0x35b   :  { %8606 = vmatpush3.msra.mxu1 %v15848_v48  ;;  %v6554_v43 = vmax.f32 %v13329_v18, 0.0  ;;  %v13370_v48 = vsub.f32 %v6561_v55, %v13323_v4  ;;  %v13372_v53 = vand.u32 4294901760, %v6559_v6  ;;  %v15852_v49 = vld [vmem:[#allocation80_spill] sm:$0xff]  ;;  %v15854_v9 = vand.u32 4294901760, %v13186_v0 }
 0x35c   :  { %8525 = vmatpush3.msra.mxu0 %v15847_v19  ;;  %v15851_v19 = vand.u32 4294901760, %v13181_v14  ;;  %v15853_v3 = vand.u32 4294901760, %v15852_v49  ;;  %v6777_v46 = vand.u32 4294901760, %v13334_v11  ;;  %v15855_v14 = vand.u32 4294901760, %v13286_v22 }
 0x35d   :  { %8526 = vmatprep.subr.mxu0 %v15850_v31  ;;  %v13385_v36 = vsub.f32 %v6576_v51, %v13337_v16  ;;  %v13387_v55 = vand.u32 4294901760, %v6574_v35  ;;  %v4668_v18 = vadd.f32 %v13241_v33, %v4403_v60  ;;  %v15856_v0 = vand.u32 4294901760, %v13298_v5  ;;  %v6557_v51 = vld [vmem:[#allocation11 + $0x8] sm:$0xff]  ;;  %v6572_v60 = vld [vmem:[#allocation11 + $0x80] sm:$0xff] }
 0x35e   :  { %8607 = vmatprep.subr.mxu1 %v15851_v19  ;;  %8527 = vmatpush3.msra.mxu0 %v15853_v3  ;;  %v13382_v61 = vsub.f32 %v13286_v22, %v15855_v14  ;;  %v13398_v3 = vsub.f32 %v6560_v26, %v13348_v57  ;;  %v13400_v11 = vand.u32 4294901760, %v6558_v34  ;;  %v15858_v31 = vand.u32 4294901760, %v13217_v41 }
 0x35f   :  { %8608 = vmatpush3.msra.mxu1 %v15854_v9  ;;  %6424 = vmatmul.mubr.f32.vlgmr.msra.gmra.mxu0 %v15832_v42  ;;  %v13395_v9 = vsub.f32 %v13298_v5, %v15856_v0  ;;  %v6896_v42 = vand.u32 4294901760, %v13358_v58  ;;  %v13408_v49 = vsub.f32 %v6575_v29, %v13361_v37  ;;  %v13410_v19 = vand.u32 4294901760, %v6573_v47  ;;  %v6556_v29 = vld [vmem:[#allocation11] sm:$0xff] }
 0x360   :  { %8566 = vmatprep.subr.mxu0 %v13007_v23  ;;  %15857 = vst [vmem:[#allocation37_spill] sm:$0xff] %v13398_v3  ;;  %8609 = vmatprep.subr.mxu1 %v15858_v31  ;;  %v15861_v26 = vand.u32 4294901760, %v13222_v24  ;;  %v13414_v14 = vand.u32 4294901760, %v6554_v43  ;;  %v15862_v41 = vand.u32 4294901760, %v13313_v52  ;;  %v14692_v58 = vand.u32 4294901760, %v13370_v48 }
 0x361   :  { %8567 = vmatpush3.msra.mxu0 %v13009_v12  ;;  %15859 = vst [vmem:[#allocation20_spill] sm:$0xff] %v13408_v49  ;;  %15860 = vst [vmem:[#allocation38_spill] sm:$0xff] %v13410_v19  ;;  %v13422_v31 = vsub.f32 %v6559_v6, %v13372_v53  ;;  %v15864_v33 = vand.u32 4294901760, %v13250_v39  ;;  %v6784_v24 = vand.u32 4294901760, %v13382_v61  ;;  %v13430_v5 = vsub.f32 %v6574_v35, %v13387_v55 }
 0x362   :  { %8610 = vmatpush3.msra.mxu1 %v15861_v26  ;;  %8568 = vmatprep.subr.mxu0 %v13016_v44  ;;  %v6790_v0 = vsub.f32 %v13313_v52, %v15862_v41  ;;  %v13432_v22 = vand.u32 4294901760, %v6557_v51  ;;  %v4805_v41 = vadd.f32 %v13239_v56, %v4668_v18  ;;  %v15865_v6 = vand.u32 4294901760, %v13272_v50 }
 0x363   :  { %15863 = vst [vmem:[#allocation30_spill] sm:$0xff] %v13422_v31  ;;  %8611 = vmatprep.subr.mxu1 %v15864_v33  ;;  %8569 = vmatpush3.msra.mxu0 %v13021_v45  ;;  %v13440_v33 = vsub.f32 %v6558_v34, %v13400_v11  ;;  %v13442_v61 = vand.u32 4294901760, %v6572_v60  ;;  %v15867_v26 = vand.u32 4294901760, %v13277_v38  ;;  %v15868_v35 = vand.u32 4294901760, %v13346_v59 }
 0x364   :  { %8612 = vmatpush3.msra.mxu1 %v15865_v6  ;;  %8570 = vmatprep.subr.mxu0 %v13023_v1  ;;  %v13452_v18 = vsub.f32 %v6573_v47, %v13410_v19  ;;  %v13454_v6 = vand.u32 4294901760, %v6556_v29  ;;  %v13457_v34 = vsub.f32 %v6554_v43, %v13414_v14  ;;  %v15870_v39 = vand.u32 4294901760, %v13295_v20 }
 0x365   :  { %15866 = vst [vmem:[#allocation40_spill] sm:$0xff] %v13440_v33  ;;  %8613 = vmatprep.subr.mxu1 %v15867_v26  ;;  %8571 = vmatpush3.msra.mxu0 %v13034_v30  ;;  %v6909_v56 = vsub.f32 %v13346_v59, %v15868_v35  ;;  %v6903_v38 = vand.u32 4294901760, %v13395_v9  ;;  %v6797_v26 = vsub.f32 %v13370_v48, %v14692_v58  ;;  %v6791_v47 = vand.u32 4294901760, %v6790_v0 }
 0x366   :  { %15869 = vst [vmem:[#allocation32_spill] sm:$0xff] %v13452_v18  ;;  %8614 = vmatpush3.msra.mxu1 %v15870_v39  ;;  %8572 = vmatprep.subr.mxu0 %v13045_v2  ;;  %v15871_v43 = vand.u32 4294901760, %v13385_v36  ;;  %v14695_v20 = vand.u32 4294901760, %v13430_v5  ;;  %v13473_v39 = vsub.f32 %v6557_v51, %v13432_v22  ;;  %v6550_v9 = vadd.f32 %v13245_v8, %v4805_v41 }
 0x367   :  { %8615 = vmatprep.subr.mxu1 %v6889_v17  ;;  %8573 = vmatpush3.msra.mxu0 %v13047_v40  ;;  %v15872_v58 = vand.u32 4294901760, %v13398_v3  ;;  %v13482_v35 = vsub.f32 %v6572_v60, %v13442_v61  ;;  %v15873_v51 = vand.u32 4294901760, %v13408_v49  ;;  %v13490_v41 = vsub.f32 %v6556_v29, %v13454_v6  ;;  %v15877_v29 = vld [vmem:[#allocation102_spill] sm:$0xff] }
 0x368   :  { %v6916_v50 = vsub.f32 %v13385_v36, %v15871_v43  ;;  %8616 = vmatpush3.msra.mxu1 %v6777_v46  ;;  %8574 = vmatprep.subr.mxu0 %v13069_v54  ;;  %v6910_v43 = vand.u32 4294901760, %v6909_v56  ;;  %v15874_v60 = vand.u32 4294901760, %v13422_v31  ;;  %v6709_v0 = vand.u32 4294901760, %v13457_v34 }
 0x369   :  { %v6804_v17 = vsub.f32 %v13398_v3, %v15872_v58  ;;  %8617 = vmatprep.subr.mxu1 %v6896_v42  ;;  %8575 = vmatpush3.msra.mxu0 %v13071_v13  ;;  %v6923_v8 = vsub.f32 %v13408_v49, %v15873_v51  ;;  %v6798_v58 = vand.u32 4294901760, %v6797_v26  ;;  %v6930_v51 = vsub.f32 %v13430_v5, %v14695_v20 }
 0x36a   :  { %8618 = vmatpush3.msra.mxu1 %v6784_v24  ;;  %8576 = vmatprep.subr.mxu0 %v13088_v10  ;;  %v6811_v42 = vsub.f32 %v13422_v31, %v15874_v60  ;;  %v6917_v56 = vand.u32 4294901760, %v6916_v50  ;;  %v6553_v24 = vmax.f32 %v6550_v9, 0.0  ;;  %v15875_v46 = vand.u32 4294901760, %v13440_v33  ;;  %v15882_v9 = vld [vmem:[#allocation110_spill] sm:$0xff] }
 0x36b   :  { %8619 = vmatprep.subr.mxu1 %v6903_v38  ;;  %8577 = vmatpush3.msra.mxu0 %v13117_v28  ;;  %v6805_v26 = vand.u32 4294901760, %v6804_v17  ;;  %v6924_v50 = vand.u32 4294901760, %v6923_v8  ;;  %v15876_v31 = vand.u32 4294901760, %v13452_v18  ;;  %v6710_v17 = vsub.f32 %v13457_v34, %v6709_v0 }
 0x36c   :  { %8620 = vmatpush3.msra.mxu1 %v6791_v47  ;;  %8578 = vmatprep.subr.mxu0 %v13119_v63  ;;  %v6818_v60 = vsub.f32 %v13440_v33, %v15875_v46  ;;  %v6812_v47 = vand.u32 4294901760, %v6811_v42  ;;  %v6931_v46 = vand.u32 4294901760, %v6930_v51  ;;  %v13518_v38 = vand.u32 4294901760, %v6553_v24  ;;  %v15880_v33 = vld [vmem:[#allocation21_spill] sm:$0xff] }
 0x36d   :  { %8621 = vmatprep.subr.mxu1 %v6910_v43  ;;  %8579 = vmatpush3.msra.mxu0 %v13147_v32  ;;  %v6937_v20 = vsub.f32 %v13452_v18, %v15876_v31  ;;  %v15878_v43 = vand.u32 4294901760, %v13473_v39 }
 0x36e   :  { %8622 = vmatpush3.msra.mxu1 %v6798_v58  ;;  %6948 = vmatprep.mubr.f32.mxu1 %v13414_v14  ;;  %15879 = vst [vmem:[#allocation44_spill] sm:$0xff] %v13518_v38  ;;  %v6819_v31 = vand.u32 4294901760, %v6818_v60  ;;  %v15881_v58 = vand.u32 4294901760, %v13482_v35  ;;  %v13531_v60 = vsub.f32 %v6553_v24, %v13518_v38 }
 0x36f   :  { %8580 = vmatprep.subr.mxu0 %v15877_v29  ;;  %8623 = vmatprep.subr.mxu1 %v6917_v56  ;;  %v6825_v8 = vsub.f32 %v13473_v39, %v15878_v43  ;;  %v6938_v18 = vand.u32 4294901760, %v6937_v20  ;;  %v15883_v56 = vand.u32 4294901760, %v13490_v41  ;;  %v6711_v43 = vand.u32 4294901760, %v6710_v17  ;;  %v15885_v17 = vld [vmem:[#allocation82_spill] sm:$0xff] }
 0x370   :  { %8581 = vmatpush3.msra.mxu0 %v15880_v33  ;;  %8624 = vmatpush3.msra.mxu1 %v6805_v26  ;;  %v6944_v42 = vsub.f32 %v13482_v35, %v15881_v58  ;;  %v14700_v24 = vand.u32 4294901760, %v13531_v60  ;;  %v15889_v58 = vld [vmem:[#allocation93_spill] sm:$0xff] }
 0x371   :  { %8582 = vmatprep.subr.mxu0 %v15882_v9  ;;  %8625 = vmatprep.subr.mxu1 %v6924_v50  ;;  %v6832_v51 = vsub.f32 %v13490_v41, %v15883_v56  ;;  %v6826_v26 = vand.u32 4294901760, %v6825_v8  ;;  %v15887_v8 = vld [vmem:[#allocation87_spill] sm:$0xff]  ;;  %v15892_v56 = vld [vmem:[#allocation120_spill] sm:$0xff] }
 0x372   :  { %8583 = vmatpush3.msra.mxu0 %v13234_v62  ;;  %8626 = vmatpush3.msra.mxu1 %v6812_v47  ;;  %v6945_v50 = vand.u32 4294901760, %v6944_v42  ;;  %v15884_v47 = vld [vmem:[#allocation101_spill] sm:$0xff]  ;;  %v15890_v42 = vld [vmem:[#allocation19_spill] sm:$0xff] }
 0x373   :  { %8584 = vmatprep.subr.mxu0 %v13253_v25  ;;  %8627 = vmatprep.subr.mxu1 %v6931_v46  ;;  %v6833_v20 = vand.u32 4294901760, %v6832_v51  ;;  %v15886_v46 = vld [vmem:[#allocation104_spill] sm:$0xff]  ;;  %v15893_v51 = vld [vmem:[#allocation99_spill] sm:$0xff] }
 0x374   :  { %8585 = vmatpush3.msra.mxu0 %v13262_v7  ;;  %8628 = vmatpush3.msra.mxu1 %v6819_v31  ;;  %v15888_v31 = vld [vmem:[#allocation56_spill] sm:$0xff] }
 0x375   :  { %8586 = vmatprep.subr.mxu0 %v13300_v21  ;;  %8629 = vmatprep.subr.mxu1 %v6938_v18  ;;  %v6716_v18 = vsub.f32 %v13531_v60, %v14700_v24  ;;  %v15900_v24 = vld [vmem:[#allocation119_spill] sm:$0xff] }
 0x376   :  { %8587 = vmatpush3.msra.mxu0 %v13323_v4  ;;  %6712 = vmatprep.mubr.f32.mxu0 %v6711_v43  ;;  %v15894_v43 = vld [vmem:[#allocation122_spill] sm:$0xff] }
 0x377   :  { %8630 = vmatpush3.msra.mxu1 %v6826_v26  ;;  %8588 = vmatprep.subr.mxu0 %v13337_v16  ;;  %v15895_v26 = vld [vmem:[#allocation124_spill] sm:$0xff] }
 0x378   :  { %8631 = vmatprep.subr.mxu1 %v6945_v50  ;;  %8589 = vmatpush3.msra.mxu0 %v13348_v57  ;;  %v15896_v50 = vld [vmem:[#allocation108_spill] sm:$0xff] }
 0x379   :  { %8632 = vmatpush3.msra.mxu1 %v6833_v20  ;;  %8590 = vmatprep.subr.mxu0 %v13361_v37  ;;  %v15897_v20 = vld [vmem:[#allocation22_spill] sm:$0xff] }
 0x37a   :  { %6950 = vmatmul.mubr.f32.vlgmr.msra.gmra.mxu1 %v13518_v38  ;;  %8671 = vmatprep.subr.mxu1 %v13007_v23  ;;  %v15901_v38 = vand.u32 4294901760, %v13531_v60 }
 0x37b   :  { %8591 = vmatpush3.msra.mxu0 %v13372_v53  ;;  %8672 = vmatpush3.msra.mxu1 %v13009_v12 }
 0x37c   :  { %7192 = vmatprep.mubr.f32.mxu1 %v6709_v0  ;;  %8592 = vmatprep.subr.mxu0 %v13387_v55  ;;  %v6717_v0 = vand.u32 4294901760, %v6716_v18  ;;  %v15898_v18 = vld [vmem:[#allocation114_spill] sm:$0xff] }
 0x37d   :  { %8673 = vmatprep.subr.mxu1 %v13016_v44  ;;  %8593 = vmatpush3.msra.mxu0 %v13400_v11 }
 0x37e   :  { %8674 = vmatpush3.msra.mxu1 %v13021_v45  ;;  %8594 = vmatprep.subr.mxu0 %v13410_v19 }
 0x37f   :  { %8675 = vmatprep.subr.mxu1 %v13023_v1  ;;  %8595 = vmatpush3.msra.mxu0 %v13432_v22 }
 0x380   :  { %8676 = vmatpush3.msra.mxu1 %v13034_v30  ;;  %8596 = vmatprep.subr.mxu0 %v13442_v61 }
 0x381   :  { %8677 = vmatprep.subr.mxu1 %v13045_v2  ;;  %8597 = vmatpush3.msra.mxu0 %v13454_v6 }
 0x382   :  { %8678 = vmatpush3.msra.mxu1 %v13047_v40  ;;  %6718 = vmatmul.mubr.f32.vlgmr.msra.gmra.mxu0 %v6717_v0  ;;  %v15899_v0 = vld [vmem:[#allocation25_spill] sm:$0xff] }
 0x383   :  { %8636 = vmatprep.subr.mxu0 %v15884_v47  ;;  %8679 = vmatprep.subr.mxu1 %v13069_v54 }
 0x384   :  { %8637 = vmatpush3.msra.mxu0 %v15885_v17  ;;  %7085 = vmatprep.mubr.f32.mxu0 %v13457_v34  ;;  %v15891_v34 = vld [vmem:[#allocation95_spill] sm:$0xff] }
 0x385   :  { %8680 = vmatpush3.msra.mxu1 %v13071_v13  ;;  %8638 = vmatprep.subr.mxu0 %v15886_v46 }
 0x386   :  { %8681 = vmatprep.subr.mxu1 %v13088_v10  ;;  %8639 = vmatpush3.msra.mxu0 %v15887_v8 }
 0x387   :  { %8682 = vmatpush3.msra.mxu1 %v13117_v28  ;;  %8640 = vmatprep.subr.mxu0 %v15888_v31 }
 0x388   :  { %8683 = vmatprep.subr.mxu1 %v13119_v63  ;;  %8641 = vmatpush3.msra.mxu0 %v15889_v58 }
 0x389   :  { %8684 = vmatpush3.msra.mxu1 %v13147_v32  ;;  %8642 = vmatprep.subr.mxu0 %v15890_v42 }
 0x38a   :  { %8685 = vmatprep.subr.mxu1 %v15877_v29  ;;  %8643 = vmatpush3.msra.mxu0 %v15891_v34 }
 0x38b   :  { %8686 = vmatpush3.msra.mxu1 %v15880_v33  ;;  %8644 = vmatprep.subr.mxu0 %v15892_v56 }
 0x38c   :  { %8687 = vmatprep.subr.mxu1 %v15882_v9  ;;  %8645 = vmatpush3.msra.mxu0 %v15893_v51 }
 0x38d   :  { %8688 = vmatpush3.msra.mxu1 %v13234_v62  ;;  %8646 = vmatprep.subr.mxu0 %v15894_v43 }
 0x38e   :  { %8689 = vmatprep.subr.mxu1 %v13253_v25  ;;  %8647 = vmatpush3.msra.mxu0 %v15895_v26 }
 0x38f   :  { %8690 = vmatpush3.msra.mxu1 %v13262_v7  ;;  %8648 = vmatprep.subr.mxu0 %v15896_v50 }
 0x390   :  { %8691 = vmatprep.subr.mxu1 %v13300_v21  ;;  %8649 = vmatpush3.msra.mxu0 %v13197_v15 }
 0x391   :  { %8692 = vmatpush3.msra.mxu1 %v13323_v4  ;;  %8650 = vmatprep.subr.mxu0 %v13207_v27 }
 0x392   :  { %8693 = vmatprep.subr.mxu1 %v13337_v16  ;;  %8651 = vmatpush3.msra.mxu0 %v15897_v20 }
 0x393   :  { %8694 = vmatpush3.msra.mxu1 %v13348_v57  ;;  %8652 = vmatprep.subr.mxu0 %v15898_v18 }
 0x394   :  { %8695 = vmatprep.subr.mxu1 %v13361_v37  ;;  %8653 = vmatpush3.msra.mxu0 %v15899_v0 }
 0x395   :  { %8696 = vmatpush3.msra.mxu1 %v13372_v53  ;;  %8654 = vmatprep.subr.mxu0 %v15900_v24 }
 0x396   :  { %8697 = vmatprep.subr.mxu1 %v13387_v55  ;;  %8655 = vmatpush3.msra.mxu0 %v13313_v52 }
 0x397   :  { %8698 = vmatpush3.msra.mxu1 %v13400_v11  ;;  %8656 = vmatprep.subr.mxu0 %v13346_v59 }
 0x398   :  { %8699 = vmatprep.subr.mxu1 %v13410_v19  ;;  %8657 = vmatpush3.msra.mxu0 %v13370_v48  ;;  %v15902_v19 = vld [vmem:[#allocation30_spill] sm:$0xff] }
 0x399   :  { %8700 = vmatpush3.msra.mxu1 %v13432_v22  ;;  %8658 = vmatprep.subr.mxu0 %v13385_v36 }
 0x39a   :  { %8701 = vmatprep.subr.mxu1 %v13442_v61  ;;  %8659 = vmatpush3.msra.mxu0 %v13398_v3  ;;  %v15903_v3 = vld [vmem:[#allocation40_spill] sm:$0xff] }
 0x39b   :  { %8702 = vmatpush3.msra.mxu1 %v13454_v6  ;;  %8660 = vmatprep.subr.mxu0 %v13408_v49  ;;  %v15904_v49 = vld [vmem:[#allocation32_spill] sm:$0xff] }
 0x39c   :  { %7196 = vmatmul.mubr.f32.vlgmr.msra.gmra.mxu1 %v15901_v38  ;;  %8741 = vmatprep.subr.mxu1 %v13007_v23  ;;  %v15905_v23 = vand.u32 4294901760, %v15884_v47  ;;  %v6600_v38 = vld [vmem:[#allocation11 + $0x160] sm:$0xff]  ;;  %v15917_v47 = vand.u32 4294901760, %v15896_v50 }
 0x39d   :  { %8661 = vmatpush3.msra.mxu0 %v15902_v19  ;;  %8742 = vmatpush3.msra.mxu1 %v13009_v12  ;;  %v15906_v12 = vand.u32 4294901760, %v15885_v17  ;;  %v15918_v17 = vand.u32 4294901760, %v13197_v15 }
 0x39e   :  { %7466 = vmatprep.mubr.f32.mxu1 %v13414_v14  ;;  %8662 = vmatprep.subr.mxu0 %v13430_v5 }
 0x39f   :  { %8743 = vmatprep.subr.mxu1 %v13016_v44  ;;  %8663 = vmatpush3.msra.mxu0 %v15903_v3  ;;  %v15907_v44 = vand.u32 4294901760, %v15886_v46  ;;  %v13682_v46 = vand.u32 4294901760, %v6600_v38 }
 0x3a0   :  { %8744 = vmatpush3.msra.mxu1 %v13021_v45  ;;  %8664 = vmatprep.subr.mxu0 %v15904_v49  ;;  %v15908_v45 = vand.u32 4294901760, %v15887_v8  ;;  %v15919_v8 = vand.u32 4294901760, %v13207_v27  ;;  %v15922_v27 = vand.u32 4294901760, %v15899_v0 }
 0x3a1   :  { %8745 = vmatprep.subr.mxu1 %v13023_v1  ;;  %8665 = vmatpush3.msra.mxu0 %v13473_v39  ;;  %v15909_v1 = vand.u32 4294901760, %v15888_v31  ;;  %v15920_v31 = vand.u32 4294901760, %v15897_v20 }
 0x3a2   :  { %8746 = vmatpush3.msra.mxu1 %v13034_v30  ;;  %8666 = vmatprep.subr.mxu0 %v13482_v35  ;;  %v6603_v30 = vld [vmem:[#allocation11 + $0x178] sm:$0xff] }
 0x3a3   :  { %8747 = vmatprep.subr.mxu1 %v13045_v2  ;;  %8667 = vmatpush3.msra.mxu0 %v13490_v41  ;;  %v15910_v2 = vand.u32 4294901760, %v15889_v58 }
 0x3a4   :  { %8748 = vmatpush3.msra.mxu1 %v13047_v40  ;;  %7088 = vmatmul.mubr.f32.vlgmr.msra.gmra.mxu0 %v13531_v60  ;;  %v15911_v40 = vand.u32 4294901760, %v15890_v42  ;;  %v6597_v42 = vld [vmem:[#allocation11 + $0x148] sm:$0xff] }
 0x3a5   :  { %8706 = vmatprep.subr.mxu0 %v15905_v23  ;;  %8749 = vmatprep.subr.mxu1 %v13069_v54  ;;  %v6602_v54 = vld [vmem:[#allocation11 + $0x170] sm:$0xff] }
 0x3a6   :  { %8707 = vmatpush3.msra.mxu0 %v15906_v12  ;;  %7362 = vmatprep.mubr.f32.mxu0 %v13414_v14  ;;  %v13660_v14 = vand.u32 4294901760, %v6602_v54 }
 0x3a7   :  { %8750 = vmatpush3.msra.mxu1 %v13071_v13  ;;  %8708 = vmatprep.subr.mxu0 %v15907_v44  ;;  %v15912_v13 = vand.u32 4294901760, %v15891_v34  ;;  %v13704_v34 = vsub.f32 %v6600_v38, %v13682_v46  ;;  %v6594_v44 = vld [vmem:[#allocation11 + $0x130] sm:$0xff]  ;;  %v15935_v38 = vand.u32 4294901760, %v13430_v5  ;;  %v15938_v5 = vand.u32 4294901760, %v15904_v49 }
 0x3a8   :  { %8751 = vmatprep.subr.mxu1 %v13088_v10  ;;  %8709 = vmatpush3.msra.mxu0 %v15908_v45  ;;  %v13652_v10 = vand.u32 4294901760, %v6603_v30  ;;  %v15940_v49 = vand.u32 4294901760, %v13482_v35 }
 0x3a9   :  { %8752 = vmatpush3.msra.mxu1 %v13117_v28  ;;  %8710 = vmatprep.subr.mxu0 %v15909_v1  ;;  %v15913_v28 = vand.u32 4294901760, %v15892_v56  ;;  %v7588_v23 = vand.u32 4294901760, %v13704_v34 }
 0x3aa   :  { %8753 = vmatprep.subr.mxu1 %v13119_v63  ;;  %8711 = vmatpush3.msra.mxu0 %v15910_v2  ;;  %v6601_v63 = vld [vmem:[#allocation11 + $0x168] sm:$0xff]  ;;  %v13669_v60 = vsub.f32 %v6603_v30, %v13652_v10 }
 0x3ab   :  { %8754 = vmatpush3.msra.mxu1 %v13147_v32  ;;  %8712 = vmatprep.subr.mxu0 %v15911_v40  ;;  %v15914_v32 = vand.u32 4294901760, %v15893_v51  ;;  %v6596_v51 = vld [vmem:[#allocation11 + $0x140] sm:$0xff] }
 0x3ac   :  { %8755 = vmatprep.subr.mxu1 %v15877_v29  ;;  %8713 = vmatpush3.msra.mxu0 %v15912_v13  ;;  %v15915_v29 = vand.u32 4294901760, %v15894_v43  ;;  %v13711_v43 = vand.u32 4294901760, %v6597_v42  ;;  %v15933_v13 = vld [vmem:[#allocation44_spill] sm:$0xff] }
 0x3ad   :  { %8756 = vmatpush3.msra.mxu1 %v15880_v33  ;;  %8714 = vmatprep.subr.mxu0 %v15913_v28  ;;  %v15916_v33 = vand.u32 4294901760, %v15895_v26  ;;  %v15934_v28 = vand.u32 4294901760, %v15902_v19  ;;  %v15937_v19 = vand.u32 4294901760, %v15903_v3  ;;  %v6591_v3 = vld [vmem:[#allocation11 + $0x118] sm:$0xff] }
 0x3ae   :  { %8757 = vmatprep.subr.mxu1 %v15882_v9  ;;  %8715 = vmatpush3.msra.mxu0 %v15914_v32  ;;  %v13671_v9 = vand.u32 4294901760, %v6601_v63  ;;  %v7589_v32 = vsub.f32 %v13704_v34, %v7588_v23 }
 0x3af   :  { %8758 = vmatpush3.msra.mxu1 %v13234_v62  ;;  %8716 = vmatprep.subr.mxu0 %v15915_v29  ;;  %v6599_v62 = vld [vmem:[#allocation11 + $0x158] sm:$0xff] }
 0x3b0   :  { %8759 = vmatprep.subr.mxu1 %v13253_v25  ;;  %8717 = vmatpush3.msra.mxu0 %v15916_v33  ;;  %v13680_v25 = vsub.f32 %v6602_v54, %v13660_v14  ;;  %v13692_v15 = vsub.f32 %v6601_v63, %v13671_v9  ;;  %v13694_v58 = vand.u32 4294901760, %v6599_v62  ;;  %v15936_v33 = vmov 0.0  }
 0x3b1   :  { %8760 = vmatpush3.msra.mxu1 %v13262_v7  ;;  %8718 = vmatprep.subr.mxu0 %v15917_v47  ;;  %v6598_v7 = vld [vmem:[#allocation11 + $0x150] sm:$0xff] }
 0x3b2   :  { %8761 = vmatprep.subr.mxu1 %v13300_v21  ;;  %8719 = vmatpush3.msra.mxu0 %v15918_v17  ;;  %v7567_v21 = vand.u32 4294901760, %v13669_v60  ;;  %v13706_v56 = vand.u32 4294901760, %v6598_v7  ;;  %v7581_v50 = vand.u32 4294901760, %v13692_v15  ;;  %v13721_v20 = vsub.f32 %v6599_v62, %v13694_v58  ;;  %v6592_v62 = vld [vmem:[#allocation11 + $0x120] sm:$0xff] }
 0x3b3   :  { %8762 = vmatpush3.msra.mxu1 %v13323_v4  ;;  %8720 = vmatprep.subr.mxu0 %v15919_v8  ;;  %v15921_v4 = vand.u32 4294901760, %v15898_v18  ;;  %v15926_v18 = vld [vmem:[#allocation38_spill] sm:$0xff] }
 0x3b4   :  { %8763 = vmatprep.subr.mxu1 %v13337_v16  ;;  %8721 = vmatpush3.msra.mxu0 %v15920_v31  ;;  %v7574_v16 = vand.u32 4294901760, %v13680_v25  ;;  %v7568_v26 = vsub.f32 %v13669_v60, %v7567_v21  ;;  %v13736_v12 = vsub.f32 %v6598_v7, %v13706_v56  ;;  %v7582_v30 = vsub.f32 %v13692_v15, %v7581_v50 }
 0x3b5   :  { %8764 = vmatpush3.msra.mxu1 %v13348_v57  ;;  %8722 = vmatprep.subr.mxu0 %v15921_v4  ;;  %v15923_v57 = vand.u32 4294901760, %v15900_v24  ;;  %v13726_v24 = vand.u32 4294901760, %v6596_v51  ;;  %v14717_v2 = vand.u32 4294901760, %v13721_v20  ;;  %v15939_v4 = vand.u32 4294901760, %v13473_v39 }
 0x3b6   :  { %8765 = vmatprep.subr.mxu1 %v13361_v37  ;;  %8723 = vmatpush3.msra.mxu0 %v15922_v27  ;;  %v15924_v37 = vand.u32 4294901760, %v13313_v52  ;;  %v15927_v52 = vand.u32 4294901760, %v13370_v48  ;;  %v7575_v0 = vsub.f32 %v13680_v25, %v7574_v16  ;;  %v15929_v48 = vld [vmem:[#allocation37_spill] sm:$0xff]  ;;  %v7569_v1 = vand.u32 4294901760, %v7568_v26  ;;  %v6590_v26 = vld [vmem:[#allocation11 + $0x110] sm:$0xff] }
 0x3b7   :  { %8766 = vmatpush3.msra.mxu1 %v13372_v53  ;;  %8724 = vmatprep.subr.mxu0 %v15923_v57  ;;  %v15925_v53 = vand.u32 4294901760, %v13346_v59  ;;  %v15928_v59 = vand.u32 4294901760, %v13385_v36  ;;  %v15930_v45 = vand.u32 4294901760, %v15929_v48  ;;  %v15931_v36 = vld [vmem:[#allocation20_spill] sm:$0xff]  ;;  %v13757_v54 = vsub.f32 %v6596_v51, %v13726_v24 }
 0x3b8   :  { %8767 = vmatprep.subr.mxu1 %v13387_v55  ;;  %8725 = vmatpush3.msra.mxu0 %v15924_v37  ;;  %v6595_v55 = vld [vmem:[#allocation11 + $0x138] sm:$0xff]  ;;  %v15932_v40 = vand.u32 4294901760, %v15931_v36  ;;  %v7576_v63 = vand.u32 4294901760, %v7575_v0  ;;  %v14716_v29 = vand.u32 4294901760, %v13736_v12  ;;  %v7583_v17 = vand.u32 4294901760, %v7582_v30  ;;  %v6588_v30 = vld [vmem:[#allocation11 + $0x100] sm:$0xff] }
 0x3b9   :  { %8768 = vmatpush3.msra.mxu1 %v13400_v11  ;;  %8726 = vmatprep.subr.mxu0 %v15925_v53  ;;  %v13742_v11 = vsub.f32 %v6597_v42, %v13711_v43  ;;  %v7596_v8 = vsub.f32 %v13721_v20, %v14717_v2  ;;  %v14714_v42 = vand.u32 4294901760, %v13757_v54  ;;  %v7590_v27 = vand.u32 4294901760, %v7589_v32 }
 0x3ba   :  { %8769 = vmatprep.subr.mxu1 %v15926_v18  ;;  %8727 = vmatpush3.msra.mxu0 %v15927_v52  ;;  %v7603_v51 = vsub.f32 %v13736_v12, %v14716_v29  ;;  %v13794_v37 = vand.u32 4294901760, %v6592_v62  ;;  %v15941_v53 = vand.u32 4294901760, %v13490_v41  ;;  %v13808_v0 = vand.u32 4294901760, %v6591_v3 }
 0x3bb   :  { %8770 = vmatpush3.msra.mxu1 %v13432_v22  ;;  %8728 = vmatprep.subr.mxu0 %v15928_v59  ;;  %v13751_v22 = vand.u32 4294901760, %v6595_v55  ;;  %v14715_v47 = vand.u32 4294901760, %v13742_v11  ;;  %v7617_v35 = vsub.f32 %v13757_v54, %v14714_v42  ;;  %v6589_v59 = vld [vmem:[#allocation11 + $0x108] sm:$0xff] }
 0x3bc   :  { %8771 = vmatprep.subr.mxu1 %v13442_v61  ;;  %8729 = vmatpush3.msra.mxu0 %v15930_v45  ;;  %v6593_v61 = vld [vmem:[#allocation11 + $0x128] sm:$0xff]  ;;  %v7604_v41 = vand.u32 4294901760, %v7603_v51  ;;  %v13818_v48 = vsub.f32 %v6592_v62, %v13794_v37  ;;  %v13820_v45 = vand.u32 4294901760, %v6590_v26  ;;  %v13844_v62 = vand.u32 4294901760, %v6588_v30 }
 0x3bd   :  { %8772 = vmatpush3.msra.mxu1 %v13454_v6  ;;  %8730 = vmatprep.subr.mxu0 %v15932_v40  ;;  %v13766_v6 = vand.u32 4294901760, %v6594_v44  ;;  %v13778_v7 = vsub.f32 %v6595_v55, %v13751_v22  ;;  %v13780_v31 = vand.u32 4294901760, %v6593_v61  ;;  %v7610_v39 = vsub.f32 %v13742_v11, %v14715_v47 }
 0x3be   :  { %7468 = vmatmul.mubr.f32.vlgmr.msra.gmra.mxu1 %v15933_v13  ;;  %8731 = vmatpush3.msra.mxu0 %v15934_v28  ;;  %v7597_v55 = vand.u32 4294901760, %v7596_v8  ;;  %v7618_v28 = vand.u32 4294901760, %v7617_v35  ;;  %v14710_v32 = vand.u32 4294901760, %v13818_v48  ;;  %v13864_v51 = vsub.f32 %v6588_v30, %v13844_v62 }
 0x3bf   :  { %8732 = vmatprep.subr.mxu0 %v15935_v38  ;;  %8943 = vmatprep.subr.mxu1 %v15936_v33  ;;  %v13792_v57 = vsub.f32 %v6594_v44, %v13766_v6  ;;  %v14713_v18 = vand.u32 4294901760, %v13778_v7  ;;  %v13806_v52 = vsub.f32 %v6593_v61, %v13780_v31  ;;  %v13830_v61 = vsub.f32 %v6591_v3, %v13808_v0 }
 0x3c0   :  { %8733 = vmatpush3.msra.mxu0 %v15937_v19  ;;  %8944 = vmatpush3.msra.mxu1 %v7569_v1  ;;  %v7611_v1 = vand.u32 4294901760, %v7610_v39  ;;  %v13842_v38 = vsub.f32 %v6590_v26, %v13820_v45  ;;  %v14706_v35 = vand.u32 4294901760, %v13864_v51 }
 0x3c1   :  { %8734 = vmatprep.subr.mxu0 %v15938_v5  ;;  %8945 = vmatprep.subr.mxu1 %v15936_v33  ;;  %v14712_v44 = vand.u32 4294901760, %v13792_v57  ;;  %v7624_v36 = vsub.f32 %v13778_v7, %v14713_v18  ;;  %v14711_v40 = vand.u32 4294901760, %v13806_v52  ;;  %v14709_v8 = vand.u32 4294901760, %v13830_v61 }
 0x3c2   :  { %8735 = vmatpush3.msra.mxu0 %v15939_v4  ;;  %8946 = vmatpush3.msra.mxu1 %v7576_v63  ;;  %v7645_v4 = vsub.f32 %v13818_v48, %v14710_v32  ;;  %v7673_v30 = vsub.f32 %v13864_v51, %v14706_v35 }
 0x3c3   :  { %8736 = vmatprep.subr.mxu0 %v15940_v49  ;;  %8947 = vmatprep.subr.mxu1 %v15936_v33  ;;  %v7631_v63 = vsub.f32 %v13792_v57, %v14712_v44  ;;  %v7625_v19 = vand.u32 4294901760, %v7624_v36  ;;  %v7652_v39 = vsub.f32 %v13830_v61, %v14709_v8 }
 0x3c4   :  { %8737 = vmatpush3.msra.mxu0 %v15941_v53  ;;  %8948 = vmatpush3.msra.mxu1 %v7583_v17  ;;  %v7638_v17 = vsub.f32 %v13806_v52, %v14711_v40  ;;  %v7646_v53 = vand.u32 4294901760, %v7645_v4 }
 0x3c5   :  { %7364 = vmatmul.mubr.f32.vlgmr.msra.gmra.mxu0 %v15933_v13  ;;  %8949 = vmatprep.subr.mxu1 %v15936_v33  ;;  %v13832_v13 = vand.u32 4294901760, %v6589_v59  ;;  %v7632_v3 = vand.u32 4294901760, %v7631_v63  ;;  %v8178_v63 = vpop.f32.mrf.mxu0 }
 0x3c6   :  { %8950 = vmatpush3.msra.mxu1 %v7590_v27  ;;  %8908 = vmatprep.subr.mxu0 %v15936_v33  ;;  %v14708_v27 = vand.u32 4294901760, %v13842_v38  ;;  %v7639_v49 = vand.u32 4294901760, %v7638_v17 }
 0x3c7   :  { %8951 = vmatprep.subr.mxu1 %v15936_v33  ;;  %8909 = vmatpush3.msra.mxu0 %v13652_v10  ;;  %v13854_v5 = vsub.f32 %v6589_v59, %v13832_v13  ;;  %v7653_v59 = vand.u32 4294901760, %v7652_v39  ;;  %v8179_v17 = vpop.f32.mrf.mxu0 }
 0x3c8   :  { %8952 = vmatpush3.msra.mxu1 %v7597_v55  ;;  %8910 = vmatprep.subr.mxu0 %v15936_v33  ;;  %v7659_v55 = vsub.f32 %v13842_v38, %v14708_v27  ;;  %v8180_v4 = vadd.f32 %v8179_v17, %v8178_v63 }
 0x3c9   :  { %8953 = vmatprep.subr.mxu1 %v15936_v33  ;;  %8911 = vmatpush3.msra.mxu0 %v13660_v14  ;;  %v14707_v26 = vand.u32 4294901760, %v13854_v5 }
 0x3ca   :  { %8954 = vmatpush3.msra.mxu1 %v7604_v41  ;;  %8912 = vmatprep.subr.mxu0 %v15936_v33 }
 0x3cb   :  { %8955 = vmatprep.subr.mxu1 %v15936_v33  ;;  %8913 = vmatpush3.msra.mxu0 %v13671_v9  ;;  %v7666_v41 = vsub.f32 %v13854_v5, %v14707_v26 }
 0x3cc   :  { %8956 = vmatpush3.msra.mxu1 %v7611_v1  ;;  %8914 = vmatprep.subr.mxu0 %v15936_v33  ;;  %v7660_v1 = vand.u32 4294901760, %v7659_v55  ;;  %v15942_v55 = vld [vmem:[#allocation64_spill] sm:$0xff] }
 0x3cd   :  { %8957 = vmatprep.subr.mxu1 %v15936_v33  ;;  %8915 = vmatpush3.msra.mxu0 %v13682_v46  ;;  %v7667_v36 = vand.u32 4294901760, %v7666_v41 }
 0x3ce   :  { %8958 = vmatpush3.msra.mxu1 %v7618_v28  ;;  %8916 = vmatprep.subr.mxu0 %v15936_v33  ;;  %v7674_v28 = vand.u32 4294901760, %v7673_v30 }
 0x3cf   :  { %8959 = vmatprep.subr.mxu1 %v15936_v33  ;;  %8917 = vmatpush3.msra.mxu0 %v13694_v58 }
 0x3d0   :  { %8960 = vmatpush3.msra.mxu1 %v7625_v19  ;;  %8918 = vmatprep.subr.mxu0 %v15936_v33  ;;  %v8213_v19 = vpop.f32.mrf.mxu1 }
 0x3d1   :  { %8961 = vmatprep.subr.mxu1 %v15936_v33  ;;  %8919 = vmatpush3.msra.mxu0 %v13706_v56 }
 0x3d2   :  { %8962 = vmatpush3.msra.mxu1 %v7632_v3  ;;  %8920 = vmatprep.subr.mxu0 %v15936_v33  ;;  %v8248_v3 = vpop.f32.mrf.mxu0 }
 0x3d3   :  { %8963 = vmatprep.subr.mxu1 %v15936_v33  ;;  %8921 = vmatpush3.msra.mxu0 %v13711_v43 }
 0x3d4   :  { %8964 = vmatpush3.msra.mxu1 %v7639_v49  ;;  %8922 = vmatprep.subr.mxu0 %v15936_v33  ;;  %v8214_v49 = vpop.f32.mrf.mxu1 }
 0x3d5   :  { %8965 = vmatprep.subr.mxu1 %v15936_v33  ;;  %8923 = vmatpush3.msra.mxu0 %v13726_v24 }
 0x3d6   :  { %8966 = vmatpush3.msra.mxu1 %v7646_v53  ;;  %8924 = vmatprep.subr.mxu0 %v15936_v33  ;;  %v8283_v39 = vpop.f32.mrf.mxu1  ;;  %v8249_v53 = vpop.f32.mrf.mxu0 }
 0x3d7   :  { %8967 = vmatprep.subr.mxu1 %v15936_v33  ;;  %8925 = vmatpush3.msra.mxu0 %v13751_v22  ;;  %v8250_v30 = vadd.f32 %v8249_v53, %v8248_v3 }
 0x3d8   :  { %8968 = vmatpush3.msra.mxu1 %v7653_v59  ;;  %8926 = vmatprep.subr.mxu0 %v15936_v33  ;;  %v4918_v59 = vadd.f32 %v8180_v4, %v15942_v55  ;;  %v8318_v41 = vpop.f32.mrf.mxu0 }
 0x3d9   :  { %8969 = vmatprep.subr.mxu1 %v15936_v33  ;;  %8927 = vmatpush3.msra.mxu0 %v13766_v6 }
 0x3da   :  { %8970 = vmatpush3.msra.mxu1 %v7660_v1  ;;  %8928 = vmatprep.subr.mxu0 %v15936_v33  ;;  %v8215_v1 = vadd.f32 %v8214_v49, %v8213_v19  ;;  %v8319_v26 = vpop.f32.mrf.mxu0 }
 0x3db   :  { %8971 = vmatprep.subr.mxu1 %v15936_v33  ;;  %8929 = vmatpush3.msra.mxu0 %v13780_v31  ;;  %v8320_v40 = vadd.f32 %v8319_v26, %v8318_v41 }
 0x3dc   :  { %8972 = vmatpush3.msra.mxu1 %v7667_v36  ;;  %8930 = vmatprep.subr.mxu0 %v15936_v33  ;;  %v8284_v36 = vpop.f32.mrf.mxu1  ;;  %v8388_v8 = vpop.f32.mrf.mxu0 }
 0x3dd   :  { %8973 = vmatprep.subr.mxu1 %v15936_v33  ;;  %8931 = vmatpush3.msra.mxu0 %v13794_v37  ;;  %v8285_v32 = vadd.f32 %v8284_v36, %v8283_v39 }
 0x3de   :  { %8974 = vmatpush3.msra.mxu1 %v7674_v28  ;;  %8932 = vmatprep.subr.mxu0 %v15936_v33  ;;  %v5150_v28 = vadd.f32 %v8215_v1, %v4918_v59  ;;  %v8353_v35 = vpop.f32.mrf.mxu1  ;;  %v8389_v63 = vpop.f32.mrf.mxu0 }
 0x3df   :  { %8975 = vmatprep.mubr.msk.f32.mxu1 %vm9297_vm2, %v15936_v33  ;;  %9013 = vmatprep.subr.mxu1 %v15936_v33  ;;  %v8390_v2 = vadd.f32 %v8389_v63, %v8388_v8 }
 0x3e0   :  { %8933 = vmatpush3.msra.mxu0 %v13808_v0  ;;  %8940 = vmatprep.mubr.msk.f32.mxu0 %vm9297_vm2, %v15936_v33  ;;  %v5288_v27 = vadd.f32 %v8250_v30, %v5150_v28  ;;  %v8354_v44 = vpop.f32.mrf.mxu1 }
 0x3e1   :  { %8934 = vmatprep.subr.mxu0 %v15936_v33  ;;  %v8355_v29 = vadd.f32 %v8354_v44, %v8353_v35  ;;  %v9133_v44 = vld [vmem:[%s14099_s6] sm:$0x7] }
 0x3e2   :  { %8935 = vmatpush3.msra.mxu0 %v13820_v45  ;;  %v5396_v18 = vadd.f32 %v8285_v32, %v5288_v27  ;;  %v8423_v42 = vpop.f32.mrf.mxu1 }
 0x3e3   :  { %8936 = vmatprep.subr.mxu0 %v15936_v33 }
 0x3e4   :  { %8937 = vmatpush3.msra.mxu0 %v13832_v13  ;;  %v5564_v17 = vadd.f32 %v8320_v40, %v5396_v18  ;;  %v8424_v4 = vpop.f32.mrf.mxu1 }
 0x3e5   :  { %8938 = vmatprep.subr.mxu0 %v15936_v33  ;;  %v8425_v53 = vadd.f32 %v8424_v4, %v8423_v42 }
 0x3e6   :  { %8939 = vmatpush3.msra.mxu0 %v13844_v62  ;;  %v5668_v55 = vadd.f32 %v8355_v29, %v5564_v17  ;;  %v15943_v29 = vld [vmem:[#allocation130_spill] sm:$0xff] }
 0x3e7   :  { %8978 = vmatprep.subr.mxu0 %v15936_v33  ;;  %v15944_v40 = vsub.s32 2, %v15943_v29 }
 0x3e8   :  { %v5780_v49 = vadd.f32 %v8390_v2, %v5668_v55 }
 0x3e9   :  { %v6546_v8 = vrot.slane %v9133_v44, %v15944_v40 }
 0x3ea   :  { %v6012_v30 = vadd.f32 %v8425_v53, %v5780_v49 }
 0x3f0   :  { %v8493_v19 = vpop.f32.mrf.mxu1 }
 0x3f2   :  { %v8494_v1 = vpop.f32.mrf.mxu1 }
 0x3f3   :  { %v8495_v41 = vadd.f32 %v8494_v1, %v8493_v19 }
 0x3f8   :  { %v8458_v47 = vpop.f32.mrf.mxu0 }
 0x3fa   :  { %v8459_v3 = vpop.f32.mrf.mxu0 }
 0x3fb   :  { %v8460_v59 = vadd.f32 %v8459_v3, %v8458_v47 }
 0x3fd   :  { %v6150_v39 = vadd.f32 %v8460_v59, %v6012_v30 }
 0x3ff   :  { %v6258_v36 = vadd.f32 %v8495_v41, %v6150_v39 }
 0x412   :  { %v8563_v28 = vpop.f32.mrf.mxu1 }
 0x414   :  { %v8564_v32 = vpop.f32.mrf.mxu1 }
 0x415   :  { %v8565_v2 = vadd.f32 %v8564_v32, %v8563_v28 }
 0x41f   :  { %v8528_v26 = vpop.f32.mrf.mxu0 }
 0x421   :  { %v8529_v27 = vpop.f32.mrf.mxu0 }
 0x422   :  { %v8530_v18 = vadd.f32 %v8529_v27, %v8528_v26 }
 0x424   :  { %v6426_v42 = vadd.f32 %v8530_v18, %v6258_v36 }
 0x426   :  { %v6530_v47 = vadd.f32 %v8565_v2, %v6426_v42 }
 0x428   :  { %v6552_v35 = vadd.f32 %v6546_v8, %v6530_v47 }
 0x42a   :  { %v6555_v63 = vmax.f32 %v6552_v35, 0.0 }
 0x42c   :  { %v13923_v17 = vand.u32 4294901760, %v6555_v63 }
 0x42e   :  { %8976 = vmatmul.mubr.f32.vlgmr.msra.gmra.mxu1 %v13923_v17  ;;  %v13927_v4 = vsub.f32 %v6555_v63, %v13923_v17 }
 0x42f   :  { %9014 = vmatpush3.msra.mxu1 %v13652_v10  ;;  %9045 = vmatprep.mubr.msk.f32.mxu1 %vm9297_vm2, %v15936_v33 }
 0x430   :  { %9015 = vmatprep.subr.mxu1 %v15936_v33  ;;  %v7556_v55 = vand.u32 4294901760, %v13927_v4 }
 0x431   :  { %9016 = vmatpush3.msra.mxu1 %v13660_v14 }
 0x432   :  { %9017 = vmatprep.subr.mxu1 %v15936_v33  ;;  %v7557_v19 = vsub.f32 %v13927_v4, %v7556_v55 }
 0x433   :  { %9018 = vmatpush3.msra.mxu1 %v13671_v9 }
 0x434   :  { %9019 = vmatprep.subr.mxu1 %v15936_v33  ;;  %v7558_v3 = vand.u32 4294901760, %v7557_v19 }
 0x435   :  { %9020 = vmatpush3.msra.mxu1 %v13682_v46 }
 0x436   :  { %9021 = vmatprep.subr.mxu1 %v15936_v33  ;;  %8941 = vmatmul.mubr.f32.vlgmr.msra.gmra.mxu0 %v7558_v3 }
 0x437   :  { %8979 = vmatpush3.msra.mxu0 %v13669_v60  ;;  %9022 = vmatpush3.msra.mxu1 %v13694_v58 }
 0x438   :  { %8980 = vmatprep.subr.mxu0 %v15936_v33  ;;  %9023 = vmatprep.subr.mxu1 %v15936_v33 }
 0x439   :  { %8981 = vmatpush3.msra.mxu0 %v13680_v25  ;;  %9024 = vmatpush3.msra.mxu1 %v13706_v56  ;;  %v8133_v25 = vld [vmem:[%s14101_s8] ss:$0 sm:$0xff]  ;;  %s9298_s8 = smov [#allocation13]  }
 0x43a   :  { %v8633_v49 = vpop.f32.mrf.mxu1  ;;  %8982 = vmatprep.subr.mxu0 %v15936_v33  ;;  %9025 = vmatprep.subr.mxu1 %v15936_v33  ;;  %s8121_s24 = sshll.u32 %s9298_s8, 4  ;;  %s8122_s24 = int_to_ptr.vmem [resolvable:$true] %s8121_s24 }
 0x43b   :  { %8983 = vmatpush3.msra.mxu0 %v13692_v15  ;;  %9026 = vmatpush3.msra.mxu1 %v13711_v43  ;;  %v15945_v15 = vand.u32 4294901760, %v13721_v20  ;;  %s9254_s1 = scalar_lea.vmem %s8122_s24, 128  ;;  %p9259_p3 = scmp.lt.s32.totalorder %s8122_s24, %s8122_s24 }
 0x43c   :  { %v8634_v53 = vpop.f32.mrf.mxu1  ;;  %8984 = vmatprep.subr.mxu0 %v15936_v33  ;;  %9027 = vmatprep.subr.mxu1 %v15936_v33  ;;  %p9255_p2 = scmp.ne.s32.totalorder %s8122_s24, %s9254_s1  ;;  %p9260_p4 = scmp.lt.s32.totalorder %s9254_s1, %s9254_s1 }
 0x43d   :  { %v13951_v59 = vadd.f32 %v8634_v53, %v8633_v49  ;;  %8985 = vmatpush3.msra.mxu0 %v13704_v34  ;;  %9028 = vmatpush3.msra.mxu1 %v13726_v24 }
 0x43e   :  { %8986 = vmatprep.subr.mxu0 %v15936_v33  ;;  %9029 = vmatprep.subr.mxu1 %v15936_v33  ;;  %p9261_p5 = por %p9260_p4, %p9259_p3 }
 0x43f   :  { %8987 = vmatpush3.msra.mxu0 %v13721_v20  ;;  %9030 = vmatpush3.msra.mxu1 %v13751_v22 }
 0x440   :  { %8988 = vmatprep.subr.mxu0 %v15936_v33  ;;  %9031 = vmatprep.subr.mxu1 %v15936_v33  ;;  %p9262_p6 = pnand %p9261_p5, %p9255_p2 }
 0x441   :  { %8989 = vmatpush3.msra.mxu0 %v13736_v12  ;;  %9032 = vmatpush3.msra.mxu1 %v13766_v6 }
 0x442   :  { %8990 = vmatprep.subr.mxu0 %v15936_v33  ;;  %9033 = vmatprep.subr.mxu1 %v15936_v33 }
 0x443   :  { %8991 = vmatpush3.msra.mxu0 %v13742_v11  ;;  %9034 = vmatpush3.msra.mxu1 %v13780_v31 }
 0x444   :  { %8992 = vmatprep.subr.mxu0 %v15936_v33  ;;  %9035 = vmatprep.subr.mxu1 %v15936_v33 }
 0x445   :  { %8993 = vmatpush3.msra.mxu0 %v13757_v54  ;;  %9036 = vmatpush3.msra.mxu1 %v13794_v37 }
 0x446   :  { %8994 = vmatprep.subr.mxu0 %v15936_v33  ;;  %9037 = vmatprep.subr.mxu1 %v15936_v33 }
 0x447   :  { %8995 = vmatpush3.msra.mxu0 %v13778_v7  ;;  %9038 = vmatpush3.msra.mxu1 %v13808_v0 }
 0x448   :  { %8996 = vmatprep.subr.mxu0 %v15936_v33  ;;  %9039 = vmatprep.subr.mxu1 %v15936_v33 }
 0x449   :  { %8997 = vmatpush3.msra.mxu0 %v13792_v57  ;;  %9040 = vmatpush3.msra.mxu1 %v13820_v45 }
 0x44a   :  { %8998 = vmatprep.subr.mxu0 %v15936_v33  ;;  %9041 = vmatprep.subr.mxu1 %v15936_v33 }
 0x44b   :  { %8999 = vmatpush3.msra.mxu0 %v13806_v52  ;;  %9042 = vmatpush3.msra.mxu1 %v13832_v13 }
 0x44c   :  { %9000 = vmatprep.subr.mxu0 %v15936_v33  ;;  %9043 = vmatprep.subr.mxu1 %v15936_v33 }
 0x44d   :  { %9001 = vmatpush3.msra.mxu0 %v13818_v48  ;;  %9044 = vmatpush3.msra.mxu1 %v13844_v62 }
 0x44e   :  { %9002 = vmatprep.subr.mxu0 %v15936_v33  ;;  %9046 = vmatmul.mubr.f32.vlgmr.msra.gmra.mxu1 %v7556_v55 }
 0x44f   :  { %9083 = vmatprep.subr.mxu1 %v15936_v33  ;;  %9003 = vmatpush3.msra.mxu0 %v13830_v61 }
 0x450   :  { %9084 = vmatpush3.msra.mxu1 %v13652_v10  ;;  %9004 = vmatprep.subr.mxu0 %v15936_v33  ;;  %v8598_v10 = vpop.f32.mrf.mxu0 }
 0x451   :  { %9085 = vmatprep.subr.mxu1 %v15936_v33  ;;  %9005 = vmatpush3.msra.mxu0 %v13842_v38 }
 0x452   :  { %9086 = vmatpush3.msra.mxu1 %v13660_v14  ;;  %9006 = vmatprep.subr.mxu0 %v15936_v33  ;;  %v8599_v14 = vpop.f32.mrf.mxu0 }
 0x453   :  { %9087 = vmatprep.subr.mxu1 %v15936_v33  ;;  %9007 = vmatpush3.msra.mxu0 %v13854_v5 }
 0x454   :  { %9088 = vmatpush3.msra.mxu1 %v13671_v9  ;;  %9008 = vmatprep.subr.mxu0 %v15936_v33 }
 0x455   :  { %9089 = vmatprep.subr.mxu1 %v15936_v33  ;;  %9009 = vmatpush3.msra.mxu0 %v13864_v51 }
 0x456   :  { %9010 = vmatprep.mubr.msk.f32.mxu0 %vm9297_vm2, %v15936_v33  ;;  %9090 = vmatpush3.msra.mxu1 %v13682_v46  ;;  %v8600_v46 = vadd.f32 %v8599_v14, %v8598_v10 }
 0x457   :  { %9011 = vmatmul.mubr.f32.vlgmr.msra.gmra.mxu0 %v13927_v4  ;;  %9048 = vmatprep.subr.mxu0 %v15936_v33 }
 0x458   :  { %9091 = vmatprep.subr.mxu1 %v15936_v33  ;;  %9049 = vmatpush3.msra.mxu0 %v7567_v21 }
 0x459   :  { %9092 = vmatpush3.msra.mxu1 %v13694_v58  ;;  %9050 = vmatprep.subr.mxu0 %v15936_v33  ;;  %v6720_v58 = vadd.f32 %v8600_v46, %v8133_v25 }
 0x45a   :  { %9093 = vmatprep.subr.mxu1 %v15936_v33  ;;  %9051 = vmatpush3.msra.mxu0 %v7574_v16  ;;  %v15946_v16 = vand.u32 4294901760, %v13736_v12  ;;  %v15949_v12 = vand.u32 4294901760, %v13778_v7  ;;  %v15953_v7 = vand.u32 4294901760, %v13830_v61 }
 0x45b   :  { %9094 = vmatpush3.msra.mxu1 %v13706_v56  ;;  %9052 = vmatprep.subr.mxu0 %v15936_v33  ;;  %v15947_v56 = vand.u32 4294901760, %v13742_v11  ;;  %v15950_v11 = vand.u32 4294901760, %v13792_v57  ;;  %v15955_v57 = vand.u32 4294901760, %v13854_v5 }
 0x45c   :  { %v8703_v9 = vpop.f32.mrf.mxu1  ;;  %9095 = vmatprep.subr.mxu1 %v15936_v33  ;;  %9053 = vmatpush3.msra.mxu0 %v7581_v50  ;;  %v6952_v50 = vadd.f32 %v13951_v59, %v6720_v58 }
 0x45d   :  { %9096 = vmatpush3.msra.mxu1 %v13711_v43  ;;  %9054 = vmatprep.subr.mxu0 %v15936_v33 }
 0x45e   :  { %v8704_v60 = vpop.f32.mrf.mxu1  ;;  %9097 = vmatprep.subr.mxu1 %v15936_v33  ;;  %9055 = vmatpush3.msra.mxu0 %v7588_v23 }
 0x45f   :  { %v8705_v21 = vadd.f32 %v8704_v60, %v8703_v9  ;;  %9098 = vmatpush3.msra.mxu1 %v13726_v24  ;;  %9056 = vmatprep.subr.mxu0 %v15936_v33  ;;  %v15948_v24 = vand.u32 4294901760, %v13757_v54  ;;  %v15951_v54 = vand.u32 4294901760, %v13806_v52 }
 0x460   :  { %9099 = vmatprep.subr.mxu1 %v15936_v33  ;;  %9057 = vmatpush3.msra.mxu0 %v15945_v15 }
 0x461   :  { %9100 = vmatpush3.msra.mxu1 %v13751_v22  ;;  %9058 = vmatprep.subr.mxu0 %v15936_v33 }
 0x462   :  { %9101 = vmatprep.subr.mxu1 %v15936_v33  ;;  %9059 = vmatpush3.msra.mxu0 %v15946_v16 }
 0x463   :  { %9102 = vmatpush3.msra.mxu1 %v13766_v6  ;;  %9060 = vmatprep.subr.mxu0 %v15936_v33  ;;  %v15952_v6 = vand.u32 4294901760, %v13818_v48 }
 0x464   :  { %v8668_v34 = vpop.f32.mrf.mxu0  ;;  %9103 = vmatprep.subr.mxu1 %v15936_v33  ;;  %9061 = vmatpush3.msra.mxu0 %v15947_v56 }
 0x465   :  { %9104 = vmatpush3.msra.mxu1 %v13780_v31  ;;  %9062 = vmatprep.subr.mxu0 %v15936_v33  ;;  %v15954_v31 = vand.u32 4294901760, %v13842_v38 }
 0x466   :  { %v8669_v43 = vpop.f32.mrf.mxu0  ;;  %9105 = vmatprep.subr.mxu1 %v15936_v33  ;;  %9063 = vmatpush3.msra.mxu0 %v15948_v24 }
 0x467   :  { %v8670_v20 = vadd.f32 %v8669_v43, %v8668_v34  ;;  %9106 = vmatpush3.msra.mxu1 %v13794_v37  ;;  %9064 = vmatprep.subr.mxu0 %v15936_v33  ;;  %v15956_v37 = vand.u32 4294901760, %v13864_v51 }
 0x468   :  { %9107 = vmatprep.subr.mxu1 %v15936_v33  ;;  %9065 = vmatpush3.msra.mxu0 %v15949_v12 }
 0x469   :  { %v7090_v23 = vadd.f32 %v8670_v20, %v6952_v50  ;;  %9108 = vmatpush3.msra.mxu1 %v13808_v0  ;;  %9066 = vmatprep.subr.mxu0 %v15936_v33 }
 0x46a   :  { %9109 = vmatprep.subr.mxu1 %v15936_v33  ;;  %9067 = vmatpush3.msra.mxu0 %v15950_v11 }
 0x46b   :  { %v7198_v22 = vadd.f32 %v8705_v21, %v7090_v23  ;;  %9110 = vmatpush3.msra.mxu1 %v13820_v45  ;;  %9068 = vmatprep.subr.mxu0 %v15936_v33 }
 0x46c   :  { %9111 = vmatprep.subr.mxu1 %v15936_v33  ;;  %9069 = vmatpush3.msra.mxu0 %v15951_v54 }
 0x46d   :  { %9112 = vmatpush3.msra.mxu1 %v13832_v13  ;;  %9070 = vmatprep.subr.mxu0 %v15936_v33 }
 0x46e   :  { %9113 = vmatprep.subr.mxu1 %v15936_v33  ;;  %9071 = vmatpush3.msra.mxu0 %v15952_v6 }
 0x46f   :  { %9114 = vmatpush3.msra.mxu1 %v13844_v62  ;;  %9115 = vmatprep.mubr.msk.f32.mxu1 %vm9297_vm2, %v15936_v33 }
 0x470   :  { %9072 = vmatprep.subr.mxu0 %v15936_v33  ;;  %9116 = vmatmul.mubr.f32.vlgmr.msra.gmra.mxu1 %v13923_v17 }
 0x471   :  { %9073 = vmatpush3.msra.mxu0 %v15953_v7  ;;  %9080 = vmatprep.mubr.msk.f32.mxu0 %vm9297_vm2, %v15936_v33 }
 0x472   :  { %9074 = vmatprep.subr.mxu0 %v15936_v33 }
 0x473   :  { %9075 = vmatpush3.msra.mxu0 %v15954_v31 }
 0x474   :  { %9076 = vmatprep.subr.mxu0 %v15936_v33 }
 0x475   :  { %9077 = vmatpush3.msra.mxu0 %v15955_v57 }
 0x476   :  { %9078 = vmatprep.subr.mxu0 %v15936_v33 }
 0x477   :  { %9079 = vmatpush3.msra.mxu0 %v15956_v37 }
 0x478   :  { %9081 = vmatmul.mubr.f32.vlgmr.msra.gmra.mxu0 %v13923_v17 }
 0x47e   :  { %v8773_v52 = vpop.f32.mrf.mxu1 }
 0x480   :  { %v8774_v0 = vpop.f32.mrf.mxu1 }
 0x481   :  { %v8775_v48 = vadd.f32 %v8774_v0, %v8773_v52 }
 0x485   :  { %v8738_v45 = vpop.f32.mrf.mxu0 }
 0x487   :  { %v8739_v61 = vpop.f32.mrf.mxu0 }
 0x488   :  { %v8740_v13 = vadd.f32 %v8739_v61, %v8738_v45 }
 0x48a   :  { %v7366_v38 = vadd.f32 %v8740_v13, %v7198_v22 }
 0x48c   :  { %v7470_v62 = vadd.f32 %v8775_v48, %v7366_v38 }
 0x4ee   :  { %v7711_v1 = vpop.f32.mrf.mxu1 }
 0x4f0   :  { %v8977_v30 = vpop.f32.mrf.mxu1 }
 0x4f6   :  { %v7560_v28 = vpop.f32.mrf.mxu0 }
 0x4f7   :  { %v7561_v5 = vadd.f32 %v7560_v28, %v7470_v62 }
 0x4f8   :  { %v8942_v39 = vpop.f32.mrf.mxu0 }
 0x4f9   :  { %v7712_v26 = vadd.f32 %v7711_v1, %v7561_v5 }
 0x50e   :  { %v7904_v33 = vpop.f32.mrf.mxu1 }
 0x510   :  { %v9047_v41 = vpop.f32.mrf.mxu1 }
 0x517   :  { %v7815_v51 = vpop.f32.mrf.mxu0 }
 0x518   :  { %v7816_v18 = vadd.f32 %v7815_v51, %v7712_v26 }
 0x519   :  { %v9012_v32 = vpop.f32.mrf.mxu0 }
 0x51a   :  { %v7905_v44 = vadd.f32 %v7904_v33, %v7816_v18 }
 0x530   :  { %v8110_v27 = vpop.f32.mrf.mxu1 }
 0x532   :  { %v9117_v36 = vpop.f32.mrf.mxu1 }
 0x538   :  { %v8023_v29 = vpop.f32.mrf.mxu0 }
 0x539   :  { %v8024_v40 = vadd.f32 %v8023_v29, %v7905_v44 }
 0x53a   :  { %v9082_v8 = vpop.f32.mrf.mxu0 }
 0x53b   :  { %v8111_v2 = vadd.f32 %v8110_v27, %v8024_v40 }
 0x53d   :  { %8114 = vst [vmem:[#allocation13] sm:$0xff] %v8111_v2 }
 0x53e   :  { %9265 = shalt.err (!%p9262_p6)
}
 0x53f   :  { %8124 = dma.vmem_to_hbm [thread:$0]  %s8122_s24, 128, %s14102_s9, [#allocation4]  }
 0x540   :  { %9282 = dma.done.wait [#allocation4], 128  }
 0x541   :  { %9283 = vsyncadd [#allocation4], 4294967168 }
 0x542   :  { %8128 = vsyncpa [#allocation3], 1 }
 0x543   :  { %8129 = vsyncpa [#allocation6], 1 }
 0x544   :  { %8130 = vsyncpa [#allocation9], 1 }
 0x545   :  { %8131 = vsyncpa [#allocation12], 1 }
 0x546   :  { %8132 = vsyncpa [#allocation4], 1 }

</bundles_post_ra>
